<compile_context>
chip_gen: v6e
topology: v6e:2x2x1
jax: 0.10.0
libtpu: 0.0.40
codegen_flags: <defaults>
</compile_context>

<pallas_src>
import jax
import jax.numpy as jnp
from jax import lax
from jax.experimental import pallas as pl
from jax.experimental.pallas import tpu as pltpu


def _round_up(a, b):
    return (a + b - 1) // b * b


def _cdiv(a, b):
    return (a + b - 1) // b


def init_params(key, in_planes, planes, kernel_size):
    ks = jax.random.split(key, 6)
    return dict(
        conv_w=0.1 * jax.random.normal(
            ks[0], (planes, in_planes, kernel_size, kernel_size), jnp.float32),
        conv_b=0.1 * jax.random.normal(ks[1], (planes,), jnp.float32),
        bn_w=1.0 + 0.1 * jax.random.normal(ks[2], (in_planes,), jnp.float32),
        bn_b=0.1 * jax.random.normal(ks[3], (in_planes,), jnp.float32),
        bnsc_w=1.0 + 0.1 * jax.random.normal(ks[4], (planes,), jnp.float32),
        bnsc_b=0.1 * jax.random.normal(ks[5], (planes,), jnp.float32),
    )


def srconv_forward(x_nchw, params, *, in_planes, planes, kernel_size=3,
                   stride=1, eps=1e-5):
    N, C, H, W = x_nchw.shape
    assert C == in_planes
    assert stride == 1, "demo covers the stride==1 path of SRConv"
    # TODO(synk): strided SRConv (shortcut AvgPool2d with divisor_override=1) not implemented.
    K = kernel_size
    pad = (K - 1) // 2
    x = jnp.transpose(x_nchw, (0, 2, 3, 1)).astype(jnp.float32)   # NHWC

    # --- BatchNorm2d(in_planes), training-mode batch stats, folded to affine ---
    mean = jnp.mean(x, axis=(0, 1, 2))
    var = jnp.var(x, axis=(0, 1, 2))                              # biased, as torch
    bn_scale = params["bn_w"] / jnp.sqrt(var + eps)
    bn_shift = params["bn_b"] - mean * bn_scale
    x_bn = x * bn_scale + bn_shift

    # --- aligned / padded sizes ---
    ROW_ALIGN = 16                                    # bf16 sublane tile = 16 rows
    CIN_PAD = _round_up(max(C, 8), 8)                 # contraction dim (128 for real nets)
    COUT_PAD = _round_up(max(planes, 128), 128)       # lane-dense output channels
    Hp, Wp = H + 2 * pad, W + 2 * pad

    # Flattened padded-spatial row space: row p = n*Hp*Wp + i*Wp + j.  The conv is
    # K*K accumulated matmuls over row windows shifted by (kh-pad)*Wp + (kw-pad);
    # border rows produce garbage and are sliced away afterwards.
    P_out = N * Hp * Wp
    TARGET_ROWS = 1024                                # big tiles amortize step cost
    n_tiles = max(1, _cdiv(P_out, TARGET_ROWS))
    TP = _round_up(_cdiv(P_out, n_tiles), ROW_ALIGN)
    P_pad = n_tiles * TP
    GUARD = _round_up(pad * (Wp + 1), ROW_ALIGN)      # covers max |row shift|
    P_total = P_pad + 2 * GUARD
    WIN = TP + 2 * GUARD                              # per-tile activation window

    # --- activation: BN'd, spatially zero-padded, channel-padded, bf16, flat ---
    x_sp = jnp.pad(x_bn, ((0, 0), (pad, pad), (pad, pad), (0, CIN_PAD - C)))
    x_rows = x_sp.astype(jnp.bfloat16).reshape(P_out, CIN_PAD)
    x_rows = jnp.pad(x_rows, ((GUARD, GUARD + P_pad - P_out), (0, 0)))  # (P_total, CIN_PAD)

    # --- conv weight as K*K (Cin, Cout) taps (bf16) + bias row (f32) ---
    w_taps = jnp.transpose(params["conv_w"], (2, 3, 1, 0)).reshape(K * K, C, planes)
    w9 = jnp.zeros((K * K, CIN_PAD, COUT_PAD), jnp.float32)
    w9 = w9.at[:, :C, :planes].set(w_taps).astype(jnp.bfloat16)
    b_row = jnp.zeros((1, COUT_PAD), jnp.float32).at[0, :planes].set(params["conv_b"])

    # --- shortcut branch folded into a channel-mixing affine of the BN'd activation ---
    # torch shortcut (stride==1): channel zero-pad (in<out) or grouped channel-sum
    # (in>out), followed by BatchNorm2d(planes).  Both are linear in x, so:
    #   res_bn = x_bn @ Rmix + res_shift
    # with Rmix obtained by inverting the first BN affine (assumes bn weight != 0,
    # which matches torch's init of 1).  Batch stats of the folded tensor are
    # computed here in plain JAX (cheap reductions).
    ci = jnp.arange(C)
    co = ci if in_planes <= planes else ci % planes
    Mmat = jnp.zeros((C, planes), jnp.float32).at[ci, co].set(1.0)   # channel fold map
    res_raw = jnp.einsum('nhwc,cp->nhwp', x, Mmat)
    rmean = jnp.mean(res_raw, axis=(0, 1, 2))
    rvar = jnp.var(res_raw, axis=(0, 1, 2))
    inv = params["bnsc_w"] / jnp.sqrt(rvar + eps)
    Rmix = Mmat * (inv[None, :] / bn_scale[:, None])
    res_shift = params["bnsc_b"] - rmean * inv - bn_shift @ Rmix
    r_mat = jnp.zeros((CIN_PAD, COUT_PAD), jnp.float32)
    r_mat = r_mat.at[:C, :planes].set(Rmix).astype(jnp.bfloat16)
    rshift_row = jnp.zeros((1, COUT_PAD), jnp.float32).at[0, :planes].set(res_shift)

    # per-tap offsets inside the per-tile window (all static Python ints >= 0)
    win_offsets = tuple(GUARD + (kh - pad) * Wp + (kw - pad)
                        for kh in range(K) for kw in range(K))

    def kernel(x_ref, w_ref, b_ref, rmat_ref, rshift_ref, out_ref):
        base = pl.multiple_of(pl.program_id(0) * TP, ROW_ALIGN)
        # one aligned dynamic window load; taps are static shifted slices of it
        x_win = x_ref[pl.ds(base, WIN), :]                       # (WIN, CIN_PAD) bf16
        acc = jnp.zeros((TP, COUT_PAD), jnp.float32)
        for k, off in enumerate(win_offsets):                    # unrolled K*K taps
            acc = acc + jnp.dot(x_win[off:off + TP, :], w_ref[k],
                                preferred_element_type=jnp.float32)
        out = jnp.maximum(acc + b_ref[...], 0.0)                 # conv bias + ReLU
        # shortcut: folded bnsc affine as one extra matmul on the center-tap rows
        res = jnp.dot(x_win[GUARD:GUARD + TP, :], rmat_ref[...],
                      preferred_element_type=jnp.float32) + rshift_ref[...]
        out_ref[...] = (out + res).astype(out_ref.dtype)

    out_rows = pl.pallas_call(
        kernel,
        out_shape=jax.ShapeDtypeStruct((P_pad, COUT_PAD), jnp.float32),
        grid=(n_tiles,),
        in_specs=[
            pl.BlockSpec((P_total, CIN_PAD), lambda t: (0, 0)),        # whole flat act
            pl.BlockSpec((K * K, CIN_PAD, COUT_PAD), lambda t: (0, 0, 0)),
            pl.BlockSpec((1, COUT_PAD), lambda t: (0, 0)),
            pl.BlockSpec((CIN_PAD, COUT_PAD), lambda t: (0, 0)),
            pl.BlockSpec((1, COUT_PAD), lambda t: (0, 0)),
        ],
        out_specs=pl.BlockSpec((TP, COUT_PAD), lambda t: (t, 0)),
        compiler_params=pltpu.CompilerParams(
            dimension_semantics=("parallel",),
            vmem_limit_bytes=32 * 1024 * 1024,                         # ample, v7x-safe
        ),
    )(x_rows, w9, b_row, r_mat, rshift_row)

    out = out_rows[:P_out].reshape(N, Hp, Wp, COUT_PAD)
    out = out[:, pad:pad + H, pad:pad + W, :planes]                    # drop borders/pad chans
    return jnp.transpose(out, (0, 3, 1, 2))                            # back to NCHW


def srconv_reference(x_nchw, params, *, in_planes, planes, kernel_size=3,
                     stride=1, eps=1e-5):
    """Pure-JAX f32 reference mirroring the PyTorch forward (stride==1, in<=planes)."""
    x = x_nchw.astype(jnp.float32)
    mean = jnp.mean(x, axis=(0, 2, 3), keepdims=True)
    var = jnp.var(x, axis=(0, 2, 3), keepdims=True)
    xb = ((x - mean) / jnp.sqrt(var + eps)
          * params["bn_w"].reshape(1, -1, 1, 1) + params["bn_b"].reshape(1, -1, 1, 1))
    pad = (kernel_size - 1) // 2
    conv = lax.conv_general_dilated(
        xb, params["conv_w"], window_strides=(stride, stride),
        padding=[(pad, pad), (pad, pad)],
        dimension_numbers=("NCHW", "OIHW", "NCHW"))
    conv = conv + params["conv_b"].reshape(1, -1, 1, 1)
    out = jnp.maximum(conv, 0.0)
    res = x
    if in_planes < planes:
        res = jnp.pad(res, ((0, 0), (0, planes - in_planes), (0, 0), (0, 0)))
    rmean = jnp.mean(res, axis=(0, 2, 3), keepdims=True)
    rvar = jnp.var(res, axis=(0, 2, 3), keepdims=True)
    res = ((res - rmean) / jnp.sqrt(rvar + eps)
           * params["bnsc_w"].reshape(1, -1, 1, 1)
           + params["bnsc_b"].reshape(1, -1, 1, 1))
    return out + res


if __name__ == "__main__":
    # TODO(synk): dero_network's pool stages, adaptive_avg_pool2d and Dropout+Linear
    # classifier are standard XLA ops and are not part of this fused SRConv kernel.
    in_planes, planes, K = 4, 8, 3
    key = jax.random.PRNGKey(0)
    kx, kp = jax.random.split(key)
    x = jax.random.normal(kx, (2, in_planes, 16, 16), jnp.float32)   # NCHW like PyTorch
    params = init_params(kp, in_planes, planes, K)

    out = srconv_forward(x, params, in_planes=in_planes, planes=planes,
                         kernel_size=K, stride=1)
    out = jax.block_until_ready(out)

    ref = srconv_reference(x, params, in_planes=in_planes, planes=planes,
                           kernel_size=K, stride=1)
    assert out.shape == (2, planes, 16, 16)
    max_err = float(jnp.max(jnp.abs(out - ref)))
    # Conv AND folded shortcut both go through bf16 MXU inputs with f32
    # accumulation -> compare at bf16-path tolerance.
    assert jnp.allclose(out, ref, rtol=2e-2, atol=3e-2), max_err
    print("KERNEL_OK")
</pallas_src>

<mosaic_0001>
module attributes {stable_mosaic.version = 11 : i64} {
  func.func @kernel(%arg0: i32, %arg1: memref<720x8xbf16, #tpu.memory_space<vmem>>, %arg2: memref<9x8x128xbf16, #tpu.memory_space<vmem>>, %arg3: memref<1x128xf32, #tpu.memory_space<vmem>>, %arg4: memref<8x128xbf16, #tpu.memory_space<vmem>>, %arg5: memref<1x128xf32, #tpu.memory_space<vmem>>, %arg6: memref<656x128xf32, #tpu.memory_space<vmem>>) attributes {dimension_semantics = [#tpu.dimension_semantics<parallel>], iteration_bounds = array<i64: 1>, scalar_prefetch = 0 : i64, scratch_operands = 0 : i64, tpu.core_type = #tpu.core_type<tc>, window_params = [{pipeline_mode = #tpu.pipeline_mode<synchronous>, transform_indices = @transform_0, window_bounds = array<i64: 720, 8>}, {pipeline_mode = #tpu.pipeline_mode<synchronous>, transform_indices = @transform_1, window_bounds = array<i64: 9, 8, 128>}, {pipeline_mode = #tpu.pipeline_mode<synchronous>, transform_indices = @transform_2, window_bounds = array<i64: 1, 128>}, {pipeline_mode = #tpu.pipeline_mode<synchronous>, transform_indices = @transform_3, window_bounds = array<i64: 8, 128>}, {pipeline_mode = #tpu.pipeline_mode<synchronous>, transform_indices = @transform_4, window_bounds = array<i64: 1, 128>}, {transform_indices = @transform_5, window_bounds = array<i64: 656, 128>}]} {
    %c656_i32 = arith.constant 656 : i32
    %0 = arith.muli %arg0, %c656_i32 : i32
    %1 = tpu.assume_multiple %0, 16 : i32
    %2 = arith.index_cast %1 : i32 to index
    %c0 = arith.constant 0 : index
    %3 = vector.load %arg1[%2, %c0] : memref<720x8xbf16, #tpu.memory_space<vmem>>, vector<720x8xbf16>
    %cst = arith.constant 0.000000e+00 : f32
    %4 = vector.broadcast %cst : f32 to vector<656x128xf32>
    %5 = vector.extract_strided_slice %3 {offsets = [13, 0], sizes = [656, 8], strides = [1, 1]} : vector<720x8xbf16> to vector<656x8xbf16>
    %c0_0 = arith.constant 0 : index
    %c0_1 = arith.constant 0 : index
    %c0_2 = arith.constant 0 : index
    %6 = vector.load %arg2[%c0_0, %c0_1, %c0_2] : memref<9x8x128xbf16, #tpu.memory_space<vmem>>, vector<1x8x128xbf16>
    %7 = vector.shape_cast %6 : vector<1x8x128xbf16> to vector<8x128xbf16>
    %cst_3 = arith.constant dense<0.000000e+00> : vector<656x128xf32>
    %8 = tpu.matmul %5, %7, %cst_3 {dimension_numbers = #tpu.dot_dimension_numbers<[1], [0], [0], [1], [0, 0, 1, 1], [], []>} : vector<656x8xbf16>, vector<8x128xbf16>, vector<656x128xf32> -> vector<656x128xf32>
    %9 = arith.addf %4, %8 : vector<656x128xf32>
    %10 = vector.extract_strided_slice %3 {offsets = [14, 0], sizes = [656, 8], strides = [1, 1]} : vector<720x8xbf16> to vector<656x8xbf16>
    %c1 = arith.constant 1 : index
    %c0_4 = arith.constant 0 : index
    %c0_5 = arith.constant 0 : index
    %11 = vector.load %arg2[%c1, %c0_4, %c0_5] : memref<9x8x128xbf16, #tpu.memory_space<vmem>>, vector<1x8x128xbf16>
    %12 = vector.shape_cast %11 : vector<1x8x128xbf16> to vector<8x128xbf16>
    %cst_6 = arith.constant dense<0.000000e+00> : vector<656x128xf32>
    %13 = tpu.matmul %10, %12, %cst_6 {dimension_numbers = #tpu.dot_dimension_numbers<[1], [0], [0], [1], [0, 0, 1, 1], [], []>} : vector<656x8xbf16>, vector<8x128xbf16>, vector<656x128xf32> -> vector<656x128xf32>
    %14 = arith.addf %9, %13 : vector<656x128xf32>
    %15 = vector.extract_strided_slice %3 {offsets = [15, 0], sizes = [656, 8], strides = [1, 1]} : vector<720x8xbf16> to vector<656x8xbf16>
    %c2 = arith.constant 2 : index
    %c0_7 = arith.constant 0 : index
    %c0_8 = arith.constant 0 : index
    %16 = vector.load %arg2[%c2, %c0_7, %c0_8] : memref<9x8x128xbf16, #tpu.memory_space<vmem>>, vector<1x8x128xbf16>
    %17 = vector.shape_cast %16 : vector<1x8x128xbf16> to vector<8x128xbf16>
    %cst_9 = arith.constant dense<0.000000e+00> : vector<656x128xf32>
    %18 = tpu.matmul %15, %17, %cst_9 {dimension_numbers = #tpu.dot_dimension_numbers<[1], [0], [0], [1], [0, 0, 1, 1], [], []>} : vector<656x8xbf16>, vector<8x128xbf16>, vector<656x128xf32> -> vector<656x128xf32>
    %19 = arith.addf %14, %18 : vector<656x128xf32>
    %20 = vector.extract_strided_slice %3 {offsets = [31, 0], sizes = [656, 8], strides = [1, 1]} : vector<720x8xbf16> to vector<656x8xbf16>
    %c3 = arith.constant 3 : index
    %c0_10 = arith.constant 0 : index
    %c0_11 = arith.constant 0 : index
    %21 = vector.load %arg2[%c3, %c0_10, %c0_11] : memref<9x8x128xbf16, #tpu.memory_space<vmem>>, vector<1x8x128xbf16>
    %22 = vector.shape_cast %21 : vector<1x8x128xbf16> to vector<8x128xbf16>
    %cst_12 = arith.constant dense<0.000000e+00> : vector<656x128xf32>
    %23 = tpu.matmul %20, %22, %cst_12 {dimension_numbers = #tpu.dot_dimension_numbers<[1], [0], [0], [1], [0, 0, 1, 1], [], []>} : vector<656x8xbf16>, vector<8x128xbf16>, vector<656x128xf32> -> vector<656x128xf32>
    %24 = arith.addf %19, %23 : vector<656x128xf32>
    %25 = vector.extract_strided_slice %3 {offsets = [32, 0], sizes = [656, 8], strides = [1, 1]} : vector<720x8xbf16> to vector<656x8xbf16>
    %c4 = arith.constant 4 : index
    %c0_13 = arith.constant 0 : index
    %c0_14 = arith.constant 0 : index
    %26 = vector.load %arg2[%c4, %c0_13, %c0_14] : memref<9x8x128xbf16, #tpu.memory_space<vmem>>, vector<1x8x128xbf16>
    %27 = vector.shape_cast %26 : vector<1x8x128xbf16> to vector<8x128xbf16>
    %cst_15 = arith.constant dense<0.000000e+00> : vector<656x128xf32>
    %28 = tpu.matmul %25, %27, %cst_15 {dimension_numbers = #tpu.dot_dimension_numbers<[1], [0], [0], [1], [0, 0, 1, 1], [], []>} : vector<656x8xbf16>, vector<8x128xbf16>, vector<656x128xf32> -> vector<656x128xf32>
    %29 = arith.addf %24, %28 : vector<656x128xf32>
    %30 = vector.extract_strided_slice %3 {offsets = [33, 0], sizes = [656, 8], strides = [1, 1]} : vector<720x8xbf16> to vector<656x8xbf16>
    %c5 = arith.constant 5 : index
    %c0_16 = arith.constant 0 : index
    %c0_17 = arith.constant 0 : index
    %31 = vector.load %arg2[%c5, %c0_16, %c0_17] : memref<9x8x128xbf16, #tpu.memory_space<vmem>>, vector<1x8x128xbf16>
    %32 = vector.shape_cast %31 : vector<1x8x128xbf16> to vector<8x128xbf16>
    %cst_18 = arith.constant dense<0.000000e+00> : vector<656x128xf32>
    %33 = tpu.matmul %30, %32, %cst_18 {dimension_numbers = #tpu.dot_dimension_numbers<[1], [0], [0], [1], [0, 0, 1, 1], [], []>} : vector<656x8xbf16>, vector<8x128xbf16>, vector<656x128xf32> -> vector<656x128xf32>
    %34 = arith.addf %29, %33 : vector<656x128xf32>
    %35 = vector.extract_strided_slice %3 {offsets = [49, 0], sizes = [656, 8], strides = [1, 1]} : vector<720x8xbf16> to vector<656x8xbf16>
    %c6 = arith.constant 6 : index
    %c0_19 = arith.constant 0 : index
    %c0_20 = arith.constant 0 : index
    %36 = vector.load %arg2[%c6, %c0_19, %c0_20] : memref<9x8x128xbf16, #tpu.memory_space<vmem>>, vector<1x8x128xbf16>
    %37 = vector.shape_cast %36 : vector<1x8x128xbf16> to vector<8x128xbf16>
    %cst_21 = arith.constant dense<0.000000e+00> : vector<656x128xf32>
    %38 = tpu.matmul %35, %37, %cst_21 {dimension_numbers = #tpu.dot_dimension_numbers<[1], [0], [0], [1], [0, 0, 1, 1], [], []>} : vector<656x8xbf16>, vector<8x128xbf16>, vector<656x128xf32> -> vector<656x128xf32>
    %39 = arith.addf %34, %38 : vector<656x128xf32>
    %40 = vector.extract_strided_slice %3 {offsets = [50, 0], sizes = [656, 8], strides = [1, 1]} : vector<720x8xbf16> to vector<656x8xbf16>
    %c7 = arith.constant 7 : index
    %c0_22 = arith.constant 0 : index
    %c0_23 = arith.constant 0 : index
    %41 = vector.load %arg2[%c7, %c0_22, %c0_23] : memref<9x8x128xbf16, #tpu.memory_space<vmem>>, vector<1x8x128xbf16>
    %42 = vector.shape_cast %41 : vector<1x8x128xbf16> to vector<8x128xbf16>
    %cst_24 = arith.constant dense<0.000000e+00> : vector<656x128xf32>
    %43 = tpu.matmul %40, %42, %cst_24 {dimension_numbers = #tpu.dot_dimension_numbers<[1], [0], [0], [1], [0, 0, 1, 1], [], []>} : vector<656x8xbf16>, vector<8x128xbf16>, vector<656x128xf32> -> vector<656x128xf32>
    %44 = arith.addf %39, %43 : vector<656x128xf32>
    %45 = vector.extract_strided_slice %3 {offsets = [51, 0], sizes = [656, 8], strides = [1, 1]} : vector<720x8xbf16> to vector<656x8xbf16>
    %c8 = arith.constant 8 : index
    %c0_25 = arith.constant 0 : index
    %c0_26 = arith.constant 0 : index
    %46 = vector.load %arg2[%c8, %c0_25, %c0_26] : memref<9x8x128xbf16, #tpu.memory_space<vmem>>, vector<1x8x128xbf16>
    %47 = vector.shape_cast %46 : vector<1x8x128xbf16> to vector<8x128xbf16>
    %cst_27 = arith.constant dense<0.000000e+00> : vector<656x128xf32>
    %48 = tpu.matmul %45, %47, %cst_27 {dimension_numbers = #tpu.dot_dimension_numbers<[1], [0], [0], [1], [0, 0, 1, 1], [], []>} : vector<656x8xbf16>, vector<8x128xbf16>, vector<656x128xf32> -> vector<656x128xf32>
    %49 = arith.addf %44, %48 : vector<656x128xf32>
    %c0_28 = arith.constant 0 : index
    %c0_29 = arith.constant 0 : index
    %50 = vector.load %arg3[%c0_28, %c0_29] : memref<1x128xf32, #tpu.memory_space<vmem>>, vector<1x128xf32>
    %51 = vector.broadcast %50 : vector<1x128xf32> to vector<656x128xf32>
    %52 = arith.addf %49, %51 : vector<656x128xf32>
    %cst_30 = arith.constant 0.000000e+00 : f32
    %53 = vector.broadcast %cst_30 : f32 to vector<656x128xf32>
    %54 = arith.maximumf %52, %53 : vector<656x128xf32>
    %55 = vector.extract_strided_slice %3 {offsets = [32, 0], sizes = [656, 8], strides = [1, 1]} : vector<720x8xbf16> to vector<656x8xbf16>
    %c0_31 = arith.constant 0 : index
    %c0_32 = arith.constant 0 : index
    %56 = vector.load %arg4[%c0_31, %c0_32] : memref<8x128xbf16, #tpu.memory_space<vmem>>, vector<8x128xbf16>
    %cst_33 = arith.constant dense<0.000000e+00> : vector<656x128xf32>
    %57 = tpu.matmul %55, %56, %cst_33 {dimension_numbers = #tpu.dot_dimension_numbers<[1], [0], [0], [1], [0, 0, 1, 1], [], []>} : vector<656x8xbf16>, vector<8x128xbf16>, vector<656x128xf32> -> vector<656x128xf32>
    %c0_34 = arith.constant 0 : index
    %c0_35 = arith.constant 0 : index
    %58 = vector.load %arg5[%c0_34, %c0_35] : memref<1x128xf32, #tpu.memory_space<vmem>>, vector<1x128xf32>
    %59 = vector.broadcast %58 : vector<1x128xf32> to vector<656x128xf32>
    %60 = arith.addf %57, %59 : vector<656x128xf32>
    %61 = arith.addf %54, %60 : vector<656x128xf32>
    %c0_36 = arith.constant 0 : index
    %c0_37 = arith.constant 0 : index
    %62 = vector.load %arg6[%c0_36, %c0_37] : memref<656x128xf32, #tpu.memory_space<vmem>>, vector<656x128xf32>
    tpu.vector_store %arg6[%c0_36, %c0_37], %61 {strides = array<i32>} : memref<656x128xf32, #tpu.memory_space<vmem>>, vector<656x128xf32>,
    return
  }
  func.func @transform_0(%arg0: i32) -> (i32, i32) {
    %c0_i32 = arith.constant 0 : i32
    %c0_i32_0 = arith.constant 0 : i32
    %c0_i32_1 = arith.constant 0 : i32
    return %c0_i32, %c0_i32_0 : i32, i32
  }
  func.func @transform_1(%arg0: i32) -> (i32, i32, i32) {
    %c0_i32 = arith.constant 0 : i32
    %c0_i32_0 = arith.constant 0 : i32
    %c0_i32_1 = arith.constant 0 : i32
    %c0_i32_2 = arith.constant 0 : i32
    return %c0_i32, %c0_i32_0, %c0_i32_1 : i32, i32, i32
  }
  func.func @transform_2(%arg0: i32) -> (i32, i32) {
    %c0_i32 = arith.constant 0 : i32
    %c0_i32_0 = arith.constant 0 : i32
    %c0_i32_1 = arith.constant 0 : i32
    return %c0_i32, %c0_i32_0 : i32, i32
  }
  func.func @transform_3(%arg0: i32) -> (i32, i32) {
    %c0_i32 = arith.constant 0 : i32
    %c0_i32_0 = arith.constant 0 : i32
    %c0_i32_1 = arith.constant 0 : i32
    return %c0_i32, %c0_i32_0 : i32, i32
  }
  func.func @transform_4(%arg0: i32) -> (i32, i32) {
    %c0_i32 = arith.constant 0 : i32
    %c0_i32_0 = arith.constant 0 : i32
    %c0_i32_1 = arith.constant 0 : i32
    return %c0_i32, %c0_i32_0 : i32, i32
  }
  func.func @transform_5(%arg0: i32) -> (i32, i32) {
    %c0_i32 = arith.constant 0 : i32
    %c0_i32_0 = arith.constant 0 : i32
    return %arg0, %c0_i32 : i32, i32
  }
}

</mosaic_0001>

<bundles_post_ra>
// kernel: tpu_custom_call.1
= control target key start
LH: loop header
LB: loop body
LE: loop exit
PB: predicated region body
PF: predicated region fallthrough
CT: control target
= control target key end

     0   :  { %vm534_vm0 = vcmask 1043456   ;;  %v14514_v2 = vmov 0.0   ;;  %vm9764_vm1 = vmmov 0   ;;  %vm326_vm2 = vcmask 1044480   ;;  %s14369_s0 = inlined_call_operand.vmem [shape: bf16[720,8], index: 0, kind: input, shape index: {}]   ;;  %s14370_s1 = inlined_call_operand.vmem [shape: bf16[9,8,128], index: 1, kind: input, shape index: {}]   ;;  %s14371_s2 = inlined_call_operand.vmem [shape: f32[1,128], index: 2, kind: input, shape index: {}]   ;;  %s14372_s3 = inlined_call_operand.vmem [shape: bf16[8,128], index: 3, kind: input, shape index: {}]   ;;  %s14373_s4 = inlined_call_operand.vmem [shape: f32[1,128], index: 4, kind: input, shape index: {}]   ;;  %s14374_s5 = inlined_call_operand.hbm [shape: f32[656,128], index: 5, kind: output, shape index: {}]  }
   0x1   :  { %v7053_v0 = vld [vmem:[%s14370_s1 + $0x4] sm:$0xf]  ;;  %7981 = vmatprep.subr.bf16.mxu0 %v14514_v2  ;;  %7983 = vmatprep.mubr.msk.bf16.mxu0 %vm9764_vm1, %v14514_v2  ;;  %v29_v4 = vld [vmem:[%s14369_s0 + $0xc] sm:$0xf]  ;;  %v30_v5 = vld [vmem:[%s14369_s0 + $0x10] sm:$0xf] }
   0x2   :  { %v9646_v1 = vld [vmem:[%s14369_s0 + $0x4] sm:$0xff]   ;;  %v536_v3 = vsel %vm534_vm0, %v7053_v0, 0  ;;  %8147 = vmatprep.subr.bf16.mxu1 %v14514_v2  ;;  %v7055_v7 = vcombine.low %v29_v4, %v30_v5  ;;  %v115_v8 = vld [vmem:[%s14370_s1] sm:$0xf]  ;;  %8149 = vmatprep.mubr.msk.bf16.mxu1 %vm9764_vm1, %v14514_v2  ;;  %vm899_vm3 = vsmask.f32 5376 }
   0x3   :  { %7982 = vmatpush3.bf16.msra.mxu0 %v536_v3  ;;  %v327_v6 = vrot.slane %v9646_v1, 3  ;;  %v7178_v9 = vld [vmem:[%s14370_s1 + $0x8] sm:$0xf]  ;;  %vm410_vm4 = vcmask 64512   ;;  %v1401_v10 = vsel %vm534_vm0, %v115_v8, 0  ;;  %v901_v11 = vshrl.u32 %v9646_v1, 16 }
   0x4   :  { %8313 = vmatprep.subr.bf16.mxu0 %v14514_v2  ;;  %v904_v12 = vshll.u32 %v9646_v1, 16  ;;  %v7220_v13 = vld [vmem:[%s14370_s1 + $0xc] sm:$0xf]  ;;  %v328_v14 = vrot.slane %v7055_v7, 3  ;;  %8148 = vmatpush3.bf16.msra.mxu1 %v1401_v10  ;;  %v2058_v15 = vsel %vm534_vm0, %v7178_v9, 0  ;;  %v909_v16 = vshrl.u32 %v7055_v7, 16 }
   0x5   :  { %v912_v17 = vshll.u32 %v7055_v7, 16  ;;  %v31_v18 = vld [vmem:[%s14369_s0 + $0x14] sm:$0xf]  ;;  %8479 = vmatprep.subr.bf16.mxu1 %v14514_v2  ;;  %v903_v19 = vrot.slane %v901_v11, 2  ;;  %v9833_v21 = vrot.slane %v901_v11, 3  ;;  %v2536_v35 = vsel %vm534_vm0, %v7220_v13, 0 }
   0x6   :  { %v906_v20 = vrot.slane %v904_v12, 3  ;;  %v9835_v22 = vrot.slane %v904_v12, 4  ;;  %v32_v23 = vld [vmem:[%s14369_s0 + $0x18] sm:$0xf]  ;;  %v329_v24 = vsel %vm326_vm2, %v327_v6, %v328_v14  ;;  %v911_v25 = vrot.slane %v909_v16, 2 }
   0x7   :  { %v914_v26 = vrot.slane %v912_v17, 3  ;;  %v1770_v27 = vrot.slane %v909_v16, 3  ;;  %v33_v28 = vld [vmem:[%s14369_s0 + $0x1c] sm:$0xf]  ;;  %7984 = vmatmul.mubr.msk.bf16.vlgmr.msra.gmra.mxu0 %vm410_vm4, %v329_v24  ;;  %v1771_v31 = vrot.slane %v912_v17, 4  ;;  %v7056_v32 = vcombine.low %v31_v18, %v32_v23 }
   0x8   :  { %v907_v29 = vor.u32 %v906_v20, %v903_v19  ;;  %v34_v33 = vld [vmem:[%s14369_s0 + $0x20] sm:$0xf]  ;;  %8314 = vmatpush3.bf16.msra.mxu0 %v2058_v15  ;;  %7987 = vmatprep.mubr.msk.bf16.mxu0 %vm9764_vm1, %v14514_v2  ;;  %v9853_v36 = vcombine.low %v30_v5, %v31_v18  ;;  %v9861_v43 = vcombine.low %v32_v23, %v33_v28  ;;  %v35_v51 = vld [vmem:[%s14369_s0 + $0x24] sm:$0xf]  ;;  %v36_v53 = vld [vmem:[%s14369_s0 + $0x28] sm:$0xf] }
   0x9   :  { %v915_v34 = vor.u32 %v914_v26, %v911_v25  ;;  %v9855_v37 = vcombine.low %v33_v28, %v34_v33  ;;  %v9857_v38 = vor.u32 %v1771_v31, %v1770_v27  ;;  %v330_v39 = vrot.slane %v7056_v32, 3  ;;  %8645 = vmatprep.subr.bf16.mxu0 %v14514_v2  ;;  %v37_v55 = vld [vmem:[%s14369_s0 + $0x2c] sm:$0xf]  ;;  %v38_v63 = vld [vmem:[%s14369_s0 + $0x30] sm:$0xf] }
   0xa   :  { %14630 = vst [vmem:[#allocation5_spill] sm:$0xff] %v9853_v36  ;;  %v918_v40 = vshrl.u32 %v7056_v32, 16  ;;  %v921_v41 = vshll.u32 %v7056_v32, 16  ;;  %14631 = vst [vmem:[#allocation6_spill] sm:$0xff] %v9861_v43  ;;  %v9875_v54 = vcombine.low %v34_v33, %v35_v51  ;;  %v9883_v57 = vcombine.low %v36_v53, %v37_v55  ;;  %v39_v0 = vld [vmem:[%s14369_s0 + $0x34] sm:$0xf] }
   0xb   :  { %v916_v42 = vsel %vm899_vm3, %v907_v29, %v915_v34  ;;  %v331_v47 = vsel %vm326_vm2, %v328_v14, %v330_v39  ;;  %v14384_v49 = vshrl.u32 %v9855_v37, 16  ;;  %v14383_v50 = vshll.u32 %v9855_v37, 16  ;;  %v40_v3 = vld [vmem:[%s14369_s0 + $0x38] sm:$0xf]  ;;  %v41_v5 = vld [vmem:[%s14369_s0 + $0x3c] sm:$0xf] }
   0xc   :  { %8150 = vmatmul.mubr.msk.bf16.vlgmr.msra.gmra.mxu1 %vm410_vm4, %v916_v42  ;;  %v920_v44 = vrot.slane %v918_v40, 2  ;;  %v923_v45 = vrot.slane %v921_v41, 3  ;;  %v1774_v46 = vrot.slane %v918_v40, 3  ;;  %v1775_v48 = vrot.slane %v921_v41, 4  ;;  %14632 = vst [vmem:[#allocation7_spill] sm:$0xff] %v9875_v54  ;;  %14633 = vst [vmem:[#allocation8_spill] sm:$0xff] %v9883_v57 }
   0xd   :  { %8480 = vmatpush3.bf16.msra.mxu1 %v2536_v35  ;;  %8153 = vmatprep.mubr.msk.bf16.mxu1 %vm9764_vm1, %v14514_v2  ;;  %v332_v58 = vrot.slane %v9855_v37, 3  ;;  %v929_v60 = vrot.slane %v14384_v49, 2  ;;  %v932_v61 = vrot.slane %v14383_v50, 3  ;;  %v9894_v62 = vcombine.low %v35_v51, %v36_v53  ;;  %v42_v9 = vld [vmem:[%s14369_s0 + $0x40] sm:$0xf] }
   0xe   :  { %v924_v52 = vor.u32 %v923_v45, %v920_v44  ;;  %8811 = vmatprep.subr.bf16.mxu1 %v14514_v2  ;;  %v9881_v56 = vor.u32 %v1775_v48, %v1774_v46  ;;  %v9907_v4 = vcombine.low %v38_v63, %v39_v0  ;;  %v9919_v10 = vcombine.low %v40_v3, %v41_v5  ;;  %v9924_v11 = vld [vmem:[%s14369_s0 + $0x44] sm:$0xf]  ;;  %v9943_v18 = vld [vmem:[%s14369_s0 + $0x48] sm:$0xf]  ;;  %v9948_v19 = vld [vmem:[%s14369_s0 + $0x4c] sm:$0xf] }
   0xf   :  { %7988 = vmatmul.mubr.msk.bf16.gmra.mxu0 %vm410_vm4, %v331_v47  ;;  %v333_v1 = vsel %vm326_vm2, %v330_v39, %v332_v58  ;;  %v933_v6 = vor.u32 %v932_v61, %v929_v60  ;;  %v14382_v7 = vshrl.u32 %v9894_v62, 16  ;;  %v14381_v8 = vshll.u32 %v9894_v62, 16  ;;  %v9959_v24 = vld [vmem:[%s14369_s0 + $0x50] sm:$0xf]  ;;  %v9964_v25 = vld [vmem:[%s14369_s0 + $0x54] sm:$0xf] }
  0x10   :  { %v925_v59 = vsel %vm899_vm3, %v915_v34, %v924_v52  ;;  %7991 = vmatprep.mubr.msk.bf16.mxu0 %vm9764_vm1, %v14514_v2  ;;  %14634 = vst [vmem:[#allocation9_spill] sm:$0xff] %v9907_v4  ;;  %14635 = vst [vmem:[#allocation10_spill] sm:$0xff] %v9919_v10  ;;  %v9927_v12 = vcombine.low %v42_v9, %v9924_v11  ;;  %v9930_v13 = vcombine.low %v37_v55, %v38_v63 }
  0x11   :  { %v934_v14 = vsel %vm899_vm3, %v924_v52, %v933_v6  ;;  %v334_v15 = vrot.slane %v9894_v62, 3  ;;  %v938_v16 = vrot.slane %v14382_v7, 2  ;;  %v941_v17 = vrot.slane %v14381_v8, 3 }
  0x12   :  { %14636 = vst [vmem:[#allocation11_spill] sm:$0xff] %v9927_v12  ;;  %v9952_v20 = vcombine.low %v9943_v18, %v9948_v19  ;;  %v14380_v23 = vshrl.u32 %v9930_v13, 16  ;;  %v14377_v28 = vshll.u32 %v9930_v13, 16  ;;  %v9972_v29 = vcombine.low %v9959_v24, %v9964_v25 }
  0x13   :  { %v335_v26 = vsel %vm326_vm2, %v332_v58, %v334_v15  ;;  %v942_v27 = vor.u32 %v941_v17, %v938_v16 }
  0x14   :  { %8154 = vmatmul.mubr.msk.bf16.gmra.mxu1 %vm410_vm4, %v925_v59  ;;  %14637 = vst [vmem:[#allocation12_spill] sm:$0xff] %v9952_v20  ;;  %14638 = vst [vmem:[#allocation13_spill] sm:$0xff] %v9972_v29 }
  0x15   :  { %8157 = vmatprep.mubr.msk.bf16.mxu1 %vm9764_vm1, %v14514_v2 }
  0x17   :  { %7992 = vmatmul.mubr.msk.bf16.gmra.mxu0 %vm410_vm4, %v333_v1 }
  0x18   :  { %7995 = vmatprep.mubr.msk.bf16.mxu0 %vm9764_vm1, %v14514_v2 }
  0x1c   :  { %8158 = vmatmul.mubr.msk.bf16.gmra.mxu1 %vm410_vm4, %v934_v14 }
  0x1d   :  { %8161 = vmatprep.mubr.msk.bf16.mxu1 %vm9764_vm1, %v14514_v2 }
  0x1e   :  { %10 = vsyncpa [#allocation3], 0  ;;  %v9977_v31 = vld [vmem:[%s14369_s0 + $0x58] sm:$0xf]  ;;  %v9982_v32 = vld [vmem:[%s14369_s0 + $0x5c] sm:$0xf]  ;;  %v943_v35 = vsel %vm899_vm3, %v933_v6, %v942_v27  ;;  %v9997_v41 = vcombine.low %v39_v0, %v40_v3  ;;  %v10056_v3 = vcombine.low %v41_v5, %v42_v9  ;;  %v10171_v30 = vcombine.low %v9948_v19, %v9959_v24 }
  0x1f   :  { %v9986_v33 = vcombine.low %v9977_v31, %v9982_v32  ;;  %7996 = vmatmul.mubr.msk.bf16.gmra.mxu0 %vm410_vm4, %v335_v26  ;;  %v336_v34 = vrot.slane %v9930_v13, 3  ;;  %v947_v39 = vrot.slane %v14380_v23, 2  ;;  %v950_v40 = vrot.slane %v14377_v28, 3  ;;  %v10002_v42 = vld [vmem:[%s14369_s0 + $0x60] sm:$0xf] }
  0x20   :  { %7999 = vmatprep.mubr.msk.bf16.mxu0 %vm9764_vm1, %v14514_v2  ;;  %v10007_v44 = vld [vmem:[%s14369_s0 + $0x64] sm:$0xf]  ;;  %v10016_v46 = vld [vmem:[%s14369_s0 + $0x68] sm:$0xf]  ;;  %v10021_v47 = vld [vmem:[%s14369_s0 + $0x6c] sm:$0xf] }
  0x21   :  { %14639 = vst [vmem:[#allocation14_spill] sm:$0xff] %v9986_v33  ;;  %v10011_v45 = vcombine.low %v10002_v42, %v10007_v44  ;;  %v10026_v48 = vcombine.low %v10016_v46, %v10021_v47  ;;  %v337_v51 = vsel %vm326_vm2, %v334_v15, %v336_v34  ;;  %v951_v52 = vor.u32 %v950_v40, %v947_v39  ;;  %v10036_v58 = vld [vmem:[%s14369_s0 + $0x70] sm:$0xf]  ;;  %v10041_v59 = vld [vmem:[%s14369_s0 + $0x74] sm:$0xf] }
  0x22   :  { %v14376_v53 = vshrl.u32 %v9997_v41, 16  ;;  %v14375_v55 = vshll.u32 %v9997_v41, 16  ;;  %v10045_v60 = vcombine.low %v10036_v58, %v10041_v59  ;;  %v338_v61 = vrot.slane %v9997_v41, 3  ;;  %v10061_v6 = vld [vmem:[%s14369_s0 + $0x78] sm:$0xf] }
  0x23   :  { %14640 = vst [vmem:[#allocation15_spill] sm:$0xff] %v10011_v45  ;;  %14641 = vst [vmem:[#allocation16_spill] sm:$0xff] %v10026_v48  ;;  %v952_v63 = vsel %vm899_vm3, %v942_v27, %v951_v52  ;;  %v10066_v14 = vld [vmem:[%s14369_s0 + $0x7c] sm:$0xf]  ;;  %v10071_v15 = vld [vmem:[%s14369_s0 + $0x80] sm:$0xf] }
  0x24   :  { %8162 = vmatmul.mubr.msk.bf16.gmra.mxu1 %vm410_vm4, %v943_v35  ;;  %14642 = vst [vmem:[#allocation17_spill] sm:$0xff] %v10045_v60  ;;  %v956_v0 = vrot.slane %v14376_v53, 2  ;;  %v959_v1 = vrot.slane %v14375_v55, 3  ;;  %v10075_v16 = vcombine.low %v10061_v6, %v10066_v14  ;;  %v10080_v5 = vld [vmem:[%s14369_s0 + $0x84] sm:$0xf]  ;;  %v339_v17 = vsel %vm326_vm2, %v336_v34, %v338_v61 }
  0x25   :  { %8165 = vmatprep.mubr.msk.bf16.mxu1 %vm9764_vm1, %v14514_v2  ;;  %v10084_v9 = vcombine.low %v10071_v15, %v10080_v5  ;;  %v14378_v27 = vshrl.u32 %v10056_v3, 16  ;;  %v14379_v35 = vshll.u32 %v10056_v3, 16  ;;  %v10095_v39 = vld [vmem:[%s14369_s0 + $0x88] sm:$0xf]  ;;  %v10100_v40 = vld [vmem:[%s14369_s0 + $0x8c] sm:$0xf] }
  0x26   :  { %14643 = vst [vmem:[#allocation18_spill] sm:$0xff] %v10075_v16  ;;  %v960_v26 = vor.u32 %v959_v1, %v956_v0  ;;  %v10105_v34 = vld [vmem:[%s14369_s0 + $0x90] sm:$0xf]  ;;  %v10119_v0 = vcombine.low %v9924_v11, %v9943_v18  ;;  %v340_v53 = vrot.slane %v10056_v3, 3  ;;  %v10136_v11 = vld [vmem:[%s14369_s0 + $0x98] sm:$0xf] }
  0x27   :  { %8000 = vmatmul.mubr.msk.bf16.gmra.mxu0 %vm410_vm4, %v337_v51  ;;  %14644 = vst [vmem:[#allocation19_spill] sm:$0xff] %v10084_v9  ;;  %v10109_v51 = vcombine.low %v10095_v39, %v10100_v40  ;;  %v965_v28 = vrot.slane %v14378_v27, 2  ;;  %v10141_v18 = vld [vmem:[%s14369_s0 + $0x9c] sm:$0xf]  ;;  %v10148_v27 = vld [vmem:[%s14369_s0 + $0xa0] sm:$0xf] }
  0x28   :  { %8003 = vmatprep.mubr.msk.bf16.mxu0 %vm9764_vm1, %v14514_v2  ;;  %v961_v55 = vsel %vm899_vm3, %v951_v52, %v960_v26  ;;  %v14386_v52 = vshrl.u32 %v10119_v0, 16  ;;  %v10157_v23 = vld [vmem:[%s14369_s0 + $0xa4] sm:$0xf]  ;;  %v341_v8 = vsel %vm326_vm2, %v338_v61, %v340_v53  ;;  %v14387_v7 = vshll.u32 %v10119_v0, 16  ;;  %v10176_v61 = vld [vmem:[%s14369_s0 + $0xa8] sm:$0xf] }
  0x29   :  { %14645 = vst [vmem:[#allocation20_spill] sm:$0xff] %v10109_v51  ;;  %v10165_v50 = vcombine.low %v10148_v27, %v10157_v23  ;;  %v342_v49 = vrot.slane %v10119_v0, 3  ;;  %v10193_v24 = vld [vmem:[%s14369_s0 + $0xb0] sm:$0xf]  ;;  %v10217_v51 = vld [vmem:[%s14369_s0 + $0xb8] sm:$0xf] }
  0x2a   :  { %v977_v19 = vrot.slane %v14387_v7, 3  ;;  %v14654_v16 = vshll.u32 %v10171_v30, 16  ;;  %vm1766_vm5 = vsmask.f32 4352  ;;  %vm3598_vm6 = vsmask.f32 7424 }
  0x2b   :  { %14648 = vst [vmem:[#allocation23_spill] sm:$0xff] %v10165_v50  ;;  %v343_v7 = vsel %vm326_vm2, %v340_v53, %v342_v49  ;;  %vm4934_vm7 = vcmask 1046528   ;;  %vm5589_vm8 = vsmask.f32 6400 }
  0x2c   :  { %8166 = vmatmul.mubr.msk.bf16.gmra.mxu1 %vm410_vm4, %v952_v63  ;;  %v10114_v63 = vld [vmem:[%s14369_s0 + $0x94] sm:$0xf]  ;;  %v986_v60 = vrot.slane %v14654_v16, 3  ;;  %v10264_v16 = vld [vmem:[%s14369_s0 + $0xc8] sm:$0xf] }
  0x2d   :  { %8169 = vmatprep.mubr.msk.bf16.mxu1 %vm9764_vm1, %v14514_v2  ;;  %v10123_v1 = vcombine.low %v10105_v34, %v10114_v63 }
  0x2f   :  { %8004 = vmatmul.mubr.msk.bf16.gmra.mxu0 %vm410_vm4, %v339_v17  ;;  %14646 = vst [vmem:[#allocation21_spill] sm:$0xff] %v10123_v1  ;;  %v968_v17 = vrot.slane %v14379_v35, 3  ;;  %v10152_v35 = vcombine.low %v10136_v11, %v10141_v18 }
  0x30   :  { %8007 = vmatprep.mubr.msk.bf16.mxu0 %vm9764_vm1, %v14514_v2 }
  0x31   :  { %14647 = vst [vmem:[#allocation22_spill] sm:$0xff] %v10152_v35 }
  0x34   :  { %8170 = vmatmul.mubr.msk.bf16.gmra.mxu1 %vm410_vm4, %v961_v55  ;;  %v969_v55 = vor.u32 %v968_v17, %v965_v28  ;;  %v10181_v28 = vld [vmem:[%s14369_s0 + $0xac] sm:$0xf] }
  0x35   :  { %8173 = vmatprep.mubr.msk.bf16.mxu1 %vm9764_vm1, %v14514_v2  ;;  %v10197_v50 = vcombine.low %v10176_v61, %v10181_v28 }
  0x36   :  { %v970_v17 = vsel %vm899_vm3, %v960_v26, %v969_v55  ;;  %v10202_v26 = vld [vmem:[%s14369_s0 + $0xb4] sm:$0xf] }
  0x37   :  { %8008 = vmatmul.mubr.msk.bf16.gmra.mxu0 %vm410_vm4, %v341_v8  ;;  %v974_v8 = vrot.slane %v14386_v52, 2  ;;  %14649 = vst [vmem:[#allocation24_spill] sm:$0xff] %v10197_v50  ;;  %v10206_v52 = vcombine.low %v10193_v24, %v10202_v26 }
  0x38   :  { %8011 = vmatprep.mubr.msk.bf16.mxu0 %vm9764_vm1, %v14514_v2 }
  0x39   :  { %14650 = vst [vmem:[#allocation25_spill] sm:$0xff] %v10206_v52  ;;  %v978_v35 = vor.u32 %v977_v19, %v974_v8  ;;  %v10222_v52 = vld [vmem:[%s14369_s0 + $0xbc] sm:$0xf]  ;;  %v10236_v8 = vld [vmem:[%s14369_s0 + $0xc4] sm:$0xf]  ;;  %v344_v19 = vrot.slane %v10171_v30, 3 }
  0x3a   :  { %v10226_v53 = vcombine.low %v10217_v51, %v10222_v52 }
  0x3b   :  { %v979_v1 = vsel %vm899_vm3, %v969_v55, %v978_v35  ;;  %v345_v48 = vsel %vm326_vm2, %v342_v49, %v344_v19  ;;  %v10274_v49 = vcombine.low %v9982_v32, %v10002_v42 }
  0x3c   :  { %8174 = vmatmul.mubr.msk.bf16.gmra.mxu1 %vm410_vm4, %v970_v17  ;;  %14651 = vst [vmem:[#allocation26_spill] sm:$0xff] %v10226_v53  ;;  %v10231_v17 = vld [vmem:[%s14369_s0 + $0xc0] sm:$0xf]  ;;  %v14653_v53 = vshrl.u32 %v10171_v30, 16 }
  0x3d   :  { %8177 = vmatprep.mubr.msk.bf16.mxu1 %vm9764_vm1, %v14514_v2  ;;  %v10242_v50 = vcombine.low %v10231_v17, %v10236_v8 }
  0x3e   :  { %v983_v9 = vrot.slane %v14653_v53, 2  ;;  %v14406_v53 = vshll.u32 %v10274_v49, 16 }
  0x3f   :  { %8012 = vmatmul.mubr.msk.bf16.gmra.mxu0 %vm410_vm4, %v343_v7  ;;  %14652 = vst [vmem:[#allocation27_spill] sm:$0xff] %v10242_v50  ;;  %v10253_v7 = vcombine.low %v9964_v25, %v9977_v31  ;;  %v10269_v25 = vld [vmem:[%s14369_s0 + $0xcc] sm:$0xf] }
  0x40   :  { %8015 = vmatprep.mubr.msk.bf16.mxu0 %vm9764_vm1, %v14514_v2  ;;  %v987_v55 = vor.u32 %v986_v60, %v983_v9  ;;  %v10278_v31 = vcombine.low %v10264_v16, %v10269_v25 }
  0x41   :  { %v14402_v50 = vshrl.u32 %v10253_v7, 16  ;;  %v14401_v45 = vshll.u32 %v10253_v7, 16  ;;  %v346_v9 = vrot.slane %v10253_v7, 3 }
  0x42   :  { %14655 = vst [vmem:[#allocation28_spill] sm:$0xff] %v10278_v31  ;;  %v988_v60 = vsel %vm899_vm3, %v978_v35, %v987_v55  ;;  %v14407_v35 = vshrl.u32 %v10274_v49, 16  ;;  %v10297_v31 = vld [vmem:[%s14369_s0 + $0xd0] sm:$0xf] }
  0x43   :  { %v347_v32 = vsel %vm326_vm2, %v344_v19, %v346_v9  ;;  %v348_v19 = vrot.slane %v10274_v49, 3 }
  0x44   :  { %8178 = vmatmul.mubr.msk.bf16.gmra.mxu1 %vm410_vm4, %v979_v1  ;;  %v992_v1 = vrot.slane %v14402_v50, 2  ;;  %v1004_v50 = vrot.slane %v14406_v53, 3  ;;  %v10330_v53 = vld [vmem:[%s14369_s0 + $0xd8] sm:$0xf] }
  0x45   :  { %8181 = vmatprep.mubr.msk.bf16.mxu1 %vm9764_vm1, %v14514_v2  ;;  %v349_v33 = vsel %vm326_vm2, %v346_v9, %v348_v19 }
  0x47   :  { %8016 = vmatmul.mubr.msk.bf16.gmra.mxu0 %vm410_vm4, %v345_v48  ;;  %v995_v48 = vrot.slane %v14401_v45, 3  ;;  %v10302_v45 = vld [vmem:[%s14369_s0 + $0xd4] sm:$0xf] }
  0x48   :  { %8019 = vmatprep.mubr.msk.bf16.mxu0 %vm9764_vm1, %v14514_v2 }
  0x49   :  { %v996_v42 = vor.u32 %v995_v48, %v992_v1  ;;  %v1001_v48 = vrot.slane %v14407_v35, 2 }
  0x4b   :  { %v997_v1 = vsel %vm899_vm3, %v987_v55, %v996_v42  ;;  %v1005_v55 = vor.u32 %v1004_v50, %v1001_v48 }
  0x4c   :  { %8182 = vmatmul.mubr.msk.bf16.gmra.mxu1 %vm410_vm4, %v988_v60  ;;  %v10308_v60 = vcombine.low %v10297_v31, %v10302_v45 }
  0x4d   :  { %8185 = vmatprep.mubr.msk.bf16.mxu1 %vm9764_vm1, %v14514_v2  ;;  %v1006_v9 = vsel %vm899_vm3, %v996_v42, %v1005_v55 }
  0x4e   :  { %14656 = vst [vmem:[#allocation29_spill] sm:$0xff] %v10308_v60 }
  0x4f   :  { %8020 = vmatmul.mubr.msk.bf16.gmra.mxu0 %vm410_vm4, %v347_v32  ;;  %v10319_v32 = vcombine.low %v10007_v44, %v10016_v46  ;;  %v10335_v44 = vld [vmem:[%s14369_s0 + $0xdc] sm:$0xf] }
  0x50   :  { %8023 = vmatprep.mubr.msk.bf16.mxu0 %vm9764_vm1, %v14514_v2  ;;  %v10341_v50 = vcombine.low %v10330_v53, %v10335_v44 }
  0x51   :  { %v14411_v60 = vshrl.u32 %v10319_v32, 16  ;;  %v14410_v29 = vshll.u32 %v10319_v32, 16  ;;  %v350_v46 = vrot.slane %v10319_v32, 3 }
  0x52   :  { %14657 = vst [vmem:[#allocation30_spill] sm:$0xff] %v10341_v50 }
  0x53   :  { %v1013_v48 = vrot.slane %v14410_v29, 3  ;;  %v351_v35 = vsel %vm326_vm2, %v348_v19, %v350_v46  ;;  %v10363_v29 = vld [vmem:[%s14369_s0 + $0xe0] sm:$0xf]  ;;  %v10374_v19 = vcombine.low %v10041_v59, %v10061_v6 }
  0x54   :  { %8186 = vmatmul.mubr.msk.bf16.gmra.mxu1 %vm410_vm4, %v997_v1  ;;  %v1010_v1 = vrot.slane %v14411_v60, 2 }
  0x55   :  { %8189 = vmatprep.mubr.msk.bf16.mxu1 %vm9764_vm1, %v14514_v2  ;;  %v14418_v10 = vshll.u32 %v10374_v19, 16 }
  0x56   :  { %v1014_v42 = vor.u32 %v1013_v48, %v1010_v1  ;;  %v10384_v1 = vld [vmem:[%s14369_s0 + $0xec] sm:$0xf] }
  0x57   :  { %8024 = vmatmul.mubr.msk.bf16.gmra.mxu0 %vm410_vm4, %v349_v33  ;;  %v10352_v33 = vcombine.low %v10021_v47, %v10036_v58  ;;  %v10368_v47 = vld [vmem:[%s14369_s0 + $0xe4] sm:$0xf] }
  0x58   :  { %8027 = vmatprep.mubr.msk.bf16.mxu0 %vm9764_vm1, %v14514_v2  ;;  %v10388_v48 = vcombine.low %v10363_v29, %v10368_v47 }
  0x59   :  { %v14416_v50 = vshrl.u32 %v10352_v33, 16  ;;  %v14415_v20 = vshll.u32 %v10352_v33, 16  ;;  %v352_v58 = vrot.slane %v10352_v33, 3 }
  0x5a   :  { %14658 = vst [vmem:[#allocation31_spill] sm:$0xff] %v10388_v48  ;;  %v14419_v48 = vshrl.u32 %v10374_v19, 16 }
  0x5b   :  { %v1019_v59 = vrot.slane %v14416_v50, 2  ;;  %v1022_v6 = vrot.slane %v14415_v20, 3  ;;  %v353_v12 = vsel %vm326_vm2, %v350_v46, %v352_v58  ;;  %v354_v20 = vrot.slane %v10374_v19, 3 }
  0x5c   :  { %8190 = vmatmul.mubr.msk.bf16.gmra.mxu1 %vm410_vm4, %v1006_v9  ;;  %v10379_v9 = vld [vmem:[%s14369_s0 + $0xe8] sm:$0xf]  ;;  %v1028_v46 = vrot.slane %v14419_v48, 2 }
  0x5d   :  { %8193 = vmatprep.mubr.msk.bf16.mxu1 %vm9764_vm1, %v14514_v2  ;;  %v10399_v60 = vcombine.low %v10379_v9, %v10384_v1 }
  0x5f   :  { %8028 = vmatmul.mubr.msk.bf16.gmra.mxu0 %vm410_vm4, %v351_v35  ;;  %v1015_v35 = vsel %vm899_vm3, %v1005_v55, %v1014_v42  ;;  %14659 = vst [vmem:[#allocation32_spill] sm:$0xff] %v10399_v60  ;;  %v1023_v55 = vor.u32 %v1022_v6, %v1019_v59  ;;  %v10418_v59 = vcombine.low %v10066_v14, %v10071_v15  ;;  %v10434_v14 = vld [vmem:[%s14369_s0 + $0xf4] sm:$0xf] }
  0x60   :  { %8031 = vmatprep.mubr.msk.bf16.mxu0 %vm9764_vm1, %v14514_v2  ;;  %v10439_v15 = vcombine.low %v10080_v5, %v10095_v39 }
  0x61   :  { %v1024_v50 = vsel %vm899_vm3, %v1014_v42, %v1023_v55  ;;  %v14422_v6 = vshrl.u32 %v10418_v59, 16  ;;  %v14421_v60 = vshll.u32 %v10418_v59, 16 }
  0x62   :  { %v14426_v48 = vshll.u32 %v10439_v15, 16 }
  0x64   :  { %8194 = vmatmul.mubr.msk.bf16.gmra.mxu1 %vm410_vm4, %v1015_v35  ;;  %v1031_v35 = vrot.slane %v14418_v10, 3  ;;  %v10429_v10 = vld [vmem:[%s14369_s0 + $0xf0] sm:$0xf] }
  0x65   :  { %8197 = vmatprep.mubr.msk.bf16.mxu1 %vm9764_vm1, %v14514_v2 }
  0x66   :  { %v1032_v42 = vor.u32 %v1031_v35, %v1028_v46  ;;  %v356_v46 = vrot.slane %v10418_v59, 3  ;;  %v1037_v35 = vrot.slane %v14422_v6, 2  ;;  %v1049_v6 = vrot.slane %v14426_v48, 3  ;;  %v10495_v48 = vld [vmem:[%s14369_s0 + $0x100] sm:$0xf] }
  0x67   :  { %8032 = vmatmul.mubr.msk.bf16.gmra.mxu0 %vm410_vm4, %v353_v12  ;;  %v355_v12 = vsel %vm326_vm2, %v352_v58, %v354_v20 }
  0x68   :  { %8035 = vmatprep.mubr.msk.bf16.mxu0 %vm9764_vm1, %v14514_v2  ;;  %v1033_v58 = vsel %vm899_vm3, %v1023_v55, %v1032_v42  ;;  %v357_v5 = vsel %vm326_vm2, %v354_v20, %v356_v46  ;;  %v14427_v55 = vshrl.u32 %v10439_v15, 16  ;;  %v358_v20 = vrot.slane %v10439_v15, 3 }
  0x6a   :  { %v359_v4 = vsel %vm326_vm2, %v356_v46, %v358_v20 }
  0x6c   :  { %8198 = vmatmul.mubr.msk.bf16.gmra.mxu1 %vm410_vm4, %v1024_v50  ;;  %v10443_v50 = vcombine.low %v10429_v10, %v10434_v14 }
  0x6d   :  { %8201 = vmatprep.mubr.msk.bf16.mxu1 %vm9764_vm1, %v14514_v2 }
  0x6e   :  { %14660 = vst [vmem:[#allocation33_spill] sm:$0xff] %v10443_v50  ;;  %v10462_v50 = vld [vmem:[%s14369_s0 + $0xf8] sm:$0xf] }
  0x6f   :  { %8036 = vmatmul.mubr.msk.bf16.gmra.mxu0 %vm410_vm4, %v355_v12  ;;  %v1040_v12 = vrot.slane %v14421_v60, 3  ;;  %v10467_v60 = vld [vmem:[%s14369_s0 + $0xfc] sm:$0xf] }
  0x70   :  { %8039 = vmatprep.mubr.msk.bf16.mxu0 %vm9764_vm1, %v14514_v2 }
  0x71   :  { %v1041_v39 = vor.u32 %v1040_v12, %v1037_v35  ;;  %v1046_v12 = vrot.slane %v14427_v55, 2 }
  0x73   :  { %v1042_v35 = vsel %vm899_vm3, %v1032_v42, %v1041_v39  ;;  %v1050_v42 = vor.u32 %v1049_v6, %v1046_v12 }
  0x74   :  { %8202 = vmatmul.mubr.msk.bf16.gmra.mxu1 %vm410_vm4, %v1033_v58  ;;  %v10473_v58 = vcombine.low %v10462_v50, %v10467_v60 }
  0x75   :  { %8205 = vmatprep.mubr.msk.bf16.mxu1 %vm9764_vm1, %v14514_v2  ;;  %v1051_v46 = vsel %vm899_vm3, %v1041_v39, %v1050_v42 }
  0x76   :  { %14661 = vst [vmem:[#allocation34_spill] sm:$0xff] %v10473_v58 }
  0x77   :  { %8040 = vmatmul.mubr.msk.bf16.gmra.mxu0 %vm410_vm4, %v357_v5  ;;  %v10484_v5 = vcombine.low %v10100_v40, %v10105_v34  ;;  %v10500_v40 = vld [vmem:[%s14369_s0 + $0x104] sm:$0xf]  ;;  %v10505_v34 = vcombine.low %v10114_v63, %v10136_v11 }
  0x78   :  { %8043 = vmatprep.mubr.msk.bf16.mxu0 %vm9764_vm1, %v14514_v2  ;;  %v10509_v6 = vcombine.low %v10495_v48, %v10500_v40 }
  0x79   :  { %v14430_v58 = vshrl.u32 %v10484_v5, 16  ;;  %v14429_v57 = vshll.u32 %v10484_v5, 16  ;;  %14662 = vst [vmem:[#allocation35_spill] sm:$0xff] %v10505_v34  ;;  %v14435_v39 = vshrl.u32 %v10505_v34, 16  ;;  %v14434_v55 = vshll.u32 %v10505_v34, 16 }
  0x7a   :  { %14663 = vst [vmem:[#allocation36_spill] sm:$0xff] %v10509_v6  ;;  %v10528_v6 = vld [vmem:[%s14369_s0 + $0x108] sm:$0xf] }
  0x7b   :  { %v1055_v12 = vrot.slane %v14430_v58, 2  ;;  %v1067_v58 = vrot.slane %v14434_v55, 3  ;;  %v10561_v55 = vld [vmem:[%s14369_s0 + $0x110] sm:$0xf] }
  0x7c   :  { %8206 = vmatmul.mubr.msk.bf16.gmra.mxu1 %vm410_vm4, %v1042_v35  ;;  %v360_v35 = vrot.slane %v10484_v5, 3 }
  0x7d   :  { %8209 = vmatprep.mubr.msk.bf16.mxu1 %vm9764_vm1, %v14514_v2 }
  0x7e   :  { %v361_v63 = vsel %vm326_vm2, %v358_v20, %v360_v35  ;;  %v362_v20 = vrot.slane %v10505_v34, 3 }
  0x7f   :  { %8044 = vmatmul.mubr.msk.bf16.gmra.mxu0 %vm410_vm4, %v359_v4  ;;  %v1058_v4 = vrot.slane %v14429_v57, 3  ;;  %v10533_v57 = vld [vmem:[%s14369_s0 + $0x10c] sm:$0xf] }
  0x80   :  { %8047 = vmatprep.mubr.msk.bf16.mxu0 %vm9764_vm1, %v14514_v2  ;;  %v363_v54 = vsel %vm326_vm2, %v360_v35, %v362_v20 }
  0x81   :  { %v1059_v11 = vor.u32 %v1058_v4, %v1055_v12  ;;  %v1064_v4 = vrot.slane %v14435_v39, 2 }
  0x83   :  { %v1060_v12 = vsel %vm899_vm3, %v1050_v42, %v1059_v11  ;;  %v1068_v42 = vor.u32 %v1067_v58, %v1064_v4 }
  0x84   :  { %8210 = vmatmul.mubr.msk.bf16.gmra.mxu1 %vm410_vm4, %v1051_v46  ;;  %v10539_v46 = vcombine.low %v10528_v6, %v10533_v57 }
  0x85   :  { %8213 = vmatprep.mubr.msk.bf16.mxu1 %vm9764_vm1, %v14514_v2  ;;  %v1069_v35 = vsel %vm899_vm3, %v1059_v11, %v1068_v42 }
  0x86   :  { %14664 = vst [vmem:[#allocation37_spill] sm:$0xff] %v10539_v46 }
  0x87   :  { %8048 = vmatmul.mubr.msk.bf16.gmra.mxu0 %vm410_vm4, %v361_v63  ;;  %v10550_v63 = vcombine.low %v10141_v18, %v10148_v27  ;;  %v10566_v27 = vld [vmem:[%s14369_s0 + $0x114] sm:$0xf]  ;;  %v10571_v18 = vcombine.low %v10157_v23, %v10176_v61 }
  0x88   :  { %8051 = vmatprep.mubr.msk.bf16.mxu0 %vm9764_vm1, %v14514_v2  ;;  %v10575_v58 = vcombine.low %v10561_v55, %v10566_v27 }
  0x89   :  { %14665 = vst [vmem:[#allocation38_spill] sm:$0xff] %v10550_v63  ;;  %v14438_v46 = vshrl.u32 %v10550_v63, 16  ;;  %v14437_v43 = vshll.u32 %v10550_v63, 16  ;;  %14666 = vst [vmem:[#allocation39_spill] sm:$0xff] %v10571_v18  ;;  %v14444_v11 = vshrl.u32 %v10571_v18, 16  ;;  %v14443_v39 = vshll.u32 %v10571_v18, 16 }
  0x8a   :  { %14667 = vst [vmem:[#allocation40_spill] sm:$0xff] %v10575_v58  ;;  %v10594_v58 = vld [vmem:[%s14369_s0 + $0x118] sm:$0xf] }
  0x8b   :  { %v1073_v4 = vrot.slane %v14438_v46, 2  ;;  %v1085_v46 = vrot.slane %v14443_v39, 3  ;;  %v10627_v39 = vld [vmem:[%s14369_s0 + $0x120] sm:$0xf] }
  0x8c   :  { %8214 = vmatmul.mubr.msk.bf16.gmra.mxu1 %vm410_vm4, %v1060_v12  ;;  %v364_v12 = vrot.slane %v10550_v63, 3 }
  0x8d   :  { %8217 = vmatprep.mubr.msk.bf16.mxu1 %vm9764_vm1, %v14514_v2 }
  0x8e   :  { %v365_v23 = vsel %vm326_vm2, %v362_v20, %v364_v12  ;;  %v366_v20 = vrot.slane %v10571_v18, 3 }
  0x8f   :  { %8052 = vmatmul.mubr.msk.bf16.gmra.mxu0 %vm410_vm4, %v363_v54  ;;  %v1076_v54 = vrot.slane %v14437_v43, 3  ;;  %v10599_v43 = vld [vmem:[%s14369_s0 + $0x11c] sm:$0xf] }
  0x90   :  { %8055 = vmatprep.mubr.msk.bf16.mxu0 %vm9764_vm1, %v14514_v2  ;;  %v367_v36 = vsel %vm326_vm2, %v364_v12, %v366_v20 }
  0x91   :  { %v1077_v61 = vor.u32 %v1076_v54, %v1073_v4  ;;  %v1082_v54 = vrot.slane %v14444_v11, 2 }
  0x93   :  { %v1078_v4 = vsel %vm899_vm3, %v1068_v42, %v1077_v61  ;;  %v1086_v42 = vor.u32 %v1085_v46, %v1082_v54 }
  0x94   :  { %8218 = vmatmul.mubr.msk.bf16.gmra.mxu1 %vm410_vm4, %v1069_v35  ;;  %v10605_v35 = vcombine.low %v10594_v58, %v10599_v43 }
  0x95   :  { %8221 = vmatprep.mubr.msk.bf16.mxu1 %vm9764_vm1, %v14514_v2  ;;  %v1087_v12 = vsel %vm899_vm3, %v1077_v61, %v1086_v42 }
  0x96   :  { %14668 = vst [vmem:[#allocation41_spill] sm:$0xff] %v10605_v35 }
  0x97   :  { %8056 = vmatmul.mubr.msk.bf16.gmra.mxu0 %vm410_vm4, %v365_v23  ;;  %v10616_v23 = vcombine.low %v10181_v28, %v10193_v24  ;;  %v10632_v28 = vld [vmem:[%s14369_s0 + $0x124] sm:$0xf]  ;;  %v10637_v24 = vcombine.low %v10202_v26, %v10217_v51 }
  0x98   :  { %8059 = vmatprep.mubr.msk.bf16.mxu0 %vm9764_vm1, %v14514_v2  ;;  %v10641_v46 = vcombine.low %v10627_v39, %v10632_v28 }
  0x99   :  { %14669 = vst [vmem:[#allocation42_spill] sm:$0xff] %v10616_v23  ;;  %v14447_v35 = vshrl.u32 %v10616_v23, 16  ;;  %v14446_v63 = vshll.u32 %v10616_v23, 16  ;;  %14670 = vst [vmem:[#allocation43_spill] sm:$0xff] %v10637_v24  ;;  %v14454_v61 = vshrl.u32 %v10637_v24, 16  ;;  %v14453_v11 = vshll.u32 %v10637_v24, 16 }
  0x9a   :  { %14671 = vst [vmem:[#allocation44_spill] sm:$0xff] %v10641_v46  ;;  %v10660_v46 = vld [vmem:[%s14369_s0 + $0x128] sm:$0xf] }
  0x9b   :  { %v1091_v54 = vrot.slane %v14447_v35, 2  ;;  %v1103_v35 = vrot.slane %v14453_v11, 3  ;;  %v10693_v11 = vld [vmem:[%s14369_s0 + $0x130] sm:$0xf] }
  0x9c   :  { %8222 = vmatmul.mubr.msk.bf16.gmra.mxu1 %vm410_vm4, %v1078_v4  ;;  %v368_v4 = vrot.slane %v10616_v23, 3 }
  0x9d   :  { %8225 = vmatprep.mubr.msk.bf16.mxu1 %vm9764_vm1, %v14514_v2 }
  0x9e   :  { %v369_v51 = vsel %vm326_vm2, %v366_v20, %v368_v4  ;;  %v370_v20 = vrot.slane %v10637_v24, 3 }
  0x9f   :  { %8060 = vmatmul.mubr.msk.bf16.gmra.mxu0 %vm410_vm4, %v367_v36  ;;  %v1094_v36 = vrot.slane %v14446_v63, 3  ;;  %v10665_v63 = vld [vmem:[%s14369_s0 + $0x12c] sm:$0xf] }
  0xa0   :  { %8063 = vmatprep.mubr.msk.bf16.mxu0 %vm9764_vm1, %v14514_v2  ;;  %v371_v23 = vsel %vm326_vm2, %v368_v4, %v370_v20 }
  0xa1   :  { %v1095_v26 = vor.u32 %v1094_v36, %v1091_v54  ;;  %v1100_v36 = vrot.slane %v14454_v61, 2 }
  0xa3   :  { %v1096_v54 = vsel %vm899_vm3, %v1086_v42, %v1095_v26  ;;  %v1104_v42 = vor.u32 %v1103_v35, %v1100_v36 }
  0xa4   :  { %8226 = vmatmul.mubr.msk.bf16.gmra.mxu1 %vm410_vm4, %v1087_v12  ;;  %v10671_v12 = vcombine.low %v10660_v46, %v10665_v63 }
  0xa5   :  { %8229 = vmatprep.mubr.msk.bf16.mxu1 %vm9764_vm1, %v14514_v2  ;;  %v1105_v4 = vsel %vm899_vm3, %v1095_v26, %v1104_v42 }
  0xa6   :  { %14672 = vst [vmem:[#allocation45_spill] sm:$0xff] %v10671_v12 }
  0xa7   :  { %8064 = vmatmul.mubr.msk.bf16.gmra.mxu0 %vm410_vm4, %v369_v51  ;;  %v10682_v51 = vcombine.low %v10222_v52, %v10231_v17  ;;  %v10698_v52 = vld [vmem:[%s14369_s0 + $0x134] sm:$0xf]  ;;  %v10703_v17 = vcombine.low %v10236_v8, %v10264_v16 }
  0xa8   :  { %8067 = vmatprep.mubr.msk.bf16.mxu0 %vm9764_vm1, %v14514_v2  ;;  %v10707_v35 = vcombine.low %v10693_v11, %v10698_v52 }
  0xa9   :  { %14673 = vst [vmem:[#allocation46_spill] sm:$0xff] %v10682_v51  ;;  %v14457_v12 = vshrl.u32 %v10682_v51, 16  ;;  %v14456_v18 = vshll.u32 %v10682_v51, 16  ;;  %14674 = vst [vmem:[#allocation47_spill] sm:$0xff] %v10703_v17  ;;  %v14464_v26 = vshrl.u32 %v10703_v17, 16  ;;  %v14463_v61 = vshll.u32 %v10703_v17, 16 }
  0xaa   :  { %14675 = vst [vmem:[#allocation48_spill] sm:$0xff] %v10707_v35  ;;  %v10726_v35 = vld [vmem:[%s14369_s0 + $0x138] sm:$0xf] }
  0xab   :  { %v1109_v36 = vrot.slane %v14457_v12, 2  ;;  %v1121_v12 = vrot.slane %v14463_v61, 3  ;;  %v10759_v61 = vld [vmem:[%s14369_s0 + $0x140] sm:$0xf] }
  0xac   :  { %8230 = vmatmul.mubr.msk.bf16.gmra.mxu1 %vm410_vm4, %v1096_v54  ;;  %v372_v54 = vrot.slane %v10682_v51, 3 }
  0xad   :  { %8233 = vmatprep.mubr.msk.bf16.mxu1 %vm9764_vm1, %v14514_v2 }
  0xae   :  { %v373_v8 = vsel %vm326_vm2, %v370_v20, %v372_v54  ;;  %v374_v20 = vrot.slane %v10703_v17, 3 }
  0xaf   :  { %8068 = vmatmul.mubr.msk.bf16.gmra.mxu0 %vm410_vm4, %v371_v23  ;;  %v1112_v23 = vrot.slane %v14456_v18, 3  ;;  %v10731_v18 = vld [vmem:[%s14369_s0 + $0x13c] sm:$0xf] }
  0xb0   :  { %8071 = vmatprep.mubr.msk.bf16.mxu0 %vm9764_vm1, %v14514_v2  ;;  %v375_v51 = vsel %vm326_vm2, %v372_v54, %v374_v20 }
  0xb1   :  { %v1113_v16 = vor.u32 %v1112_v23, %v1109_v36  ;;  %v1118_v23 = vrot.slane %v14464_v26, 2 }
  0xb3   :  { %v1114_v36 = vsel %vm899_vm3, %v1104_v42, %v1113_v16  ;;  %v1122_v42 = vor.u32 %v1121_v12, %v1118_v23 }
  0xb4   :  { %8234 = vmatmul.mubr.msk.bf16.gmra.mxu1 %vm410_vm4, %v1105_v4  ;;  %v10737_v4 = vcombine.low %v10726_v35, %v10731_v18 }
  0xb5   :  { %8237 = vmatprep.mubr.msk.bf16.mxu1 %vm9764_vm1, %v14514_v2  ;;  %v1123_v54 = vsel %vm899_vm3, %v1113_v16, %v1122_v42 }
  0xb6   :  { %14676 = vst [vmem:[#allocation49_spill] sm:$0xff] %v10737_v4 }
  0xb7   :  { %8072 = vmatmul.mubr.msk.bf16.gmra.mxu0 %vm410_vm4, %v373_v8  ;;  %v10748_v8 = vcombine.low %v10269_v25, %v10297_v31  ;;  %v10764_v25 = vld [vmem:[%s14369_s0 + $0x144] sm:$0xf]  ;;  %v10769_v31 = vcombine.low %v10302_v45, %v10330_v53 }
  0xb8   :  { %8075 = vmatprep.mubr.msk.bf16.mxu0 %vm9764_vm1, %v14514_v2  ;;  %v10773_v12 = vcombine.low %v10759_v61, %v10764_v25 }
  0xb9   :  { %14677 = vst [vmem:[#allocation50_spill] sm:$0xff] %v10748_v8  ;;  %v14466_v4 = vshrl.u32 %v10748_v8, 16  ;;  %v14467_v24 = vshll.u32 %v10748_v8, 16  ;;  %14678 = vst [vmem:[#allocation51_spill] sm:$0xff] %v10769_v31  ;;  %v14470_v45 = vshrl.u32 %v10769_v31, 16  ;;  %v14473_v53 = vshll.u32 %v10769_v31, 16 }
  0xba   :  { %14679 = vst [vmem:[#allocation52_spill] sm:$0xff] %v10773_v12 }
  0xbb   :  { %v1127_v23 = vrot.slane %v14466_v4, 2  ;;  %v1136_v4 = vrot.slane %v14470_v45, 2 }
  0xbc   :  { %8238 = vmatmul.mubr.msk.bf16.gmra.mxu1 %vm410_vm4, %v1114_v36  ;;  %v376_v36 = vrot.slane %v10748_v8, 3  ;;  %v10800_v8 = vcombine.low %v10335_v44, %v10363_v29  ;;  %v14680_v44 = vor.u32 %v9835_v22, %v9833_v21 }
  0xbd   :  { %8241 = vmatprep.mubr.msk.bf16.mxu1 %vm9764_vm1, %v14514_v2 }
  0xbe   :  { %v377_v26 = vsel %vm326_vm2, %v374_v20, %v376_v36  ;;  %v378_v20 = vrot.slane %v10769_v31, 3  ;;  %v14478_v31 = vshll.u32 %v10800_v8, 16  ;;  %v380_v21 = vrot.slane %v10800_v8, 3 }
  0xbf   :  { %8076 = vmatmul.mubr.msk.bf16.gmra.mxu0 %vm410_vm4, %v375_v51  ;;  %v1130_v51 = vrot.slane %v14467_v24, 3  ;;  %v1139_v24 = vrot.slane %v14473_v53, 3 }
  0xc0   :  { %8079 = vmatprep.mubr.msk.bf16.mxu0 %vm9764_vm1, %v14514_v2  ;;  %v379_v53 = vsel %vm326_vm2, %v376_v36, %v378_v20 }
  0xc1   :  { %v1131_v16 = vor.u32 %v1130_v51, %v1127_v23  ;;  %v1140_v45 = vor.u32 %v1139_v24, %v1136_v4  ;;  %v10815_v24 = vsel %vm1766_vm5, %v14680_v44, %v9857_v38 }
  0xc3   :  { %v1141_v36 = vsel %vm899_vm3, %v1131_v16, %v1140_v45 }
  0xc4   :  { %8242 = vmatmul.mubr.msk.bf16.gmra.mxu1 %vm410_vm4, %v1123_v54  ;;  %v1132_v54 = vsel %vm899_vm3, %v1122_v42, %v1131_v16  ;;  %v14479_v42 = vshrl.u32 %v10800_v8, 16 }
  0xc5   :  { %8245 = vmatprep.mubr.msk.bf16.mxu1 %vm9764_vm1, %v14514_v2 }
  0xc6   :  { %v1145_v22 = vrot.slane %v14479_v42, 2 }
  0xc7   :  { %v572_v12 = vpop.f32.mrf.mxu0  ;;  %8080 = vmatmul.mubr.msk.bf16.gmra.mxu0 %vm410_vm4, %v377_v26 }
  0xc8   :  { %8083 = vmatprep.mubr.msk.bf16.mxu0 %vm9764_vm1, %v14514_v2 }
  0xc9   :  { %v7985_v23 = vpop.f32.mrf.mxu0 }
  0xcb   :  { %v575_v51 = vpop.f32.mrf.mxu0 }
  0xcc   :  { %v1437_v26 = vpop.f32.mrf.mxu1  ;;  %8246 = vmatmul.mubr.msk.bf16.gmra.mxu1 %vm410_vm4, %v1132_v54  ;;  %v10821_v54 = vcombine.low %v10368_v47, %v10379_v9  ;;  %v10835_v47 = vsel %vm1766_vm5, %v9857_v38, %v9881_v56 }
  0xcd   :  { %v10803_v17 = vadd.f32 %v1437_v26, %v572_v12  ;;  %8249 = vmatprep.mubr.msk.bf16.mxu1 %vm9764_vm1, %v14514_v2  ;;  %v7986_v34 = vpop.f32.mrf.mxu0 }
  0xce   :  { %v8151_v29 = vpop.f32.mrf.mxu1 }
  0xcf   :  { %v580_v4 = vpop.f32.mrf.mxu0  ;;  %8084 = vmatmul.mubr.msk.bf16.gmra.mxu0 %vm410_vm4, %v379_v53  ;;  %v1148_v53 = vrot.slane %v14478_v31, 3  ;;  %v14480_v29 = vshll.u32 %v10821_v54, 16 }
  0xd0   :  { %v1440_v12 = vpop.f32.mrf.mxu1  ;;  %8087 = vmatprep.mubr.msk.bf16.mxu0 %vm9764_vm1, %v14514_v2 }
  0xd1   :  { %v10823_v34 = vadd.f32 %v1440_v12, %v575_v51  ;;  %v7989_v23 = vpop.f32.mrf.mxu0  ;;  %v14481_v51 = vshrl.u32 %v10821_v54, 16  ;;  %v381_v12 = vsel %vm326_vm2, %v378_v20, %v380_v21 }
  0xd2   :  { %v8152_v26 = vpop.f32.mrf.mxu1  ;;  %v1149_v23 = vor.u32 %v1148_v53, %v1145_v22  ;;  %v382_v22 = vrot.slane %v10821_v54, 3 }
  0xd3   :  { %14681 = vst [vmem:[#allocation53_spill] sm:$0xff] %v10823_v34  ;;  %v583_v9 = vpop.f32.mrf.mxu0  ;;  %v1157_v34 = vrot.slane %v14480_v29, 3 }
  0xd4   :  { %v1445_v16 = vpop.f32.mrf.mxu1  ;;  %8250 = vmatmul.mubr.msk.bf16.gmra.mxu1 %vm410_vm4, %v1141_v36  ;;  %v1154_v36 = vrot.slane %v14481_v51, 2  ;;  %v1150_v20 = vsel %vm899_vm3, %v1140_v45, %v1149_v23  ;;  %v383_v45 = vsel %vm326_vm2, %v380_v21, %v382_v22 }
  0xd5   :  { %v10840_v44 = vadd.f32 %v1445_v16, %v580_v4  ;;  %8253 = vmatprep.mubr.msk.bf16.mxu1 %vm9764_vm1, %v14514_v2  ;;  %v7990_v26 = vpop.f32.mrf.mxu0 }
  0xd6   :  { %v8155_v31 = vpop.f32.mrf.mxu1  ;;  %v1158_v29 = vor.u32 %v1157_v34, %v1154_v36  ;;  %v10872_v34 = vcombine.low %v10434_v14, %v10462_v50 }
  0xd7   :  { %v588_v38 = vpop.f32.mrf.mxu0  ;;  %8088 = vmatmul.mubr.msk.bf16.gmra.mxu0 %vm410_vm4, %v381_v12  ;;  %v10858_v31 = vcombine.low %v10384_v1, %v10429_v10 }
  0xd8   :  { %v1448_v42 = vpop.f32.mrf.mxu1  ;;  %8091 = vmatprep.mubr.msk.bf16.mxu0 %vm9764_vm1, %v14514_v2  ;;  %v14485_v14 = vshrl.u32 %v10872_v34, 16  ;;  %v14484_v50 = vshll.u32 %v10872_v34, 16 }
  0xd9   :  { %v10850_v4 = vadd.f32 %v1448_v42, %v583_v9  ;;  %v7993_v53 = vpop.f32.mrf.mxu0  ;;  %v14482_v9 = vshrl.u32 %v10858_v31, 16  ;;  %v14483_v51 = vshll.u32 %v10858_v31, 16 }
  0xda   :  { %v8156_v16 = vpop.f32.mrf.mxu1 }
  0xdb   :  { %v591_v12 = vpop.f32.mrf.mxu0  ;;  %v1163_v36 = vrot.slane %v14482_v9, 2 }
  0xdc   :  { %v1453_v26 = vpop.f32.mrf.mxu1  ;;  %8254 = vmatmul.mubr.msk.bf16.gmra.mxu1 %vm410_vm4, %v1150_v20  ;;  %v1159_v20 = vsel %vm899_vm3, %v1149_v23, %v1158_v29 }
  0xdd   :  { %v10861_v42 = vadd.f32 %v1453_v26, %v588_v38  ;;  %8257 = vmatprep.mubr.msk.bf16.mxu1 %vm9764_vm1, %v14514_v2  ;;  %v7994_v10 = vpop.f32.mrf.mxu0  ;;  %v384_v38 = vrot.slane %v10858_v31, 3  ;;  %v1166_v26 = vrot.slane %v14483_v51, 3 }
  0xde   :  { %v8159_v1 = vpop.f32.mrf.mxu1 }
  0xdf   :  { %14682 = vst [vmem:[#allocation54_spill] sm:$0xff] %v10861_v42  ;;  %v596_v53 = vpop.f32.mrf.mxu0  ;;  %8092 = vmatmul.mubr.msk.bf16.gmra.mxu0 %vm410_vm4, %v383_v45  ;;  %v1167_v9 = vor.u32 %v1166_v26, %v1163_v36  ;;  %v1175_v42 = vrot.slane %v14484_v50, 3 }
  0xe0   :  { %v1456_v16 = vpop.f32.mrf.mxu1  ;;  %8095 = vmatprep.mubr.msk.bf16.mxu0 %vm9764_vm1, %v14514_v2 }
  0xe1   :  { %v10874_v21 = vadd.f32 %v1456_v16, %v591_v12  ;;  %v7997_v45 = vpop.f32.mrf.mxu0  ;;  %v385_v16 = vsel %vm326_vm2, %v382_v22, %v384_v38  ;;  %v1168_v22 = vsel %vm899_vm3, %v1158_v29, %v1167_v9 }
  0xe2   :  { %v8160_v10 = vpop.f32.mrf.mxu1 }
  0xe3   :  { %14683 = vst [vmem:[#allocation55_spill] sm:$0xff] %v10874_v21  ;;  %v599_v23 = vpop.f32.mrf.mxu0 }
  0xe4   :  { %v1461_v1 = vpop.f32.mrf.mxu1  ;;  %8258 = vmatmul.mubr.msk.bf16.gmra.mxu1 %vm410_vm4, %v1159_v20  ;;  %v1172_v20 = vrot.slane %v14485_v14, 2 }
  0xe5   :  { %v10886_v12 = vadd.f32 %v1461_v1, %v596_v53  ;;  %8261 = vmatprep.mubr.msk.bf16.mxu1 %vm9764_vm1, %v14514_v2  ;;  %v7998_v21 = vpop.f32.mrf.mxu0 }
  0xe6   :  { %v8163_v51 = vpop.f32.mrf.mxu1  ;;  %v386_v21 = vrot.slane %v10872_v34, 3  ;;  %v1176_v50 = vor.u32 %v1175_v42, %v1172_v20  ;;  %v10918_v42 = vcombine.low %v10500_v40, %v10528_v6 }
  0xe7   :  { %v604_v45 = vpop.f32.mrf.mxu0  ;;  %8096 = vmatmul.mubr.msk.bf16.gmra.mxu0 %vm410_vm4, %v385_v16  ;;  %v10904_v51 = vcombine.low %v10467_v60, %v10495_v48 }
  0xe8   :  { %v1464_v10 = vpop.f32.mrf.mxu1  ;;  %8099 = vmatprep.mubr.msk.bf16.mxu0 %vm9764_vm1, %v14514_v2  ;;  %v387_v29 = vsel %vm326_vm2, %v384_v38, %v386_v21  ;;  %v14489_v40 = vshrl.u32 %v10918_v42, 16  ;;  %v14488_v6 = vshll.u32 %v10918_v42, 16 }
  0xe9   :  { %v10896_v53 = vadd.f32 %v1464_v10, %v599_v23  ;;  %v8001_v36 = vpop.f32.mrf.mxu0  ;;  %v14486_v10 = vshrl.u32 %v10904_v51, 16  ;;  %v14487_v14 = vshll.u32 %v10904_v51, 16 }
  0xea   :  { %v8164_v26 = vpop.f32.mrf.mxu1 }
  0xeb   :  { %v607_v1 = vpop.f32.mrf.mxu0  ;;  %v1181_v20 = vrot.slane %v14486_v10, 2 }
  0xec   :  { %v1469_v16 = vpop.f32.mrf.mxu1  ;;  %8262 = vmatmul.mubr.msk.bf16.gmra.mxu1 %vm410_vm4, %v1168_v22  ;;  %v1177_v22 = vsel %vm899_vm3, %v1167_v9, %v1176_v50 }
  0xed   :  { %v10907_v23 = vadd.f32 %v1469_v16, %v604_v45  ;;  %8265 = vmatprep.mubr.msk.bf16.mxu1 %vm9764_vm1, %v14514_v2  ;;  %v8002_v60 = vpop.f32.mrf.mxu0  ;;  %v388_v45 = vrot.slane %v10904_v51, 3  ;;  %v1184_v16 = vrot.slane %v14487_v14, 3 }
  0xee   :  { %v8167_v48 = vpop.f32.mrf.mxu1 }
  0xef   :  { %14684 = vst [vmem:[#allocation56_spill] sm:$0xff] %v10907_v23  ;;  %v612_v36 = vpop.f32.mrf.mxu0  ;;  %8100 = vmatmul.mubr.msk.bf16.gmra.mxu0 %vm410_vm4, %v387_v29  ;;  %v1185_v10 = vor.u32 %v1184_v16, %v1181_v20  ;;  %v1193_v23 = vrot.slane %v14488_v6, 3 }
  0xf0   :  { %v1472_v26 = vpop.f32.mrf.mxu1  ;;  %8103 = vmatprep.mubr.msk.bf16.mxu0 %vm9764_vm1, %v14514_v2 }
  0xf1   :  { %v10920_v38 = vadd.f32 %v1472_v26, %v607_v1  ;;  %v8005_v29 = vpop.f32.mrf.mxu0  ;;  %v389_v26 = vsel %vm326_vm2, %v386_v21, %v388_v45  ;;  %v1186_v21 = vsel %vm899_vm3, %v1176_v50, %v1185_v10 }
  0xf2   :  { %v8168_v60 = vpop.f32.mrf.mxu1 }
  0xf3   :  { %14685 = vst [vmem:[#allocation57_spill] sm:$0xff] %v10920_v38  ;;  %v615_v9 = vpop.f32.mrf.mxu0 }
  0xf4   :  { %v1477_v48 = vpop.f32.mrf.mxu1  ;;  %8266 = vmatmul.mubr.msk.bf16.gmra.mxu1 %vm410_vm4, %v1177_v22  ;;  %v1190_v22 = vrot.slane %v14489_v40, 2 }
  0xf5   :  { %v10932_v1 = vadd.f32 %v1477_v48, %v612_v36  ;;  %8269 = vmatprep.mubr.msk.bf16.mxu1 %vm9764_vm1, %v14514_v2  ;;  %v8006_v38 = vpop.f32.mrf.mxu0 }
  0xf6   :  { %v8171_v14 = vpop.f32.mrf.mxu1  ;;  %v390_v38 = vrot.slane %v10918_v42, 3  ;;  %v1194_v6 = vor.u32 %v1193_v23, %v1190_v22  ;;  %v10964_v23 = vcombine.low %v10566_v27, %v10594_v58 }
  0xf7   :  { %v620_v29 = vpop.f32.mrf.mxu0  ;;  %8104 = vmatmul.mubr.msk.bf16.gmra.mxu0 %vm410_vm4, %v389_v26  ;;  %v10950_v14 = vcombine.low %v10533_v57, %v10561_v55 }
  0xf8   :  { %v1480_v60 = vpop.f32.mrf.mxu1  ;;  %8107 = vmatprep.mubr.msk.bf16.mxu0 %vm9764_vm1, %v14514_v2  ;;  %v391_v50 = vsel %vm326_vm2, %v388_v45, %v390_v38  ;;  %v14493_v27 = vshrl.u32 %v10964_v23, 16  ;;  %v14492_v58 = vshll.u32 %v10964_v23, 16 }
  0xf9   :  { %v10942_v36 = vadd.f32 %v1480_v60, %v615_v9  ;;  %v8009_v20 = vpop.f32.mrf.mxu0  ;;  %v14490_v60 = vshrl.u32 %v10950_v14, 16  ;;  %v14491_v40 = vshll.u32 %v10950_v14, 16 }
  0xfa   :  { %v8172_v16 = vpop.f32.mrf.mxu1 }
  0xfb   :  { %v623_v48 = vpop.f32.mrf.mxu0  ;;  %v1199_v22 = vrot.slane %v14490_v60, 2 }
  0xfc   :  { %v1485_v26 = vpop.f32.mrf.mxu1  ;;  %8270 = vmatmul.mubr.msk.bf16.gmra.mxu1 %vm410_vm4, %v1186_v21  ;;  %v1195_v21 = vsel %vm899_vm3, %v1185_v10, %v1194_v6 }
  0xfd   :  { %v10953_v9 = vadd.f32 %v1485_v26, %v620_v29  ;;  %8273 = vmatprep.mubr.msk.bf16.mxu1 %vm9764_vm1, %v14514_v2  ;;  %v8010_v57 = vpop.f32.mrf.mxu0  ;;  %v392_v29 = vrot.slane %v10950_v14, 3  ;;  %v1202_v26 = vrot.slane %v14491_v40, 3 }
  0xfe   :  { %v8175_v55 = vpop.f32.mrf.mxu1 }
  0xff   :  { %14686 = vst [vmem:[#allocation58_spill] sm:$0xff] %v10953_v9  ;;  %v628_v20 = vpop.f32.mrf.mxu0  ;;  %8108 = vmatmul.mubr.msk.bf16.gmra.mxu0 %vm410_vm4, %v391_v50  ;;  %v1203_v60 = vor.u32 %v1202_v26, %v1199_v22  ;;  %v1211_v9 = vrot.slane %v14492_v58, 3 }
 0x100   :  { %v1488_v16 = vpop.f32.mrf.mxu1  ;;  %8111 = vmatprep.mubr.msk.bf16.mxu0 %vm9764_vm1, %v14514_v2 }
 0x101   :  { %v10966_v45 = vadd.f32 %v1488_v16, %v623_v48  ;;  %v8013_v50 = vpop.f32.mrf.mxu0  ;;  %v393_v16 = vsel %vm326_vm2, %v390_v38, %v392_v29  ;;  %v1204_v38 = vsel %vm899_vm3, %v1194_v6, %v1203_v60 }
 0x102   :  { %v8176_v57 = vpop.f32.mrf.mxu1 }
 0x103   :  { %14687 = vst [vmem:[#allocation59_spill] sm:$0xff] %v10966_v45  ;;  %v631_v10 = vpop.f32.mrf.mxu0 }
 0x104   :  { %v1493_v55 = vpop.f32.mrf.mxu1  ;;  %8274 = vmatmul.mubr.msk.bf16.gmra.mxu1 %vm410_vm4, %v1195_v21  ;;  %v1208_v21 = vrot.slane %v14493_v27, 2 }
 0x105   :  { %v10978_v48 = vadd.f32 %v1493_v55, %v628_v20  ;;  %8277 = vmatprep.mubr.msk.bf16.mxu1 %vm9764_vm1, %v14514_v2  ;;  %v8014_v45 = vpop.f32.mrf.mxu0 }
 0x106   :  { %v8179_v40 = vpop.f32.mrf.mxu1  ;;  %v394_v45 = vrot.slane %v10964_v23, 3  ;;  %v1212_v58 = vor.u32 %v1211_v9, %v1208_v21  ;;  %v11010_v9 = vcombine.low %v10632_v28, %v10660_v46 }
 0x107   :  { %v636_v50 = vpop.f32.mrf.mxu0  ;;  %8112 = vmatmul.mubr.msk.bf16.gmra.mxu0 %vm410_vm4, %v393_v16  ;;  %v10996_v40 = vcombine.low %v10599_v43, %v10627_v39 }
 0x108   :  { %v1496_v57 = vpop.f32.mrf.mxu1  ;;  %8115 = vmatprep.mubr.msk.bf16.mxu0 %vm9764_vm1, %v14514_v2  ;;  %v395_v6 = vsel %vm326_vm2, %v392_v29, %v394_v45  ;;  %v14497_v28 = vshrl.u32 %v11010_v9, 16  ;;  %v14496_v46 = vshll.u32 %v11010_v9, 16 }
 0x109   :  { %v10988_v20 = vadd.f32 %v1496_v57, %v631_v10  ;;  %v8017_v22 = vpop.f32.mrf.mxu0  ;;  %v14494_v57 = vshrl.u32 %v10996_v40, 16  ;;  %v14495_v27 = vshll.u32 %v10996_v40, 16 }
 0x10a   :  { %v8180_v26 = vpop.f32.mrf.mxu1 }
 0x10b   :  { %v639_v55 = vpop.f32.mrf.mxu0  ;;  %v1217_v21 = vrot.slane %v14494_v57, 2 }
 0x10c   :  { %v1501_v16 = vpop.f32.mrf.mxu1  ;;  %8278 = vmatmul.mubr.msk.bf16.gmra.mxu1 %vm410_vm4, %v1204_v38  ;;  %v1213_v38 = vsel %vm899_vm3, %v1203_v60, %v1212_v58 }
 0x10d   :  { %v10999_v10 = vadd.f32 %v1501_v16, %v636_v50  ;;  %8281 = vmatprep.mubr.msk.bf16.mxu1 %vm9764_vm1, %v14514_v2  ;;  %v8018_v43 = vpop.f32.mrf.mxu0  ;;  %v396_v50 = vrot.slane %v10996_v40, 3  ;;  %v1220_v16 = vrot.slane %v14495_v27, 3 }
 0x10e   :  { %v8183_v39 = vpop.f32.mrf.mxu1 }
 0x10f   :  { %14688 = vst [vmem:[#allocation60_spill] sm:$0xff] %v10999_v10  ;;  %v644_v22 = vpop.f32.mrf.mxu0  ;;  %8116 = vmatmul.mubr.msk.bf16.gmra.mxu0 %vm410_vm4, %v395_v6  ;;  %v1221_v57 = vor.u32 %v1220_v16, %v1217_v21  ;;  %v1229_v10 = vrot.slane %v14496_v46, 3 }
 0x110   :  { %v1504_v26 = vpop.f32.mrf.mxu1  ;;  %8119 = vmatprep.mubr.msk.bf16.mxu0 %vm9764_vm1, %v14514_v2 }
 0x111   :  { %v11012_v29 = vadd.f32 %v1504_v26, %v639_v55  ;;  %v8021_v6 = vpop.f32.mrf.mxu0  ;;  %v397_v26 = vsel %vm326_vm2, %v394_v45, %v396_v50  ;;  %v1222_v45 = vsel %vm899_vm3, %v1212_v58, %v1221_v57 }
 0x112   :  { %v8184_v43 = vpop.f32.mrf.mxu1 }
 0x113   :  { %14689 = vst [vmem:[#allocation61_spill] sm:$0xff] %v11012_v29  ;;  %v647_v60 = vpop.f32.mrf.mxu0 }
 0x114   :  { %v1509_v39 = vpop.f32.mrf.mxu1  ;;  %8282 = vmatmul.mubr.msk.bf16.gmra.mxu1 %vm410_vm4, %v1213_v38  ;;  %v1226_v38 = vrot.slane %v14497_v28, 2 }
 0x115   :  { %v11024_v55 = vadd.f32 %v1509_v39, %v644_v22  ;;  %8285 = vmatprep.mubr.msk.bf16.mxu1 %vm9764_vm1, %v14514_v2  ;;  %v8022_v29 = vpop.f32.mrf.mxu0 }
 0x116   :  { %v8187_v27 = vpop.f32.mrf.mxu1  ;;  %v398_v29 = vrot.slane %v11010_v9, 3  ;;  %v1230_v46 = vor.u32 %v1229_v10, %v1226_v38  ;;  %v11056_v10 = vcombine.low %v10698_v52, %v10726_v35 }
 0x117   :  { %v652_v6 = vpop.f32.mrf.mxu0  ;;  %8120 = vmatmul.mubr.msk.bf16.gmra.mxu0 %vm410_vm4, %v397_v26  ;;  %v11042_v27 = vcombine.low %v10665_v63, %v10693_v11 }
 0x118   :  { %v1512_v43 = vpop.f32.mrf.mxu1  ;;  %8123 = vmatprep.mubr.msk.bf16.mxu0 %vm9764_vm1, %v14514_v2  ;;  %v399_v58 = vsel %vm326_vm2, %v396_v50, %v398_v29  ;;  %v14501_v52 = vshrl.u32 %v11056_v10, 16  ;;  %v14500_v35 = vshll.u32 %v11056_v10, 16 }
 0x119   :  { %v11034_v22 = vadd.f32 %v1512_v43, %v647_v60  ;;  %v8025_v21 = vpop.f32.mrf.mxu0  ;;  %v14498_v43 = vshrl.u32 %v11042_v27, 16  ;;  %v14499_v28 = vshll.u32 %v11042_v27, 16 }
 0x11a   :  { %v8188_v16 = vpop.f32.mrf.mxu1 }
 0x11b   :  { %v655_v39 = vpop.f32.mrf.mxu0  ;;  %v1235_v38 = vrot.slane %v14498_v43, 2 }
 0x11c   :  { %v1517_v26 = vpop.f32.mrf.mxu1  ;;  %8286 = vmatmul.mubr.msk.bf16.gmra.mxu1 %vm410_vm4, %v1222_v45  ;;  %v1231_v45 = vsel %vm899_vm3, %v1221_v57, %v1230_v46 }
 0x11d   :  { %v11045_v60 = vadd.f32 %v1517_v26, %v652_v6  ;;  %8289 = vmatprep.mubr.msk.bf16.mxu1 %vm9764_vm1, %v14514_v2  ;;  %v8026_v63 = vpop.f32.mrf.mxu0  ;;  %v400_v6 = vrot.slane %v11042_v27, 3  ;;  %v1238_v26 = vrot.slane %v14499_v28, 3 }
 0x11e   :  { %v8191_v11 = vpop.f32.mrf.mxu1 }
 0x11f   :  { %14690 = vst [vmem:[#allocation62_spill] sm:$0xff] %v11045_v60  ;;  %v660_v21 = vpop.f32.mrf.mxu0  ;;  %8124 = vmatmul.mubr.msk.bf16.gmra.mxu0 %vm410_vm4, %v399_v58  ;;  %v1239_v43 = vor.u32 %v1238_v26, %v1235_v38  ;;  %v1247_v60 = vrot.slane %v14500_v35, 3 }
 0x120   :  { %v1520_v16 = vpop.f32.mrf.mxu1  ;;  %8127 = vmatprep.mubr.msk.bf16.mxu0 %vm9764_vm1, %v14514_v2 }
 0x121   :  { %v11058_v50 = vadd.f32 %v1520_v16, %v655_v39  ;;  %v8029_v58 = vpop.f32.mrf.mxu0  ;;  %v401_v16 = vsel %vm326_vm2, %v398_v29, %v400_v6  ;;  %v1240_v29 = vsel %vm899_vm3, %v1230_v46, %v1239_v43 }
 0x122   :  { %v8192_v63 = vpop.f32.mrf.mxu1 }
 0x123   :  { %14691 = vst [vmem:[#allocation63_spill] sm:$0xff] %v11058_v50  ;;  %v663_v57 = vpop.f32.mrf.mxu0 }
 0x124   :  { %v1525_v11 = vpop.f32.mrf.mxu1  ;;  %8290 = vmatmul.mubr.msk.bf16.gmra.mxu1 %vm410_vm4, %v1231_v45  ;;  %v1244_v45 = vrot.slane %v14501_v52, 2 }
 0x125   :  { %v11070_v39 = vadd.f32 %v1525_v11, %v660_v21  ;;  %8293 = vmatprep.mubr.msk.bf16.mxu1 %vm9764_vm1, %v14514_v2  ;;  %v8030_v50 = vpop.f32.mrf.mxu0 }
 0x126   :  { %v8195_v28 = vpop.f32.mrf.mxu1  ;;  %v402_v50 = vrot.slane %v11056_v10, 3  ;;  %v1248_v35 = vor.u32 %v1247_v60, %v1244_v45 }
 0x127   :  { %v668_v58 = vpop.f32.mrf.mxu0  ;;  %8128 = vmatmul.mubr.msk.bf16.gmra.mxu0 %vm410_vm4, %v401_v16  ;;  %v11088_v28 = vcombine.low %v10731_v18, %v10759_v61  ;;  %v108_v18 = vld [vmem:[%s14369_s0 + $0x148] sm:$0xf] }
 0x128   :  { %v1528_v63 = vpop.f32.mrf.mxu1  ;;  %8131 = vmatprep.mubr.msk.bf16.mxu0 %vm9764_vm1, %v14514_v2  ;;  %v403_v46 = vsel %vm326_vm2, %v400_v6, %v402_v50  ;;  %v11104_v6 = vcombine.low %v10764_v25, %v108_v18 }
 0x129   :  { %v11080_v21 = vadd.f32 %v1528_v63, %v663_v57  ;;  %14693 = vst [vmem:[#allocation65_spill] sm:$0xff] %v11088_v28  ;;  %v8033_v38 = vpop.f32.mrf.mxu0  ;;  %v14502_v63 = vshrl.u32 %v11088_v28, 16  ;;  %v14503_v52 = vshll.u32 %v11088_v28, 16 }
 0x12a   :  { %v8196_v26 = vpop.f32.mrf.mxu1  ;;  %v14506_v25 = vshrl.u32 %v11104_v6, 16 }
 0x12b   :  { %14692 = vst [vmem:[#allocation64_spill] sm:$0xff] %v11080_v21  ;;  %v671_v11 = vpop.f32.mrf.mxu0 }
 0x12c   :  { %v1533_v16 = vpop.f32.mrf.mxu1  ;;  %8294 = vmatmul.mubr.msk.bf16.gmra.mxu1 %vm410_vm4, %v1240_v29  ;;  %v404_v29 = vrot.slane %v11088_v28, 3 }
 0x12d   :  { %v11091_v57 = vadd.f32 %v1533_v16, %v668_v58  ;;  %8297 = vmatprep.mubr.msk.bf16.mxu1 %vm9764_vm1, %v14514_v2  ;;  %v8034_v61 = vpop.f32.mrf.mxu0  ;;  %v1249_v58 = vsel %vm899_vm3, %v1239_v43, %v1248_v35  ;;  %v1253_v16 = vrot.slane %v14502_v63, 2 }
 0x12e   :  { %v8199_v38 = vpop.f32.mrf.mxu1  ;;  %v1256_v61 = vrot.slane %v14503_v52, 3 }
 0x12f   :  { %14694 = vst [vmem:[#allocation66_spill] sm:$0xff] %v11091_v57  ;;  %v676_v26 = vpop.f32.mrf.mxu0  ;;  %8132 = vmatmul.mubr.msk.bf16.gmra.mxu0 %vm410_vm4, %v403_v46 }
 0x130   :  { %v1536_v60 = vpop.f32.mrf.mxu1  ;;  %8135 = vmatprep.mubr.msk.bf16.mxu0 %vm9764_vm1, %v14514_v2  ;;  %v1257_v63 = vor.u32 %v1256_v61, %v1253_v16 }
 0x131   :  { %v11106_v45 = vadd.f32 %v1536_v60, %v671_v11  ;;  %v8037_v46 = vpop.f32.mrf.mxu0  ;;  %v14507_v11 = vshll.u32 %v11104_v6, 16  ;;  %v405_v60 = vsel %vm326_vm2, %v402_v50, %v404_v29 }
 0x132   :  { %v8200_v38 = vpop.f32.mrf.mxu1  ;;  %v109_v46 = vld [vmem:[%s14369_s0 + $0x14c] sm:$0xf]  ;;  %v1258_v16 = vsel %vm899_vm3, %v1248_v35, %v1257_v63 }
 0x133   :  { %14695 = vst [vmem:[#allocation67_spill] sm:$0xff] %v11106_v45  ;;  %v679_v57 = vpop.f32.mrf.mxu0  ;;  %v1265_v50 = vrot.slane %v14507_v11, 3 }
 0x134   :  { %v1541_v43 = vpop.f32.mrf.mxu1  ;;  %8298 = vmatmul.mubr.msk.bf16.gmra.mxu1 %vm410_vm4, %v1249_v58 }
 0x135   :  { %v11118_v18 = vadd.f32 %v1541_v43, %v676_v26  ;;  %8301 = vmatprep.mubr.msk.bf16.mxu1 %vm9764_vm1, %v14514_v2  ;;  %v8038_v45 = vpop.f32.mrf.mxu0  ;;  %v1262_v26 = vrot.slane %v14506_v25, 2 }
 0x136   :  { %v8203_v52 = vpop.f32.mrf.mxu1  ;;  %v11137_v45 = vcombine.low %v109_v46, %v109_v46 }
 0x137   :  { %14696 = vst [vmem:[#allocation68_spill] sm:$0xff] %v11118_v18  ;;  %v684_v38 = vpop.f32.mrf.mxu0  ;;  %8136 = vmatmul.mubr.msk.bf16.gmra.mxu0 %vm410_vm4, %v405_v60  ;;  %v406_v52 = vrot.slane %v11104_v6, 3  ;;  %v1266_v25 = vor.u32 %v1265_v50, %v1262_v26 }
 0x138   :  { %v1544_v58 = vpop.f32.mrf.mxu1  ;;  %8139 = vmatprep.mubr.msk.bf16.mxu0 %vm9764_vm1, %v14514_v2  ;;  %v14508_v35 = vshrl.u32 %v11137_v45, 16 }
 0x139   :  { %v11131_v43 = vadd.f32 %v1544_v58, %v679_v57  ;;  %v8041_v61 = vpop.f32.mrf.mxu0  ;;  %v407_v57 = vsel %vm326_vm2, %v404_v29, %v406_v52  ;;  %v14509_v58 = vshll.u32 %v11137_v45, 16 }
 0x13a   :  { %v8204_v60 = vpop.f32.mrf.mxu1  ;;  %v1271_v29 = vrot.slane %v14508_v35, 2 }
 0x13b   :  { %v687_v18 = vpop.f32.mrf.mxu0 }
 0x13c   :  { %v1549_v28 = vpop.f32.mrf.mxu1  ;;  %8302 = vmatmul.mubr.msk.bf16.gmra.mxu1 %vm410_vm4, %v1258_v16  ;;  %v1267_v16 = vsel %vm899_vm3, %v1257_v63, %v1266_v25 }
 0x13d   :  { %v11140_v21 = vadd.f32 %v1549_v28, %v684_v38  ;;  %8305 = vmatprep.mubr.msk.bf16.mxu1 %vm9764_vm1, %v14514_v2  ;;  %v8042_v46 = vpop.f32.mrf.mxu0  ;;  %v408_v28 = vrot.slane %v11137_v45, 3  ;;  %v1274_v38 = vrot.slane %v14509_v58, 3 }
 0x13e   :  { %v8207_v11 = vpop.f32.mrf.mxu1 }
 0x13f   :  { %14697 = vst [vmem:[#allocation69_spill] sm:$0xff] %v11140_v21  ;;  %v692_v61 = vpop.f32.mrf.mxu0  ;;  %8140 = vmatmul.mubr.msk.bf16.gmra.mxu0 %vm410_vm4, %v407_v57 }
 0x140   :  { %v1552_v60 = vpop.f32.mrf.mxu1  ;;  %8143 = vmatprep.mubr.msk.bf16.mxu0 %vm9764_vm1, %v14514_v2 }
 0x141   :  { %v11149_v26 = vadd.f32 %v1552_v60, %v687_v18  ;;  %v8045_v11 = vpop.f32.mrf.mxu0  ;;  %v409_v18 = vsel %vm326_vm2, %v406_v52, %v408_v28  ;;  %v1275_v60 = vor.u32 %v1274_v38, %v1271_v29  ;;  %v7264_v52 = vld [vmem:[%s14370_s1 + $0x10] sm:$0xf]  ;;  %v7347_v38 = vld [vmem:[%s14370_s1 + $0x14] sm:$0xf] }
 0x142   :  { %v8208_v50 = vpop.f32.mrf.mxu1  ;;  %v3148_v29 = vsel %vm534_vm0, %v7264_v52, 0 }
 0x143   :  { %14698 = vst [vmem:[#allocation70_spill] sm:$0xff] %v11149_v26  ;;  %v695_v46 = vpop.f32.mrf.mxu0  ;;  %v1276_v50 = vsel %vm899_vm3, %v1266_v25, %v1275_v60 }
 0x144   :  { %v1557_v57 = vpop.f32.mrf.mxu1  ;;  %8306 = vmatmul.mubr.msk.bf16.gmra.mxu1 %vm410_vm4, %v1267_v16 }
 0x145   :  { %v11159_v63 = vadd.f32 %v1557_v57, %v692_v61  ;;  %8309 = vmatprep.mubr.msk.bf16.mxu1 %vm9764_vm1, %v14514_v2  ;;  %v8046_v26 = vpop.f32.mrf.mxu0 }
 0x146   :  { %v8211_v21 = vpop.f32.mrf.mxu1 }
 0x147   :  { %v700_v35 = vpop.f32.mrf.mxu0  ;;  %8144 = vmatmul.mubr.msk.bf16.gmra.mxu0 %vm410_vm4, %v409_v18 }
 0x148   :  { %v1560_v58 = vpop.f32.mrf.mxu1  ;;  %8315 = vmatprep.mubr.msk.bf16.mxu0 %vm9764_vm1, %v14514_v2 }
 0x149   :  { %v11165_v11 = vadd.f32 %v1560_v58, %v695_v46  ;;  %v8049_v61 = vpop.f32.mrf.mxu0 }
 0x14a   :  { %v8212_v16 = vpop.f32.mrf.mxu1 }
 0x14b   :  { %v703_v28 = vpop.f32.mrf.mxu0 }
 0x14c   :  { %v1565_v26 = vpop.f32.mrf.mxu1  ;;  %8310 = vmatmul.mubr.msk.bf16.gmra.mxu1 %vm410_vm4, %v1276_v50  ;;  %v14700_v50 = vshll.u32 %v9855_v37, 16 }
 0x14d   :  { %v11174_v21 = vadd.f32 %v1565_v26, %v700_v35  ;;  %8481 = vmatprep.mubr.msk.bf16.mxu1 %vm9764_vm1, %v14514_v2  ;;  %v8050_v58 = vpop.f32.mrf.mxu0  ;;  %v14699_v35 = vshrl.u32 %v9855_v37, 16  ;;  %v4014_v26 = vsel %vm534_vm0, %v7347_v38, 0 }
 0x14e   :  { %v8215_v25 = vpop.f32.mrf.mxu1  ;;  %v1779_v61 = vrot.slane %v14700_v50, 4  ;;  %v14702_v50 = vshrl.u32 %v9894_v62, 16 }
 0x14f   :  { %v708_v46 = vpop.f32.mrf.mxu0  ;;  %8316 = vmatmul.mubr.msk.bf16.vlgmr.msra.gmra.mxu0 %vm410_vm4, %v10815_v24  ;;  %v1778_v60 = vrot.slane %v14699_v35, 3 }
 0x150   :  { %v1568_v57 = vpop.f32.mrf.mxu1  ;;  %8646 = vmatpush3.bf16.msra.mxu0 %v3148_v29  ;;  %8319 = vmatprep.mubr.msk.bf16.mxu0 %vm9764_vm1, %v14514_v2 }
 0x151   :  { %v11184_v18 = vadd.f32 %v1568_v57, %v703_v28  ;;  %v8053_v16 = vpop.f32.mrf.mxu0  ;;  %8977 = vmatprep.subr.bf16.mxu0 %v14514_v2  ;;  %v1780_v25 = vor.u32 %v1779_v61, %v1778_v60  ;;  %v1782_v60 = vrot.slane %v14702_v50, 3  ;;  %v14703_v61 = vshll.u32 %v9894_v62, 16 }
 0x152   :  { %v8216_v52 = vpop.f32.mrf.mxu1 }
 0x153   :  { %v711_v58 = vpop.f32.mrf.mxu0  ;;  %v1783_v16 = vrot.slane %v14703_v61, 4 }
 0x154   :  { %v1573_v24 = vpop.f32.mrf.mxu1  ;;  %8482 = vmatmul.mubr.msk.bf16.vlgmr.msra.gmra.mxu1 %vm410_vm4, %v10835_v47 }
 0x155   :  { %v11196_v28 = vadd.f32 %v1573_v24, %v708_v46  ;;  %8812 = vmatpush3.bf16.msra.mxu1 %v4014_v26  ;;  %8485 = vmatprep.mubr.msk.bf16.mxu1 %vm9764_vm1, %v14514_v2  ;;  %v8054_v37 = vpop.f32.mrf.mxu0  ;;  %v1781_v46 = vsel %vm1766_vm5, %v9881_v56, %v1780_v25  ;;  %v1784_v56 = vor.u32 %v1783_v16, %v1782_v60 }
 0x156   :  { %v8219_v29 = vpop.f32.mrf.mxu1  ;;  %9143 = vmatprep.subr.bf16.mxu1 %v14514_v2 }
 0x157   :  { %v716_v57 = vpop.f32.mrf.mxu0  ;;  %8320 = vmatmul.mubr.msk.bf16.gmra.mxu0 %vm410_vm4, %v10835_v47  ;;  %v1785_v50 = vsel %vm1766_vm5, %v1780_v25, %v1784_v56 }
 0x158   :  { %v1576_v38 = vpop.f32.mrf.mxu1  ;;  %8323 = vmatprep.mubr.msk.bf16.mxu0 %vm9764_vm1, %v14514_v2 }
 0x159   :  { %v11203_v35 = vadd.f32 %v1576_v38, %v711_v58  ;;  %v8057_v52 = vpop.f32.mrf.mxu0 }
 0x15a   :  { %v8220_v26 = vpop.f32.mrf.mxu1  ;;  %v14706_v52 = vshll.u32 %v9930_v13, 16 }
 0x15b   :  { %14701 = vst [vmem:[#allocation71_spill] sm:$0xff] %v11203_v35  ;;  %v719_v24 = vpop.f32.mrf.mxu0 }
 0x15c   :  { %v1581_v37 = vpop.f32.mrf.mxu1  ;;  %8486 = vmatmul.mubr.msk.bf16.gmra.mxu1 %vm410_vm4, %v1781_v46  ;;  %v1787_v26 = vrot.slane %v14706_v52, 4 }
 0x15d   :  { %v11214_v47 = vadd.f32 %v1581_v37, %v716_v57  ;;  %8489 = vmatprep.mubr.msk.bf16.mxu1 %vm9764_vm1, %v14514_v2  ;;  %v8058_v58 = vpop.f32.mrf.mxu0  ;;  %v14705_v57 = vshrl.u32 %v9930_v13, 16 }
 0x15e   :  { %v8223_v29 = vpop.f32.mrf.mxu1 }
 0x15f   :  { %v724_v38 = vpop.f32.mrf.mxu0  ;;  %8324 = vmatmul.mubr.msk.bf16.gmra.mxu0 %vm410_vm4, %v1781_v46  ;;  %v1786_v61 = vrot.slane %v14705_v57, 3 }
 0x160   :  { %v1584_v35 = vpop.f32.mrf.mxu1  ;;  %8327 = vmatprep.mubr.msk.bf16.mxu0 %vm9764_vm1, %v14514_v2 }
 0x161   :  { %v11219_v62 = vadd.f32 %v1584_v35, %v719_v24  ;;  %v8061_v60 = vpop.f32.mrf.mxu0  ;;  %v1788_v25 = vor.u32 %v1787_v26, %v1786_v61 }
 0x162   :  { %v8224_v16 = vpop.f32.mrf.mxu1  ;;  %v14709_v60 = vshll.u32 %v9997_v41, 16 }
 0x163   :  { %14704 = vst [vmem:[#allocation72_spill] sm:$0xff] %v11219_v62  ;;  %v727_v37 = vpop.f32.mrf.mxu0  ;;  %v1789_v57 = vsel %vm1766_vm5, %v1784_v56, %v1788_v25 }
 0x164   :  { %v1589_v58 = vpop.f32.mrf.mxu1  ;;  %8490 = vmatmul.mubr.msk.bf16.gmra.mxu1 %vm410_vm4, %v1785_v50  ;;  %v1791_v16 = vrot.slane %v14709_v60, 4 }
 0x165   :  { %v11229_v46 = vadd.f32 %v1589_v58, %v724_v38  ;;  %8493 = vmatprep.mubr.msk.bf16.mxu1 %vm9764_vm1, %v14514_v2  ;;  %v8062_v35 = vpop.f32.mrf.mxu0  ;;  %v14708_v38 = vshrl.u32 %v9997_v41, 16 }
 0x166   :  { %v8227_v24 = vpop.f32.mrf.mxu1 }
 0x167   :  { %v732_v29 = vpop.f32.mrf.mxu0  ;;  %8328 = vmatmul.mubr.msk.bf16.gmra.mxu0 %vm410_vm4, %v1785_v50  ;;  %v1790_v52 = vrot.slane %v14708_v38, 3 }
 0x168   :  { %v1592_v62 = vpop.f32.mrf.mxu1  ;;  %8331 = vmatprep.mubr.msk.bf16.mxu0 %vm9764_vm1, %v14514_v2 }
 0x169   :  { %v11234_v13 = vadd.f32 %v1592_v62, %v727_v37  ;;  %v8065_v61 = vpop.f32.mrf.mxu0  ;;  %v1792_v56 = vor.u32 %v1791_v16, %v1790_v52 }
 0x16a   :  { %v8228_v26 = vpop.f32.mrf.mxu1  ;;  %v14712_v61 = vshll.u32 %v10056_v3, 16 }
 0x16b   :  { %14707 = vst [vmem:[#allocation73_spill] sm:$0xff] %v11234_v13  ;;  %v735_v58 = vpop.f32.mrf.mxu0  ;;  %v1793_v38 = vsel %vm1766_vm5, %v1788_v25, %v1792_v56 }
 0x16c   :  { %v1597_v35 = vpop.f32.mrf.mxu1  ;;  %8494 = vmatmul.mubr.msk.bf16.gmra.mxu1 %vm410_vm4, %v1789_v57  ;;  %v1795_v26 = vrot.slane %v14712_v61, 4 }
 0x16d   :  { %v11244_v50 = vadd.f32 %v1597_v35, %v732_v29  ;;  %8497 = vmatprep.mubr.msk.bf16.mxu1 %vm9764_vm1, %v14514_v2  ;;  %v8066_v62 = vpop.f32.mrf.mxu0  ;;  %v14711_v29 = vshrl.u32 %v10056_v3, 16 }
 0x16e   :  { %v8231_v37 = vpop.f32.mrf.mxu1 }
 0x16f   :  { %v740_v24 = vpop.f32.mrf.mxu0  ;;  %8332 = vmatmul.mubr.msk.bf16.gmra.mxu0 %vm410_vm4, %v1789_v57  ;;  %v1794_v60 = vrot.slane %v14711_v29, 3 }
 0x170   :  { %v1600_v13 = vpop.f32.mrf.mxu1  ;;  %8335 = vmatprep.mubr.msk.bf16.mxu0 %vm9764_vm1, %v14514_v2 }
 0x171   :  { %v11249_v41 = vadd.f32 %v1600_v13, %v735_v58  ;;  %v8069_v52 = vpop.f32.mrf.mxu0  ;;  %v1796_v25 = vor.u32 %v1795_v26, %v1794_v60 }
 0x172   :  { %v8232_v16 = vpop.f32.mrf.mxu1  ;;  %v14715_v52 = vshll.u32 %v10119_v0, 16 }
 0x173   :  { %14710 = vst [vmem:[#allocation74_spill] sm:$0xff] %v11249_v41  ;;  %v743_v35 = vpop.f32.mrf.mxu0  ;;  %v1797_v29 = vsel %vm1766_vm5, %v1792_v56, %v1796_v25 }
 0x174   :  { %v1605_v62 = vpop.f32.mrf.mxu1  ;;  %8498 = vmatmul.mubr.msk.bf16.gmra.mxu1 %vm410_vm4, %v1793_v38  ;;  %v1799_v16 = vrot.slane %v14715_v52, 4 }
 0x175   :  { %v11259_v57 = vadd.f32 %v1605_v62, %v740_v24  ;;  %8501 = vmatprep.mubr.msk.bf16.mxu1 %vm9764_vm1, %v14514_v2  ;;  %v8070_v13 = vpop.f32.mrf.mxu0  ;;  %v14714_v24 = vshrl.u32 %v10119_v0, 16 }
 0x176   :  { %v8235_v58 = vpop.f32.mrf.mxu1 }
 0x177   :  { %v748_v37 = vpop.f32.mrf.mxu0  ;;  %8336 = vmatmul.mubr.msk.bf16.gmra.mxu0 %vm410_vm4, %v1793_v38  ;;  %v1798_v61 = vrot.slane %v14714_v24, 3 }
 0x178   :  { %v1608_v41 = vpop.f32.mrf.mxu1  ;;  %8339 = vmatprep.mubr.msk.bf16.mxu0 %vm9764_vm1, %v14514_v2 }
 0x179   :  { %v11264_v3 = vadd.f32 %v1608_v41, %v743_v35  ;;  %v8073_v60 = vpop.f32.mrf.mxu0  ;;  %v1800_v56 = vor.u32 %v1799_v16, %v1798_v61 }
 0x17a   :  { %v8236_v26 = vpop.f32.mrf.mxu1  ;;  %v14718_v60 = vshll.u32 %v10171_v30, 16 }
 0x17b   :  { %14713 = vst [vmem:[#allocation75_spill] sm:$0xff] %v11264_v3  ;;  %v751_v62 = vpop.f32.mrf.mxu0  ;;  %v1801_v24 = vsel %vm1766_vm5, %v1796_v25, %v1800_v56 }
 0x17c   :  { %v1613_v13 = vpop.f32.mrf.mxu1  ;;  %8502 = vmatmul.mubr.msk.bf16.gmra.mxu1 %vm410_vm4, %v1797_v29  ;;  %v1803_v26 = vrot.slane %v14718_v60, 4 }
 0x17d   :  { %v11274_v38 = vadd.f32 %v1613_v13, %v748_v37  ;;  %8505 = vmatprep.mubr.msk.bf16.mxu1 %vm9764_vm1, %v14514_v2  ;;  %v8074_v41 = vpop.f32.mrf.mxu0  ;;  %v14717_v37 = vshrl.u32 %v10171_v30, 16 }
 0x17e   :  { %v8239_v35 = vpop.f32.mrf.mxu1 }
 0x17f   :  { %v756_v58 = vpop.f32.mrf.mxu0  ;;  %8340 = vmatmul.mubr.msk.bf16.gmra.mxu0 %vm410_vm4, %v1797_v29  ;;  %v1802_v52 = vrot.slane %v14717_v37, 3 }
 0x180   :  { %v1616_v3 = vpop.f32.mrf.mxu1  ;;  %8343 = vmatprep.mubr.msk.bf16.mxu0 %vm9764_vm1, %v14514_v2 }
 0x181   :  { %v11279_v0 = vadd.f32 %v1616_v3, %v751_v62  ;;  %v8077_v61 = vpop.f32.mrf.mxu0  ;;  %v1804_v25 = vor.u32 %v1803_v26, %v1802_v52 }
 0x182   :  { %v8240_v16 = vpop.f32.mrf.mxu1  ;;  %v14721_v61 = vshll.u32 %v10253_v7, 16 }
 0x183   :  { %14716 = vst [vmem:[#allocation76_spill] sm:$0xff] %v11279_v0  ;;  %v759_v13 = vpop.f32.mrf.mxu0  ;;  %v1805_v37 = vsel %vm1766_vm5, %v1800_v56, %v1804_v25 }
 0x184   :  { %v1621_v41 = vpop.f32.mrf.mxu1  ;;  %8506 = vmatmul.mubr.msk.bf16.gmra.mxu1 %vm410_vm4, %v1801_v24  ;;  %v1807_v16 = vrot.slane %v14721_v61, 4 }
 0x185   :  { %v11289_v29 = vadd.f32 %v1621_v41, %v756_v58  ;;  %8509 = vmatprep.mubr.msk.bf16.mxu1 %vm9764_vm1, %v14514_v2  ;;  %v8078_v3 = vpop.f32.mrf.mxu0  ;;  %v14720_v58 = vshrl.u32 %v10253_v7, 16 }
 0x186   :  { %v8243_v62 = vpop.f32.mrf.mxu1 }
 0x187   :  { %v764_v35 = vpop.f32.mrf.mxu0  ;;  %8344 = vmatmul.mubr.msk.bf16.gmra.mxu0 %vm410_vm4, %v1801_v24  ;;  %v1806_v60 = vrot.slane %v14720_v58, 3 }
 0x188   :  { %v1624_v0 = vpop.f32.mrf.mxu1  ;;  %8347 = vmatprep.mubr.msk.bf16.mxu0 %vm9764_vm1, %v14514_v2 }
 0x189   :  { %v11294_v30 = vadd.f32 %v1624_v0, %v759_v13  ;;  %v8081_v52 = vpop.f32.mrf.mxu0  ;;  %v1808_v56 = vor.u32 %v1807_v16, %v1806_v60 }
 0x18a   :  { %v8244_v26 = vpop.f32.mrf.mxu1  ;;  %v14724_v52 = vshll.u32 %v10274_v49, 16 }
 0x18b   :  { %14719 = vst [vmem:[#allocation77_spill] sm:$0xff] %v11294_v30  ;;  %v767_v41 = vpop.f32.mrf.mxu0  ;;  %v1809_v58 = vsel %vm1766_vm5, %v1804_v25, %v1808_v56 }
 0x18c   :  { %v1629_v3 = vpop.f32.mrf.mxu1  ;;  %8510 = vmatmul.mubr.msk.bf16.gmra.mxu1 %vm410_vm4, %v1805_v37  ;;  %v1811_v26 = vrot.slane %v14724_v52, 4 }
 0x18d   :  { %v11304_v24 = vadd.f32 %v1629_v3, %v764_v35  ;;  %8513 = vmatprep.mubr.msk.bf16.mxu1 %vm9764_vm1, %v14514_v2  ;;  %v8082_v0 = vpop.f32.mrf.mxu0  ;;  %v14723_v35 = vshrl.u32 %v10274_v49, 16 }
 0x18e   :  { %v8247_v13 = vpop.f32.mrf.mxu1 }
 0x18f   :  { %v772_v62 = vpop.f32.mrf.mxu0  ;;  %8348 = vmatmul.mubr.msk.bf16.gmra.mxu0 %vm410_vm4, %v1805_v37  ;;  %v1810_v61 = vrot.slane %v14723_v35, 3 }
 0x190   :  { %v1632_v30 = vpop.f32.mrf.mxu1  ;;  %8351 = vmatprep.mubr.msk.bf16.mxu0 %vm9764_vm1, %v14514_v2 }
 0x191   :  { %v11309_v7 = vadd.f32 %v1632_v30, %v767_v41  ;;  %v8085_v60 = vpop.f32.mrf.mxu0  ;;  %v1812_v25 = vor.u32 %v1811_v26, %v1810_v61 }
 0x192   :  { %v8248_v16 = vpop.f32.mrf.mxu1  ;;  %v14727_v60 = vshll.u32 %v10319_v32, 16 }
 0x193   :  { %14722 = vst [vmem:[#allocation78_spill] sm:$0xff] %v11309_v7  ;;  %v775_v3 = vpop.f32.mrf.mxu0  ;;  %v1813_v35 = vsel %vm1766_vm5, %v1808_v56, %v1812_v25 }
 0x194   :  { %v1637_v0 = vpop.f32.mrf.mxu1  ;;  %8514 = vmatmul.mubr.msk.bf16.gmra.mxu1 %vm410_vm4, %v1809_v58  ;;  %v1815_v16 = vrot.slane %v14727_v60, 4 }
 0x195   :  { %v11319_v37 = vadd.f32 %v1637_v0, %v772_v62  ;;  %8517 = vmatprep.mubr.msk.bf16.mxu1 %vm9764_vm1, %v14514_v2  ;;  %v8086_v30 = vpop.f32.mrf.mxu0  ;;  %v14726_v62 = vshrl.u32 %v10319_v32, 16 }
 0x196   :  { %v8251_v41 = vpop.f32.mrf.mxu1 }
 0x197   :  { %v780_v13 = vpop.f32.mrf.mxu0  ;;  %8352 = vmatmul.mubr.msk.bf16.gmra.mxu0 %vm410_vm4, %v1809_v58  ;;  %v1814_v52 = vrot.slane %v14726_v62, 3 }
 0x198   :  { %v1640_v7 = vpop.f32.mrf.mxu1  ;;  %8355 = vmatprep.mubr.msk.bf16.mxu0 %vm9764_vm1, %v14514_v2 }
 0x199   :  { %v11324_v49 = vadd.f32 %v1640_v7, %v775_v3  ;;  %v8089_v61 = vpop.f32.mrf.mxu0  ;;  %v1816_v56 = vor.u32 %v1815_v16, %v1814_v52 }
 0x19a   :  { %v8252_v26 = vpop.f32.mrf.mxu1  ;;  %v14730_v61 = vshll.u32 %v10352_v33, 16 }
 0x19b   :  { %14725 = vst [vmem:[#allocation79_spill] sm:$0xff] %v11324_v49  ;;  %v783_v0 = vpop.f32.mrf.mxu0  ;;  %v1817_v62 = vsel %vm1766_vm5, %v1812_v25, %v1816_v56 }
 0x19c   :  { %v1645_v30 = vpop.f32.mrf.mxu1  ;;  %8518 = vmatmul.mubr.msk.bf16.gmra.mxu1 %vm410_vm4, %v1813_v35  ;;  %v1819_v26 = vrot.slane %v14730_v61, 4 }
 0x19d   :  { %v11334_v58 = vadd.f32 %v1645_v30, %v780_v13  ;;  %8521 = vmatprep.mubr.msk.bf16.mxu1 %vm9764_vm1, %v14514_v2  ;;  %v8090_v7 = vpop.f32.mrf.mxu0  ;;  %v14729_v13 = vshrl.u32 %v10352_v33, 16 }
 0x19e   :  { %v8255_v3 = vpop.f32.mrf.mxu1 }
 0x19f   :  { %v788_v41 = vpop.f32.mrf.mxu0  ;;  %8356 = vmatmul.mubr.msk.bf16.gmra.mxu0 %vm410_vm4, %v1813_v35  ;;  %v1818_v60 = vrot.slane %v14729_v13, 3 }
 0x1a0   :  { %v1648_v49 = vpop.f32.mrf.mxu1  ;;  %8359 = vmatprep.mubr.msk.bf16.mxu0 %vm9764_vm1, %v14514_v2 }
 0x1a1   :  { %v11339_v32 = vadd.f32 %v1648_v49, %v783_v0  ;;  %v8093_v52 = vpop.f32.mrf.mxu0  ;;  %v1820_v25 = vor.u32 %v1819_v26, %v1818_v60 }
 0x1a2   :  { %v8256_v16 = vpop.f32.mrf.mxu1  ;;  %v14733_v52 = vshll.u32 %v10374_v19, 16 }
 0x1a3   :  { %14728 = vst [vmem:[#allocation80_spill] sm:$0xff] %v11339_v32  ;;  %v791_v30 = vpop.f32.mrf.mxu0  ;;  %v1821_v13 = vsel %vm1766_vm5, %v1816_v56, %v1820_v25 }
 0x1a4   :  { %v1653_v7 = vpop.f32.mrf.mxu1  ;;  %8522 = vmatmul.mubr.msk.bf16.gmra.mxu1 %vm410_vm4, %v1817_v62  ;;  %v1823_v16 = vrot.slane %v14733_v52, 4 }
 0x1a5   :  { %v11349_v35 = vadd.f32 %v1653_v7, %v788_v41  ;;  %8525 = vmatprep.mubr.msk.bf16.mxu1 %vm9764_vm1, %v14514_v2  ;;  %v8094_v49 = vpop.f32.mrf.mxu0  ;;  %v14732_v41 = vshrl.u32 %v10374_v19, 16 }
 0x1a6   :  { %v8259_v0 = vpop.f32.mrf.mxu1 }
 0x1a7   :  { %v796_v3 = vpop.f32.mrf.mxu0  ;;  %8360 = vmatmul.mubr.msk.bf16.gmra.mxu0 %vm410_vm4, %v1817_v62  ;;  %v1822_v61 = vrot.slane %v14732_v41, 3 }
 0x1a8   :  { %v1656_v32 = vpop.f32.mrf.mxu1  ;;  %8363 = vmatprep.mubr.msk.bf16.mxu0 %vm9764_vm1, %v14514_v2 }
 0x1a9   :  { %v11354_v33 = vadd.f32 %v1656_v32, %v791_v30  ;;  %v8097_v60 = vpop.f32.mrf.mxu0  ;;  %v1824_v56 = vor.u32 %v1823_v16, %v1822_v61 }
 0x1aa   :  { %v8260_v26 = vpop.f32.mrf.mxu1  ;;  %v14736_v60 = vshll.u32 %v10418_v59, 16 }
 0x1ab   :  { %14731 = vst [vmem:[#allocation81_spill] sm:$0xff] %v11354_v33  ;;  %v799_v7 = vpop.f32.mrf.mxu0  ;;  %v1825_v41 = vsel %vm1766_vm5, %v1820_v25, %v1824_v56 }
 0x1ac   :  { %v1661_v49 = vpop.f32.mrf.mxu1  ;;  %8526 = vmatmul.mubr.msk.bf16.gmra.mxu1 %vm410_vm4, %v1821_v13  ;;  %v1827_v26 = vrot.slane %v14736_v60, 4 }
 0x1ad   :  { %v11364_v62 = vadd.f32 %v1661_v49, %v796_v3  ;;  %8529 = vmatprep.mubr.msk.bf16.mxu1 %vm9764_vm1, %v14514_v2  ;;  %v8098_v32 = vpop.f32.mrf.mxu0  ;;  %v14735_v3 = vshrl.u32 %v10418_v59, 16 }
 0x1ae   :  { %v8263_v30 = vpop.f32.mrf.mxu1 }
 0x1af   :  { %v804_v0 = vpop.f32.mrf.mxu0  ;;  %8364 = vmatmul.mubr.msk.bf16.gmra.mxu0 %vm410_vm4, %v1821_v13  ;;  %v1826_v52 = vrot.slane %v14735_v3, 3 }
 0x1b0   :  { %v1664_v33 = vpop.f32.mrf.mxu1  ;;  %8367 = vmatprep.mubr.msk.bf16.mxu0 %vm9764_vm1, %v14514_v2 }
 0x1b1   :  { %v11369_v19 = vadd.f32 %v1664_v33, %v799_v7  ;;  %v8101_v61 = vpop.f32.mrf.mxu0  ;;  %v1828_v25 = vor.u32 %v1827_v26, %v1826_v52 }
 0x1b2   :  { %v8264_v16 = vpop.f32.mrf.mxu1  ;;  %v14739_v61 = vshll.u32 %v10439_v15, 16 }
 0x1b3   :  { %14734 = vst [vmem:[#allocation82_spill] sm:$0xff] %v11369_v19  ;;  %v807_v49 = vpop.f32.mrf.mxu0  ;;  %v1829_v3 = vsel %vm1766_vm5, %v1824_v56, %v1828_v25 }
 0x1b4   :  { %v1669_v32 = vpop.f32.mrf.mxu1  ;;  %8530 = vmatmul.mubr.msk.bf16.gmra.mxu1 %vm410_vm4, %v1825_v41  ;;  %v1831_v16 = vrot.slane %v14739_v61, 4 }
 0x1b5   :  { %v11379_v13 = vadd.f32 %v1669_v32, %v804_v0  ;;  %8533 = vmatprep.mubr.msk.bf16.mxu1 %vm9764_vm1, %v14514_v2  ;;  %v8102_v33 = vpop.f32.mrf.mxu0  ;;  %v14738_v0 = vshrl.u32 %v10439_v15, 16 }
 0x1b6   :  { %v8267_v7 = vpop.f32.mrf.mxu1 }
 0x1b7   :  { %v812_v30 = vpop.f32.mrf.mxu0  ;;  %8368 = vmatmul.mubr.msk.bf16.gmra.mxu0 %vm410_vm4, %v1825_v41  ;;  %v1830_v60 = vrot.slane %v14738_v0, 3 }
 0x1b8   :  { %v1672_v19 = vpop.f32.mrf.mxu1  ;;  %8371 = vmatprep.mubr.msk.bf16.mxu0 %vm9764_vm1, %v14514_v2 }
 0x1b9   :  { %v11384_v59 = vadd.f32 %v1672_v19, %v807_v49  ;;  %v8105_v52 = vpop.f32.mrf.mxu0  ;;  %v1832_v56 = vor.u32 %v1831_v16, %v1830_v60 }
 0x1ba   :  { %v8268_v26 = vpop.f32.mrf.mxu1  ;;  %v14742_v52 = vshll.u32 %v10484_v5, 16 }
 0x1bb   :  { %14737 = vst [vmem:[#allocation83_spill] sm:$0xff] %v11384_v59  ;;  %v815_v32 = vpop.f32.mrf.mxu0  ;;  %v1833_v0 = vsel %vm1766_vm5, %v1828_v25, %v1832_v56 }
 0x1bc   :  { %v1677_v33 = vpop.f32.mrf.mxu1  ;;  %8534 = vmatmul.mubr.msk.bf16.gmra.mxu1 %vm410_vm4, %v1829_v3  ;;  %v1835_v26 = vrot.slane %v14742_v52, 4  ;;  %v14745_v52 = vld [vmem:[#allocation35_spill] sm:$0xff] }
 0x1bd   :  { %v11394_v41 = vadd.f32 %v1677_v33, %v812_v30  ;;  %8537 = vmatprep.mubr.msk.bf16.mxu1 %vm9764_vm1, %v14514_v2  ;;  %v8106_v19 = vpop.f32.mrf.mxu0  ;;  %v14741_v30 = vshrl.u32 %v10484_v5, 16 }
 0x1be   :  { %v8271_v49 = vpop.f32.mrf.mxu1 }
 0x1bf   :  { %v820_v7 = vpop.f32.mrf.mxu0  ;;  %8372 = vmatmul.mubr.msk.bf16.gmra.mxu0 %vm410_vm4, %v1829_v3  ;;  %v1834_v61 = vrot.slane %v14741_v30, 3 }
 0x1c0   :  { %v1680_v59 = vpop.f32.mrf.mxu1  ;;  %8375 = vmatprep.mubr.msk.bf16.mxu0 %vm9764_vm1, %v14514_v2 }
 0x1c1   :  { %v11399_v15 = vadd.f32 %v1680_v59, %v815_v32  ;;  %v8109_v60 = vpop.f32.mrf.mxu0  ;;  %v1836_v25 = vor.u32 %v1835_v26, %v1834_v61 }
 0x1c2   :  { %v8272_v16 = vpop.f32.mrf.mxu1 }
 0x1c3   :  { %14740 = vst [vmem:[#allocation84_spill] sm:$0xff] %v11399_v15  ;;  %v823_v33 = vpop.f32.mrf.mxu0  ;;  %v1837_v30 = vsel %vm1766_vm5, %v1832_v56, %v1836_v25  ;;  %v14747_v16 = vshll.u32 %v14745_v52, 16 }
 0x1c4   :  { %v1685_v19 = vpop.f32.mrf.mxu1  ;;  %8538 = vmatmul.mubr.msk.bf16.gmra.mxu1 %vm410_vm4, %v1833_v0 }
 0x1c5   :  { %v11409_v3 = vadd.f32 %v1685_v19, %v820_v7  ;;  %8541 = vmatprep.mubr.msk.bf16.mxu1 %vm9764_vm1, %v14514_v2  ;;  %v8110_v59 = vpop.f32.mrf.mxu0  ;;  %v14746_v7 = vshrl.u32 %v14745_v52, 16  ;;  %v1839_v19 = vrot.slane %v14747_v16, 4  ;;  %v14750_v16 = vld [vmem:[#allocation38_spill] sm:$0xff] }
 0x1c6   :  { %v8275_v32 = vpop.f32.mrf.mxu1 }
 0x1c7   :  { %14743 = vst [vmem:[#allocation85_spill] sm:$0xff] %v11409_v3  ;;  %v828_v49 = vpop.f32.mrf.mxu0  ;;  %8376 = vmatmul.mubr.msk.bf16.gmra.mxu0 %vm410_vm4, %v1833_v0  ;;  %v1838_v60 = vrot.slane %v14746_v7, 3 }
 0x1c8   :  { %v1688_v15 = vpop.f32.mrf.mxu1  ;;  %8379 = vmatprep.mubr.msk.bf16.mxu0 %vm9764_vm1, %v14514_v2 }
 0x1c9   :  { %v11414_v5 = vadd.f32 %v1688_v15, %v823_v33  ;;  %v8113_v61 = vpop.f32.mrf.mxu0  ;;  %v1840_v56 = vor.u32 %v1839_v19, %v1838_v60 }
 0x1ca   :  { %v8276_v26 = vpop.f32.mrf.mxu1 }
 0x1cb   :  { %14744 = vst [vmem:[#allocation86_spill] sm:$0xff] %v11414_v5  ;;  %v831_v59 = vpop.f32.mrf.mxu0  ;;  %v1841_v7 = vsel %vm1766_vm5, %v1836_v25, %v1840_v56  ;;  %v14752_v26 = vshll.u32 %v14750_v16, 16 }
 0x1cc   :  { %v1693_v32 = vpop.f32.mrf.mxu1  ;;  %8542 = vmatmul.mubr.msk.bf16.gmra.mxu1 %vm410_vm4, %v1837_v30 }
 0x1cd   :  { %v11424_v0 = vadd.f32 %v1693_v32, %v828_v49  ;;  %8545 = vmatprep.mubr.msk.bf16.mxu1 %vm9764_vm1, %v14514_v2  ;;  %v8114_v15 = vpop.f32.mrf.mxu0  ;;  %v14751_v49 = vshrl.u32 %v14750_v16, 16  ;;  %v1843_v32 = vrot.slane %v14752_v26, 4  ;;  %v14755_v26 = vld [vmem:[#allocation39_spill] sm:$0xff] }
 0x1ce   :  { %v8279_v33 = vpop.f32.mrf.mxu1 }
 0x1cf   :  { %14748 = vst [vmem:[#allocation35_spill] sm:$0xff] %v11424_v0  ;;  %v836_v5 = vpop.f32.mrf.mxu0  ;;  %8380 = vmatmul.mubr.msk.bf16.gmra.mxu0 %vm410_vm4, %v1837_v30  ;;  %v1842_v61 = vrot.slane %v14751_v49, 3 }
 0x1d0   :  { %v1696_v3 = vpop.f32.mrf.mxu1  ;;  %8383 = vmatprep.mubr.msk.bf16.mxu0 %vm9764_vm1, %v14514_v2 }
 0x1d1   :  { %v11429_v52 = vadd.f32 %v1696_v3, %v831_v59  ;;  %v8117_v60 = vpop.f32.mrf.mxu0  ;;  %v1844_v3 = vor.u32 %v1843_v32, %v1842_v61 }
 0x1d2   :  { %v8280_v19 = vpop.f32.mrf.mxu1 }
 0x1d3   :  { %14749 = vst [vmem:[#allocation87_spill] sm:$0xff] %v11429_v52  ;;  %v839_v15 = vpop.f32.mrf.mxu0  ;;  %v1845_v49 = vsel %vm1766_vm5, %v1840_v56, %v1844_v3  ;;  %v14757_v19 = vshll.u32 %v14755_v26, 16 }
 0x1d4   :  { %v1701_v33 = vpop.f32.mrf.mxu1  ;;  %8546 = vmatmul.mubr.msk.bf16.gmra.mxu1 %vm410_vm4, %v1841_v7 }
 0x1d5   :  { %v11439_v30 = vadd.f32 %v1701_v33, %v836_v5  ;;  %8549 = vmatprep.mubr.msk.bf16.mxu1 %vm9764_vm1, %v14514_v2  ;;  %v8118_v25 = vpop.f32.mrf.mxu0  ;;  %v14756_v5 = vshrl.u32 %v14755_v26, 16  ;;  %v1847_v33 = vrot.slane %v14757_v19, 4  ;;  %v14760_v19 = vld [vmem:[#allocation42_spill] sm:$0xff] }
 0x1d6   :  { %v8283_v59 = vpop.f32.mrf.mxu1 }
 0x1d7   :  { %14753 = vst [vmem:[#allocation38_spill] sm:$0xff] %v11439_v30  ;;  %v844_v52 = vpop.f32.mrf.mxu0  ;;  %8384 = vmatmul.mubr.msk.bf16.gmra.mxu0 %vm410_vm4, %v1841_v7  ;;  %v1846_v60 = vrot.slane %v14756_v5, 3 }
 0x1d8   :  { %v1704_v0 = vpop.f32.mrf.mxu1  ;;  %8387 = vmatprep.mubr.msk.bf16.mxu0 %vm9764_vm1, %v14514_v2 }
 0x1d9   :  { %v11444_v16 = vadd.f32 %v1704_v0, %v839_v15  ;;  %v8121_v61 = vpop.f32.mrf.mxu0  ;;  %v1848_v0 = vor.u32 %v1847_v33, %v1846_v60 }
 0x1da   :  { %v8284_v32 = vpop.f32.mrf.mxu1 }
 0x1db   :  { %14754 = vst [vmem:[#allocation88_spill] sm:$0xff] %v11444_v16  ;;  %v847_v25 = vpop.f32.mrf.mxu0  ;;  %v1849_v5 = vsel %vm1766_vm5, %v1844_v3, %v1848_v0  ;;  %v14762_v32 = vshll.u32 %v14760_v19, 16 }
 0x1dc   :  { %v1709_v59 = vpop.f32.mrf.mxu1  ;;  %8550 = vmatmul.mubr.msk.bf16.gmra.mxu1 %vm410_vm4, %v1845_v49 }
 0x1dd   :  { %v11454_v7 = vadd.f32 %v1709_v59, %v844_v52  ;;  %8553 = vmatprep.mubr.msk.bf16.mxu1 %vm9764_vm1, %v14514_v2  ;;  %v8122_v56 = vpop.f32.mrf.mxu0  ;;  %v14761_v52 = vshrl.u32 %v14760_v19, 16  ;;  %v1851_v59 = vrot.slane %v14762_v32, 4  ;;  %v14765_v32 = vld [vmem:[#allocation43_spill] sm:$0xff] }
 0x1de   :  { %v8287_v15 = vpop.f32.mrf.mxu1 }
 0x1df   :  { %14758 = vst [vmem:[#allocation39_spill] sm:$0xff] %v11454_v7  ;;  %v852_v16 = vpop.f32.mrf.mxu0  ;;  %8388 = vmatmul.mubr.msk.bf16.gmra.mxu0 %vm410_vm4, %v1845_v49  ;;  %v1850_v61 = vrot.slane %v14761_v52, 3 }
 0x1e0   :  { %v1712_v30 = vpop.f32.mrf.mxu1  ;;  %8391 = vmatprep.mubr.msk.bf16.mxu0 %vm9764_vm1, %v14514_v2 }
 0x1e1   :  { %v11459_v26 = vadd.f32 %v1712_v30, %v847_v25  ;;  %v8125_v60 = vpop.f32.mrf.mxu0  ;;  %v1852_v30 = vor.u32 %v1851_v59, %v1850_v61 }
 0x1e2   :  { %v8288_v33 = vpop.f32.mrf.mxu1 }
 0x1e3   :  { %14759 = vst [vmem:[#allocation89_spill] sm:$0xff] %v11459_v26  ;;  %v855_v56 = vpop.f32.mrf.mxu0  ;;  %v1853_v52 = vsel %vm1766_vm5, %v1848_v0, %v1852_v30  ;;  %v14767_v33 = vshll.u32 %v14765_v32, 16 }
 0x1e4   :  { %v1717_v15 = vpop.f32.mrf.mxu1  ;;  %8554 = vmatmul.mubr.msk.bf16.gmra.mxu1 %vm410_vm4, %v1849_v5 }
 0x1e5   :  { %v11469_v49 = vadd.f32 %v1717_v15, %v852_v16  ;;  %8557 = vmatprep.mubr.msk.bf16.mxu1 %vm9764_vm1, %v14514_v2  ;;  %v8126_v3 = vpop.f32.mrf.mxu0  ;;  %v14766_v16 = vshrl.u32 %v14765_v32, 16  ;;  %v1855_v15 = vrot.slane %v14767_v33, 4  ;;  %v14770_v33 = vld [vmem:[#allocation46_spill] sm:$0xff] }
 0x1e6   :  { %v8291_v25 = vpop.f32.mrf.mxu1 }
 0x1e7   :  { %14763 = vst [vmem:[#allocation42_spill] sm:$0xff] %v11469_v49  ;;  %v860_v26 = vpop.f32.mrf.mxu0  ;;  %8392 = vmatmul.mubr.msk.bf16.gmra.mxu0 %vm410_vm4, %v1849_v5  ;;  %v1854_v60 = vrot.slane %v14766_v16, 3 }
 0x1e8   :  { %v1720_v7 = vpop.f32.mrf.mxu1  ;;  %8395 = vmatprep.mubr.msk.bf16.mxu0 %vm9764_vm1, %v14514_v2 }
 0x1e9   :  { %v11474_v19 = vadd.f32 %v1720_v7, %v855_v56  ;;  %v8129_v61 = vpop.f32.mrf.mxu0  ;;  %v1856_v7 = vor.u32 %v1855_v15, %v1854_v60 }
 0x1ea   :  { %v8292_v59 = vpop.f32.mrf.mxu1 }
 0x1eb   :  { %14764 = vst [vmem:[#allocation90_spill] sm:$0xff] %v11474_v19  ;;  %v863_v3 = vpop.f32.mrf.mxu0  ;;  %v1857_v16 = vsel %vm1766_vm5, %v1852_v30, %v1856_v7  ;;  %v14772_v59 = vshll.u32 %v14770_v33, 16 }
 0x1ec   :  { %v1725_v25 = vpop.f32.mrf.mxu1  ;;  %8558 = vmatmul.mubr.msk.bf16.gmra.mxu1 %vm410_vm4, %v1853_v52 }
 0x1ed   :  { %v11484_v5 = vadd.f32 %v1725_v25, %v860_v26  ;;  %8561 = vmatprep.mubr.msk.bf16.mxu1 %vm9764_vm1, %v14514_v2  ;;  %v8130_v0 = vpop.f32.mrf.mxu0  ;;  %v14771_v26 = vshrl.u32 %v14770_v33, 16  ;;  %v1859_v25 = vrot.slane %v14772_v59, 4  ;;  %v14775_v59 = vld [vmem:[#allocation47_spill] sm:$0xff] }
 0x1ee   :  { %v8295_v56 = vpop.f32.mrf.mxu1 }
 0x1ef   :  { %14768 = vst [vmem:[#allocation43_spill] sm:$0xff] %v11484_v5  ;;  %v868_v19 = vpop.f32.mrf.mxu0  ;;  %8396 = vmatmul.mubr.msk.bf16.gmra.mxu0 %vm410_vm4, %v1853_v52  ;;  %v1858_v61 = vrot.slane %v14771_v26, 3 }
 0x1f0   :  { %v1728_v49 = vpop.f32.mrf.mxu1  ;;  %8399 = vmatprep.mubr.msk.bf16.mxu0 %vm9764_vm1, %v14514_v2 }
 0x1f1   :  { %v11489_v32 = vadd.f32 %v1728_v49, %v863_v3  ;;  %v8133_v60 = vpop.f32.mrf.mxu0  ;;  %v1860_v49 = vor.u32 %v1859_v25, %v1858_v61 }
 0x1f2   :  { %v8296_v15 = vpop.f32.mrf.mxu1 }
 0x1f3   :  { %14769 = vst [vmem:[#allocation91_spill] sm:$0xff] %v11489_v32  ;;  %v871_v0 = vpop.f32.mrf.mxu0  ;;  %v1861_v26 = vsel %vm1766_vm5, %v1856_v7, %v1860_v49  ;;  %v14777_v15 = vshll.u32 %v14775_v59, 16 }
 0x1f4   :  { %v1733_v56 = vpop.f32.mrf.mxu1  ;;  %8562 = vmatmul.mubr.msk.bf16.gmra.mxu1 %vm410_vm4, %v1857_v16 }
 0x1f5   :  { %v11499_v52 = vadd.f32 %v1733_v56, %v868_v19  ;;  %8565 = vmatprep.mubr.msk.bf16.mxu1 %vm9764_vm1, %v14514_v2  ;;  %v8134_v30 = vpop.f32.mrf.mxu0  ;;  %v14776_v19 = vshrl.u32 %v14775_v59, 16  ;;  %v1863_v56 = vrot.slane %v14777_v15, 4  ;;  %v14780_v15 = vld [vmem:[#allocation50_spill] sm:$0xff] }
 0x1f6   :  { %v8299_v3 = vpop.f32.mrf.mxu1 }
 0x1f7   :  { %14773 = vst [vmem:[#allocation46_spill] sm:$0xff] %v11499_v52  ;;  %v876_v32 = vpop.f32.mrf.mxu0  ;;  %8400 = vmatmul.mubr.msk.bf16.gmra.mxu0 %vm410_vm4, %v1857_v16  ;;  %v1862_v60 = vrot.slane %v14776_v19, 3 }
 0x1f8   :  { %v1736_v5 = vpop.f32.mrf.mxu1  ;;  %8403 = vmatprep.mubr.msk.bf16.mxu0 %vm9764_vm1, %v14514_v2 }
 0x1f9   :  { %v11504_v33 = vadd.f32 %v1736_v5, %v871_v0  ;;  %v8137_v61 = vpop.f32.mrf.mxu0  ;;  %v1864_v5 = vor.u32 %v1863_v56, %v1862_v60 }
 0x1fa   :  { %v8300_v25 = vpop.f32.mrf.mxu1 }
 0x1fb   :  { %14774 = vst [vmem:[#allocation92_spill] sm:$0xff] %v11504_v33  ;;  %v879_v30 = vpop.f32.mrf.mxu0  ;;  %v1865_v19 = vsel %vm1766_vm5, %v1860_v49, %v1864_v5  ;;  %v14782_v25 = vshll.u32 %v14780_v15, 16 }
 0x1fc   :  { %v1741_v3 = vpop.f32.mrf.mxu1  ;;  %8566 = vmatmul.mubr.msk.bf16.gmra.mxu1 %vm410_vm4, %v1861_v26 }
 0x1fd   :  { %v11514_v16 = vadd.f32 %v1741_v3, %v876_v32  ;;  %8569 = vmatprep.mubr.msk.bf16.mxu1 %vm9764_vm1, %v14514_v2  ;;  %v8138_v7 = vpop.f32.mrf.mxu0  ;;  %v14781_v32 = vshrl.u32 %v14780_v15, 16  ;;  %v1867_v3 = vrot.slane %v14782_v25, 4  ;;  %v14785_v25 = vld [vmem:[#allocation51_spill] sm:$0xff] }
 0x1fe   :  { %v8303_v0 = vpop.f32.mrf.mxu1 }
 0x1ff   :  { %14778 = vst [vmem:[#allocation47_spill] sm:$0xff] %v11514_v16  ;;  %v884_v33 = vpop.f32.mrf.mxu0  ;;  %8404 = vmatmul.mubr.msk.bf16.gmra.mxu0 %vm410_vm4, %v1861_v26  ;;  %v1866_v61 = vrot.slane %v14781_v32, 3 }
 0x200   :  { %v1744_v52 = vpop.f32.mrf.mxu1  ;;  %8407 = vmatprep.mubr.msk.bf16.mxu0 %vm9764_vm1, %v14514_v2 }
 0x201   :  { %v11519_v59 = vadd.f32 %v1744_v52, %v879_v30  ;;  %v8141_v60 = vpop.f32.mrf.mxu0  ;;  %v1868_v52 = vor.u32 %v1867_v3, %v1866_v61 }
 0x202   :  { %v8304_v56 = vpop.f32.mrf.mxu1 }
 0x203   :  { %14779 = vst [vmem:[#allocation93_spill] sm:$0xff] %v11519_v59  ;;  %v887_v7 = vpop.f32.mrf.mxu0  ;;  %v1869_v32 = vsel %vm1766_vm5, %v1864_v5, %v1868_v52  ;;  %v14787_v56 = vshll.u32 %v14785_v25, 16 }
 0x204   :  { %v1749_v0 = vpop.f32.mrf.mxu1  ;;  %8570 = vmatmul.mubr.msk.bf16.gmra.mxu1 %vm410_vm4, %v1865_v19 }
 0x205   :  { %v11529_v26 = vadd.f32 %v1749_v0, %v884_v33  ;;  %8573 = vmatprep.mubr.msk.bf16.mxu1 %vm9764_vm1, %v14514_v2  ;;  %v8142_v49 = vpop.f32.mrf.mxu0  ;;  %v14786_v33 = vshrl.u32 %v14785_v25, 16  ;;  %v1871_v0 = vrot.slane %v14787_v56, 4  ;;  %v14788_v25 = vshrl.u32 %v10800_v8, 16 }
 0x206   :  { %v8307_v30 = vpop.f32.mrf.mxu1  ;;  %v14789_v56 = vshll.u32 %v10800_v8, 16  ;;  %v11563_v8 = vld [vmem:[%s14369_s0 + $0x150] sm:$0xf] }
 0x207   :  { %14783 = vst [vmem:[#allocation50_spill] sm:$0xff] %v11529_v26  ;;  %v892_v59 = vpop.f32.mrf.mxu0  ;;  %8408 = vmatmul.mubr.msk.bf16.gmra.mxu0 %vm410_vm4, %v1865_v19  ;;  %v1870_v60 = vrot.slane %v14786_v33, 3  ;;  %v1874_v33 = vrot.slane %v14788_v25, 3 }
 0x208   :  { %v1752_v16 = vpop.f32.mrf.mxu1  ;;  %8411 = vmatprep.mubr.msk.bf16.mxu0 %vm9764_vm1, %v14514_v2 }
 0x209   :  { %v11534_v15 = vadd.f32 %v1752_v16, %v887_v7  ;;  %v8145_v61 = vpop.f32.mrf.mxu0  ;;  %v1872_v16 = vor.u32 %v1871_v0, %v1870_v60 }
 0x20a   :  { %v8308_v3 = vpop.f32.mrf.mxu1  ;;  %v1875_v61 = vrot.slane %v14789_v56, 4 }
 0x20b   :  { %14784 = vst [vmem:[#allocation94_spill] sm:$0xff] %v11534_v15  ;;  %v895_v49 = vpop.f32.mrf.mxu0 }
 0x20c   :  { %v1757_v30 = vpop.f32.mrf.mxu1  ;;  %8574 = vmatmul.mubr.msk.bf16.gmra.mxu1 %vm410_vm4, %v1869_v32 }
 0x20d   :  { %v11544_v19 = vadd.f32 %v1757_v30, %v892_v59  ;;  %8577 = vmatprep.mubr.msk.bf16.mxu1 %vm9764_vm1, %v14514_v2  ;;  %v8146_v5 = vpop.f32.mrf.mxu0  ;;  %v1873_v30 = vsel %vm1766_vm5, %v1868_v52, %v1872_v16 }
 0x20e   :  { %v8311_v7 = vpop.f32.mrf.mxu1 }
 0x20f   :  { %v2094_v26 = vpop.f32.mrf.mxu0  ;;  %8412 = vmatmul.mubr.msk.bf16.gmra.mxu0 %vm410_vm4, %v1869_v32  ;;  %v1876_v32 = vor.u32 %v1875_v61, %v1874_v33 }
 0x210   :  { %v1760_v15 = vpop.f32.mrf.mxu1  ;;  %v2421_v59 = vadd.f32 %v2094_v26, %v10803_v17  ;;  %8415 = vmatprep.mubr.msk.bf16.mxu0 %vm9764_vm1, %v14514_v2  ;;  %v11568_v17 = vld [vmem:[%s14369_s0 + $0x154] sm:$0xf] }
 0x211   :  { %v11553_v3 = vadd.f32 %v1760_v15, %v895_v49  ;;  %v8317_v0 = vpop.f32.mrf.mxu0  ;;  %v14791_v26 = vld [vmem:[#allocation53_spill] sm:$0xff]  ;;  %v11577_v49 = vcombine.low %v11563_v8, %v11568_v17 }
 0x212   :  { %v8312_v60 = vpop.f32.mrf.mxu1 }
 0x213   :  { %14790 = vst [vmem:[#allocation51_spill] sm:$0xff] %v11553_v3  ;;  %v2097_v5 = vpop.f32.mrf.mxu0  ;;  %14793 = vst [vmem:[#allocation95_spill] sm:$0xff] %v11577_v49  ;;  %v1877_v60 = vsel %vm1766_vm5, %v1872_v16, %v1876_v32  ;;  %v14799_v3 = vld [vmem:[#allocation54_spill] sm:$0xff] }
 0x214   :  { %v2572_v7 = vpop.f32.mrf.mxu1  ;;  %8578 = vmatmul.mubr.msk.bf16.gmra.mxu1 %vm410_vm4, %v1873_v30  ;;  %v2422_v52 = vadd.f32 %v2097_v5, %v14791_v26  ;;  %v14796_v26 = vshll.u32 %v10821_v54, 16 }
 0x215   :  { %v11571_v15 = vadd.f32 %v2572_v7, %v2421_v59  ;;  %8581 = vmatprep.mubr.msk.bf16.mxu1 %vm9764_vm1, %v14514_v2  ;;  %v8318_v25 = vpop.f32.mrf.mxu0  ;;  %v14795_v59 = vshrl.u32 %v10821_v54, 16 }
 0x216   :  { %v8483_v33 = vpop.f32.mrf.mxu1  ;;  %v1879_v25 = vrot.slane %v14796_v26, 4 }
 0x217   :  { %14792 = vst [vmem:[#allocation53_spill] sm:$0xff] %v11571_v15  ;;  %v2102_v56 = vpop.f32.mrf.mxu0  ;;  %8416 = vmatmul.mubr.msk.bf16.gmra.mxu0 %vm410_vm4, %v1873_v30  ;;  %v1878_v7 = vrot.slane %v14795_v59, 3 }
 0x218   :  { %v2575_v61 = vpop.f32.mrf.mxu1  ;;  %v2423_v0 = vadd.f32 %v2102_v56, %v10840_v44  ;;  %8419 = vmatprep.mubr.msk.bf16.mxu0 %vm9764_vm1, %v14514_v2 }
 0x219   :  { %v11582_v5 = vadd.f32 %v2575_v61, %v2422_v52  ;;  %v8321_v33 = vpop.f32.mrf.mxu0  ;;  %v1880_v52 = vor.u32 %v1879_v25, %v1878_v7 }
 0x21a   :  { %v8484_v49 = vpop.f32.mrf.mxu1  ;;  %v14798_v33 = vshll.u32 %v10858_v31, 16 }
 0x21b   :  { %14794 = vst [vmem:[#allocation96_spill] sm:$0xff] %v11582_v5  ;;  %v2105_v15 = vpop.f32.mrf.mxu0  ;;  %v14797_v49 = vshrl.u32 %v10858_v31, 16 }
 0x21c   :  { %v2580_v30 = vpop.f32.mrf.mxu1  ;;  %8582 = vmatmul.mubr.msk.bf16.gmra.mxu1 %vm410_vm4, %v1877_v60  ;;  %v2424_v16 = vadd.f32 %v2105_v15, %v10850_v4  ;;  %v1883_v5 = vrot.slane %v14798_v33, 4 }
 0x21d   :  { %v11592_v44 = vadd.f32 %v2580_v30, %v2423_v0  ;;  %8585 = vmatprep.mubr.msk.bf16.mxu1 %vm9764_vm1, %v14514_v2  ;;  %v8322_v56 = vpop.f32.mrf.mxu0  ;;  %v1882_v26 = vrot.slane %v14797_v49, 3  ;;  %v1881_v0 = vsel %vm1766_vm5, %v1876_v32, %v1880_v52 }
 0x21e   :  { %v8487_v61 = vpop.f32.mrf.mxu1 }
 0x21f   :  { %v2110_v59 = vpop.f32.mrf.mxu0  ;;  %8420 = vmatmul.mubr.msk.bf16.gmra.mxu0 %vm410_vm4, %v1877_v60  ;;  %v1884_v56 = vor.u32 %v1883_v5, %v1882_v26  ;;  %v14800_v61 = vld [vmem:[#allocation55_spill] sm:$0xff]  ;;  %v14801_v5 = vshrl.u32 %v10872_v34, 16 }
 0x220   :  { %v2583_v54 = vpop.f32.mrf.mxu1  ;;  %v2425_v4 = vadd.f32 %v2110_v59, %v14799_v3  ;;  %8423 = vmatprep.mubr.msk.bf16.mxu0 %vm9764_vm1, %v14514_v2 }
 0x221   :  { %v11602_v15 = vadd.f32 %v2583_v54, %v2424_v16  ;;  %v8325_v7 = vpop.f32.mrf.mxu0  ;;  %v1885_v54 = vsel %vm1766_vm5, %v1880_v52, %v1884_v56  ;;  %v1886_v26 = vrot.slane %v14801_v5, 3 }
 0x222   :  { %v8488_v25 = vpop.f32.mrf.mxu1 }
 0x223   :  { %v2113_v30 = vpop.f32.mrf.mxu0 }
 0x224   :  { %v2588_v60 = vpop.f32.mrf.mxu1  ;;  %8586 = vmatmul.mubr.msk.bf16.gmra.mxu1 %vm410_vm4, %v1881_v0  ;;  %v2426_v49 = vadd.f32 %v2113_v30, %v14800_v61 }
 0x225   :  { %v11609_v31 = vadd.f32 %v2588_v60, %v2425_v4  ;;  %8589 = vmatprep.mubr.msk.bf16.mxu1 %vm9764_vm1, %v14514_v2  ;;  %v8326_v3 = vpop.f32.mrf.mxu0  ;;  %v14802_v4 = vshll.u32 %v10872_v34, 16 }
 0x226   :  { %v8491_v16 = vpop.f32.mrf.mxu1 }
 0x227   :  { %v2118_v32 = vpop.f32.mrf.mxu0  ;;  %8424 = vmatmul.mubr.msk.bf16.gmra.mxu0 %vm410_vm4, %v1881_v0  ;;  %v1887_v25 = vrot.slane %v14802_v4, 4  ;;  %v14804_v4 = vshll.u32 %v10904_v51, 16 }
 0x228   :  { %v2591_v59 = vpop.f32.mrf.mxu1  ;;  %v2427_v33 = vadd.f32 %v2118_v32, %v10886_v12  ;;  %8427 = vmatprep.mubr.msk.bf16.mxu0 %vm9764_vm1, %v14514_v2 }
 0x229   :  { %v11616_v7 = vadd.f32 %v2591_v59, %v2426_v49  ;;  %v8329_v30 = vpop.f32.mrf.mxu0  ;;  %v1888_v49 = vor.u32 %v1887_v25, %v1886_v26  ;;  %v14803_v59 = vshrl.u32 %v10904_v51, 16 }
 0x22a   :  { %v8492_v60 = vpop.f32.mrf.mxu1  ;;  %v1891_v30 = vrot.slane %v14804_v4, 4 }
 0x22b   :  { %v2121_v61 = vpop.f32.mrf.mxu0  ;;  %v1890_v5 = vrot.slane %v14803_v59, 3  ;;  %v14805_v60 = vld [vmem:[#allocation56_spill] sm:$0xff] }
 0x22c   :  { %v2596_v0 = vpop.f32.mrf.mxu1  ;;  %8590 = vmatmul.mubr.msk.bf16.gmra.mxu1 %vm410_vm4, %v1885_v54  ;;  %v2428_v52 = vadd.f32 %v2121_v61, %v10896_v53  ;;  %v1889_v61 = vsel %vm1766_vm5, %v1884_v56, %v1888_v49 }
 0x22d   :  { %v11626_v12 = vadd.f32 %v2596_v0, %v2427_v33  ;;  %8593 = vmatprep.mubr.msk.bf16.mxu1 %vm9764_vm1, %v14514_v2  ;;  %v8330_v3 = vpop.f32.mrf.mxu0 }
 0x22e   :  { %v8495_v16 = vpop.f32.mrf.mxu1  ;;  %v1892_v3 = vor.u32 %v1891_v30, %v1890_v5  ;;  %v14807_v5 = vshrl.u32 %v10918_v42, 16 }
 0x22f   :  { %v2126_v32 = vpop.f32.mrf.mxu0  ;;  %8428 = vmatmul.mubr.msk.bf16.gmra.mxu0 %vm410_vm4, %v1885_v54  ;;  %v14806_v16 = vld [vmem:[#allocation57_spill] sm:$0xff] }
 0x230   :  { %v2599_v34 = vpop.f32.mrf.mxu1  ;;  %v2429_v53 = vadd.f32 %v2126_v32, %v14805_v60  ;;  %8431 = vmatprep.mubr.msk.bf16.mxu0 %vm9764_vm1, %v14514_v2  ;;  %v1893_v4 = vsel %vm1766_vm5, %v1888_v49, %v1892_v3  ;;  %v1894_v30 = vrot.slane %v14807_v5, 3 }
 0x231   :  { %v11636_v33 = vadd.f32 %v2599_v34, %v2428_v52  ;;  %v8333_v26 = vpop.f32.mrf.mxu0 }
 0x232   :  { %v8496_v25 = vpop.f32.mrf.mxu1 }
 0x233   :  { %v2129_v0 = vpop.f32.mrf.mxu0 }
 0x234   :  { %v2604_v54 = vpop.f32.mrf.mxu1  ;;  %8594 = vmatmul.mubr.msk.bf16.gmra.mxu1 %vm410_vm4, %v1889_v61  ;;  %v2430_v59 = vadd.f32 %v2129_v0, %v14806_v16 }
 0x235   :  { %v11643_v51 = vadd.f32 %v2604_v54, %v2429_v53  ;;  %8597 = vmatprep.mubr.msk.bf16.mxu1 %vm9764_vm1, %v14514_v2  ;;  %v8334_v52 = vpop.f32.mrf.mxu0  ;;  %v14808_v53 = vshll.u32 %v10918_v42, 16 }
 0x236   :  { %v8499_v32 = vpop.f32.mrf.mxu1 }
 0x237   :  { %v2134_v56 = vpop.f32.mrf.mxu0  ;;  %8432 = vmatmul.mubr.msk.bf16.gmra.mxu0 %vm410_vm4, %v1889_v61  ;;  %v1895_v25 = vrot.slane %v14808_v53, 4  ;;  %v14810_v53 = vshll.u32 %v10950_v14, 16 }
 0x238   :  { %v2607_v34 = vpop.f32.mrf.mxu1  ;;  %v2431_v60 = vadd.f32 %v2134_v56, %v10932_v1  ;;  %8435 = vmatprep.mubr.msk.bf16.mxu0 %vm9764_vm1, %v14514_v2 }
 0x239   :  { %v11650_v26 = vadd.f32 %v2607_v34, %v2430_v59  ;;  %v8337_v0 = vpop.f32.mrf.mxu0  ;;  %v1896_v59 = vor.u32 %v1895_v25, %v1894_v30  ;;  %v14809_v34 = vshrl.u32 %v10950_v14, 16 }
 0x23a   :  { %v8500_v54 = vpop.f32.mrf.mxu1  ;;  %v1899_v0 = vrot.slane %v14810_v53, 4 }
 0x23b   :  { %v2137_v16 = vpop.f32.mrf.mxu0  ;;  %v1898_v5 = vrot.slane %v14809_v34, 3  ;;  %v14811_v54 = vld [vmem:[#allocation58_spill] sm:$0xff] }
 0x23c   :  { %v2612_v61 = vpop.f32.mrf.mxu1  ;;  %8598 = vmatmul.mubr.msk.bf16.gmra.mxu1 %vm410_vm4, %v1893_v4  ;;  %v2432_v49 = vadd.f32 %v2137_v16, %v10942_v36  ;;  %v1897_v16 = vsel %vm1766_vm5, %v1892_v3, %v1896_v59 }
 0x23d   :  { %v11660_v1 = vadd.f32 %v2612_v61, %v2431_v60  ;;  %8601 = vmatprep.mubr.msk.bf16.mxu1 %vm9764_vm1, %v14514_v2  ;;  %v8338_v52 = vpop.f32.mrf.mxu0 }
 0x23e   :  { %v8503_v32 = vpop.f32.mrf.mxu1  ;;  %v1900_v52 = vor.u32 %v1899_v0, %v1898_v5  ;;  %v14813_v5 = vshrl.u32 %v10964_v23, 16 }
 0x23f   :  { %v2142_v56 = vpop.f32.mrf.mxu0  ;;  %8436 = vmatmul.mubr.msk.bf16.gmra.mxu0 %vm410_vm4, %v1893_v4  ;;  %v14812_v32 = vld [vmem:[#allocation59_spill] sm:$0xff] }
 0x240   :  { %v2615_v42 = vpop.f32.mrf.mxu1  ;;  %v2433_v36 = vadd.f32 %v2142_v56, %v14811_v54  ;;  %8439 = vmatprep.mubr.msk.bf16.mxu0 %vm9764_vm1, %v14514_v2  ;;  %v1901_v53 = vsel %vm1766_vm5, %v1896_v59, %v1900_v52  ;;  %v1902_v0 = vrot.slane %v14813_v5, 3 }
 0x241   :  { %v11670_v60 = vadd.f32 %v2615_v42, %v2432_v49  ;;  %v8341_v30 = vpop.f32.mrf.mxu0 }
 0x242   :  { %v8504_v25 = vpop.f32.mrf.mxu1 }
 0x243   :  { %v2145_v61 = vpop.f32.mrf.mxu0 }
 0x244   :  { %v2620_v4 = vpop.f32.mrf.mxu1  ;;  %8602 = vmatmul.mubr.msk.bf16.gmra.mxu1 %vm410_vm4, %v1897_v16  ;;  %v2434_v34 = vadd.f32 %v2145_v61, %v14812_v32 }
 0x245   :  { %v11677_v14 = vadd.f32 %v2620_v4, %v2433_v36  ;;  %8605 = vmatprep.mubr.msk.bf16.mxu1 %vm9764_vm1, %v14514_v2  ;;  %v8342_v49 = vpop.f32.mrf.mxu0  ;;  %v14814_v36 = vshll.u32 %v10964_v23, 16 }
 0x246   :  { %v8507_v56 = vpop.f32.mrf.mxu1 }
 0x247   :  { %v2150_v3 = vpop.f32.mrf.mxu0  ;;  %8440 = vmatmul.mubr.msk.bf16.gmra.mxu0 %vm410_vm4, %v1897_v16  ;;  %v1903_v25 = vrot.slane %v14814_v36, 4  ;;  %v14816_v36 = vshll.u32 %v10996_v40, 16 }
 0x248   :  { %v2623_v42 = vpop.f32.mrf.mxu1  ;;  %v2435_v54 = vadd.f32 %v2150_v3, %v10978_v48  ;;  %8443 = vmatprep.mubr.msk.bf16.mxu0 %vm9764_vm1, %v14514_v2 }
 0x249   :  { %v11684_v30 = vadd.f32 %v2623_v42, %v2434_v34  ;;  %v8345_v61 = vpop.f32.mrf.mxu0  ;;  %v1904_v34 = vor.u32 %v1903_v25, %v1902_v0  ;;  %v14815_v42 = vshrl.u32 %v10996_v40, 16 }
 0x24a   :  { %v8508_v4 = vpop.f32.mrf.mxu1  ;;  %v1907_v61 = vrot.slane %v14816_v36, 4 }
 0x24b   :  { %v2153_v32 = vpop.f32.mrf.mxu0  ;;  %v1906_v5 = vrot.slane %v14815_v42, 3  ;;  %v14817_v4 = vld [vmem:[#allocation60_spill] sm:$0xff] }
 0x24c   :  { %v2628_v16 = vpop.f32.mrf.mxu1  ;;  %8606 = vmatmul.mubr.msk.bf16.gmra.mxu1 %vm410_vm4, %v1901_v53  ;;  %v2436_v59 = vadd.f32 %v2153_v32, %v10988_v20  ;;  %v1905_v32 = vsel %vm1766_vm5, %v1900_v52, %v1904_v34 }
 0x24d   :  { %v11694_v48 = vadd.f32 %v2628_v16, %v2435_v54  ;;  %8609 = vmatprep.mubr.msk.bf16.mxu1 %vm9764_vm1, %v14514_v2  ;;  %v8346_v49 = vpop.f32.mrf.mxu0 }
 0x24e   :  { %v8511_v56 = vpop.f32.mrf.mxu1  ;;  %v1908_v49 = vor.u32 %v1907_v61, %v1906_v5  ;;  %v14819_v5 = vshrl.u32 %v11010_v9, 16 }
 0x24f   :  { %v2158_v3 = vpop.f32.mrf.mxu0  ;;  %8444 = vmatmul.mubr.msk.bf16.gmra.mxu0 %vm410_vm4, %v1901_v53  ;;  %v14818_v56 = vld [vmem:[#allocation61_spill] sm:$0xff] }
 0x250   :  { %v2631_v23 = vpop.f32.mrf.mxu1  ;;  %v2437_v20 = vadd.f32 %v2158_v3, %v14817_v4  ;;  %8447 = vmatprep.mubr.msk.bf16.mxu0 %vm9764_vm1, %v14514_v2  ;;  %v1909_v36 = vsel %vm1766_vm5, %v1904_v34, %v1908_v49  ;;  %v1910_v61 = vrot.slane %v14819_v5, 3 }
 0x251   :  { %v11704_v54 = vadd.f32 %v2631_v23, %v2436_v59  ;;  %v8349_v0 = vpop.f32.mrf.mxu0 }
 0x252   :  { %v8512_v25 = vpop.f32.mrf.mxu1 }
 0x253   :  { %v2161_v16 = vpop.f32.mrf.mxu0 }
 0x254   :  { %v2636_v53 = vpop.f32.mrf.mxu1  ;;  %8610 = vmatmul.mubr.msk.bf16.gmra.mxu1 %vm410_vm4, %v1905_v32  ;;  %v2438_v42 = vadd.f32 %v2161_v16, %v14818_v56 }
 0x255   :  { %v11711_v40 = vadd.f32 %v2636_v53, %v2437_v20  ;;  %8613 = vmatprep.mubr.msk.bf16.mxu1 %vm9764_vm1, %v14514_v2  ;;  %v8350_v59 = vpop.f32.mrf.mxu0  ;;  %v14820_v20 = vshll.u32 %v11010_v9, 16 }
 0x256   :  { %v8515_v3 = vpop.f32.mrf.mxu1 }
 0x257   :  { %v2166_v52 = vpop.f32.mrf.mxu0  ;;  %8448 = vmatmul.mubr.msk.bf16.gmra.mxu0 %vm410_vm4, %v1905_v32  ;;  %v1911_v25 = vrot.slane %v14820_v20, 4  ;;  %v14822_v20 = vshll.u32 %v11042_v27, 16 }
 0x258   :  { %v2639_v23 = vpop.f32.mrf.mxu1  ;;  %v2439_v4 = vadd.f32 %v2166_v52, %v11024_v55  ;;  %8451 = vmatprep.mubr.msk.bf16.mxu0 %vm9764_vm1, %v14514_v2 }
 0x259   :  { %v11718_v0 = vadd.f32 %v2639_v23, %v2438_v42  ;;  %v8353_v16 = vpop.f32.mrf.mxu0  ;;  %v1912_v42 = vor.u32 %v1911_v25, %v1910_v61  ;;  %v14821_v23 = vshrl.u32 %v11042_v27, 16 }
 0x25a   :  { %v8516_v53 = vpop.f32.mrf.mxu1  ;;  %v1915_v16 = vrot.slane %v14822_v20, 4 }
 0x25b   :  { %v2169_v56 = vpop.f32.mrf.mxu0  ;;  %v1914_v5 = vrot.slane %v14821_v23, 3  ;;  %v14823_v53 = vld [vmem:[#allocation62_spill] sm:$0xff] }
 0x25c   :  { %v2644_v32 = vpop.f32.mrf.mxu1  ;;  %8614 = vmatmul.mubr.msk.bf16.gmra.mxu1 %vm410_vm4, %v1909_v36  ;;  %v2440_v34 = vadd.f32 %v2169_v56, %v11034_v22  ;;  %v1913_v56 = vsel %vm1766_vm5, %v1908_v49, %v1912_v42 }
 0x25d   :  { %v11728_v55 = vadd.f32 %v2644_v32, %v2439_v4  ;;  %8617 = vmatprep.mubr.msk.bf16.mxu1 %vm9764_vm1, %v14514_v2  ;;  %v8354_v59 = vpop.f32.mrf.mxu0 }
 0x25e   :  { %v8519_v3 = vpop.f32.mrf.mxu1  ;;  %v1916_v59 = vor.u32 %v1915_v16, %v1914_v5  ;;  %v14827_v5 = vshrl.u32 %v11056_v10, 16 }
 0x25f   :  { %v2174_v52 = vpop.f32.mrf.mxu0  ;;  %8452 = vmatmul.mubr.msk.bf16.gmra.mxu0 %vm410_vm4, %v1909_v36  ;;  %v14824_v3 = vld [vmem:[#allocation63_spill] sm:$0xff] }
 0x260   :  { %v2647_v9 = vpop.f32.mrf.mxu1  ;;  %v2441_v22 = vadd.f32 %v2174_v52, %v14823_v53  ;;  %8455 = vmatprep.mubr.msk.bf16.mxu0 %vm9764_vm1, %v14514_v2  ;;  %v1917_v20 = vsel %vm1766_vm5, %v1912_v42, %v1916_v59  ;;  %v1918_v16 = vrot.slane %v14827_v5, 3  ;;  %v14829_v42 = vld [vmem:[#allocation64_spill] sm:$0xff]  ;;  %v14830_v5 = vld [vmem:[#allocation65_spill] sm:$0xff] }
 0x261   :  { %v11738_v4 = vadd.f32 %v2647_v9, %v2440_v34  ;;  %v8357_v61 = vpop.f32.mrf.mxu0 }
 0x262   :  { %v8520_v25 = vpop.f32.mrf.mxu1 }
 0x263   :  { %v2177_v32 = vpop.f32.mrf.mxu0 }
 0x264   :  { %v2652_v36 = vpop.f32.mrf.mxu1  ;;  %8618 = vmatmul.mubr.msk.bf16.gmra.mxu1 %vm410_vm4, %v1913_v56  ;;  %v2442_v23 = vadd.f32 %v2177_v32, %v14824_v3 }
 0x265   :  { %v11745_v27 = vadd.f32 %v2652_v36, %v2441_v22  ;;  %8621 = vmatprep.mubr.msk.bf16.mxu1 %vm9764_vm1, %v14514_v2  ;;  %v8358_v34 = vpop.f32.mrf.mxu0  ;;  %v14828_v22 = vshll.u32 %v11056_v10, 16 }
 0x266   :  { %v8523_v52 = vpop.f32.mrf.mxu1 }
 0x267   :  { %14825 = vst [vmem:[#allocation54_spill] sm:$0xff] %v11745_v27  ;;  %v2182_v49 = vpop.f32.mrf.mxu0  ;;  %8456 = vmatmul.mubr.msk.bf16.gmra.mxu0 %vm410_vm4, %v1913_v56  ;;  %v1919_v25 = vrot.slane %v14828_v22, 4  ;;  %v14831_v22 = vshrl.u32 %v14830_v5, 16  ;;  %v14833_v27 = vld [vmem:[#allocation66_spill] sm:$0xff] }
 0x268   :  { %v2655_v9 = vpop.f32.mrf.mxu1  ;;  %v2443_v53 = vadd.f32 %v2182_v49, %v11070_v39  ;;  %8459 = vmatprep.mubr.msk.bf16.mxu0 %vm9764_vm1, %v14514_v2 }
 0x269   :  { %v11752_v61 = vadd.f32 %v2655_v9, %v2442_v23  ;;  %v8361_v32 = vpop.f32.mrf.mxu0  ;;  %v1920_v23 = vor.u32 %v1919_v25, %v1918_v16 }
 0x26a   :  { %v8524_v36 = vpop.f32.mrf.mxu1  ;;  %v1922_v32 = vrot.slane %v14831_v22, 3 }
 0x26b   :  { %14826 = vst [vmem:[#allocation55_spill] sm:$0xff] %v11752_v61  ;;  %v2185_v3 = vpop.f32.mrf.mxu0  ;;  %v14832_v36 = vshll.u32 %v14830_v5, 16 }
 0x26c   :  { %v2660_v56 = vpop.f32.mrf.mxu1  ;;  %8622 = vmatmul.mubr.msk.bf16.gmra.mxu1 %vm410_vm4, %v1917_v20  ;;  %v2444_v34 = vadd.f32 %v2185_v3, %v14829_v42 }
 0x26d   :  { %v11762_v39 = vadd.f32 %v2660_v56, %v2443_v53  ;;  %8625 = vmatprep.mubr.msk.bf16.mxu1 %vm9764_vm1, %v14514_v2  ;;  %v8362_v52 = vpop.f32.mrf.mxu0  ;;  %v1923_v61 = vrot.slane %v14832_v36, 4  ;;  %v1921_v56 = vsel %vm1766_vm5, %v1916_v59, %v1920_v23  ;;  %v9734_v36 = vld [vmem:[%s14369_s0 + $0x14c] sm:$0xf] }
 0x26e   :  { %v8527_v49 = vpop.f32.mrf.mxu1 }
 0x26f   :  { %v2190_v9 = vpop.f32.mrf.mxu0  ;;  %8460 = vmatmul.mubr.msk.bf16.gmra.mxu0 %vm410_vm4, %v1917_v20  ;;  %v1924_v52 = vor.u32 %v1923_v61, %v1922_v32  ;;  %v14834_v49 = vld [vmem:[#allocation67_spill] sm:$0xff]  ;;  %v7221_v61 = vcombine.low %v9734_v36, %v11563_v8  ;;  %v14836_v32 = vld [vmem:[#allocation68_spill] sm:$0xff] }
 0x270   :  { %v2663_v10 = vpop.f32.mrf.mxu1  ;;  %v2445_v3 = vadd.f32 %v2190_v9, %v14833_v27  ;;  %8463 = vmatprep.mubr.msk.bf16.mxu0 %vm9764_vm1, %v14514_v2 }
 0x271   :  { %v11772_v53 = vadd.f32 %v2663_v10, %v2444_v34  ;;  %v8365_v16 = vpop.f32.mrf.mxu0  ;;  %v1925_v10 = vsel %vm1766_vm5, %v1920_v23, %v1924_v52  ;;  %v2512_v8 = vshrl.u32 %v7221_v61, 16  ;;  %v2515_v36 = vshll.u32 %v7221_v61, 16  ;;  %v14840_v61 = vld [vmem:[#allocation69_spill] sm:$0xff] }
 0x272   :  { %v8528_v25 = vpop.f32.mrf.mxu1 }
 0x273   :  { %v2193_v42 = vpop.f32.mrf.mxu0  ;;  %v14838_v25 = vshrl.u32 %v11104_v6, 16 }
 0x274   :  { %v2668_v20 = vpop.f32.mrf.mxu1  ;;  %8626 = vmatmul.mubr.msk.bf16.gmra.mxu1 %vm410_vm4, %v1921_v56  ;;  %v2446_v22 = vadd.f32 %v2193_v42, %v14834_v49 }
 0x275   :  { %v11779_v5 = vadd.f32 %v2668_v20, %v2445_v3  ;;  %8629 = vmatprep.mubr.msk.bf16.mxu1 %vm9764_vm1, %v14514_v2  ;;  %v8366_v27 = vpop.f32.mrf.mxu0  ;;  %v1926_v42 = vrot.slane %v14838_v25, 3 }
 0x276   :  { %v8531_v34 = vpop.f32.mrf.mxu1 }
 0x277   :  { %14835 = vst [vmem:[#allocation56_spill] sm:$0xff] %v11779_v5  ;;  %v2198_v59 = vpop.f32.mrf.mxu0  ;;  %8464 = vmatmul.mubr.msk.bf16.gmra.mxu0 %vm410_vm4, %v1921_v56  ;;  %v14839_v56 = vshll.u32 %v11104_v6, 16 }
 0x278   :  { %v2671_v9 = vpop.f32.mrf.mxu1  ;;  %v2447_v3 = vadd.f32 %v2198_v59, %v14836_v32  ;;  %8467 = vmatprep.mubr.msk.bf16.mxu0 %vm9764_vm1, %v14514_v2 }
 0x279   :  { %v11790_v16 = vadd.f32 %v2671_v9, %v2446_v22  ;;  %v1927_v20 = vrot.slane %v14839_v56, 4  ;;  %v8369_v23 = vpop.f32.mrf.mxu0 }
 0x27a   :  { %v8532_v49 = vpop.f32.mrf.mxu1  ;;  %v2514_v23 = vrot.slane %v2512_v8, 3 }
 0x27b   :  { %14837 = vst [vmem:[#allocation57_spill] sm:$0xff] %v11790_v16  ;;  %v2201_v27 = vpop.f32.mrf.mxu0  ;;  %v1928_v9 = vor.u32 %v1927_v20, %v1926_v42  ;;  %v2517_v49 = vrot.slane %v2515_v36, 4  ;;  %v7222_v16 = vcombine.low %v11568_v17, %v11568_v17 }
 0x27c   :  { %v2676_v34 = vpop.f32.mrf.mxu1  ;;  %8630 = vmatmul.mubr.msk.bf16.gmra.mxu1 %vm410_vm4, %v1925_v10  ;;  %v2448_v22 = vadd.f32 %v2201_v27, %v11131_v43 }
 0x27d   :  { %v11800_v59 = vadd.f32 %v2676_v34, %v2447_v3  ;;  %8633 = vmatprep.mubr.msk.bf16.mxu1 %vm9764_vm1, %v14514_v2  ;;  %v8370_v32 = vpop.f32.mrf.mxu0  ;;  %v1929_v3 = vsel %vm1766_vm5, %v1924_v52, %v1928_v9  ;;  %v2521_v8 = vshrl.u32 %v7222_v16, 16  ;;  %v2524_v36 = vshll.u32 %v7222_v16, 16 }
 0x27e   :  { %v8535_v25 = vpop.f32.mrf.mxu1  ;;  %v14841_v32 = vld [vmem:[#allocation70_spill] sm:$0xff]  ;;  %v14842_v52 = vshrl.u32 %v11137_v45, 16 }
 0x27f   :  { %v2206_v6 = vpop.f32.mrf.mxu0  ;;  %8468 = vmatmul.mubr.msk.bf16.gmra.mxu0 %vm410_vm4, %v1925_v10  ;;  %v2518_v10 = vor.u32 %v2517_v49, %v2514_v23  ;;  %v2523_v16 = vrot.slane %v2521_v8, 3  ;;  %v2526_v49 = vrot.slane %v2524_v36, 4 }
 0x280   :  { %v2679_v56 = vpop.f32.mrf.mxu1  ;;  %v2449_v5 = vadd.f32 %v2206_v6, %v14840_v61  ;;  %8471 = vmatprep.mubr.msk.bf16.mxu0 %vm9764_vm1, %v14514_v2  ;;  %v14843_v6 = vshll.u32 %v11137_v45, 16 }
 0x281   :  { %v11808_v43 = vadd.f32 %v2679_v56, %v2448_v22  ;;  %v8373_v42 = vpop.f32.mrf.mxu0  ;;  %v1930_v22 = vrot.slane %v14842_v52, 3 }
 0x282   :  { %v8536_v20 = vpop.f32.mrf.mxu1  ;;  %v1931_v56 = vrot.slane %v14843_v6, 4 }
 0x283   :  { %v2209_v27 = vpop.f32.mrf.mxu0 }
 0x284   :  { %v2684_v34 = vpop.f32.mrf.mxu1  ;;  %8634 = vmatmul.mubr.msk.bf16.gmra.mxu1 %vm410_vm4, %v1929_v3  ;;  %v2450_v17 = vadd.f32 %v2209_v27, %v14841_v32  ;;  %v1932_v32 = vor.u32 %v1931_v56, %v1930_v22 }
 0x285   :  { %v11815_v25 = vadd.f32 %v2684_v34, %v2449_v5  ;;  %8637 = vmatprep.mubr.msk.bf16.mxu1 %vm9764_vm1, %v14514_v2  ;;  %v8374_v61 = vpop.f32.mrf.mxu0  ;;  %v2519_v34 = vsel %vm1766_vm5, %v1928_v9, %v2518_v10 }
 0x286   :  { %v8539_v42 = vpop.f32.mrf.mxu1 }
 0x287   :  { %v2214_v20 = vpop.f32.mrf.mxu0  ;;  %8472 = vmatmul.mubr.msk.bf16.gmra.mxu0 %vm410_vm4, %v1929_v3  ;;  %v2527_v3 = vor.u32 %v2526_v49, %v2523_v16 }
 0x288   :  { %v2687_v23 = vpop.f32.mrf.mxu1  ;;  %v2451_v5 = vadd.f32 %v2214_v20, %v11159_v63  ;;  %8475 = vmatprep.mubr.msk.bf16.mxu0 %vm9764_vm1, %v14514_v2  ;;  %v1933_v63 = vsel %vm1766_vm5, %v1928_v9, %v1932_v32 }
 0x289   :  { %v11825_v27 = vadd.f32 %v2687_v23, %v2450_v17  ;;  %v8377_v45 = vpop.f32.mrf.mxu0  ;;  %v14844_v17 = vld [vmem:[#allocation5_spill] sm:$0xff] }
 0x28a   :  { %v8540_v52 = vpop.f32.mrf.mxu1  ;;  %v3601_v42 = vshll.u32 %v14844_v17, 16  ;;  %v3599_v16 = vshrl.u32 %v14844_v17, 16 }
 0x28b   :  { %v2217_v6 = vpop.f32.mrf.mxu0 }
 0x28c   :  { %v2692_v61 = vpop.f32.mrf.mxu1  ;;  %8638 = vmatmul.mubr.msk.bf16.gmra.mxu1 %vm410_vm4, %v2519_v34  ;;  %v2452_v8 = vadd.f32 %v2217_v6, %v11165_v11  ;;  %v2528_v34 = vsel %vm1766_vm5, %v2518_v10, %v2527_v3  ;;  %v3603_v9 = vrot.slane %v3601_v42, 1  ;;  %v7390_v6 = vld [vmem:[%s14370_s1 + $0x18] sm:$0xf] }
 0x28d   :  { %v11832_v36 = vadd.f32 %v2692_v61, %v2451_v5  ;;  %8641 = vmatprep.mubr.msk.bf16.mxu1 %vm9764_vm1, %v14514_v2  ;;  %v8378_v20 = vpop.f32.mrf.mxu0  ;;  %v14845_v5 = vld [vmem:[#allocation6_spill] sm:$0xff] }
 0x28e   :  { %v8543_v22 = vpop.f32.mrf.mxu1  ;;  %v14511_v32 = vshll.u32 %v14845_v5, 16 }
 0x28f   :  { %v2222_v56 = vpop.f32.mrf.mxu0  ;;  %8476 = vmatmul.mubr.msk.bf16.gmra.mxu0 %vm410_vm4, %v1933_v63  ;;  %v4487_v22 = vsel %vm534_vm0, %v7390_v6, 0 }
 0x290   :  { %v2695_v23 = vpop.f32.mrf.mxu1  ;;  %v2453_v11 = vadd.f32 %v2222_v56, %v11174_v21  ;;  %8647 = vmatprep.mubr.msk.bf16.mxu0 %vm9764_vm1, %v14514_v2  ;;  %v3607_v63 = vrot.slane %v14511_v32, 1  ;;  %v7434_v56 = vld [vmem:[%s14370_s1 + $0x1c] sm:$0xf] }
 0x291   :  { %v11842_v49 = vadd.f32 %v2695_v23, %v2452_v8  ;;  %v8381_v45 = vpop.f32.mrf.mxu0  ;;  %v3604_v8 = vor.u32 %v3603_v9, %v3599_v16  ;;  %v14846_v16 = vld [vmem:[#allocation7_spill] sm:$0xff] }
 0x292   :  { %v8544_v52 = vpop.f32.mrf.mxu1 }
 0x293   :  { %v2225_v61 = vpop.f32.mrf.mxu0  ;;  %v3608_v52 = vsel %vm3598_vm6, %v3604_v8, %v3607_v63  ;;  %v14847_v8 = vld [vmem:[#allocation71_spill] sm:$0xff] }
 0x294   :  { %v2700_v10 = vpop.f32.mrf.mxu1  ;;  %8642 = vmatmul.mubr.msk.bf16.gmra.mxu1 %vm410_vm4, %v2528_v34  ;;  %v2454_v21 = vadd.f32 %v2225_v61, %v11184_v18  ;;  %v14513_v34 = vshrl.u32 %v14845_v5, 16 }
 0x295   :  { %v11852_v3 = vadd.f32 %v2700_v10, %v2453_v11  ;;  %8813 = vmatprep.mubr.msk.bf16.mxu1 %vm9764_vm1, %v14514_v2  ;;  %v8382_v42 = vpop.f32.mrf.mxu0  ;;  %v14512_v11 = vshll.u32 %v14846_v16, 16  ;;  %v5142_v10 = vsel %vm534_vm0, %v7434_v56, 0 }
 0x296   :  { %v8547_v20 = vpop.f32.mrf.mxu1 }
 0x297   :  { %v2230_v23 = vpop.f32.mrf.mxu0  ;;  %8648 = vmatmul.mubr.msk.bf16.vlgmr.msra.gmra.mxu0 %vm410_vm4, %v14844_v17 }
 0x298   :  { %v2703_v18 = vpop.f32.mrf.mxu1  ;;  %v2455_v9 = vadd.f32 %v2230_v23, %v11196_v28  ;;  %8978 = vmatpush3.bf16.msra.mxu0 %v4487_v22  ;;  %8651 = vmatprep.mubr.msk.bf16.mxu0 %vm9764_vm1, %v14514_v2  ;;  %v3611_v28 = vor.u32 %v14513_v34, %v3607_v63 }
 0x299   :  { %v11867_v45 = vadd.f32 %v2703_v18, %v2454_v21  ;;  %v8385_v6 = vpop.f32.mrf.mxu0  ;;  %9309 = vmatprep.subr.bf16.mxu0 %v14514_v2  ;;  %v3614_v21 = vrot.slane %v14512_v11, 1 }
 0x29a   :  { %v8548_v61 = vpop.f32.mrf.mxu1 }
 0x29b   :  { %v2233_v42 = vpop.f32.mrf.mxu0  ;;  %v11888_v63 = vsel %vm3598_vm6, %v3611_v28, %v3614_v21  ;;  %v14849_v28 = vld [vmem:[#allocation72_spill] sm:$0xff] }
 0x29c   :  { %v2708_v20 = vpop.f32.mrf.mxu1  ;;  %8814 = vmatmul.mubr.msk.bf16.vlgmr.msra.gmra.mxu1 %vm410_vm4, %v3608_v52  ;;  %v2456_v22 = vadd.f32 %v2233_v42, %v14847_v8  ;;  %v14848_v42 = vld [vmem:[#allocation8_spill] sm:$0xff] }
 0x29d   :  { %v11880_v23 = vadd.f32 %v2708_v20, %v2455_v9  ;;  %9144 = vmatpush3.bf16.msra.mxu1 %v5142_v10  ;;  %8817 = vmatprep.mubr.msk.bf16.mxu1 %vm9764_vm1, %v14514_v2  ;;  %v8386_v56 = vpop.f32.mrf.mxu0  ;;  %v14516_v10 = vshrl.u32 %v14846_v16, 16  ;;  %v14517_v20 = vshll.u32 %v14848_v42, 16 }
 0x29e   :  { %v8551_v18 = vpop.f32.mrf.mxu1  ;;  %9475 = vmatprep.subr.bf16.mxu1 %v14514_v2 }
 0x29f   :  { %v2238_v6 = vpop.f32.mrf.mxu0  ;;  %8652 = vmatmul.mubr.msk.bf16.gmra.mxu0 %vm410_vm4, %v14845_v5 }
 0x2a0   :  { %v2711_v52 = vpop.f32.mrf.mxu1  ;;  %v2457_v61 = vadd.f32 %v2238_v6, %v11214_v47  ;;  %8655 = vmatprep.mubr.msk.bf16.mxu0 %vm9764_vm1, %v14514_v2  ;;  %v3618_v47 = vor.u32 %v14516_v10, %v3614_v21  ;;  %v14854_v10 = vmov 0.0  }
 0x2a1   :  { %v11891_v9 = vadd.f32 %v2711_v52, %v2456_v22  ;;  %v8389_v8 = vpop.f32.mrf.mxu0  ;;  %v3621_v22 = vrot.slane %v14517_v20, 1 }
 0x2a2   :  { %v8552_v56 = vpop.f32.mrf.mxu1 }
 0x2a3   :  { %v2241_v18 = vpop.f32.mrf.mxu0  ;;  %v11916_v21 = vsel %vm3598_vm6, %v3618_v47, %v3621_v22 }
 0x2a4   :  { %v2716_v32 = vpop.f32.mrf.mxu1  ;;  %8818 = vmatmul.mubr.msk.bf16.gmra.mxu1 %vm410_vm4, %v11888_v63  ;;  %v2458_v11 = vadd.f32 %v2241_v18, %v14849_v28  ;;  %v14520_v18 = vshrl.u32 %v14848_v42, 16  ;;  %14853 = vst [vmem:[#allocation60_spill] sm:$0xff] %v11916_v21 }
 0x2a5   :  { %v11900_v34 = vadd.f32 %v2716_v32, %v2457_v61  ;;  %8821 = vmatprep.mubr.msk.bf16.mxu1 %vm9764_vm1, %v14514_v2  ;;  %v8390_v6 = vpop.f32.mrf.mxu0  ;;  %v14851_v32 = vld [vmem:[#allocation9_spill] sm:$0xff] }
 0x2a6   :  { %v8555_v52 = vpop.f32.mrf.mxu1  ;;  %v3625_v61 = vor.u32 %v14520_v18, %v3621_v22 }
 0x2a7   :  { %14850 = vst [vmem:[#allocation58_spill] sm:$0xff] %v11900_v34  ;;  %v2246_v8 = vpop.f32.mrf.mxu0  ;;  %8656 = vmatmul.mubr.msk.bf16.gmra.mxu0 %vm410_vm4, %v14846_v16 }
 0x2a8   :  { %v2719_v56 = vpop.f32.mrf.mxu1  ;;  %v2459_v28 = vadd.f32 %v2246_v8, %v11229_v46  ;;  %8659 = vmatprep.mubr.msk.bf16.mxu0 %vm9764_vm1, %v14854_v10  ;;  %v14855_v46 = vshll.u32 %v14851_v32, 16  ;;  %v14856_v8 = vld [vmem:[#allocation73_spill] sm:$0xff] }
 0x2a9   :  { %v11913_v2 = vadd.f32 %v2719_v56, %v2458_v11  ;;  %v8393_v6 = vpop.f32.mrf.mxu0 }
 0x2aa   :  { %v8556_v52 = vpop.f32.mrf.mxu1  ;;  %v3628_v11 = vrot.slane %v14855_v46, 1 }
 0x2ab   :  { %14852 = vst [vmem:[#allocation59_spill] sm:$0xff] %v11913_v2  ;;  %v2249_v20 = vpop.f32.mrf.mxu0 }
 0x2ac   :  { %v2724_v17 = vpop.f32.mrf.mxu1  ;;  %8822 = vmatmul.mubr.msk.bf16.gmra.mxu1 %vm410_vm4, %v11916_v21  ;;  %v2460_v56 = vadd.f32 %v2249_v20, %v14856_v8  ;;  %v11934_v21 = vsel %vm3598_vm6, %v3625_v61, %v3628_v11  ;;  %v14859_v20 = vld [vmem:[#allocation10_spill] sm:$0xff] }
 0x2ad   :  { %v11927_v47 = vadd.f32 %v2724_v17, %v2459_v28  ;;  %8825 = vmatprep.mubr.msk.bf16.mxu1 %vm9764_vm1, %v14854_v10  ;;  %v8394_v6 = vpop.f32.mrf.mxu0  ;;  %v14523_v17 = vshrl.u32 %v14851_v32, 16  ;;  %v14522_v28 = vshll.u32 %v14859_v20, 16  ;;  %v14860_v61 = vld [vmem:[#allocation74_spill] sm:$0xff] }
 0x2ae   :  { %v8559_v52 = vpop.f32.mrf.mxu1 }
 0x2af   :  { %14857 = vst [vmem:[#allocation61_spill] sm:$0xff] %v11927_v47  ;;  %v2254_v2 = vpop.f32.mrf.mxu0  ;;  %8660 = vmatmul.mubr.msk.bf16.gmra.mxu0 %vm410_vm4, %v14848_v42 }
 0x2b0   :  { %v2727_v34 = vpop.f32.mrf.mxu1  ;;  %v2461_v22 = vadd.f32 %v2254_v2, %v11244_v50  ;;  %8663 = vmatprep.mubr.msk.bf16.mxu0 %vm9764_vm1, %v14854_v10  ;;  %v3632_v2 = vor.u32 %v14523_v17, %v3628_v11  ;;  %v3635_v50 = vrot.slane %v14522_v28, 1 }
 0x2b1   :  { %v11937_v46 = vadd.f32 %v2727_v34, %v2460_v56  ;;  %v8397_v8 = vpop.f32.mrf.mxu0 }
 0x2b2   :  { %v8560_v6 = vpop.f32.mrf.mxu1  ;;  %v11962_v11 = vsel %vm3598_vm6, %v3632_v2, %v3635_v50 }
 0x2b3   :  { %14858 = vst [vmem:[#allocation62_spill] sm:$0xff] %v11937_v46  ;;  %v2257_v52 = vpop.f32.mrf.mxu0  ;;  %14864 = vst [vmem:[#allocation65_spill] sm:$0xff] %v11962_v11 }
 0x2b4   :  { %v2732_v18 = vpop.f32.mrf.mxu1  ;;  %8826 = vmatmul.mubr.msk.bf16.gmra.mxu1 %vm410_vm4, %v11934_v21  ;;  %v2462_v47 = vadd.f32 %v2257_v52, %v14860_v61  ;;  %v14525_v52 = vshrl.u32 %v14859_v20, 16 }
 0x2b5   :  { %v11946_v42 = vadd.f32 %v2732_v18, %v2461_v22  ;;  %8829 = vmatprep.mubr.msk.bf16.mxu1 %vm9764_vm1, %v14854_v10  ;;  %v8398_v34 = vpop.f32.mrf.mxu0  ;;  %v14862_v18 = vld [vmem:[#allocation11_spill] sm:$0xff] }
 0x2b6   :  { %v8563_v56 = vpop.f32.mrf.mxu1  ;;  %v3639_v22 = vor.u32 %v14525_v52, %v3635_v50 }
 0x2b7   :  { %14861 = vst [vmem:[#allocation63_spill] sm:$0xff] %v11946_v42  ;;  %v2262_v8 = vpop.f32.mrf.mxu0  ;;  %8664 = vmatmul.mubr.msk.bf16.gmra.mxu0 %vm410_vm4, %v14851_v32 }
 0x2b8   :  { %v2735_v6 = vpop.f32.mrf.mxu1  ;;  %v2463_v61 = vadd.f32 %v2262_v8, %v11259_v57  ;;  %8667 = vmatprep.mubr.msk.bf16.mxu0 %vm9764_vm1, %v14854_v10  ;;  %v14865_v57 = vshll.u32 %v14862_v18, 16  ;;  %v14866_v8 = vld [vmem:[#allocation75_spill] sm:$0xff] }
 0x2b9   :  { %v11959_v42 = vadd.f32 %v2735_v6, %v2462_v47  ;;  %v8401_v34 = vpop.f32.mrf.mxu0 }
 0x2ba   :  { %v8564_v56 = vpop.f32.mrf.mxu1  ;;  %v3642_v47 = vrot.slane %v14865_v57, 1 }
 0x2bb   :  { %14863 = vst [vmem:[#allocation64_spill] sm:$0xff] %v11959_v42  ;;  %v2265_v28 = vpop.f32.mrf.mxu0 }
 0x2bc   :  { %v2740_v17 = vpop.f32.mrf.mxu1  ;;  %8830 = vmatmul.mubr.msk.bf16.gmra.mxu1 %vm410_vm4, %v11962_v11  ;;  %v2464_v6 = vadd.f32 %v2265_v28, %v14866_v8  ;;  %v11980_v11 = vsel %vm3598_vm6, %v3639_v22, %v3642_v47  ;;  %v14869_v28 = vld [vmem:[#allocation12_spill] sm:$0xff] }
 0x2bd   :  { %v11973_v2 = vadd.f32 %v2740_v17, %v2463_v61  ;;  %8833 = vmatprep.mubr.msk.bf16.mxu1 %vm9764_vm1, %v14854_v10  ;;  %v8402_v34 = vpop.f32.mrf.mxu0  ;;  %v14528_v17 = vshrl.u32 %v14862_v18, 16  ;;  %v14527_v61 = vshll.u32 %v14869_v28, 16  ;;  %v14870_v22 = vld [vmem:[#allocation76_spill] sm:$0xff] }
 0x2be   :  { %v8567_v56 = vpop.f32.mrf.mxu1 }
 0x2bf   :  { %14867 = vst [vmem:[#allocation66_spill] sm:$0xff] %v11973_v2  ;;  %v2270_v42 = vpop.f32.mrf.mxu0  ;;  %8668 = vmatmul.mubr.msk.bf16.gmra.mxu0 %vm410_vm4, %v14859_v20 }
 0x2c0   :  { %v2743_v46 = vpop.f32.mrf.mxu1  ;;  %v2465_v50 = vadd.f32 %v2270_v42, %v11274_v38  ;;  %8671 = vmatprep.mubr.msk.bf16.mxu0 %vm9764_vm1, %v14854_v10  ;;  %v3646_v38 = vor.u32 %v14528_v17, %v3642_v47  ;;  %v3649_v42 = vrot.slane %v14527_v61, 1 }
 0x2c1   :  { %v11983_v57 = vadd.f32 %v2743_v46, %v2464_v6  ;;  %v8405_v8 = vpop.f32.mrf.mxu0 }
 0x2c2   :  { %v8568_v34 = vpop.f32.mrf.mxu1  ;;  %v12008_v47 = vsel %vm3598_vm6, %v3646_v38, %v3649_v42 }
 0x2c3   :  { %14868 = vst [vmem:[#allocation67_spill] sm:$0xff] %v11983_v57  ;;  %v2273_v56 = vpop.f32.mrf.mxu0  ;;  %14874 = vst [vmem:[#allocation70_spill] sm:$0xff] %v12008_v47 }
 0x2c4   :  { %v2748_v52 = vpop.f32.mrf.mxu1  ;;  %8834 = vmatmul.mubr.msk.bf16.gmra.mxu1 %vm410_vm4, %v11980_v11  ;;  %v2466_v2 = vadd.f32 %v2273_v56, %v14870_v22  ;;  %v14530_v56 = vshrl.u32 %v14869_v28, 16 }
 0x2c5   :  { %v11992_v20 = vadd.f32 %v2748_v52, %v2465_v50  ;;  %8837 = vmatprep.mubr.msk.bf16.mxu1 %vm9764_vm1, %v14854_v10  ;;  %v8406_v46 = vpop.f32.mrf.mxu0  ;;  %v14872_v52 = vld [vmem:[#allocation13_spill] sm:$0xff] }
 0x2c6   :  { %v8571_v6 = vpop.f32.mrf.mxu1  ;;  %v3653_v50 = vor.u32 %v14530_v56, %v3649_v42 }
 0x2c7   :  { %14871 = vst [vmem:[#allocation68_spill] sm:$0xff] %v11992_v20  ;;  %v2278_v8 = vpop.f32.mrf.mxu0  ;;  %8672 = vmatmul.mubr.msk.bf16.gmra.mxu0 %vm410_vm4, %v14862_v18 }
 0x2c8   :  { %v2751_v34 = vpop.f32.mrf.mxu1  ;;  %v2467_v22 = vadd.f32 %v2278_v8, %v11289_v29  ;;  %8675 = vmatprep.mubr.msk.bf16.mxu0 %vm9764_vm1, %v14854_v10  ;;  %v14875_v29 = vshll.u32 %v14872_v52, 16  ;;  %v14876_v8 = vld [vmem:[#allocation77_spill] sm:$0xff] }
 0x2c9   :  { %v12005_v20 = vadd.f32 %v2751_v34, %v2466_v2  ;;  %v8409_v46 = vpop.f32.mrf.mxu0 }
 0x2ca   :  { %v8572_v6 = vpop.f32.mrf.mxu1  ;;  %v3656_v2 = vrot.slane %v14875_v29, 1 }
 0x2cb   :  { %14873 = vst [vmem:[#allocation69_spill] sm:$0xff] %v12005_v20  ;;  %v2281_v61 = vpop.f32.mrf.mxu0 }
 0x2cc   :  { %v2756_v17 = vpop.f32.mrf.mxu1  ;;  %8838 = vmatmul.mubr.msk.bf16.gmra.mxu1 %vm410_vm4, %v12008_v47  ;;  %v2468_v34 = vadd.f32 %v2281_v61, %v14876_v8  ;;  %v12026_v47 = vsel %vm3598_vm6, %v3653_v50, %v3656_v2  ;;  %v14879_v61 = vld [vmem:[#allocation14_spill] sm:$0xff] }
 0x2cd   :  { %v12019_v38 = vadd.f32 %v2756_v17, %v2467_v22  ;;  %8841 = vmatprep.mubr.msk.bf16.mxu1 %vm9764_vm1, %v14854_v10  ;;  %v8410_v46 = vpop.f32.mrf.mxu0  ;;  %v14533_v17 = vshrl.u32 %v14872_v52, 16  ;;  %v14532_v22 = vshll.u32 %v14879_v61, 16  ;;  %v14880_v50 = vld [vmem:[#allocation78_spill] sm:$0xff] }
 0x2ce   :  { %v8575_v6 = vpop.f32.mrf.mxu1 }
 0x2cf   :  { %14877 = vst [vmem:[#allocation6_spill] sm:$0xff] %v12019_v38  ;;  %v2286_v20 = vpop.f32.mrf.mxu0  ;;  %8676 = vmatmul.mubr.msk.bf16.gmra.mxu0 %vm410_vm4, %v14869_v28 }
 0x2d0   :  { %v2759_v57 = vpop.f32.mrf.mxu1  ;;  %v2469_v42 = vadd.f32 %v2286_v20, %v11304_v24  ;;  %8679 = vmatprep.mubr.msk.bf16.mxu0 %vm9764_vm1, %v14854_v10  ;;  %v3660_v24 = vor.u32 %v14533_v17, %v3656_v2  ;;  %v3663_v20 = vrot.slane %v14532_v22, 1 }
 0x2d1   :  { %v12029_v29 = vadd.f32 %v2759_v57, %v2468_v34  ;;  %v8413_v8 = vpop.f32.mrf.mxu0 }
 0x2d2   :  { %v8576_v46 = vpop.f32.mrf.mxu1  ;;  %v12054_v2 = vsel %vm3598_vm6, %v3660_v24, %v3663_v20 }
 0x2d3   :  { %14878 = vst [vmem:[#allocation7_spill] sm:$0xff] %v12029_v29  ;;  %v2289_v6 = vpop.f32.mrf.mxu0  ;;  %14884 = vst [vmem:[#allocation73_spill] sm:$0xff] %v12054_v2 }
 0x2d4   :  { %v2764_v56 = vpop.f32.mrf.mxu1  ;;  %8842 = vmatmul.mubr.msk.bf16.gmra.mxu1 %vm410_vm4, %v12026_v47  ;;  %v2470_v38 = vadd.f32 %v2289_v6, %v14880_v50  ;;  %v14535_v6 = vshrl.u32 %v14879_v61, 16 }
 0x2d5   :  { %v12038_v28 = vadd.f32 %v2764_v56, %v2469_v42  ;;  %8845 = vmatprep.mubr.msk.bf16.mxu1 %vm9764_vm1, %v14854_v10  ;;  %v8414_v57 = vpop.f32.mrf.mxu0  ;;  %v14882_v56 = vld [vmem:[#allocation15_spill] sm:$0xff] }
 0x2d6   :  { %v8579_v34 = vpop.f32.mrf.mxu1  ;;  %v3667_v42 = vor.u32 %v14535_v6, %v3663_v20 }
 0x2d7   :  { %14881 = vst [vmem:[#allocation71_spill] sm:$0xff] %v12038_v28  ;;  %v2294_v8 = vpop.f32.mrf.mxu0  ;;  %8680 = vmatmul.mubr.msk.bf16.gmra.mxu0 %vm410_vm4, %v14872_v52 }
 0x2d8   :  { %v2767_v46 = vpop.f32.mrf.mxu1  ;;  %v2471_v50 = vadd.f32 %v2294_v8, %v11319_v37  ;;  %8683 = vmatprep.mubr.msk.bf16.mxu0 %vm9764_vm1, %v14854_v10  ;;  %v14885_v37 = vshll.u32 %v14882_v56, 16  ;;  %v14886_v8 = vld [vmem:[#allocation79_spill] sm:$0xff] }
 0x2d9   :  { %v12051_v28 = vadd.f32 %v2767_v46, %v2470_v38  ;;  %v8417_v57 = vpop.f32.mrf.mxu0 }
 0x2da   :  { %v8580_v34 = vpop.f32.mrf.mxu1  ;;  %v3670_v38 = vrot.slane %v14885_v37, 1 }
 0x2db   :  { %14883 = vst [vmem:[#allocation72_spill] sm:$0xff] %v12051_v28  ;;  %v2297_v22 = vpop.f32.mrf.mxu0 }
 0x2dc   :  { %v2772_v17 = vpop.f32.mrf.mxu1  ;;  %8846 = vmatmul.mubr.msk.bf16.gmra.mxu1 %vm410_vm4, %v12054_v2  ;;  %v2472_v46 = vadd.f32 %v2297_v22, %v14886_v8  ;;  %v12072_v2 = vsel %vm3598_vm6, %v3667_v42, %v3670_v38  ;;  %v14889_v22 = vld [vmem:[#allocation16_spill] sm:$0xff] }
 0x2dd   :  { %v12065_v24 = vadd.f32 %v2772_v17, %v2471_v50  ;;  %8849 = vmatprep.mubr.msk.bf16.mxu1 %vm9764_vm1, %v14854_v10  ;;  %v8418_v57 = vpop.f32.mrf.mxu0  ;;  %v14538_v17 = vshrl.u32 %v14882_v56, 16  ;;  %v14537_v50 = vshll.u32 %v14889_v22, 16  ;;  %v14890_v42 = vld [vmem:[#allocation80_spill] sm:$0xff] }
 0x2de   :  { %v8583_v34 = vpop.f32.mrf.mxu1 }
 0x2df   :  { %14887 = vst [vmem:[#allocation74_spill] sm:$0xff] %v12065_v24  ;;  %v2302_v28 = vpop.f32.mrf.mxu0  ;;  %8684 = vmatmul.mubr.msk.bf16.gmra.mxu0 %vm410_vm4, %v14879_v61 }
 0x2e0   :  { %v2775_v29 = vpop.f32.mrf.mxu1  ;;  %v2473_v20 = vadd.f32 %v2302_v28, %v11334_v58  ;;  %8687 = vmatprep.mubr.msk.bf16.mxu0 %vm9764_vm1, %v14854_v10  ;;  %v3674_v58 = vor.u32 %v14538_v17, %v3670_v38  ;;  %v3677_v28 = vrot.slane %v14537_v50, 1 }
 0x2e1   :  { %v12075_v37 = vadd.f32 %v2775_v29, %v2472_v46  ;;  %v8421_v8 = vpop.f32.mrf.mxu0 }
 0x2e2   :  { %v8584_v57 = vpop.f32.mrf.mxu1  ;;  %v12100_v38 = vsel %vm3598_vm6, %v3674_v58, %v3677_v28 }
 0x2e3   :  { %14888 = vst [vmem:[#allocation75_spill] sm:$0xff] %v12075_v37  ;;  %v2305_v34 = vpop.f32.mrf.mxu0  ;;  %14894 = vst [vmem:[#allocation78_spill] sm:$0xff] %v12100_v38 }
 0x2e4   :  { %v2780_v6 = vpop.f32.mrf.mxu1  ;;  %8850 = vmatmul.mubr.msk.bf16.gmra.mxu1 %vm410_vm4, %v12072_v2  ;;  %v2474_v24 = vadd.f32 %v2305_v34, %v14890_v42  ;;  %v14540_v34 = vshrl.u32 %v14889_v22, 16 }
 0x2e5   :  { %v12084_v61 = vadd.f32 %v2780_v6, %v2473_v20  ;;  %8853 = vmatprep.mubr.msk.bf16.mxu1 %vm9764_vm1, %v14854_v10  ;;  %v8422_v29 = vpop.f32.mrf.mxu0  ;;  %v14892_v6 = vld [vmem:[#allocation17_spill] sm:$0xff] }
 0x2e6   :  { %v8587_v46 = vpop.f32.mrf.mxu1  ;;  %v3681_v20 = vor.u32 %v14540_v34, %v3677_v28 }
 0x2e7   :  { %14891 = vst [vmem:[#allocation76_spill] sm:$0xff] %v12084_v61  ;;  %v2310_v8 = vpop.f32.mrf.mxu0  ;;  %8688 = vmatmul.mubr.msk.bf16.gmra.mxu0 %vm410_vm4, %v14882_v56 }
 0x2e8   :  { %v2783_v57 = vpop.f32.mrf.mxu1  ;;  %v2475_v42 = vadd.f32 %v2310_v8, %v11349_v35  ;;  %8691 = vmatprep.mubr.msk.bf16.mxu0 %vm9764_vm1, %v14854_v10  ;;  %v14895_v35 = vshll.u32 %v14892_v6, 16  ;;  %v14896_v8 = vld [vmem:[#allocation81_spill] sm:$0xff] }
 0x2e9   :  { %v12097_v61 = vadd.f32 %v2783_v57, %v2474_v24  ;;  %v8425_v29 = vpop.f32.mrf.mxu0 }
 0x2ea   :  { %v8588_v46 = vpop.f32.mrf.mxu1  ;;  %v3684_v24 = vrot.slane %v14895_v35, 1 }
 0x2eb   :  { %14893 = vst [vmem:[#allocation77_spill] sm:$0xff] %v12097_v61  ;;  %v2313_v50 = vpop.f32.mrf.mxu0 }
 0x2ec   :  { %v2788_v17 = vpop.f32.mrf.mxu1  ;;  %8854 = vmatmul.mubr.msk.bf16.gmra.mxu1 %vm410_vm4, %v12100_v38  ;;  %v2476_v57 = vadd.f32 %v2313_v50, %v14896_v8  ;;  %v12118_v38 = vsel %vm3598_vm6, %v3681_v20, %v3684_v24  ;;  %v14899_v50 = vld [vmem:[#allocation18_spill] sm:$0xff] }
 0x2ed   :  { %v12111_v58 = vadd.f32 %v2788_v17, %v2475_v42  ;;  %8857 = vmatprep.mubr.msk.bf16.mxu1 %vm9764_vm1, %v14854_v10  ;;  %v8426_v29 = vpop.f32.mrf.mxu0  ;;  %v14543_v17 = vshrl.u32 %v14892_v6, 16  ;;  %v14542_v42 = vshll.u32 %v14899_v50, 16  ;;  %v14900_v20 = vld [vmem:[#allocation82_spill] sm:$0xff] }
 0x2ee   :  { %v8591_v46 = vpop.f32.mrf.mxu1 }
 0x2ef   :  { %14897 = vst [vmem:[#allocation79_spill] sm:$0xff] %v12111_v58  ;;  %v2318_v61 = vpop.f32.mrf.mxu0  ;;  %8692 = vmatmul.mubr.msk.bf16.gmra.mxu0 %vm410_vm4, %v14889_v22 }
 0x2f0   :  { %v2791_v37 = vpop.f32.mrf.mxu1  ;;  %v2477_v28 = vadd.f32 %v2318_v61, %v11364_v62  ;;  %8695 = vmatprep.mubr.msk.bf16.mxu0 %vm9764_vm1, %v14854_v10  ;;  %v3688_v62 = vor.u32 %v14543_v17, %v3684_v24  ;;  %v3691_v61 = vrot.slane %v14542_v42, 1 }
 0x2f1   :  { %v12121_v35 = vadd.f32 %v2791_v37, %v2476_v57  ;;  %v8429_v8 = vpop.f32.mrf.mxu0 }
 0x2f2   :  { %v8592_v29 = vpop.f32.mrf.mxu1  ;;  %v12146_v24 = vsel %vm3598_vm6, %v3688_v62, %v3691_v61 }
 0x2f3   :  { %14898 = vst [vmem:[#allocation80_spill] sm:$0xff] %v12121_v35  ;;  %v2321_v46 = vpop.f32.mrf.mxu0  ;;  %14904 = vst [vmem:[#allocation97_spill] sm:$0xff] %v12146_v24 }
 0x2f4   :  { %v2796_v34 = vpop.f32.mrf.mxu1  ;;  %8858 = vmatmul.mubr.msk.bf16.gmra.mxu1 %vm410_vm4, %v12118_v38  ;;  %v2478_v58 = vadd.f32 %v2321_v46, %v14900_v20  ;;  %v14545_v46 = vshrl.u32 %v14899_v50, 16 }
 0x2f5   :  { %v12130_v22 = vadd.f32 %v2796_v34, %v2477_v28  ;;  %8861 = vmatprep.mubr.msk.bf16.mxu1 %vm9764_vm1, %v14854_v10  ;;  %v8430_v37 = vpop.f32.mrf.mxu0  ;;  %v14902_v34 = vld [vmem:[#allocation19_spill] sm:$0xff] }
 0x2f6   :  { %v8595_v57 = vpop.f32.mrf.mxu1  ;;  %v3695_v28 = vor.u32 %v14545_v46, %v3691_v61 }
 0x2f7   :  { %14901 = vst [vmem:[#allocation81_spill] sm:$0xff] %v12130_v22  ;;  %v2326_v8 = vpop.f32.mrf.mxu0  ;;  %8696 = vmatmul.mubr.msk.bf16.gmra.mxu0 %vm410_vm4, %v14892_v6 }
 0x2f8   :  { %v2799_v29 = vpop.f32.mrf.mxu1  ;;  %v2479_v20 = vadd.f32 %v2326_v8, %v11379_v13  ;;  %8699 = vmatprep.mubr.msk.bf16.mxu0 %vm9764_vm1, %v14854_v10  ;;  %v14905_v13 = vshll.u32 %v14902_v34, 16  ;;  %v14906_v8 = vld [vmem:[#allocation83_spill] sm:$0xff] }
 0x2f9   :  { %v12143_v22 = vadd.f32 %v2799_v29, %v2478_v58  ;;  %v8433_v37 = vpop.f32.mrf.mxu0 }
 0x2fa   :  { %v8596_v57 = vpop.f32.mrf.mxu1  ;;  %v3698_v58 = vrot.slane %v14905_v13, 1 }
 0x2fb   :  { %14903 = vst [vmem:[#allocation82_spill] sm:$0xff] %v12143_v22  ;;  %v2329_v42 = vpop.f32.mrf.mxu0 }
 0x2fc   :  { %v2804_v17 = vpop.f32.mrf.mxu1  ;;  %8862 = vmatmul.mubr.msk.bf16.gmra.mxu1 %vm410_vm4, %v12146_v24  ;;  %v2480_v29 = vadd.f32 %v2329_v42, %v14906_v8  ;;  %v12164_v24 = vsel %vm3598_vm6, %v3695_v28, %v3698_v58  ;;  %v14910_v42 = vld [vmem:[#allocation20_spill] sm:$0xff] }
 0x2fd   :  { %v12157_v62 = vadd.f32 %v2804_v17, %v2479_v20  ;;  %8865 = vmatprep.mubr.msk.bf16.mxu1 %vm9764_vm1, %v14854_v10  ;;  %v8434_v37 = vpop.f32.mrf.mxu0  ;;  %14908 = vst [vmem:[#allocation98_spill] sm:$0xff] %v12164_v24  ;;  %v14548_v17 = vshrl.u32 %v14902_v34, 16  ;;  %v14547_v20 = vshll.u32 %v14910_v42, 16  ;;  %v14911_v28 = vld [vmem:[#allocation84_spill] sm:$0xff] }
 0x2fe   :  { %v8599_v57 = vpop.f32.mrf.mxu1 }
 0x2ff   :  { %14907 = vst [vmem:[#allocation83_spill] sm:$0xff] %v12157_v62  ;;  %v2334_v22 = vpop.f32.mrf.mxu0  ;;  %8700 = vmatmul.mubr.msk.bf16.gmra.mxu0 %vm410_vm4, %v14899_v50 }
 0x300   :  { %v2807_v35 = vpop.f32.mrf.mxu1  ;;  %v2481_v61 = vadd.f32 %v2334_v22, %v11394_v41  ;;  %8703 = vmatprep.mubr.msk.bf16.mxu0 %vm9764_vm1, %v14854_v10  ;;  %v3702_v41 = vor.u32 %v14548_v17, %v3698_v58  ;;  %v3705_v22 = vrot.slane %v14547_v20, 1 }
 0x301   :  { %v12167_v13 = vadd.f32 %v2807_v35, %v2480_v29  ;;  %v8437_v8 = vpop.f32.mrf.mxu0 }
 0x302   :  { %v8600_v37 = vpop.f32.mrf.mxu1  ;;  %v12192_v58 = vsel %vm3598_vm6, %v3702_v41, %v3705_v22 }
 0x303   :  { %14909 = vst [vmem:[#allocation99_spill] sm:$0xff] %v12167_v13  ;;  %v2337_v57 = vpop.f32.mrf.mxu0  ;;  %14916 = vst [vmem:[#allocation100_spill] sm:$0xff] %v12192_v58 }
 0x304   :  { %v2812_v46 = vpop.f32.mrf.mxu1  ;;  %8866 = vmatmul.mubr.msk.bf16.gmra.mxu1 %vm410_vm4, %v12164_v24  ;;  %v2482_v62 = vadd.f32 %v2337_v57, %v14911_v28  ;;  %v14551_v57 = vshrl.u32 %v14910_v42, 16  ;;  %v14914_v28 = vld [vmem:[#allocation85_spill] sm:$0xff] }
 0x305   :  { %v12176_v50 = vadd.f32 %v2812_v46, %v2481_v61  ;;  %8869 = vmatprep.mubr.msk.bf16.mxu1 %vm9764_vm1, %v14854_v10  ;;  %v8438_v35 = vpop.f32.mrf.mxu0  ;;  %v14913_v46 = vld [vmem:[#allocation21_spill] sm:$0xff] }
 0x306   :  { %v8603_v29 = vpop.f32.mrf.mxu1  ;;  %v3709_v61 = vor.u32 %v14551_v57, %v3705_v22  ;;  %v14921_v22 = vld [vmem:[#allocation35_spill] sm:$0xff] }
 0x307   :  { %14912 = vst [vmem:[#allocation84_spill] sm:$0xff] %v12176_v50  ;;  %v2342_v8 = vpop.f32.mrf.mxu0  ;;  %8704 = vmatmul.mubr.msk.bf16.gmra.mxu0 %vm410_vm4, %v14902_v34 }
 0x308   :  { %v2815_v37 = vpop.f32.mrf.mxu1  ;;  %v2483_v50 = vadd.f32 %v2342_v8, %v14914_v28  ;;  %8707 = vmatprep.mubr.msk.bf16.mxu0 %vm9764_vm1, %v14854_v10  ;;  %v14917_v8 = vshll.u32 %v14913_v46, 16 }
 0x309   :  { %v12189_v13 = vadd.f32 %v2815_v37, %v2482_v62  ;;  %v8441_v35 = vpop.f32.mrf.mxu0  ;;  %v14918_v37 = vld [vmem:[#allocation86_spill] sm:$0xff] }
 0x30a   :  { %v8604_v29 = vpop.f32.mrf.mxu1  ;;  %v3712_v62 = vrot.slane %v14917_v8, 1 }
 0x30b   :  { %14915 = vst [vmem:[#allocation85_spill] sm:$0xff] %v12189_v13  ;;  %v2345_v20 = vpop.f32.mrf.mxu0 }
 0x30c   :  { %v2820_v17 = vpop.f32.mrf.mxu1  ;;  %8870 = vmatmul.mubr.msk.bf16.gmra.mxu1 %vm410_vm4, %v12192_v58  ;;  %v2484_v28 = vadd.f32 %v2345_v20, %v14918_v37  ;;  %v12210_v58 = vsel %vm3598_vm6, %v3709_v61, %v3712_v62  ;;  %v14924_v61 = vld [vmem:[#allocation87_spill] sm:$0xff] }
 0x30d   :  { %v12203_v41 = vadd.f32 %v2820_v17, %v2483_v50  ;;  %8873 = vmatprep.mubr.msk.bf16.mxu1 %vm9764_vm1, %v14854_v10  ;;  %v8442_v35 = vpop.f32.mrf.mxu0  ;;  %14920 = vst [vmem:[#allocation101_spill] sm:$0xff] %v12210_v58  ;;  %v14555_v50 = vshrl.u32 %v14913_v46, 16  ;;  %v14923_v17 = vld [vmem:[#allocation22_spill] sm:$0xff] }
 0x30e   :  { %v8607_v29 = vpop.f32.mrf.mxu1  ;;  %v14554_v20 = vshll.u32 %v14923_v17, 16 }
 0x30f   :  { %14919 = vst [vmem:[#allocation86_spill] sm:$0xff] %v12203_v41  ;;  %v2350_v13 = vpop.f32.mrf.mxu0  ;;  %8708 = vmatmul.mubr.msk.bf16.gmra.mxu0 %vm410_vm4, %v14910_v42 }
 0x310   :  { %v2823_v24 = vpop.f32.mrf.mxu1  ;;  %v2485_v57 = vadd.f32 %v2350_v13, %v14921_v22  ;;  %8711 = vmatprep.mubr.msk.bf16.mxu0 %vm9764_vm1, %v14854_v10  ;;  %v3719_v13 = vrot.slane %v14554_v20, 1 }
 0x311   :  { %v12213_v8 = vadd.f32 %v2823_v24, %v2484_v28  ;;  %v8445_v37 = vpop.f32.mrf.mxu0  ;;  %v3716_v24 = vor.u32 %v14555_v50, %v3712_v62 }
 0x312   :  { %v8608_v35 = vpop.f32.mrf.mxu1 }
 0x313   :  { %14922 = vst [vmem:[#allocation35_spill] sm:$0xff] %v12213_v8  ;;  %v2353_v29 = vpop.f32.mrf.mxu0  ;;  %v12238_v62 = vsel %vm3598_vm6, %v3716_v24, %v3719_v13 }
 0x314   :  { %v2828_v41 = vpop.f32.mrf.mxu1  ;;  %8874 = vmatmul.mubr.msk.bf16.gmra.mxu1 %vm410_vm4, %v12210_v58  ;;  %v2486_v42 = vadd.f32 %v2353_v29, %v14924_v61  ;;  %v14558_v29 = vshrl.u32 %v14923_v17, 16  ;;  %v14927_v61 = vld [vmem:[#allocation38_spill] sm:$0xff]  ;;  %14929 = vst [vmem:[#allocation102_spill] sm:$0xff] %v12238_v62 }
 0x315   :  { %v12222_v34 = vadd.f32 %v2828_v41, %v2485_v57  ;;  %8877 = vmatprep.mubr.msk.bf16.mxu1 %vm9764_vm1, %v14854_v10  ;;  %v8446_v28 = vpop.f32.mrf.mxu0  ;;  %v14926_v57 = vld [vmem:[#allocation23_spill] sm:$0xff] }
 0x316   :  { %v8611_v22 = vpop.f32.mrf.mxu1  ;;  %v3723_v41 = vor.u32 %v14558_v29, %v3719_v13  ;;  %v14934_v13 = vld [vmem:[#allocation39_spill] sm:$0xff] }
 0x317   :  { %14925 = vst [vmem:[#allocation87_spill] sm:$0xff] %v12222_v34  ;;  %v2358_v37 = vpop.f32.mrf.mxu0  ;;  %8712 = vmatmul.mubr.msk.bf16.gmra.mxu0 %vm410_vm4, %v14913_v46 }
 0x318   :  { %v2831_v35 = vpop.f32.mrf.mxu1  ;;  %v2487_v34 = vadd.f32 %v2358_v37, %v14927_v61  ;;  %8715 = vmatprep.mubr.msk.bf16.mxu0 %vm9764_vm1, %v14854_v10  ;;  %v14930_v37 = vshll.u32 %v14926_v57, 16 }
 0x319   :  { %v12235_v8 = vadd.f32 %v2831_v35, %v2486_v42  ;;  %v8449_v28 = vpop.f32.mrf.mxu0  ;;  %v14931_v35 = vld [vmem:[#allocation88_spill] sm:$0xff] }
 0x31a   :  { %v8612_v22 = vpop.f32.mrf.mxu1  ;;  %v3726_v42 = vrot.slane %v14930_v37, 1 }
 0x31b   :  { %14928 = vst [vmem:[#allocation38_spill] sm:$0xff] %v12235_v8  ;;  %v2361_v20 = vpop.f32.mrf.mxu0 }
 0x31c   :  { %v2836_v50 = vpop.f32.mrf.mxu1  ;;  %8878 = vmatmul.mubr.msk.bf16.gmra.mxu1 %vm410_vm4, %v12238_v62  ;;  %v2488_v61 = vadd.f32 %v2361_v20, %v14931_v35  ;;  %v12256_v62 = vsel %vm3598_vm6, %v3723_v41, %v3726_v42  ;;  %v14937_v41 = vld [vmem:[#allocation89_spill] sm:$0xff] }
 0x31d   :  { %v12249_v24 = vadd.f32 %v2836_v50, %v2487_v34  ;;  %8881 = vmatprep.mubr.msk.bf16.mxu1 %vm9764_vm1, %v14854_v10  ;;  %v8450_v28 = vpop.f32.mrf.mxu0  ;;  %14933 = vst [vmem:[#allocation103_spill] sm:$0xff] %v12256_v62  ;;  %v14562_v34 = vshrl.u32 %v14926_v57, 16  ;;  %v14936_v50 = vld [vmem:[#allocation24_spill] sm:$0xff] }
 0x31e   :  { %v8615_v22 = vpop.f32.mrf.mxu1  ;;  %v14561_v20 = vshll.u32 %v14936_v50, 16 }
 0x31f   :  { %14932 = vst [vmem:[#allocation88_spill] sm:$0xff] %v12249_v24  ;;  %v2366_v8 = vpop.f32.mrf.mxu0  ;;  %8716 = vmatmul.mubr.msk.bf16.gmra.mxu0 %vm410_vm4, %v14923_v17 }
 0x320   :  { %v2839_v58 = vpop.f32.mrf.mxu1  ;;  %v2489_v29 = vadd.f32 %v2366_v8, %v14934_v13  ;;  %8719 = vmatprep.mubr.msk.bf16.mxu0 %vm9764_vm1, %v14854_v10  ;;  %v3733_v8 = vrot.slane %v14561_v20, 1 }
 0x321   :  { %v12259_v37 = vadd.f32 %v2839_v58, %v2488_v61  ;;  %v8453_v35 = vpop.f32.mrf.mxu0  ;;  %v3730_v58 = vor.u32 %v14562_v34, %v3726_v42 }
 0x322   :  { %v8616_v28 = vpop.f32.mrf.mxu1 }
 0x323   :  { %14935 = vst [vmem:[#allocation39_spill] sm:$0xff] %v12259_v37  ;;  %v2369_v22 = vpop.f32.mrf.mxu0  ;;  %v12284_v42 = vsel %vm3598_vm6, %v3730_v58, %v3733_v8 }
 0x324   :  { %v2844_v24 = vpop.f32.mrf.mxu1  ;;  %8882 = vmatmul.mubr.msk.bf16.gmra.mxu1 %vm410_vm4, %v12256_v62  ;;  %v2490_v17 = vadd.f32 %v2369_v22, %v14937_v41  ;;  %v14565_v22 = vshrl.u32 %v14936_v50, 16  ;;  %v14940_v41 = vld [vmem:[#allocation42_spill] sm:$0xff]  ;;  %14942 = vst [vmem:[#allocation104_spill] sm:$0xff] %v12284_v42 }
 0x325   :  { %v12268_v46 = vadd.f32 %v2844_v24, %v2489_v29  ;;  %8885 = vmatprep.mubr.msk.bf16.mxu1 %vm9764_vm1, %v14854_v10  ;;  %v8454_v61 = vpop.f32.mrf.mxu0  ;;  %v14939_v29 = vld [vmem:[#allocation25_spill] sm:$0xff] }
 0x326   :  { %v8619_v13 = vpop.f32.mrf.mxu1  ;;  %v3737_v24 = vor.u32 %v14565_v22, %v3733_v8  ;;  %v14947_v8 = vld [vmem:[#allocation43_spill] sm:$0xff] }
 0x327   :  { %14938 = vst [vmem:[#allocation89_spill] sm:$0xff] %v12268_v46  ;;  %v2374_v35 = vpop.f32.mrf.mxu0  ;;  %8720 = vmatmul.mubr.msk.bf16.gmra.mxu0 %vm410_vm4, %v14926_v57 }
 0x328   :  { %v2847_v28 = vpop.f32.mrf.mxu1  ;;  %v2491_v46 = vadd.f32 %v2374_v35, %v14940_v41  ;;  %8723 = vmatprep.mubr.msk.bf16.mxu0 %vm9764_vm1, %v14854_v10  ;;  %v14943_v35 = vshll.u32 %v14939_v29, 16 }
 0x329   :  { %v12281_v37 = vadd.f32 %v2847_v28, %v2490_v17  ;;  %v8457_v61 = vpop.f32.mrf.mxu0  ;;  %v14944_v28 = vld [vmem:[#allocation90_spill] sm:$0xff] }
 0x32a   :  { %v8620_v13 = vpop.f32.mrf.mxu1  ;;  %v3740_v17 = vrot.slane %v14943_v35, 1 }
 0x32b   :  { %14941 = vst [vmem:[#allocation42_spill] sm:$0xff] %v12281_v37  ;;  %v2377_v20 = vpop.f32.mrf.mxu0 }
 0x32c   :  { %v2852_v34 = vpop.f32.mrf.mxu1  ;;  %8886 = vmatmul.mubr.msk.bf16.gmra.mxu1 %vm410_vm4, %v12284_v42  ;;  %v2492_v41 = vadd.f32 %v2377_v20, %v14944_v28  ;;  %v12302_v42 = vsel %vm3598_vm6, %v3737_v24, %v3740_v17  ;;  %v14950_v24 = vld [vmem:[#allocation91_spill] sm:$0xff] }
 0x32d   :  { %v12295_v58 = vadd.f32 %v2852_v34, %v2491_v46  ;;  %8889 = vmatprep.mubr.msk.bf16.mxu1 %vm9764_vm1, %v14854_v10  ;;  %v8458_v61 = vpop.f32.mrf.mxu0  ;;  %14946 = vst [vmem:[#allocation105_spill] sm:$0xff] %v12302_v42  ;;  %v14569_v46 = vshrl.u32 %v14939_v29, 16  ;;  %v14949_v34 = vld [vmem:[#allocation26_spill] sm:$0xff] }
 0x32e   :  { %v8623_v13 = vpop.f32.mrf.mxu1  ;;  %v14568_v20 = vshll.u32 %v14949_v34, 16 }
 0x32f   :  { %14945 = vst [vmem:[#allocation90_spill] sm:$0xff] %v12295_v58  ;;  %v2382_v37 = vpop.f32.mrf.mxu0  ;;  %8724 = vmatmul.mubr.msk.bf16.gmra.mxu0 %vm410_vm4, %v14936_v50 }
 0x330   :  { %v2855_v62 = vpop.f32.mrf.mxu1  ;;  %v2493_v22 = vadd.f32 %v2382_v37, %v14947_v8  ;;  %8727 = vmatprep.mubr.msk.bf16.mxu0 %vm9764_vm1, %v14854_v10  ;;  %v3747_v37 = vrot.slane %v14568_v20, 1 }
 0x331   :  { %v12305_v35 = vadd.f32 %v2855_v62, %v2492_v41  ;;  %v8461_v28 = vpop.f32.mrf.mxu0  ;;  %v3744_v62 = vor.u32 %v14569_v46, %v3740_v17 }
 0x332   :  { %v8624_v61 = vpop.f32.mrf.mxu1 }
 0x333   :  { %14948 = vst [vmem:[#allocation43_spill] sm:$0xff] %v12305_v35  ;;  %v2385_v13 = vpop.f32.mrf.mxu0  ;;  %v12330_v17 = vsel %vm3598_vm6, %v3744_v62, %v3747_v37 }
 0x334   :  { %v2860_v58 = vpop.f32.mrf.mxu1  ;;  %8890 = vmatmul.mubr.msk.bf16.gmra.mxu1 %vm410_vm4, %v12302_v42  ;;  %v2494_v50 = vadd.f32 %v2385_v13, %v14950_v24  ;;  %v14572_v13 = vshrl.u32 %v14949_v34, 16  ;;  %v14953_v24 = vld [vmem:[#allocation46_spill] sm:$0xff]  ;;  %14955 = vst [vmem:[#allocation106_spill] sm:$0xff] %v12330_v17 }
 0x335   :  { %v12314_v57 = vadd.f32 %v2860_v58, %v2493_v22  ;;  %8893 = vmatprep.mubr.msk.bf16.mxu1 %vm9764_vm1, %v14854_v10  ;;  %v8462_v41 = vpop.f32.mrf.mxu0  ;;  %v14952_v22 = vld [vmem:[#allocation27_spill] sm:$0xff] }
 0x336   :  { %v8627_v8 = vpop.f32.mrf.mxu1  ;;  %v3751_v58 = vor.u32 %v14572_v13, %v3747_v37  ;;  %v14960_v37 = vld [vmem:[#allocation47_spill] sm:$0xff] }
 0x337   :  { %14951 = vst [vmem:[#allocation91_spill] sm:$0xff] %v12314_v57  ;;  %v2390_v28 = vpop.f32.mrf.mxu0  ;;  %8728 = vmatmul.mubr.msk.bf16.gmra.mxu0 %vm410_vm4, %v14939_v29 }
 0x338   :  { %v2863_v61 = vpop.f32.mrf.mxu1  ;;  %v2495_v57 = vadd.f32 %v2390_v28, %v14953_v24  ;;  %8731 = vmatprep.mubr.msk.bf16.mxu0 %vm9764_vm1, %v14854_v10  ;;  %v14956_v28 = vshll.u32 %v14952_v22, 16 }
 0x339   :  { %v12327_v35 = vadd.f32 %v2863_v61, %v2494_v50  ;;  %v8465_v41 = vpop.f32.mrf.mxu0  ;;  %v14957_v61 = vld [vmem:[#allocation92_spill] sm:$0xff] }
 0x33a   :  { %v8628_v8 = vpop.f32.mrf.mxu1  ;;  %v3754_v50 = vrot.slane %v14956_v28, 1 }
 0x33b   :  { %14954 = vst [vmem:[#allocation46_spill] sm:$0xff] %v12327_v35  ;;  %v2393_v20 = vpop.f32.mrf.mxu0 }
 0x33c   :  { %v2868_v46 = vpop.f32.mrf.mxu1  ;;  %8894 = vmatmul.mubr.msk.bf16.gmra.mxu1 %vm410_vm4, %v12330_v17  ;;  %v2496_v24 = vadd.f32 %v2393_v20, %v14957_v61  ;;  %v12348_v17 = vsel %vm3598_vm6, %v3751_v58, %v3754_v50  ;;  %v14963_v58 = vld [vmem:[#allocation93_spill] sm:$0xff] }
 0x33d   :  { %v12341_v62 = vadd.f32 %v2868_v46, %v2495_v57  ;;  %8897 = vmatprep.mubr.msk.bf16.mxu1 %vm9764_vm1, %v14854_v10  ;;  %v8466_v41 = vpop.f32.mrf.mxu0  ;;  %14959 = vst [vmem:[#allocation107_spill] sm:$0xff] %v12348_v17  ;;  %v14576_v57 = vshrl.u32 %v14952_v22, 16  ;;  %v14962_v46 = vld [vmem:[#allocation28_spill] sm:$0xff] }
 0x33e   :  { %v8631_v8 = vpop.f32.mrf.mxu1  ;;  %v14575_v20 = vshll.u32 %v14962_v46, 16 }
 0x33f   :  { %14958 = vst [vmem:[#allocation92_spill] sm:$0xff] %v12341_v62  ;;  %v2398_v35 = vpop.f32.mrf.mxu0  ;;  %8732 = vmatmul.mubr.msk.bf16.gmra.mxu0 %vm410_vm4, %v14949_v34 }
 0x340   :  { %v2871_v42 = vpop.f32.mrf.mxu1  ;;  %v2497_v13 = vadd.f32 %v2398_v35, %v14960_v37  ;;  %8735 = vmatprep.mubr.msk.bf16.mxu0 %vm9764_vm1, %v14854_v10  ;;  %v3761_v35 = vrot.slane %v14575_v20, 1 }
 0x341   :  { %v12351_v28 = vadd.f32 %v2871_v42, %v2496_v24  ;;  %v8469_v61 = vpop.f32.mrf.mxu0  ;;  %v3758_v42 = vor.u32 %v14576_v57, %v3754_v50 }
 0x342   :  { %v8632_v41 = vpop.f32.mrf.mxu1 }
 0x343   :  { %14961 = vst [vmem:[#allocation47_spill] sm:$0xff] %v12351_v28  ;;  %v2401_v8 = vpop.f32.mrf.mxu0  ;;  %v12376_v50 = vsel %vm3598_vm6, %v3758_v42, %v3761_v35 }
 0x344   :  { %v2876_v62 = vpop.f32.mrf.mxu1  ;;  %8898 = vmatmul.mubr.msk.bf16.gmra.mxu1 %vm410_vm4, %v12348_v17  ;;  %v2498_v34 = vadd.f32 %v2401_v8, %v14963_v58  ;;  %v14579_v8 = vshrl.u32 %v14962_v46, 16  ;;  %v14966_v58 = vld [vmem:[#allocation50_spill] sm:$0xff] }
 0x345   :  { %v12360_v29 = vadd.f32 %v2876_v62, %v2497_v13  ;;  %8901 = vmatprep.mubr.msk.bf16.mxu1 %vm9764_vm1, %v14854_v10  ;;  %v8470_v24 = vpop.f32.mrf.mxu0  ;;  %v14965_v13 = vld [vmem:[#allocation29_spill] sm:$0xff]  ;;  %14968 = vst [vmem:[#allocation50_spill] sm:$0xff] %v12376_v50 }
 0x346   :  { %v8635_v37 = vpop.f32.mrf.mxu1  ;;  %v3765_v62 = vor.u32 %v14579_v8, %v3761_v35 }
 0x347   :  { %14964 = vst [vmem:[#allocation93_spill] sm:$0xff] %v12360_v29  ;;  %v2406_v61 = vpop.f32.mrf.mxu0  ;;  %8736 = vmatmul.mubr.msk.bf16.gmra.mxu0 %vm410_vm4, %v14952_v22 }
 0x348   :  { %v2879_v41 = vpop.f32.mrf.mxu1  ;;  %v2499_v29 = vadd.f32 %v2406_v61, %v14966_v58  ;;  %8739 = vmatprep.mubr.msk.bf16.mxu0 %vm9764_vm1, %v14854_v10  ;;  %v14969_v61 = vshll.u32 %v14965_v13, 16 }
 0x349   :  { %v12373_v28 = vadd.f32 %v2879_v41, %v2498_v34  ;;  %v8473_v24 = vpop.f32.mrf.mxu0  ;;  %v14970_v41 = vld [vmem:[#allocation94_spill] sm:$0xff] }
 0x34a   :  { %v8636_v37 = vpop.f32.mrf.mxu1  ;;  %v3768_v34 = vrot.slane %v14969_v61, 1 }
 0x34b   :  { %14967 = vst [vmem:[#allocation29_spill] sm:$0xff] %v12373_v28  ;;  %v2409_v20 = vpop.f32.mrf.mxu0 }
 0x34c   :  { %v2884_v57 = vpop.f32.mrf.mxu1  ;;  %8902 = vmatmul.mubr.msk.bf16.gmra.mxu1 %vm410_vm4, %v12376_v50  ;;  %v2500_v58 = vadd.f32 %v2409_v20, %v14970_v41  ;;  %v12394_v50 = vsel %vm3598_vm6, %v3765_v62, %v3768_v34  ;;  %v14975_v62 = vld [vmem:[#allocation51_spill] sm:$0xff] }
 0x34d   :  { %v12387_v42 = vadd.f32 %v2884_v57, %v2499_v29  ;;  %8905 = vmatprep.mubr.msk.bf16.mxu1 %vm9764_vm1, %v14854_v10  ;;  %v8474_v24 = vpop.f32.mrf.mxu0  ;;  %14972 = vst [vmem:[#allocation108_spill] sm:$0xff] %v12394_v50  ;;  %v14582_v29 = vshrl.u32 %v14965_v13, 16  ;;  %v14974_v57 = vld [vmem:[#allocation30_spill] sm:$0xff] }
 0x34e   :  { %v8639_v37 = vpop.f32.mrf.mxu1  ;;  %v14581_v20 = vshll.u32 %v14974_v57, 16 }
 0x34f   :  { %14971 = vst [vmem:[#allocation94_spill] sm:$0xff] %v12387_v42  ;;  %v2414_v28 = vpop.f32.mrf.mxu0  ;;  %8740 = vmatmul.mubr.msk.bf16.gmra.mxu0 %vm410_vm4, %v14962_v46 }
 0x350   :  { %v2887_v17 = vpop.f32.mrf.mxu1  ;;  %v2501_v35 = vadd.f32 %v2414_v28, %v11544_v19  ;;  %8743 = vmatprep.mubr.msk.bf16.mxu0 %vm9764_vm1, %v14854_v10  ;;  %v3772_v19 = vor.u32 %v14582_v29, %v3768_v34 }
 0x351   :  { %v12397_v61 = vadd.f32 %v2887_v17, %v2500_v58  ;;  %v8477_v41 = vpop.f32.mrf.mxu0  ;;  %v3775_v17 = vrot.slane %v14581_v20, 1 }
 0x352   :  { %v8640_v24 = vpop.f32.mrf.mxu1 }
 0x353   :  { %14973 = vst [vmem:[#allocation109_spill] sm:$0xff] %v12397_v61  ;;  %v2417_v37 = vpop.f32.mrf.mxu0  ;;  %v12422_v34 = vsel %vm3598_vm6, %v3772_v19, %v3775_v17 }
 0x354   :  { %v2892_v8 = vpop.f32.mrf.mxu1  ;;  %8906 = vmatmul.mubr.msk.bf16.gmra.mxu1 %vm410_vm4, %v12394_v50  ;;  %v2502_v42 = vadd.f32 %v2417_v37, %v14975_v62  ;;  %v14585_v37 = vshrl.u32 %v14974_v57, 16 }
 0x355   :  { %v12406_v46 = vadd.f32 %v2892_v8, %v2501_v35  ;;  %8909 = vmatprep.mubr.msk.bf16.mxu1 %vm9764_vm1, %v14854_v10  ;;  %v8478_v28 = vpop.f32.mrf.mxu0  ;;  %v14977_v8 = vld [vmem:[#allocation31_spill] sm:$0xff] }
 0x356   :  { %v8643_v58 = vpop.f32.mrf.mxu1  ;;  %v3779_v35 = vor.u32 %v14585_v37, %v3775_v17 }
 0x357   :  { %14976 = vst [vmem:[#allocation51_spill] sm:$0xff] %v12406_v46  ;;  %v3184_v24 = vpop.f32.mrf.mxu0  ;;  %8744 = vmatmul.mubr.msk.bf16.gmra.mxu0 %vm410_vm4, %v14965_v13  ;;  %v14979_v46 = vld [vmem:[#allocation53_spill] sm:$0xff] }
 0x358   :  { %v2895_v41 = vpop.f32.mrf.mxu1  ;;  %v3511_v61 = vadd.f32 %v3184_v24, %v14979_v46  ;;  %14980 = vst [vmem:[#allocation53_spill] sm:$0xff] %v12422_v34  ;;  %8747 = vmatprep.mubr.msk.bf16.mxu0 %vm9764_vm1, %v14854_v10  ;;  %v14982_v46 = vld [vmem:[#allocation96_spill] sm:$0xff] }
 0x359   :  { %v12418_v62 = vadd.f32 %v2895_v41, %v2502_v42  ;;  %v8649_v58 = vpop.f32.mrf.mxu0  ;;  %v14981_v42 = vshll.u32 %v14977_v8, 16 }
 0x35a   :  { %v8644_v28 = vpop.f32.mrf.mxu1 }
 0x35b   :  { %14978 = vst [vmem:[#allocation110_spill] sm:$0xff] %v12418_v62  ;;  %v3187_v20 = vpop.f32.mrf.mxu0  ;;  %v3782_v41 = vrot.slane %v14981_v42, 1 }
 0x35c   :  { %v4050_v29 = vpop.f32.mrf.mxu1  ;;  %8910 = vmatmul.mubr.msk.bf16.gmra.mxu1 %vm410_vm4, %v12422_v34  ;;  %v3512_v24 = vadd.f32 %v3187_v20, %v14982_v46 }
 0x35d   :  { %v12433_v19 = vadd.f32 %v4050_v29, %v3511_v61  ;;  %8913 = vmatprep.mubr.msk.bf16.mxu1 %vm9764_vm1, %v14854_v10  ;;  %v8650_v28 = vpop.f32.mrf.mxu0  ;;  %v12440_v50 = vsel %vm3598_vm6, %v3779_v35, %v3782_v41  ;;  %v14587_v61 = vshrl.u32 %v14977_v8, 16  ;;  %v14984_v29 = vld [vmem:[#allocation32_spill] sm:$0xff] }
 0x35e   :  { %v8815_v58 = vpop.f32.mrf.mxu1  ;;  %v14586_v20 = vshll.u32 %v14984_v29, 16 }
 0x35f   :  { %14983 = vst [vmem:[#allocation96_spill] sm:$0xff] %v12433_v19  ;;  %v3192_v62 = vpop.f32.mrf.mxu0  ;;  %8748 = vmatmul.mubr.msk.bf16.gmra.mxu0 %vm410_vm4, %v14974_v57 }
 0x360   :  { %v4053_v34 = vpop.f32.mrf.mxu1  ;;  %v3513_v17 = vadd.f32 %v3192_v62, %v11592_v44  ;;  %8751 = vmatprep.mubr.msk.bf16.mxu0 %vm9764_vm1, %v14854_v10  ;;  %v3786_v44 = vor.u32 %v14587_v61, %v3782_v41  ;;  %v3789_v62 = vrot.slane %v14586_v20, 1 }
 0x361   :  { %v12443_v42 = vadd.f32 %v4053_v34, %v3512_v24  ;;  %v8653_v46 = vpop.f32.mrf.mxu0 }
 0x362   :  { %v8816_v28 = vpop.f32.mrf.mxu1  ;;  %v12468_v41 = vsel %vm3598_vm6, %v3786_v44, %v3789_v62 }
 0x363   :  { %v3195_v58 = vpop.f32.mrf.mxu0  ;;  %14988 = vst [vmem:[#allocation111_spill] sm:$0xff] %v12468_v41 }
 0x364   :  { %v4058_v37 = vpop.f32.mrf.mxu1  ;;  %8914 = vmatmul.mubr.msk.bf16.gmra.mxu1 %vm410_vm4, %v12440_v50  ;;  %v3514_v35 = vadd.f32 %v3195_v58, %v11602_v15  ;;  %v14589_v15 = vshrl.u32 %v14984_v29, 16 }
 0x365   :  { %v12452_v19 = vadd.f32 %v4058_v37, %v3513_v17  ;;  %8917 = vmatprep.mubr.msk.bf16.mxu1 %vm9764_vm1, %v14854_v10  ;;  %v8654_v34 = vpop.f32.mrf.mxu0  ;;  %v14986_v37 = vld [vmem:[#allocation33_spill] sm:$0xff] }
 0x366   :  { %v8819_v24 = vpop.f32.mrf.mxu1  ;;  %v3793_v17 = vor.u32 %v14589_v15, %v3789_v62 }
 0x367   :  { %14985 = vst [vmem:[#allocation32_spill] sm:$0xff] %v12452_v19  ;;  %v3200_v46 = vpop.f32.mrf.mxu0  ;;  %8752 = vmatmul.mubr.msk.bf16.gmra.mxu0 %vm410_vm4, %v14977_v8 }
 0x368   :  { %v4061_v28 = vpop.f32.mrf.mxu1  ;;  %v3515_v58 = vadd.f32 %v3200_v46, %v11609_v31  ;;  %8755 = vmatprep.mubr.msk.bf16.mxu0 %vm9764_vm1, %v14854_v10  ;;  %v14989_v31 = vshll.u32 %v14986_v37, 16 }
 0x369   :  { %v12465_v19 = vadd.f32 %v4061_v28, %v3514_v35  ;;  %v8657_v34 = vpop.f32.mrf.mxu0 }
 0x36a   :  { %v8820_v24 = vpop.f32.mrf.mxu1  ;;  %v3796_v35 = vrot.slane %v14989_v31, 1 }
 0x36b   :  { %14987 = vst [vmem:[#allocation33_spill] sm:$0xff] %v12465_v19  ;;  %v3203_v20 = vpop.f32.mrf.mxu0 }
 0x36c   :  { %v4066_v61 = vpop.f32.mrf.mxu1  ;;  %8918 = vmatmul.mubr.msk.bf16.gmra.mxu1 %vm410_vm4, %v12468_v41  ;;  %v3516_v46 = vadd.f32 %v3203_v20, %v11616_v7  ;;  %v12486_v41 = vsel %vm3598_vm6, %v3793_v17, %v3796_v35  ;;  %v14591_v7 = vshrl.u32 %v14986_v37, 16 }
 0x36d   :  { %v12479_v44 = vadd.f32 %v4066_v61, %v3515_v58  ;;  %8921 = vmatprep.mubr.msk.bf16.mxu1 %vm9764_vm1, %v14854_v10  ;;  %v8658_v28 = vpop.f32.mrf.mxu0  ;;  %v14991_v61 = vld [vmem:[#allocation34_spill] sm:$0xff] }
 0x36e   :  { %v8823_v34 = vpop.f32.mrf.mxu1  ;;  %v14590_v20 = vshll.u32 %v14991_v61, 16 }
 0x36f   :  { %14990 = vst [vmem:[#allocation112_spill] sm:$0xff] %v12479_v44  ;;  %v3208_v24 = vpop.f32.mrf.mxu0  ;;  %8756 = vmatmul.mubr.msk.bf16.gmra.mxu0 %vm410_vm4, %v14984_v29 }
 0x370   :  { %v4069_v19 = vpop.f32.mrf.mxu1  ;;  %v3517_v62 = vadd.f32 %v3208_v24, %v11626_v12  ;;  %8759 = vmatprep.mubr.msk.bf16.mxu0 %vm9764_vm1, %v14854_v10  ;;  %v3800_v12 = vor.u32 %v14591_v7, %v3796_v35 }
 0x371   :  { %v12489_v31 = vadd.f32 %v4069_v19, %v3516_v46  ;;  %v8661_v58 = vpop.f32.mrf.mxu0  ;;  %v3803_v19 = vrot.slane %v14590_v20, 1 }
 0x372   :  { %v8824_v28 = vpop.f32.mrf.mxu1 }
 0x373   :  { %v3211_v34 = vpop.f32.mrf.mxu0  ;;  %v12514_v35 = vsel %vm3598_vm6, %v3800_v12, %v3803_v19 }
 0x374   :  { %v4074_v15 = vpop.f32.mrf.mxu1  ;;  %8922 = vmatmul.mubr.msk.bf16.gmra.mxu1 %vm410_vm4, %v12486_v41  ;;  %v3518_v17 = vadd.f32 %v3211_v34, %v11636_v33  ;;  %v14593_v33 = vshrl.u32 %v14991_v61, 16  ;;  %14995 = vst [vmem:[#allocation113_spill] sm:$0xff] %v12514_v35 }
 0x375   :  { %v12498_v44 = vadd.f32 %v4074_v15, %v3517_v62  ;;  %8925 = vmatprep.mubr.msk.bf16.mxu1 %vm9764_vm1, %v14854_v10  ;;  %v8662_v46 = vpop.f32.mrf.mxu0  ;;  %v14993_v15 = vld [vmem:[#allocation36_spill] sm:$0xff] }
 0x376   :  { %v8827_v24 = vpop.f32.mrf.mxu1  ;;  %v3807_v62 = vor.u32 %v14593_v33, %v3803_v19 }
 0x377   :  { %14992 = vst [vmem:[#allocation34_spill] sm:$0xff] %v12498_v44  ;;  %v3216_v58 = vpop.f32.mrf.mxu0  ;;  %8760 = vmatmul.mubr.msk.bf16.gmra.mxu0 %vm410_vm4, %v14986_v37 }
 0x378   :  { %v4077_v28 = vpop.f32.mrf.mxu1  ;;  %v3519_v34 = vadd.f32 %v3216_v58, %v11643_v51  ;;  %8763 = vmatprep.mubr.msk.bf16.mxu0 %vm9764_vm1, %v14854_v10  ;;  %v14996_v51 = vshll.u32 %v14993_v15, 16 }
 0x379   :  { %v12511_v44 = vadd.f32 %v4077_v28, %v3518_v17  ;;  %v8665_v46 = vpop.f32.mrf.mxu0 }
 0x37a   :  { %v8828_v24 = vpop.f32.mrf.mxu1  ;;  %v3810_v17 = vrot.slane %v14996_v51, 1 }
 0x37b   :  { %14994 = vst [vmem:[#allocation36_spill] sm:$0xff] %v12511_v44  ;;  %v3219_v20 = vpop.f32.mrf.mxu0 }
 0x37c   :  { %v4082_v7 = vpop.f32.mrf.mxu1  ;;  %8926 = vmatmul.mubr.msk.bf16.gmra.mxu1 %vm410_vm4, %v12514_v35  ;;  %v3520_v58 = vadd.f32 %v3219_v20, %v11650_v26  ;;  %v12532_v35 = vsel %vm3598_vm6, %v3807_v62, %v3810_v17  ;;  %v14595_v26 = vshrl.u32 %v14993_v15, 16 }
 0x37d   :  { %v12525_v12 = vadd.f32 %v4082_v7, %v3519_v34  ;;  %8929 = vmatprep.mubr.msk.bf16.mxu1 %vm9764_vm1, %v14854_v10  ;;  %v8666_v28 = vpop.f32.mrf.mxu0  ;;  %v14998_v7 = vld [vmem:[#allocation37_spill] sm:$0xff] }
 0x37e   :  { %v8831_v46 = vpop.f32.mrf.mxu1  ;;  %v14594_v20 = vshll.u32 %v14998_v7, 16 }
 0x37f   :  { %14997 = vst [vmem:[#allocation114_spill] sm:$0xff] %v12525_v12  ;;  %v3224_v24 = vpop.f32.mrf.mxu0  ;;  %8764 = vmatmul.mubr.msk.bf16.gmra.mxu0 %vm410_vm4, %v14991_v61 }
 0x380   :  { %v4085_v44 = vpop.f32.mrf.mxu1  ;;  %v3521_v19 = vadd.f32 %v3224_v24, %v11660_v1  ;;  %8767 = vmatprep.mubr.msk.bf16.mxu0 %vm9764_vm1, %v14854_v10  ;;  %v3814_v1 = vor.u32 %v14595_v26, %v3810_v17 }
 0x381   :  { %v12535_v51 = vadd.f32 %v4085_v44, %v3520_v58  ;;  %v8669_v34 = vpop.f32.mrf.mxu0  ;;  %v3817_v44 = vrot.slane %v14594_v20, 1 }
 0x382   :  { %v8832_v28 = vpop.f32.mrf.mxu1 }
 0x383   :  { %v3227_v46 = vpop.f32.mrf.mxu0  ;;  %v12560_v17 = vsel %vm3598_vm6, %v3814_v1, %v3817_v44 }
 0x384   :  { %v4090_v33 = vpop.f32.mrf.mxu1  ;;  %8930 = vmatmul.mubr.msk.bf16.gmra.mxu1 %vm410_vm4, %v12532_v35  ;;  %v3522_v62 = vadd.f32 %v3227_v46, %v11670_v60  ;;  %v14597_v60 = vshrl.u32 %v14998_v7, 16  ;;  %15002 = vst [vmem:[#allocation115_spill] sm:$0xff] %v12560_v17 }
 0x385   :  { %v12544_v12 = vadd.f32 %v4090_v33, %v3521_v19  ;;  %8933 = vmatprep.mubr.msk.bf16.mxu1 %vm9764_vm1, %v14854_v10  ;;  %v8670_v58 = vpop.f32.mrf.mxu0  ;;  %v15000_v33 = vld [vmem:[#allocation40_spill] sm:$0xff] }
 0x386   :  { %v8835_v24 = vpop.f32.mrf.mxu1  ;;  %v3821_v19 = vor.u32 %v14597_v60, %v3817_v44 }
 0x387   :  { %14999 = vst [vmem:[#allocation37_spill] sm:$0xff] %v12544_v12  ;;  %v3232_v34 = vpop.f32.mrf.mxu0  ;;  %8768 = vmatmul.mubr.msk.bf16.gmra.mxu0 %vm410_vm4, %v14993_v15 }
 0x388   :  { %v4093_v28 = vpop.f32.mrf.mxu1  ;;  %v3523_v46 = vadd.f32 %v3232_v34, %v11677_v14  ;;  %8771 = vmatprep.mubr.msk.bf16.mxu0 %vm9764_vm1, %v14854_v10  ;;  %v15003_v14 = vshll.u32 %v15000_v33, 16 }
 0x389   :  { %v12557_v12 = vadd.f32 %v4093_v28, %v3522_v62  ;;  %v8673_v58 = vpop.f32.mrf.mxu0 }
 0x38a   :  { %v8836_v24 = vpop.f32.mrf.mxu1  ;;  %v3824_v62 = vrot.slane %v15003_v14, 1 }
 0x38b   :  { %15001 = vst [vmem:[#allocation40_spill] sm:$0xff] %v12557_v12  ;;  %v3235_v20 = vpop.f32.mrf.mxu0 }
 0x38c   :  { %v4098_v26 = vpop.f32.mrf.mxu1  ;;  %8934 = vmatmul.mubr.msk.bf16.gmra.mxu1 %vm410_vm4, %v12560_v17  ;;  %v3524_v34 = vadd.f32 %v3235_v20, %v11684_v30  ;;  %v12578_v17 = vsel %vm3598_vm6, %v3821_v19, %v3824_v62  ;;  %v14599_v30 = vshrl.u32 %v15000_v33, 16 }
 0x38d   :  { %v12571_v1 = vadd.f32 %v4098_v26, %v3523_v46  ;;  %8937 = vmatprep.mubr.msk.bf16.mxu1 %vm9764_vm1, %v14854_v10  ;;  %v8674_v28 = vpop.f32.mrf.mxu0  ;;  %v15005_v26 = vld [vmem:[#allocation41_spill] sm:$0xff] }
 0x38e   :  { %v8839_v58 = vpop.f32.mrf.mxu1  ;;  %v14598_v20 = vshll.u32 %v15005_v26, 16 }
 0x38f   :  { %15004 = vst [vmem:[#allocation116_spill] sm:$0xff] %v12571_v1  ;;  %v3240_v24 = vpop.f32.mrf.mxu0  ;;  %8772 = vmatmul.mubr.msk.bf16.gmra.mxu0 %vm410_vm4, %v14998_v7 }
 0x390   :  { %v4101_v12 = vpop.f32.mrf.mxu1  ;;  %v3525_v44 = vadd.f32 %v3240_v24, %v11694_v48  ;;  %8775 = vmatprep.mubr.msk.bf16.mxu0 %vm9764_vm1, %v14854_v10  ;;  %v3828_v48 = vor.u32 %v14599_v30, %v3824_v62 }
 0x391   :  { %v12581_v14 = vadd.f32 %v4101_v12, %v3524_v34  ;;  %v8677_v46 = vpop.f32.mrf.mxu0  ;;  %v3831_v12 = vrot.slane %v14598_v20, 1 }
 0x392   :  { %v8840_v28 = vpop.f32.mrf.mxu1 }
 0x393   :  { %v3243_v58 = vpop.f32.mrf.mxu0  ;;  %v12606_v62 = vsel %vm3598_vm6, %v3828_v48, %v3831_v12 }
 0x394   :  { %v4106_v60 = vpop.f32.mrf.mxu1  ;;  %8938 = vmatmul.mubr.msk.bf16.gmra.mxu1 %vm410_vm4, %v12578_v17  ;;  %v3526_v19 = vadd.f32 %v3243_v58, %v11704_v54  ;;  %v14601_v54 = vshrl.u32 %v15005_v26, 16  ;;  %15009 = vst [vmem:[#allocation117_spill] sm:$0xff] %v12606_v62 }
 0x395   :  { %v12590_v1 = vadd.f32 %v4106_v60, %v3525_v44  ;;  %8941 = vmatprep.mubr.msk.bf16.mxu1 %vm9764_vm1, %v14854_v10  ;;  %v8678_v34 = vpop.f32.mrf.mxu0  ;;  %v15007_v60 = vld [vmem:[#allocation44_spill] sm:$0xff] }
 0x396   :  { %v8843_v24 = vpop.f32.mrf.mxu1  ;;  %v3835_v44 = vor.u32 %v14601_v54, %v3831_v12 }
 0x397   :  { %15006 = vst [vmem:[#allocation41_spill] sm:$0xff] %v12590_v1  ;;  %v3248_v46 = vpop.f32.mrf.mxu0  ;;  %8776 = vmatmul.mubr.msk.bf16.gmra.mxu0 %vm410_vm4, %v15000_v33 }
 0x398   :  { %v4109_v28 = vpop.f32.mrf.mxu1  ;;  %v3527_v58 = vadd.f32 %v3248_v46, %v11711_v40  ;;  %8779 = vmatprep.mubr.msk.bf16.mxu0 %vm9764_vm1, %v14854_v10  ;;  %v15010_v40 = vshll.u32 %v15007_v60, 16 }
 0x399   :  { %v12603_v1 = vadd.f32 %v4109_v28, %v3526_v19  ;;  %v8681_v34 = vpop.f32.mrf.mxu0 }
 0x39a   :  { %v8844_v24 = vpop.f32.mrf.mxu1  ;;  %v3838_v19 = vrot.slane %v15010_v40, 1 }
 0x39b   :  { %15008 = vst [vmem:[#allocation44_spill] sm:$0xff] %v12603_v1  ;;  %v3251_v20 = vpop.f32.mrf.mxu0 }
 0x39c   :  { %v4114_v30 = vpop.f32.mrf.mxu1  ;;  %8942 = vmatmul.mubr.msk.bf16.gmra.mxu1 %vm410_vm4, %v12606_v62  ;;  %v3528_v46 = vadd.f32 %v3251_v20, %v11718_v0  ;;  %v12624_v62 = vsel %vm3598_vm6, %v3835_v44, %v3838_v19  ;;  %v14603_v0 = vshrl.u32 %v15007_v60, 16 }
 0x39d   :  { %v12617_v48 = vadd.f32 %v4114_v30, %v3527_v58  ;;  %8945 = vmatprep.mubr.msk.bf16.mxu1 %vm9764_vm1, %v14854_v10  ;;  %v8682_v28 = vpop.f32.mrf.mxu0  ;;  %15012 = vst [vmem:[#allocation119_spill] sm:$0xff] %v12624_v62  ;;  %v15014_v30 = vld [vmem:[#allocation45_spill] sm:$0xff] }
 0x39e   :  { %v8847_v34 = vpop.f32.mrf.mxu1  ;;  %v14602_v20 = vshll.u32 %v15014_v30, 16 }
 0x39f   :  { %15011 = vst [vmem:[#allocation118_spill] sm:$0xff] %v12617_v48  ;;  %v3256_v24 = vpop.f32.mrf.mxu0  ;;  %8780 = vmatmul.mubr.msk.bf16.gmra.mxu0 %vm410_vm4, %v15005_v26 }
 0x3a0   :  { %v4117_v1 = vpop.f32.mrf.mxu1  ;;  %v3529_v12 = vadd.f32 %v3256_v24, %v11728_v55  ;;  %8783 = vmatprep.mubr.msk.bf16.mxu0 %vm9764_vm1, %v14854_v10  ;;  %v3842_v55 = vor.u32 %v14603_v0, %v3838_v19 }
 0x3a1   :  { %v12627_v40 = vadd.f32 %v4117_v1, %v3528_v46  ;;  %v8685_v58 = vpop.f32.mrf.mxu0  ;;  %v3845_v1 = vrot.slane %v14602_v20, 1 }
 0x3a2   :  { %v8848_v28 = vpop.f32.mrf.mxu1 }
 0x3a3   :  { %15013 = vst [vmem:[#allocation120_spill] sm:$0xff] %v12627_v40  ;;  %v3259_v34 = vpop.f32.mrf.mxu0  ;;  %v12652_v19 = vsel %vm3598_vm6, %v3842_v55, %v3845_v1 }
 0x3a4   :  { %v4122_v54 = vpop.f32.mrf.mxu1  ;;  %8946 = vmatmul.mubr.msk.bf16.gmra.mxu1 %vm410_vm4, %v12624_v62  ;;  %v3530_v44 = vadd.f32 %v3259_v34, %v11738_v4  ;;  %v14606_v4 = vshrl.u32 %v15014_v30, 16  ;;  %v15017_v34 = vld [vmem:[#allocation54_spill] sm:$0xff] }
 0x3a5   :  { %v12636_v48 = vadd.f32 %v4122_v54, %v3529_v12  ;;  %8949 = vmatprep.mubr.msk.bf16.mxu1 %vm9764_vm1, %v14854_v10  ;;  %v8686_v46 = vpop.f32.mrf.mxu0  ;;  %v15016_v54 = vld [vmem:[#allocation48_spill] sm:$0xff]  ;;  %15019 = vst [vmem:[#allocation54_spill] sm:$0xff] %v12652_v19 }
 0x3a6   :  { %v8851_v24 = vpop.f32.mrf.mxu1  ;;  %v3849_v12 = vor.u32 %v14606_v4, %v3845_v1 }
 0x3a7   :  { %15015 = vst [vmem:[#allocation45_spill] sm:$0xff] %v12636_v48  ;;  %v3264_v58 = vpop.f32.mrf.mxu0  ;;  %8784 = vmatmul.mubr.msk.bf16.gmra.mxu0 %vm410_vm4, %v15007_v60 }
 0x3a8   :  { %v4125_v28 = vpop.f32.mrf.mxu1  ;;  %v3531_v48 = vadd.f32 %v3264_v58, %v15017_v34  ;;  %8787 = vmatprep.mubr.msk.bf16.mxu0 %vm9764_vm1, %v14854_v10  ;;  %v15020_v58 = vshll.u32 %v15016_v54, 16 }
 0x3a9   :  { %v12649_v40 = vadd.f32 %v4125_v28, %v3530_v44  ;;  %v8689_v46 = vpop.f32.mrf.mxu0  ;;  %v15021_v28 = vld [vmem:[#allocation55_spill] sm:$0xff] }
 0x3aa   :  { %v8852_v24 = vpop.f32.mrf.mxu1  ;;  %v3852_v44 = vrot.slane %v15020_v58, 1 }
 0x3ab   :  { %15018 = vst [vmem:[#allocation48_spill] sm:$0xff] %v12649_v40  ;;  %v3267_v20 = vpop.f32.mrf.mxu0 }
 0x3ac   :  { %v4130_v0 = vpop.f32.mrf.mxu1  ;;  %8950 = vmatmul.mubr.msk.bf16.gmra.mxu1 %vm410_vm4, %v12652_v19  ;;  %v3532_v34 = vadd.f32 %v3267_v20, %v15021_v28  ;;  %v12670_v62 = vsel %vm3598_vm6, %v3849_v12, %v3852_v44 }
 0x3ad   :  { %v12663_v55 = vadd.f32 %v4130_v0, %v3531_v48  ;;  %8953 = vmatprep.mubr.msk.bf16.mxu1 %vm9764_vm1, %v14854_v10  ;;  %v8690_v46 = vpop.f32.mrf.mxu0  ;;  %15023 = vst [vmem:[#allocation121_spill] sm:$0xff] %v12670_v62  ;;  %v14608_v48 = vshrl.u32 %v15016_v54, 16  ;;  %v15025_v0 = vld [vmem:[#allocation49_spill] sm:$0xff] }
 0x3ae   :  { %v8855_v24 = vpop.f32.mrf.mxu1  ;;  %v14607_v20 = vshll.u32 %v15025_v0, 16 }
 0x3af   :  { %15022 = vst [vmem:[#allocation55_spill] sm:$0xff] %v12663_v55  ;;  %v3272_v40 = vpop.f32.mrf.mxu0  ;;  %8788 = vmatmul.mubr.msk.bf16.gmra.mxu0 %vm410_vm4, %v15014_v30 }
 0x3b0   :  { %v4133_v19 = vpop.f32.mrf.mxu1  ;;  %v3533_v1 = vadd.f32 %v3272_v40, %v11762_v39  ;;  %8791 = vmatprep.mubr.msk.bf16.mxu0 %vm9764_vm1, %v14854_v10  ;;  %v3856_v39 = vor.u32 %v14608_v48, %v3852_v44  ;;  %v3859_v40 = vrot.slane %v14607_v20, 1 }
 0x3b1   :  { %v12673_v58 = vadd.f32 %v4133_v19, %v3532_v34  ;;  %v8693_v28 = vpop.f32.mrf.mxu0 }
 0x3b2   :  { %v8856_v46 = vpop.f32.mrf.mxu1  ;;  %v12698_v44 = vsel %vm3598_vm6, %v3856_v39, %v3859_v40  ;;  %v9735_v39 = vld [vmem:[%s14369_s0 + $0x148] sm:$0xf] }
 0x3b3   :  { %15024 = vst [vmem:[#allocation122_spill] sm:$0xff] %v12673_v58  ;;  %v3275_v24 = vpop.f32.mrf.mxu0 }
 0x3b4   :  { %v4138_v4 = vpop.f32.mrf.mxu1  ;;  %8954 = vmatmul.mubr.msk.bf16.gmra.mxu1 %vm410_vm4, %v12670_v62  ;;  %v3534_v12 = vadd.f32 %v3275_v24, %v11772_v53  ;;  %v14609_v53 = vshrl.u32 %v15025_v0, 16  ;;  %v15028_v24 = vld [vmem:[#allocation56_spill] sm:$0xff] }
 0x3b5   :  { %v12682_v55 = vadd.f32 %v4138_v4, %v3533_v1  ;;  %8957 = vmatprep.mubr.msk.bf16.mxu1 %vm9764_vm1, %v14854_v10  ;;  %v8694_v19 = vpop.f32.mrf.mxu0  ;;  %v15027_v4 = vld [vmem:[#allocation52_spill] sm:$0xff]  ;;  %15030 = vst [vmem:[#allocation56_spill] sm:$0xff] %v12698_v44 }
 0x3b6   :  { %v8859_v34 = vpop.f32.mrf.mxu1  ;;  %v3863_v1 = vor.u32 %v14609_v53, %v3859_v40 }
 0x3b7   :  { %15026 = vst [vmem:[#allocation49_spill] sm:$0xff] %v12682_v55  ;;  %v3280_v28 = vpop.f32.mrf.mxu0  ;;  %8792 = vmatmul.mubr.msk.bf16.gmra.mxu0 %vm410_vm4, %v15016_v54 }
 0x3b8   :  { %v4141_v46 = vpop.f32.mrf.mxu1  ;;  %v3535_v55 = vadd.f32 %v3280_v28, %v15028_v24  ;;  %8795 = vmatprep.mubr.msk.bf16.mxu0 %vm9764_vm1, %v14854_v10  ;;  %v15031_v28 = vshll.u32 %v15027_v4, 16 }
 0x3b9   :  { %v12695_v58 = vadd.f32 %v4141_v46, %v3534_v12  ;;  %v8697_v19 = vpop.f32.mrf.mxu0  ;;  %v9736_v46 = vld [vmem:[%s14369_s0 + $0x14c] sm:$0xf] }
 0x3ba   :  { %v8860_v34 = vpop.f32.mrf.mxu1  ;;  %v3866_v12 = vrot.slane %v15031_v28, 1  ;;  %v12714_v24 = vcombine.low %v9735_v39, %v9736_v46  ;;  %v15033_v19 = vld [vmem:[#allocation57_spill] sm:$0xff] }
 0x3bb   :  { %15029 = vst [vmem:[#allocation52_spill] sm:$0xff] %v12695_v58  ;;  %v3283_v20 = vpop.f32.mrf.mxu0 }
 0x3bc   :  { %v4146_v48 = vpop.f32.mrf.mxu1  ;;  %8958 = vmatmul.mubr.msk.bf16.gmra.mxu1 %vm410_vm4, %v12698_v44  ;;  %15032 = vst [vmem:[#allocation123_spill] sm:$0xff] %v12714_v24  ;;  %v3536_v34 = vadd.f32 %v3283_v20, %v15033_v19  ;;  %v12724_v62 = vsel %vm3598_vm6, %v3863_v1, %v3866_v12 }
 0x3bd   :  { %v12717_v58 = vadd.f32 %v4146_v48, %v3535_v55  ;;  %8961 = vmatprep.mubr.msk.bf16.mxu1 %vm9764_vm1, %v14854_v10  ;;  %v8698_v40 = vpop.f32.mrf.mxu0  ;;  %v14613_v55 = vshrl.u32 %v15027_v4, 16  ;;  %v14612_v48 = vshll.u32 %v12714_v24, 16 }
 0x3be   :  { %v8863_v53 = vpop.f32.mrf.mxu1 }
 0x3bf   :  { %15034 = vst [vmem:[#allocation57_spill] sm:$0xff] %v12717_v58  ;;  %v3288_v28 = vpop.f32.mrf.mxu0  ;;  %8796 = vmatmul.mubr.msk.bf16.gmra.mxu0 %vm410_vm4, %v15025_v0 }
 0x3c0   :  { %v4149_v44 = vpop.f32.mrf.mxu1  ;;  %v3537_v39 = vadd.f32 %v3288_v28, %v11800_v59  ;;  %8799 = vmatprep.mubr.msk.bf16.mxu0 %vm9764_vm1, %v14854_v10  ;;  %v3870_v59 = vor.u32 %v14613_v55, %v3866_v12 }
 0x3c1   :  { %v12727_v46 = vadd.f32 %v4149_v44, %v3536_v34  ;;  %v8701_v20 = vpop.f32.mrf.mxu0  ;;  %v3873_v44 = vrot.slane %v14612_v48, 1  ;;  %v112_v48 = vld [vmem:[%s14369_s0 + $0x158] sm:$0xf] }
 0x3c2   :  { %v8864_v53 = vpop.f32.mrf.mxu1 }
 0x3c3   :  { %15035 = vst [vmem:[#allocation124_spill] sm:$0xff] %v12727_v46  ;;  %v3291_v19 = vpop.f32.mrf.mxu0  ;;  %v12752_v12 = vsel %vm3598_vm6, %v3870_v59, %v3873_v44 }
 0x3c4   :  { %v4154_v40 = vpop.f32.mrf.mxu1  ;;  %8962 = vmatmul.mubr.msk.bf16.gmra.mxu1 %vm410_vm4, %v12724_v62  ;;  %v3538_v1 = vadd.f32 %v3291_v19, %v11808_v43  ;;  %15039 = vst [vmem:[#allocation126_spill] sm:$0xff] %v12752_v12 }
 0x3c5   :  { %v12736_v58 = vadd.f32 %v4154_v40, %v3537_v39  ;;  %8965 = vmatprep.mubr.msk.bf16.mxu1 %vm9764_vm1, %v14854_v10  ;;  %v8702_v34 = vpop.f32.mrf.mxu0  ;;  %v15037_v39 = vld [vmem:[#allocation95_spill] sm:$0xff] }
 0x3c6   :  { %v8867_v28 = vpop.f32.mrf.mxu1  ;;  %v14615_v19 = vshll.u32 %v15037_v39, 16 }
 0x3c7   :  { %15036 = vst [vmem:[#allocation125_spill] sm:$0xff] %v12736_v58  ;;  %v3296_v20 = vpop.f32.mrf.mxu0  ;;  %8800 = vmatmul.mubr.msk.bf16.gmra.mxu0 %vm410_vm4, %v15027_v4 }
 0x3c8   :  { %v4157_v53 = vpop.f32.mrf.mxu1  ;;  %v3539_v40 = vadd.f32 %v3296_v20, %v11815_v25  ;;  %8803 = vmatprep.mubr.msk.bf16.mxu0 %vm9764_vm1, %v14854_v10  ;;  %v15040_v25 = vshrl.u32 %v12714_v24, 16  ;;  %v3880_v59 = vrot.slane %v14615_v19, 1 }
 0x3c9   :  { %v12749_v58 = vadd.f32 %v4157_v53, %v3538_v1  ;;  %v8705_v34 = vpop.f32.mrf.mxu0 }
 0x3ca   :  { %v8868_v28 = vpop.f32.mrf.mxu1  ;;  %v3877_v1 = vor.u32 %v15040_v25, %v3873_v44  ;;  %v7348_v34 = vcombine.low %v112_v48, %v112_v48 }
 0x3cb   :  { %15038 = vst [vmem:[#allocation95_spill] sm:$0xff] %v12749_v58  ;;  %v3299_v55 = vpop.f32.mrf.mxu0 }
 0x3cc   :  { %v4162_v43 = vpop.f32.mrf.mxu1  ;;  %8966 = vmatmul.mubr.msk.bf16.gmra.mxu1 %vm410_vm4, %v12752_v12  ;;  %v3540_v20 = vadd.f32 %v3299_v55, %v11825_v27  ;;  %v12773_v44 = vsel %vm3598_vm6, %v3877_v1, %v3880_v59  ;;  %v14616_v27 = vshrl.u32 %v15037_v39, 16  ;;  %v3886_v55 = vshll.u32 %v7348_v34, 16 }
 0x3cd   :  { %v12766_v53 = vadd.f32 %v4162_v43, %v3539_v40  ;;  %8969 = vmatprep.mubr.msk.bf16.mxu1 %vm9764_vm1, %v14854_v10  ;;  %v8706_v28 = vpop.f32.mrf.mxu0 }
 0x3ce   :  { %v8871_v58 = vpop.f32.mrf.mxu1 }
 0x3cf   :  { %v3304_v46 = vpop.f32.mrf.mxu0  ;;  %8804 = vmatmul.mubr.msk.bf16.gmra.mxu0 %vm410_vm4, %v12714_v24 }
 0x3d0   :  { %v4165_v12 = vpop.f32.mrf.mxu1  ;;  %v3541_v25 = vadd.f32 %v3304_v46, %v11832_v36  ;;  %8807 = vmatprep.mubr.msk.bf16.mxu0 %vm9764_vm1, %v14854_v10  ;;  %v12790_v36 = vor.u32 %v14616_v27, %v3880_v59  ;;  %v3888_v46 = vrot.slane %v3886_v55, 1  ;;  %v7476_v55 = vld [vmem:[%s14370_s1 + $0x20] sm:$0xf] }
 0x3d1   :  { %v12776_v19 = vadd.f32 %v4165_v12, %v3540_v20  ;;  %v8709_v48 = vpop.f32.mrf.mxu0 }
 0x3d2   :  { %v8872_v58 = vpop.f32.mrf.mxu1 }
 0x3d3   :  { %v3307_v43 = vpop.f32.mrf.mxu0 }
 0x3d4   :  { %v4170_v40 = vpop.f32.mrf.mxu1  ;;  %8970 = vmatmul.mubr.msk.bf16.gmra.mxu1 %vm410_vm4, %v12773_v44  ;;  %v3542_v1 = vadd.f32 %v3307_v43, %v11842_v49 }
 0x3d5   :  { %v12784_v28 = vadd.f32 %v4170_v40, %v3541_v25  ;;  %8973 = vmatprep.mubr.msk.bf16.mxu1 %vm9764_vm1, %v14854_v10  ;;  %v8710_v12 = vpop.f32.mrf.mxu0  ;;  %v3889_v25 = vsel %vm3598_vm6, %v12790_v36, %v3888_v46  ;;  %v4935_v46 = vrot.slane %v14845_v5, 1 }
 0x3d6   :  { %v8875_v20 = vpop.f32.mrf.mxu1 }
 0x3d7   :  { %v3312_v34 = vpop.f32.mrf.mxu0  ;;  %8808 = vmatmul.mubr.msk.bf16.gmra.mxu0 %vm410_vm4, %v15037_v39  ;;  %v4936_v20 = vrot.slane %v14846_v16, 1 }
 0x3d8   :  { %v4173_v48 = vpop.f32.mrf.mxu1  ;;  %v3543_v58 = vadd.f32 %v3312_v34, %v11852_v3  ;;  %8979 = vmatprep.mubr.msk.bf16.mxu0 %vm9764_vm1, %v14854_v10 }
 0x3d9   :  { %v12795_v49 = vadd.f32 %v4173_v48, %v3542_v1  ;;  %v8713_v59 = vpop.f32.mrf.mxu0 }
 0x3da   :  { %v8876_v43 = vpop.f32.mrf.mxu1  ;;  %v5883_v59 = vsel %vm534_vm0, %v7476_v55, 0 }
 0x3db   :  { %15041 = vst [vmem:[#allocation127_spill] sm:$0xff] %v12795_v49  ;;  %v3315_v40 = vpop.f32.mrf.mxu0 }
 0x3dc   :  { %v4178_v12 = vpop.f32.mrf.mxu1  ;;  %8974 = vmatmul.mubr.msk.bf16.gmra.mxu1 %vm410_vm4, %v3889_v25  ;;  %v3544_v3 = vadd.f32 %v3315_v40, %v11867_v45  ;;  %v6499_v25 = vld [vmem:[%s14372_s3] sm:$0xf] }
 0x3dd   :  { %v12806_v1 = vadd.f32 %v4178_v12, %v3543_v58  ;;  %9145 = vmatprep.mubr.msk.bf16.mxu1 %vm9764_vm1, %v14854_v10  ;;  %v8714_v34 = vpop.f32.mrf.mxu0  ;;  %v4937_v12 = vsel %vm4934_vm7, %v4935_v46, %v4936_v20 }
 0x3de   :  { %v8879_v48 = vpop.f32.mrf.mxu1 }
 0x3df   :  { %15042 = vst [vmem:[#allocation128_spill] sm:$0xff] %v12806_v1  ;;  %v3320_v43 = vpop.f32.mrf.mxu0  ;;  %8980 = vmatmul.mubr.msk.bf16.vlgmr.msra.gmra.mxu0 %vm410_vm4, %v11888_v63  ;;  %v6508_v48 = vsel %vm534_vm0, %v6499_v25, 0  ;;  %v15046_v25 = vld [vmem:[#allocation58_spill] sm:$0xff] }
 0x3e0   :  { %v4181_v45 = vpop.f32.mrf.mxu1  ;;  %v3545_v58 = vadd.f32 %v3320_v43, %v11880_v23  ;;  %9310 = vmatpush3.bf16.msra.mxu0 %v5883_v59  ;;  %8983 = vmatprep.mubr.msk.bf16.mxu0 %vm9764_vm1, %v14854_v10  ;;  %v15044_v23 = vld [vmem:[#allocation8_spill] sm:$0xff] }
 0x3e1   :  { %v12819_v40 = vadd.f32 %v4181_v45, %v3544_v3  ;;  %v8717_v55 = vpop.f32.mrf.mxu0  ;;  %v4938_v3 = vrot.slane %v15044_v23, 1 }
 0x3e2   :  { %v8880_v34 = vpop.f32.mrf.mxu1  ;;  %v15045_v55 = vld [vmem:[#allocation60_spill] sm:$0xff] }
 0x3e3   :  { %v3323_v27 = vpop.f32.mrf.mxu0 }
 0x3e4   :  { %v4186_v1 = vpop.f32.mrf.mxu1  ;;  %9146 = vmatmul.mubr.msk.bf16.vlgmr.msra.gmra.mxu1 %vm410_vm4, %v4937_v12  ;;  %v3546_v63 = vadd.f32 %v3323_v27, %v11891_v9  ;;  %v4939_v9 = vsel %vm4934_vm7, %v4936_v20, %v4938_v3 }
 0x3e5   :  { %v12827_v49 = vadd.f32 %v4186_v1, %v3545_v58  ;;  %9476 = vmatpush3.bf16.msra.mxu1 %v6508_v48  ;;  %9149 = vmatprep.mubr.msk.bf16.mxu1 %vm9764_vm1, %v14854_v10  ;;  %v8718_v46 = vpop.f32.mrf.mxu0 }
 0x3e6   :  { %v8883_v59 = vpop.f32.mrf.mxu1  ;;  %v15047_v46 = vld [vmem:[#allocation59_spill] sm:$0xff] }
 0x3e7   :  { %15043 = vst [vmem:[#allocation129_spill] sm:$0xff] %v12827_v49  ;;  %v3328_v43 = vpop.f32.mrf.mxu0  ;;  %8984 = vmatmul.mubr.msk.bf16.gmra.mxu0 %vm410_vm4, %v15045_v55 }
 0x3e8   :  { %v4189_v45 = vpop.f32.mrf.mxu1  ;;  %v3547_v34 = vadd.f32 %v3328_v43, %v15046_v25  ;;  %8987 = vmatprep.mubr.msk.bf16.mxu0 %vm9764_vm1, %v14854_v10  ;;  %v15049_v25 = vld [vmem:[#allocation61_spill] sm:$0xff] }
 0x3e9   :  { %v12835_v12 = vadd.f32 %v4189_v45, %v3546_v63  ;;  %v8721_v27 = vpop.f32.mrf.mxu0  ;;  %v4940_v63 = vrot.slane %v14851_v32, 1 }
 0x3ea   :  { %v8884_v1 = vpop.f32.mrf.mxu1 }
 0x3eb   :  { %v3331_v58 = vpop.f32.mrf.mxu0 }
 0x3ec   :  { %v4194_v48 = vpop.f32.mrf.mxu1  ;;  %9150 = vmatmul.mubr.msk.bf16.gmra.mxu1 %vm410_vm4, %v4939_v9  ;;  %v3548_v59 = vadd.f32 %v3331_v58, %v15047_v46  ;;  %v4941_v9 = vsel %vm4934_vm7, %v4938_v3, %v4940_v63 }
 0x3ed   :  { %v12842_v49 = vadd.f32 %v4194_v48, %v3547_v34  ;;  %9153 = vmatprep.mubr.msk.bf16.mxu1 %vm9764_vm1, %v14854_v10  ;;  %v8722_v43 = vpop.f32.mrf.mxu0 }
 0x3ee   :  { %v8887_v20 = vpop.f32.mrf.mxu1  ;;  %v15051_v43 = vld [vmem:[#allocation62_spill] sm:$0xff] }
 0x3ef   :  { %15048 = vst [vmem:[#allocation8_spill] sm:$0xff] %v12842_v49  ;;  %v3336_v45 = vpop.f32.mrf.mxu0  ;;  %8988 = vmatmul.mubr.msk.bf16.gmra.mxu0 %vm410_vm4, %v11934_v21  ;;  %v15053_v21 = vld [vmem:[#allocation10_spill] sm:$0xff] }
 0x3f0   :  { %v4197_v55 = vpop.f32.mrf.mxu1  ;;  %v3549_v27 = vadd.f32 %v3336_v45, %v15049_v25  ;;  %8991 = vmatprep.mubr.msk.bf16.mxu0 %vm9764_vm1, %v14854_v10 }
 0x3f1   :  { %v12850_v1 = vadd.f32 %v4197_v55, %v3548_v59  ;;  %v8725_v34 = vpop.f32.mrf.mxu0  ;;  %v4942_v59 = vrot.slane %v15053_v21, 1 }
 0x3f2   :  { %v8888_v58 = vpop.f32.mrf.mxu1  ;;  %v15055_v34 = vld [vmem:[#allocation63_spill] sm:$0xff] }
 0x3f3   :  { %15050 = vst [vmem:[#allocation60_spill] sm:$0xff] %v12850_v1  ;;  %v3339_v48 = vpop.f32.mrf.mxu0  ;;  %v15054_v1 = vld [vmem:[#allocation65_spill] sm:$0xff] }
 0x3f4   :  { %v4202_v46 = vpop.f32.mrf.mxu1  ;;  %9154 = vmatmul.mubr.msk.bf16.gmra.mxu1 %vm410_vm4, %v4941_v9  ;;  %v3550_v20 = vadd.f32 %v3339_v48, %v15051_v43  ;;  %v4943_v9 = vsel %vm4934_vm7, %v4940_v63, %v4942_v59 }
 0x3f5   :  { %v12857_v49 = vadd.f32 %v4202_v46, %v3549_v27  ;;  %9157 = vmatprep.mubr.msk.bf16.mxu1 %vm9764_vm1, %v14854_v10  ;;  %v8726_v45 = vpop.f32.mrf.mxu0 }
 0x3f6   :  { %v8891_v3 = vpop.f32.mrf.mxu1  ;;  %v15056_v45 = vld [vmem:[#allocation64_spill] sm:$0xff] }
 0x3f7   :  { %15052 = vst [vmem:[#allocation58_spill] sm:$0xff] %v12857_v49  ;;  %v3344_v55 = vpop.f32.mrf.mxu0  ;;  %8992 = vmatmul.mubr.msk.bf16.gmra.mxu0 %vm410_vm4, %v15054_v1  ;;  %v4944_v1 = vrot.slane %v14862_v18, 1 }
 0x3f8   :  { %v4205_v25 = vpop.f32.mrf.mxu1  ;;  %v3551_v58 = vadd.f32 %v3344_v55, %v15055_v34  ;;  %8995 = vmatprep.mubr.msk.bf16.mxu0 %vm9764_vm1, %v14854_v10  ;;  %v15058_v34 = vld [vmem:[#allocation66_spill] sm:$0xff] }
 0x3f9   :  { %v12865_v32 = vadd.f32 %v4205_v25, %v3550_v20  ;;  %v8729_v27 = vpop.f32.mrf.mxu0 }
 0x3fa   :  { %v8892_v48 = vpop.f32.mrf.mxu1 }
 0x3fb   :  { %v3347_v46 = vpop.f32.mrf.mxu0 }
 0x3fc   :  { %v4210_v43 = vpop.f32.mrf.mxu1  ;;  %9158 = vmatmul.mubr.msk.bf16.gmra.mxu1 %vm410_vm4, %v4943_v9  ;;  %v3552_v3 = vadd.f32 %v3347_v46, %v15056_v45  ;;  %v4945_v9 = vsel %vm4934_vm7, %v4942_v59, %v4944_v1 }
 0x3fd   :  { %v12872_v49 = vadd.f32 %v4210_v43, %v3551_v58  ;;  %9161 = vmatprep.mubr.msk.bf16.mxu1 %vm9764_vm1, %v14854_v10  ;;  %v8730_v20 = vpop.f32.mrf.mxu0 }
 0x3fe   :  { %v8895_v63 = vpop.f32.mrf.mxu1  ;;  %v15060_v20 = vld [vmem:[#allocation67_spill] sm:$0xff] }
 0x3ff   :  { %15057 = vst [vmem:[#allocation59_spill] sm:$0xff] %v12872_v49  ;;  %v3352_v55 = vpop.f32.mrf.mxu0  ;;  %8996 = vmatmul.mubr.msk.bf16.gmra.mxu0 %vm410_vm4, %v11980_v11  ;;  %v15062_v11 = vld [vmem:[#allocation12_spill] sm:$0xff] }
 0x400   :  { %v4213_v25 = vpop.f32.mrf.mxu1  ;;  %v3553_v27 = vadd.f32 %v3352_v55, %v15058_v34  ;;  %8999 = vmatprep.mubr.msk.bf16.mxu0 %vm9764_vm1, %v14854_v10 }
 0x401   :  { %v12880_v48 = vadd.f32 %v4213_v25, %v3552_v3  ;;  %v8733_v58 = vpop.f32.mrf.mxu0  ;;  %v4946_v3 = vrot.slane %v15062_v11, 1 }
 0x402   :  { %v8896_v46 = vpop.f32.mrf.mxu1  ;;  %v15064_v58 = vld [vmem:[#allocation68_spill] sm:$0xff] }
 0x403   :  { %15059 = vst [vmem:[#allocation61_spill] sm:$0xff] %v12880_v48  ;;  %v3355_v43 = vpop.f32.mrf.mxu0  ;;  %v15063_v48 = vld [vmem:[#allocation70_spill] sm:$0xff] }
 0x404   :  { %v4218_v45 = vpop.f32.mrf.mxu1  ;;  %9162 = vmatmul.mubr.msk.bf16.gmra.mxu1 %vm410_vm4, %v4945_v9  ;;  %v3554_v63 = vadd.f32 %v3355_v43, %v15060_v20  ;;  %v4947_v9 = vsel %vm4934_vm7, %v4944_v1, %v4946_v3 }
 0x405   :  { %v12887_v49 = vadd.f32 %v4218_v45, %v3553_v27  ;;  %9165 = vmatprep.mubr.msk.bf16.mxu1 %vm9764_vm1, %v14854_v10  ;;  %v8734_v55 = vpop.f32.mrf.mxu0 }
 0x406   :  { %v8899_v59 = vpop.f32.mrf.mxu1  ;;  %v15065_v55 = vld [vmem:[#allocation69_spill] sm:$0xff] }
 0x407   :  { %15061 = vst [vmem:[#allocation62_spill] sm:$0xff] %v12887_v49  ;;  %v3360_v25 = vpop.f32.mrf.mxu0  ;;  %9000 = vmatmul.mubr.msk.bf16.gmra.mxu0 %vm410_vm4, %v15063_v48  ;;  %v4948_v48 = vrot.slane %v14872_v52, 1 }
 0x408   :  { %v4221_v34 = vpop.f32.mrf.mxu1  ;;  %v3555_v46 = vadd.f32 %v3360_v25, %v15064_v58  ;;  %9003 = vmatprep.mubr.msk.bf16.mxu0 %vm9764_vm1, %v14854_v10  ;;  %v15067_v58 = vld [vmem:[#allocation6_spill] sm:$0xff] }
 0x409   :  { %v12895_v18 = vadd.f32 %v4221_v34, %v3554_v63  ;;  %v8737_v27 = vpop.f32.mrf.mxu0 }
 0x40a   :  { %v8900_v43 = vpop.f32.mrf.mxu1 }
 0x40b   :  { %v3363_v45 = vpop.f32.mrf.mxu0 }
 0x40c   :  { %v4226_v20 = vpop.f32.mrf.mxu1  ;;  %9166 = vmatmul.mubr.msk.bf16.gmra.mxu1 %vm410_vm4, %v4947_v9  ;;  %v3556_v59 = vadd.f32 %v3363_v45, %v15065_v55  ;;  %v4949_v9 = vsel %vm4934_vm7, %v4946_v3, %v4948_v48 }
 0x40d   :  { %v12902_v49 = vadd.f32 %v4226_v20, %v3555_v46  ;;  %9169 = vmatprep.mubr.msk.bf16.mxu1 %vm9764_vm1, %v14854_v10  ;;  %v8738_v63 = vpop.f32.mrf.mxu0 }
 0x40e   :  { %v8903_v1 = vpop.f32.mrf.mxu1  ;;  %v15069_v63 = vld [vmem:[#allocation7_spill] sm:$0xff] }
 0x40f   :  { %15066 = vst [vmem:[#allocation10_spill] sm:$0xff] %v12902_v49  ;;  %v3368_v25 = vpop.f32.mrf.mxu0  ;;  %9004 = vmatmul.mubr.msk.bf16.gmra.mxu0 %vm410_vm4, %v12026_v47  ;;  %v15071_v47 = vld [vmem:[#allocation14_spill] sm:$0xff] }
 0x410   :  { %v4229_v34 = vpop.f32.mrf.mxu1  ;;  %v3557_v27 = vadd.f32 %v3368_v25, %v15067_v58  ;;  %9007 = vmatprep.mubr.msk.bf16.mxu0 %vm9764_vm1, %v14854_v10 }
 0x411   :  { %v12910_v43 = vadd.f32 %v4229_v34, %v3556_v59  ;;  %v8741_v46 = vpop.f32.mrf.mxu0  ;;  %v4950_v59 = vrot.slane %v15071_v47, 1 }
 0x412   :  { %v8904_v45 = vpop.f32.mrf.mxu1  ;;  %v15073_v46 = vld [vmem:[#allocation71_spill] sm:$0xff] }
 0x413   :  { %15068 = vst [vmem:[#allocation65_spill] sm:$0xff] %v12910_v43  ;;  %v3371_v20 = vpop.f32.mrf.mxu0  ;;  %v15072_v43 = vld [vmem:[#allocation73_spill] sm:$0xff] }
 0x414   :  { %v4234_v55 = vpop.f32.mrf.mxu1  ;;  %9170 = vmatmul.mubr.msk.bf16.gmra.mxu1 %vm410_vm4, %v4949_v9  ;;  %v3558_v1 = vadd.f32 %v3371_v20, %v15069_v63  ;;  %v4951_v9 = vsel %vm4934_vm7, %v4948_v48, %v4950_v59 }
 0x415   :  { %v12917_v49 = vadd.f32 %v4234_v55, %v3557_v27  ;;  %9173 = vmatprep.mubr.msk.bf16.mxu1 %vm9764_vm1, %v14854_v10  ;;  %v8742_v25 = vpop.f32.mrf.mxu0 }
 0x416   :  { %v8907_v3 = vpop.f32.mrf.mxu1  ;;  %v15074_v25 = vld [vmem:[#allocation72_spill] sm:$0xff] }
 0x417   :  { %15070 = vst [vmem:[#allocation63_spill] sm:$0xff] %v12917_v49  ;;  %v3376_v34 = vpop.f32.mrf.mxu0  ;;  %9008 = vmatmul.mubr.msk.bf16.gmra.mxu0 %vm410_vm4, %v15072_v43  ;;  %v4952_v43 = vrot.slane %v14882_v56, 1 }
 0x418   :  { %v4237_v58 = vpop.f32.mrf.mxu1  ;;  %v3559_v45 = vadd.f32 %v3376_v34, %v15073_v46  ;;  %9011 = vmatprep.mubr.msk.bf16.mxu0 %vm9764_vm1, %v14854_v10  ;;  %v15076_v46 = vld [vmem:[#allocation74_spill] sm:$0xff] }
 0x419   :  { %v12925_v52 = vadd.f32 %v4237_v58, %v3558_v1  ;;  %v8745_v27 = vpop.f32.mrf.mxu0 }
 0x41a   :  { %v8908_v20 = vpop.f32.mrf.mxu1 }
 0x41b   :  { %v3379_v55 = vpop.f32.mrf.mxu0 }
 0x41c   :  { %v4242_v63 = vpop.f32.mrf.mxu1  ;;  %9174 = vmatmul.mubr.msk.bf16.gmra.mxu1 %vm410_vm4, %v4951_v9  ;;  %v3560_v3 = vadd.f32 %v3379_v55, %v15074_v25  ;;  %v4953_v9 = vsel %vm4934_vm7, %v4950_v59, %v4952_v43 }
 0x41d   :  { %v12932_v49 = vadd.f32 %v4242_v63, %v3559_v45  ;;  %9177 = vmatprep.mubr.msk.bf16.mxu1 %vm9764_vm1, %v14854_v10  ;;  %v8746_v1 = vpop.f32.mrf.mxu0 }
 0x41e   :  { %v8911_v48 = vpop.f32.mrf.mxu1  ;;  %v15078_v1 = vld [vmem:[#allocation75_spill] sm:$0xff] }
 0x41f   :  { %15075 = vst [vmem:[#allocation64_spill] sm:$0xff] %v12932_v49  ;;  %v3384_v34 = vpop.f32.mrf.mxu0  ;;  %9012 = vmatmul.mubr.msk.bf16.gmra.mxu0 %vm410_vm4, %v12072_v2  ;;  %v15080_v2 = vld [vmem:[#allocation16_spill] sm:$0xff] }
 0x420   :  { %v4245_v58 = vpop.f32.mrf.mxu1  ;;  %v3561_v27 = vadd.f32 %v3384_v34, %v15076_v46  ;;  %9015 = vmatprep.mubr.msk.bf16.mxu0 %vm9764_vm1, %v14854_v10 }
 0x421   :  { %v12940_v20 = vadd.f32 %v4245_v58, %v3560_v3  ;;  %v8749_v45 = vpop.f32.mrf.mxu0  ;;  %v4954_v3 = vrot.slane %v15080_v2, 1 }
 0x422   :  { %v8912_v55 = vpop.f32.mrf.mxu1  ;;  %v15082_v45 = vld [vmem:[#allocation76_spill] sm:$0xff] }
 0x423   :  { %15077 = vst [vmem:[#allocation66_spill] sm:$0xff] %v12940_v20  ;;  %v3387_v63 = vpop.f32.mrf.mxu0  ;;  %v15081_v20 = vld [vmem:[#allocation78_spill] sm:$0xff] }
 0x424   :  { %v4250_v25 = vpop.f32.mrf.mxu1  ;;  %9178 = vmatmul.mubr.msk.bf16.gmra.mxu1 %vm410_vm4, %v4953_v9  ;;  %v3562_v48 = vadd.f32 %v3387_v63, %v15078_v1  ;;  %v4955_v9 = vsel %vm4934_vm7, %v4952_v43, %v4954_v3 }
 0x425   :  { %v12947_v49 = vadd.f32 %v4250_v25, %v3561_v27  ;;  %9181 = vmatprep.mubr.msk.bf16.mxu1 %vm9764_vm1, %v14854_v10  ;;  %v8750_v34 = vpop.f32.mrf.mxu0 }
 0x426   :  { %v8915_v59 = vpop.f32.mrf.mxu1  ;;  %v15083_v34 = vld [vmem:[#allocation77_spill] sm:$0xff] }
 0x427   :  { %15079 = vst [vmem:[#allocation67_spill] sm:$0xff] %v12947_v49  ;;  %v3392_v58 = vpop.f32.mrf.mxu0  ;;  %9016 = vmatmul.mubr.msk.bf16.gmra.mxu0 %vm410_vm4, %v15081_v20  ;;  %v4956_v20 = vrot.slane %v14892_v6, 1 }
 0x428   :  { %v4253_v46 = vpop.f32.mrf.mxu1  ;;  %v3563_v55 = vadd.f32 %v3392_v58, %v15082_v45  ;;  %9019 = vmatprep.mubr.msk.bf16.mxu0 %vm9764_vm1, %v14854_v10  ;;  %v15085_v45 = vld [vmem:[#allocation79_spill] sm:$0xff] }
 0x429   :  { %v12955_v56 = vadd.f32 %v4253_v46, %v3562_v48  ;;  %v8753_v27 = vpop.f32.mrf.mxu0 }
 0x42a   :  { %v8916_v63 = vpop.f32.mrf.mxu1 }
 0x42b   :  { %v3395_v25 = vpop.f32.mrf.mxu0 }
 0x42c   :  { %v4258_v1 = vpop.f32.mrf.mxu1  ;;  %9182 = vmatmul.mubr.msk.bf16.gmra.mxu1 %vm410_vm4, %v4955_v9  ;;  %v3564_v59 = vadd.f32 %v3395_v25, %v15083_v34  ;;  %v4957_v9 = vsel %vm4934_vm7, %v4954_v3, %v4956_v20 }
 0x42d   :  { %v12962_v49 = vadd.f32 %v4258_v1, %v3563_v55  ;;  %9185 = vmatprep.mubr.msk.bf16.mxu1 %vm9764_vm1, %v14854_v10  ;;  %v8754_v48 = vpop.f32.mrf.mxu0 }
 0x42e   :  { %v8919_v43 = vpop.f32.mrf.mxu1  ;;  %v15087_v48 = vld [vmem:[#allocation80_spill] sm:$0xff] }
 0x42f   :  { %15084 = vst [vmem:[#allocation12_spill] sm:$0xff] %v12962_v49  ;;  %v3400_v58 = vpop.f32.mrf.mxu0  ;;  %9020 = vmatmul.mubr.msk.bf16.gmra.mxu0 %vm410_vm4, %v12118_v38  ;;  %v15089_v38 = vld [vmem:[#allocation18_spill] sm:$0xff] }
 0x430   :  { %v4261_v46 = vpop.f32.mrf.mxu1  ;;  %v3565_v27 = vadd.f32 %v3400_v58, %v15085_v45  ;;  %9023 = vmatprep.mubr.msk.bf16.mxu0 %vm9764_vm1, %v14854_v10 }
 0x431   :  { %v12970_v63 = vadd.f32 %v4261_v46, %v3564_v59  ;;  %v8757_v55 = vpop.f32.mrf.mxu0  ;;  %v4958_v59 = vrot.slane %v15089_v38, 1 }
 0x432   :  { %v8920_v25 = vpop.f32.mrf.mxu1  ;;  %v15091_v55 = vld [vmem:[#allocation81_spill] sm:$0xff] }
 0x433   :  { %15086 = vst [vmem:[#allocation70_spill] sm:$0xff] %v12970_v63  ;;  %v3403_v1 = vpop.f32.mrf.mxu0  ;;  %v15090_v63 = vld [vmem:[#allocation97_spill] sm:$0xff] }
 0x434   :  { %v4266_v34 = vpop.f32.mrf.mxu1  ;;  %9186 = vmatmul.mubr.msk.bf16.gmra.mxu1 %vm410_vm4, %v4957_v9  ;;  %v3566_v43 = vadd.f32 %v3403_v1, %v15087_v48  ;;  %v4959_v9 = vsel %vm4934_vm7, %v4956_v20, %v4958_v59 }
 0x435   :  { %v12977_v49 = vadd.f32 %v4266_v34, %v3565_v27  ;;  %9189 = vmatprep.mubr.msk.bf16.mxu1 %vm9764_vm1, %v14854_v10  ;;  %v8758_v58 = vpop.f32.mrf.mxu0 }
 0x436   :  { %v8923_v3 = vpop.f32.mrf.mxu1  ;;  %v15093_v58 = vld [vmem:[#allocation82_spill] sm:$0xff] }
 0x437   :  { %15088 = vst [vmem:[#allocation68_spill] sm:$0xff] %v12977_v49  ;;  %v3408_v46 = vpop.f32.mrf.mxu0  ;;  %9024 = vmatmul.mubr.msk.bf16.gmra.mxu0 %vm410_vm4, %v15090_v63  ;;  %v15095_v63 = vld [vmem:[#allocation19_spill] sm:$0xff] }
 0x438   :  { %v4269_v45 = vpop.f32.mrf.mxu1  ;;  %v3567_v25 = vadd.f32 %v3408_v46, %v15091_v55  ;;  %9027 = vmatprep.mubr.msk.bf16.mxu0 %vm9764_vm1, %v14854_v10 }
 0x439   :  { %v12985_v6 = vadd.f32 %v4269_v45, %v3566_v43  ;;  %v8761_v27 = vpop.f32.mrf.mxu0  ;;  %v4960_v43 = vrot.slane %v15095_v63, 1 }
 0x43a   :  { %v8924_v1 = vpop.f32.mrf.mxu1  ;;  %v15097_v27 = vld [vmem:[#allocation83_spill] sm:$0xff] }
 0x43b   :  { %15092 = vst [vmem:[#allocation69_spill] sm:$0xff] %v12985_v6  ;;  %v3411_v34 = vpop.f32.mrf.mxu0  ;;  %v15096_v6 = vld [vmem:[#allocation98_spill] sm:$0xff] }
 0x43c   :  { %v4274_v48 = vpop.f32.mrf.mxu1  ;;  %9190 = vmatmul.mubr.msk.bf16.gmra.mxu1 %vm410_vm4, %v4959_v9  ;;  %v3568_v3 = vadd.f32 %v3411_v34, %v15093_v58  ;;  %v4961_v9 = vsel %vm4934_vm7, %v4958_v59, %v4960_v43 }
 0x43d   :  { %v12992_v49 = vadd.f32 %v4274_v48, %v3567_v25  ;;  %9193 = vmatprep.mubr.msk.bf16.mxu1 %vm9764_vm1, %v14854_v10  ;;  %v8762_v46 = vpop.f32.mrf.mxu0 }
 0x43e   :  { %v8927_v20 = vpop.f32.mrf.mxu1  ;;  %v15099_v46 = vld [vmem:[#allocation99_spill] sm:$0xff] }
 0x43f   :  { %15094 = vst [vmem:[#allocation6_spill] sm:$0xff] %v12992_v49  ;;  %v3416_v45 = vpop.f32.mrf.mxu0  ;;  %9028 = vmatmul.mubr.msk.bf16.gmra.mxu0 %vm410_vm4, %v15096_v6  ;;  %v15101_v6 = vld [vmem:[#allocation20_spill] sm:$0xff] }
 0x440   :  { %v4277_v55 = vpop.f32.mrf.mxu1  ;;  %v3569_v1 = vadd.f32 %v3416_v45, %v15097_v27  ;;  %9031 = vmatprep.mubr.msk.bf16.mxu0 %vm9764_vm1, %v14854_v10 }
 0x441   :  { %v13000_v38 = vadd.f32 %v4277_v55, %v3568_v3  ;;  %v8765_v25 = vpop.f32.mrf.mxu0  ;;  %v4962_v3 = vrot.slane %v15101_v6, 1 }
 0x442   :  { %v8928_v34 = vpop.f32.mrf.mxu1  ;;  %v15103_v25 = vld [vmem:[#allocation84_spill] sm:$0xff] }
 0x443   :  { %15098 = vst [vmem:[#allocation7_spill] sm:$0xff] %v13000_v38  ;;  %v3419_v48 = vpop.f32.mrf.mxu0  ;;  %v15102_v38 = vld [vmem:[#allocation100_spill] sm:$0xff] }
 0x444   :  { %v4282_v58 = vpop.f32.mrf.mxu1  ;;  %9194 = vmatmul.mubr.msk.bf16.gmra.mxu1 %vm410_vm4, %v4961_v9  ;;  %v3570_v20 = vadd.f32 %v3419_v48, %v15099_v46  ;;  %v4963_v9 = vsel %vm4934_vm7, %v4960_v43, %v4962_v3 }
 0x445   :  { %v13007_v49 = vadd.f32 %v4282_v58, %v3569_v1  ;;  %9197 = vmatprep.mubr.msk.bf16.mxu1 %vm9764_vm1, %v14854_v10  ;;  %v8766_v45 = vpop.f32.mrf.mxu0 }
 0x446   :  { %v8931_v59 = vpop.f32.mrf.mxu1  ;;  %v15105_v45 = vld [vmem:[#allocation85_spill] sm:$0xff] }
 0x447   :  { %15100 = vst [vmem:[#allocation14_spill] sm:$0xff] %v13007_v49  ;;  %v3424_v55 = vpop.f32.mrf.mxu0  ;;  %9032 = vmatmul.mubr.msk.bf16.gmra.mxu0 %vm410_vm4, %v15102_v38  ;;  %v15107_v38 = vld [vmem:[#allocation21_spill] sm:$0xff] }
 0x448   :  { %v4285_v27 = vpop.f32.mrf.mxu1  ;;  %v3571_v34 = vadd.f32 %v3424_v55, %v15103_v25  ;;  %9035 = vmatprep.mubr.msk.bf16.mxu0 %vm9764_vm1, %v14854_v10 }
 0x449   :  { %v13015_v63 = vadd.f32 %v4285_v27, %v3570_v20  ;;  %v8769_v1 = vpop.f32.mrf.mxu0  ;;  %v4964_v20 = vrot.slane %v15107_v38, 1 }
 0x44a   :  { %v8932_v48 = vpop.f32.mrf.mxu1  ;;  %v15109_v1 = vld [vmem:[#allocation86_spill] sm:$0xff] }
 0x44b   :  { %15104 = vst [vmem:[#allocation73_spill] sm:$0xff] %v13015_v63  ;;  %v3427_v58 = vpop.f32.mrf.mxu0  ;;  %v15108_v63 = vld [vmem:[#allocation101_spill] sm:$0xff] }
 0x44c   :  { %v4290_v46 = vpop.f32.mrf.mxu1  ;;  %9198 = vmatmul.mubr.msk.bf16.gmra.mxu1 %vm410_vm4, %v4963_v9  ;;  %v3572_v59 = vadd.f32 %v3427_v58, %v15105_v45  ;;  %v4965_v9 = vsel %vm4934_vm7, %v4962_v3, %v4964_v20 }
 0x44d   :  { %v13022_v49 = vadd.f32 %v4290_v46, %v3571_v34  ;;  %9201 = vmatprep.mubr.msk.bf16.mxu1 %vm9764_vm1, %v14854_v10  ;;  %v8770_v55 = vpop.f32.mrf.mxu0 }
 0x44e   :  { %v8935_v43 = vpop.f32.mrf.mxu1  ;;  %v15111_v55 = vld [vmem:[#allocation35_spill] sm:$0xff] }
 0x44f   :  { %15106 = vst [vmem:[#allocation71_spill] sm:$0xff] %v13022_v49  ;;  %v3432_v27 = vpop.f32.mrf.mxu0  ;;  %9036 = vmatmul.mubr.msk.bf16.gmra.mxu0 %vm410_vm4, %v15108_v63  ;;  %v15113_v63 = vld [vmem:[#allocation22_spill] sm:$0xff] }
 0x450   :  { %v4293_v25 = vpop.f32.mrf.mxu1  ;;  %v3573_v48 = vadd.f32 %v3432_v27, %v15109_v1  ;;  %9039 = vmatprep.mubr.msk.bf16.mxu0 %vm9764_vm1, %v14854_v10 }
 0x451   :  { %v13030_v6 = vadd.f32 %v4293_v25, %v3572_v59  ;;  %v8773_v34 = vpop.f32.mrf.mxu0  ;;  %v4966_v59 = vrot.slane %v15113_v63, 1 }
 0x452   :  { %v8936_v58 = vpop.f32.mrf.mxu1  ;;  %v15115_v34 = vld [vmem:[#allocation87_spill] sm:$0xff] }
 0x453   :  { %15110 = vst [vmem:[#allocation72_spill] sm:$0xff] %v13030_v6  ;;  %v3435_v46 = vpop.f32.mrf.mxu0  ;;  %v15114_v6 = vld [vmem:[#allocation102_spill] sm:$0xff] }
 0x454   :  { %v4298_v45 = vpop.f32.mrf.mxu1  ;;  %9202 = vmatmul.mubr.msk.bf16.gmra.mxu1 %vm410_vm4, %v4965_v9  ;;  %v3574_v43 = vadd.f32 %v3435_v46, %v15111_v55  ;;  %v4967_v9 = vsel %vm4934_vm7, %v4964_v20, %v4966_v59 }
 0x455   :  { %v13037_v49 = vadd.f32 %v4298_v45, %v3573_v48  ;;  %9205 = vmatprep.mubr.msk.bf16.mxu1 %vm9764_vm1, %v14854_v10  ;;  %v8774_v27 = vpop.f32.mrf.mxu0 }
 0x456   :  { %v8939_v3 = vpop.f32.mrf.mxu1  ;;  %v15117_v27 = vld [vmem:[#allocation38_spill] sm:$0xff] }
 0x457   :  { %15112 = vst [vmem:[#allocation74_spill] sm:$0xff] %v13037_v49  ;;  %v3440_v25 = vpop.f32.mrf.mxu0  ;;  %9040 = vmatmul.mubr.msk.bf16.gmra.mxu0 %vm410_vm4, %v15114_v6  ;;  %v15119_v6 = vld [vmem:[#allocation23_spill] sm:$0xff] }
 0x458   :  { %v4301_v1 = vpop.f32.mrf.mxu1  ;;  %v3575_v58 = vadd.f32 %v3440_v25, %v15115_v34  ;;  %9043 = vmatprep.mubr.msk.bf16.mxu0 %vm9764_vm1, %v14854_v10 }
 0x459   :  { %v13045_v38 = vadd.f32 %v4301_v1, %v3574_v43  ;;  %v8777_v48 = vpop.f32.mrf.mxu0  ;;  %v4968_v43 = vrot.slane %v15119_v6, 1 }
 0x45a   :  { %v8940_v46 = vpop.f32.mrf.mxu1  ;;  %v15121_v48 = vld [vmem:[#allocation88_spill] sm:$0xff] }
 0x45b   :  { %15116 = vst [vmem:[#allocation75_spill] sm:$0xff] %v13045_v38  ;;  %v3443_v45 = vpop.f32.mrf.mxu0  ;;  %v15120_v38 = vld [vmem:[#allocation103_spill] sm:$0xff] }
 0x45c   :  { %v4306_v55 = vpop.f32.mrf.mxu1  ;;  %9206 = vmatmul.mubr.msk.bf16.gmra.mxu1 %vm410_vm4, %v4967_v9  ;;  %v3576_v3 = vadd.f32 %v3443_v45, %v15117_v27  ;;  %v4969_v9 = vsel %vm4934_vm7, %v4966_v59, %v4968_v43 }
 0x45d   :  { %v13052_v49 = vadd.f32 %v4306_v55, %v3575_v58  ;;  %9209 = vmatprep.mubr.msk.bf16.mxu1 %vm9764_vm1, %v14854_v10  ;;  %v8778_v25 = vpop.f32.mrf.mxu0 }
 0x45e   :  { %v8943_v20 = vpop.f32.mrf.mxu1  ;;  %v15123_v25 = vld [vmem:[#allocation39_spill] sm:$0xff] }
 0x45f   :  { %15118 = vst [vmem:[#allocation16_spill] sm:$0xff] %v13052_v49  ;;  %v3448_v1 = vpop.f32.mrf.mxu0  ;;  %9044 = vmatmul.mubr.msk.bf16.gmra.mxu0 %vm410_vm4, %v15120_v38  ;;  %v15125_v38 = vld [vmem:[#allocation24_spill] sm:$0xff] }
 0x460   :  { %v4309_v34 = vpop.f32.mrf.mxu1  ;;  %v3577_v46 = vadd.f32 %v3448_v1, %v15121_v48  ;;  %9047 = vmatprep.mubr.msk.bf16.mxu0 %vm9764_vm1, %v14854_v10 }
 0x461   :  { %v13060_v63 = vadd.f32 %v4309_v34, %v3576_v3  ;;  %v8781_v58 = vpop.f32.mrf.mxu0  ;;  %v4970_v3 = vrot.slane %v15125_v38, 1 }
 0x462   :  { %v8944_v45 = vpop.f32.mrf.mxu1  ;;  %v15127_v58 = vld [vmem:[#allocation89_spill] sm:$0xff] }
 0x463   :  { %15122 = vst [vmem:[#allocation78_spill] sm:$0xff] %v13060_v63  ;;  %v3451_v55 = vpop.f32.mrf.mxu0  ;;  %v15126_v63 = vld [vmem:[#allocation104_spill] sm:$0xff] }
 0x464   :  { %v4314_v27 = vpop.f32.mrf.mxu1  ;;  %9210 = vmatmul.mubr.msk.bf16.gmra.mxu1 %vm410_vm4, %v4969_v9  ;;  %v3578_v20 = vadd.f32 %v3451_v55, %v15123_v25  ;;  %v4971_v9 = vsel %vm4934_vm7, %v4968_v43, %v4970_v3 }
 0x465   :  { %v13067_v49 = vadd.f32 %v4314_v27, %v3577_v46  ;;  %9213 = vmatprep.mubr.msk.bf16.mxu1 %vm9764_vm1, %v14854_v10  ;;  %v8782_v1 = vpop.f32.mrf.mxu0 }
 0x466   :  { %v8947_v59 = vpop.f32.mrf.mxu1  ;;  %v15129_v1 = vld [vmem:[#allocation42_spill] sm:$0xff] }
 0x467   :  { %15124 = vst [vmem:[#allocation76_spill] sm:$0xff] %v13067_v49  ;;  %v3456_v34 = vpop.f32.mrf.mxu0  ;;  %9048 = vmatmul.mubr.msk.bf16.gmra.mxu0 %vm410_vm4, %v15126_v63  ;;  %v15131_v63 = vld [vmem:[#allocation25_spill] sm:$0xff] }
 0x468   :  { %v4317_v48 = vpop.f32.mrf.mxu1  ;;  %v3579_v45 = vadd.f32 %v3456_v34, %v15127_v58  ;;  %9051 = vmatprep.mubr.msk.bf16.mxu0 %vm9764_vm1, %v14854_v10 }
 0x469   :  { %v13075_v6 = vadd.f32 %v4317_v48, %v3578_v20  ;;  %v8785_v46 = vpop.f32.mrf.mxu0  ;;  %v4972_v20 = vrot.slane %v15131_v63, 1 }
 0x46a   :  { %v8948_v55 = vpop.f32.mrf.mxu1  ;;  %v15133_v46 = vld [vmem:[#allocation90_spill] sm:$0xff] }
 0x46b   :  { %15128 = vst [vmem:[#allocation77_spill] sm:$0xff] %v13075_v6  ;;  %v3459_v27 = vpop.f32.mrf.mxu0  ;;  %v15132_v6 = vld [vmem:[#allocation105_spill] sm:$0xff] }
 0x46c   :  { %v4322_v25 = vpop.f32.mrf.mxu1  ;;  %9214 = vmatmul.mubr.msk.bf16.gmra.mxu1 %vm410_vm4, %v4971_v9  ;;  %v3580_v59 = vadd.f32 %v3459_v27, %v15129_v1  ;;  %v4973_v9 = vsel %vm4934_vm7, %v4970_v3, %v4972_v20 }
 0x46d   :  { %v13082_v49 = vadd.f32 %v4322_v25, %v3579_v45  ;;  %9217 = vmatprep.mubr.msk.bf16.mxu1 %vm9764_vm1, %v14854_v10  ;;  %v8786_v34 = vpop.f32.mrf.mxu0 }
 0x46e   :  { %v8951_v43 = vpop.f32.mrf.mxu1  ;;  %v15135_v34 = vld [vmem:[#allocation43_spill] sm:$0xff] }
 0x46f   :  { %15130 = vst [vmem:[#allocation79_spill] sm:$0xff] %v13082_v49  ;;  %v3464_v48 = vpop.f32.mrf.mxu0  ;;  %9052 = vmatmul.mubr.msk.bf16.gmra.mxu0 %vm410_vm4, %v15132_v6  ;;  %v15137_v6 = vld [vmem:[#allocation26_spill] sm:$0xff] }
 0x470   :  { %v4325_v58 = vpop.f32.mrf.mxu1  ;;  %v3581_v55 = vadd.f32 %v3464_v48, %v15133_v46  ;;  %9055 = vmatprep.mubr.msk.bf16.mxu0 %vm9764_vm1, %v14854_v10 }
 0x471   :  { %v13090_v38 = vadd.f32 %v4325_v58, %v3580_v59  ;;  %v8789_v45 = vpop.f32.mrf.mxu0  ;;  %v4974_v59 = vrot.slane %v15137_v6, 1 }
 0x472   :  { %v8952_v27 = vpop.f32.mrf.mxu1  ;;  %v15139_v45 = vld [vmem:[#allocation91_spill] sm:$0xff] }
 0x473   :  { %15134 = vst [vmem:[#allocation80_spill] sm:$0xff] %v13090_v38  ;;  %v3467_v25 = vpop.f32.mrf.mxu0  ;;  %v15138_v38 = vld [vmem:[#allocation106_spill] sm:$0xff] }
 0x474   :  { %v4330_v1 = vpop.f32.mrf.mxu1  ;;  %9218 = vmatmul.mubr.msk.bf16.gmra.mxu1 %vm410_vm4, %v4973_v9  ;;  %v3582_v43 = vadd.f32 %v3467_v25, %v15135_v34  ;;  %v4975_v9 = vsel %vm4934_vm7, %v4972_v20, %v4974_v59 }
 0x475   :  { %v13097_v49 = vadd.f32 %v4330_v1, %v3581_v55  ;;  %9221 = vmatprep.mubr.msk.bf16.mxu1 %vm9764_vm1, %v14854_v10  ;;  %v8790_v48 = vpop.f32.mrf.mxu0 }
 0x476   :  { %v8955_v3 = vpop.f32.mrf.mxu1  ;;  %v15141_v48 = vld [vmem:[#allocation46_spill] sm:$0xff] }
 0x477   :  { %15136 = vst [vmem:[#allocation97_spill] sm:$0xff] %v13097_v49  ;;  %v3472_v58 = vpop.f32.mrf.mxu0  ;;  %9056 = vmatmul.mubr.msk.bf16.gmra.mxu0 %vm410_vm4, %v15138_v38  ;;  %v4976_v38 = vrot.slane %v14952_v22, 1 }
 0x478   :  { %v4333_v46 = vpop.f32.mrf.mxu1  ;;  %v3583_v27 = vadd.f32 %v3472_v58, %v15139_v45  ;;  %9059 = vmatprep.mubr.msk.bf16.mxu0 %vm9764_vm1, %v14854_v10  ;;  %v15143_v45 = vld [vmem:[#allocation107_spill] sm:$0xff] }
 0x479   :  { %v13105_v63 = vadd.f32 %v4333_v46, %v3582_v43  ;;  %v8793_v55 = vpop.f32.mrf.mxu0 }
 0x47a   :  { %v8956_v25 = vpop.f32.mrf.mxu1  ;;  %v15144_v55 = vld [vmem:[#allocation92_spill] sm:$0xff] }
 0x47b   :  { %15140 = vst [vmem:[#allocation81_spill] sm:$0xff] %v13105_v63  ;;  %v3475_v1 = vpop.f32.mrf.mxu0 }
 0x47c   :  { %v4338_v34 = vpop.f32.mrf.mxu1  ;;  %9222 = vmatmul.mubr.msk.bf16.gmra.mxu1 %vm410_vm4, %v4975_v9  ;;  %v3584_v3 = vadd.f32 %v3475_v1, %v15141_v48  ;;  %v4977_v9 = vsel %vm4934_vm7, %v4974_v59, %v4976_v38 }
 0x47d   :  { %v13112_v49 = vadd.f32 %v4338_v34, %v3583_v27  ;;  %9225 = vmatprep.mubr.msk.bf16.mxu1 %vm9764_vm1, %v14854_v10  ;;  %v8794_v43 = vpop.f32.mrf.mxu0 }
 0x47e   :  { %v8959_v20 = vpop.f32.mrf.mxu1  ;;  %v15146_v43 = vld [vmem:[#allocation47_spill] sm:$0xff] }
 0x47f   :  { %15142 = vst [vmem:[#allocation82_spill] sm:$0xff] %v13112_v49  ;;  %v3480_v58 = vpop.f32.mrf.mxu0  ;;  %9060 = vmatmul.mubr.msk.bf16.gmra.mxu0 %vm410_vm4, %v15143_v45 }
 0x480   :  { %v4341_v46 = vpop.f32.mrf.mxu1  ;;  %v3585_v25 = vadd.f32 %v3480_v58, %v15144_v55  ;;  %9063 = vmatprep.mubr.msk.bf16.mxu0 %vm9764_vm1, %v14854_v10 }
 0x481   :  { %v13120_v63 = vadd.f32 %v4341_v46, %v3584_v3  ;;  %v8797_v27 = vpop.f32.mrf.mxu0  ;;  %v15148_v3 = vld [vmem:[#allocation28_spill] sm:$0xff] }
 0x482   :  { %v8960_v1 = vpop.f32.mrf.mxu1  ;;  %v4978_v58 = vrot.slane %v15148_v3, 1  ;;  %v15150_v27 = vld [vmem:[#allocation93_spill] sm:$0xff] }
 0x483   :  { %15145 = vst [vmem:[#allocation98_spill] sm:$0xff] %v13120_v63  ;;  %v3483_v34 = vpop.f32.mrf.mxu0  ;;  %v15149_v63 = vld [vmem:[#allocation50_spill] sm:$0xff] }
 0x484   :  { %v4346_v48 = vpop.f32.mrf.mxu1  ;;  %9226 = vmatmul.mubr.msk.bf16.gmra.mxu1 %vm410_vm4, %v4977_v9  ;;  %v3586_v20 = vadd.f32 %v3483_v34, %v15146_v43  ;;  %v4979_v9 = vsel %vm4934_vm7, %v4976_v38, %v4978_v58 }
 0x485   :  { %v13127_v49 = vadd.f32 %v4346_v48, %v3585_v25  ;;  %9229 = vmatprep.mubr.msk.bf16.mxu1 %vm9764_vm1, %v14854_v10  ;;  %v8798_v46 = vpop.f32.mrf.mxu0 }
 0x486   :  { %v8963_v59 = vpop.f32.mrf.mxu1  ;;  %v15152_v46 = vld [vmem:[#allocation29_spill] sm:$0xff] }
 0x487   :  { %15147 = vst [vmem:[#allocation83_spill] sm:$0xff] %v13127_v49  ;;  %v3488_v45 = vpop.f32.mrf.mxu0  ;;  %9064 = vmatmul.mubr.msk.bf16.gmra.mxu0 %vm410_vm4, %v15149_v63  ;;  %v4980_v63 = vrot.slane %v14965_v13, 1 }
 0x488   :  { %v4349_v55 = vpop.f32.mrf.mxu1  ;;  %v3587_v1 = vadd.f32 %v3488_v45, %v15150_v27  ;;  %9067 = vmatprep.mubr.msk.bf16.mxu0 %vm9764_vm1, %v14854_v10  ;;  %v15154_v27 = vld [vmem:[#allocation108_spill] sm:$0xff] }
 0x489   :  { %v13135_v22 = vadd.f32 %v4349_v55, %v3586_v20  ;;  %v8801_v25 = vpop.f32.mrf.mxu0 }
 0x48a   :  { %v8964_v34 = vpop.f32.mrf.mxu1  ;;  %v15155_v25 = vld [vmem:[#allocation94_spill] sm:$0xff] }
 0x48b   :  { %15151 = vst [vmem:[#allocation99_spill] sm:$0xff] %v13135_v22  ;;  %v3491_v48 = vpop.f32.mrf.mxu0 }
 0x48c   :  { %v4354_v43 = vpop.f32.mrf.mxu1  ;;  %9230 = vmatmul.mubr.msk.bf16.gmra.mxu1 %vm410_vm4, %v4979_v9  ;;  %v3588_v59 = vadd.f32 %v3491_v48, %v15152_v46  ;;  %v4981_v9 = vsel %vm4934_vm7, %v4978_v58, %v4980_v63 }
 0x48d   :  { %v13142_v49 = vadd.f32 %v4354_v43, %v3587_v1  ;;  %9233 = vmatprep.mubr.msk.bf16.mxu1 %vm9764_vm1, %v14854_v10  ;;  %v8802_v20 = vpop.f32.mrf.mxu0 }
 0x48e   :  { %v8967_v38 = vpop.f32.mrf.mxu1  ;;  %v15157_v20 = vld [vmem:[#allocation109_spill] sm:$0xff] }
 0x48f   :  { %15153 = vst [vmem:[#allocation100_spill] sm:$0xff] %v13142_v49  ;;  %v3496_v45 = vpop.f32.mrf.mxu0  ;;  %9068 = vmatmul.mubr.msk.bf16.gmra.mxu0 %vm410_vm4, %v15154_v27 }
 0x490   :  { %v4357_v55 = vpop.f32.mrf.mxu1  ;;  %v3589_v34 = vadd.f32 %v3496_v45, %v15155_v25  ;;  %9071 = vmatprep.mubr.msk.bf16.mxu0 %vm9764_vm1, %v14854_v10  ;;  %v15159_v25 = vld [vmem:[#allocation53_spill] sm:$0xff] }
 0x491   :  { %v13150_v22 = vadd.f32 %v4357_v55, %v3588_v59  ;;  %v8805_v1 = vpop.f32.mrf.mxu0  ;;  %v4982_v59 = vrot.slane %v14974_v57, 1 }
 0x492   :  { %v8968_v48 = vpop.f32.mrf.mxu1  ;;  %v15160_v1 = vld [vmem:[#allocation51_spill] sm:$0xff] }
 0x493   :  { %15156 = vst [vmem:[#allocation84_spill] sm:$0xff] %v13150_v22  ;;  %v3499_v43 = vpop.f32.mrf.mxu0 }
 0x494   :  { %v4362_v46 = vpop.f32.mrf.mxu1  ;;  %9234 = vmatmul.mubr.msk.bf16.gmra.mxu1 %vm410_vm4, %v4981_v9  ;;  %v3590_v38 = vadd.f32 %v3499_v43, %v15157_v20  ;;  %v4983_v9 = vsel %vm4934_vm7, %v4980_v63, %v4982_v59 }
 0x495   :  { %v13157_v49 = vadd.f32 %v4362_v46, %v3589_v34  ;;  %9237 = vmatprep.mubr.msk.bf16.mxu1 %vm9764_vm1, %v14854_v10  ;;  %v8806_v45 = vpop.f32.mrf.mxu0 }
 0x496   :  { %v8971_v58 = vpop.f32.mrf.mxu1  ;;  %v15162_v45 = vld [vmem:[#allocation110_spill] sm:$0xff] }
 0x497   :  { %15158 = vst [vmem:[#allocation85_spill] sm:$0xff] %v13157_v49  ;;  %v3504_v55 = vpop.f32.mrf.mxu0  ;;  %9072 = vmatmul.mubr.msk.bf16.gmra.mxu0 %vm410_vm4, %v15159_v25 }
 0x498   :  { %v4365_v27 = vpop.f32.mrf.mxu1  ;;  %v3591_v48 = vadd.f32 %v3504_v55, %v15160_v1  ;;  %9075 = vmatprep.mubr.msk.bf16.mxu0 %vm9764_vm1, %v14854_v10  ;;  %v15165_v1 = vshll.u32 %v14846_v16, 16 }
 0x499   :  { %v13165_v22 = vadd.f32 %v4365_v27, %v3590_v38  ;;  %v8809_v34 = vpop.f32.mrf.mxu0  ;;  %v4984_v38 = vrot.slane %v14977_v8, 1  ;;  %v15164_v27 = vshrl.u32 %v14845_v5, 16 }
 0x49a   :  { %v8972_v43 = vpop.f32.mrf.mxu1  ;;  %v5594_v34 = vrot.slane %v15165_v1, 2  ;;  %v15168_v1 = vshll.u32 %v14845_v5, 16 }
 0x49b   :  { %15161 = vst [vmem:[#allocation101_spill] sm:$0xff] %v13165_v22  ;;  %v3507_v46 = vpop.f32.mrf.mxu0  ;;  %v5590_v25 = vrot.slane %v15164_v27, 1 }
 0x49c   :  { %v4370_v20 = vpop.f32.mrf.mxu1  ;;  %9238 = vmatmul.mubr.msk.bf16.gmra.mxu1 %vm410_vm4, %v4983_v9  ;;  %v3592_v58 = vadd.f32 %v3507_v46, %v15162_v45 }
 0x49d   :  { %v13172_v49 = vadd.f32 %v4370_v20, %v3591_v48  ;;  %9241 = vmatprep.mubr.msk.bf16.mxu1 %vm9764_vm1, %v14854_v10  ;;  %v8810_v55 = vpop.f32.mrf.mxu0  ;;  %v15166_v48 = vshrl.u32 %v14846_v16, 16  ;;  %v15167_v20 = vld [vmem:[#allocation96_spill] sm:$0xff] }
 0x49e   :  { %v8975_v63 = vpop.f32.mrf.mxu1  ;;  %v4985_v55 = vsel %vm4934_vm7, %v4982_v59, %v4984_v38 }
 0x49f   :  { %15163 = vst [vmem:[#allocation86_spill] sm:$0xff] %v13172_v49  ;;  %v4523_v22 = vpop.f32.mrf.mxu0  ;;  %9076 = vmatmul.mubr.msk.bf16.gmra.mxu0 %vm410_vm4, %v12440_v50  ;;  %v5593_v9 = vrot.slane %v15166_v48, 1  ;;  %v5591_v49 = vrot.slane %v15168_v1, 2  ;;  %v4986_v50 = vrot.slane %v14984_v29, 1 }
 0x4a0   :  { %v4373_v43 = vpop.f32.mrf.mxu1  ;;  %v4850_v45 = vadd.f32 %v4523_v22, %v15167_v20  ;;  %9079 = vmatprep.mubr.msk.bf16.mxu0 %vm9764_vm1, %v14854_v10 }
 0x4a1   :  { %v13185_v46 = vadd.f32 %v4373_v43, %v3592_v58  ;;  %v8981_v27 = vpop.f32.mrf.mxu0  ;;  %v5592_v22 = vor.u32 %v5591_v49, %v5590_v25  ;;  %v13200_v59 = vor.u32 %v5594_v34, %v5593_v9  ;;  %v4987_v49 = vsel %vm4934_vm7, %v4984_v38, %v4986_v50 }
 0x4a2   :  { %v8976_v63 = vpop.f32.mrf.mxu1  ;;  %v15169_v27 = vld [vmem:[#allocation111_spill] sm:$0xff] }
 0x4a3   :  { %v4526_v8 = vpop.f32.mrf.mxu0  ;;  %v13204_v63 = vsel %vm5589_vm8, %v5592_v22, %v13200_v59  ;;  %v15171_v22 = vld [vmem:[#allocation33_spill] sm:$0xff] }
 0x4a4   :  { %v5178_v57 = vpop.f32.mrf.mxu1  ;;  %9242 = vmatmul.mubr.msk.bf16.gmra.mxu1 %vm410_vm4, %v4985_v55  ;;  %v4851_v58 = vadd.f32 %v4526_v8, %v12443_v42 }
 0x4a5   :  { %v13196_v43 = vadd.f32 %v5178_v57, %v4850_v45  ;;  %9245 = vmatprep.mubr.msk.bf16.mxu1 %vm9764_vm1, %v14854_v10  ;;  %v8982_v48 = vpop.f32.mrf.mxu0  ;;  %v15170_v57 = vld [vmem:[#allocation32_spill] sm:$0xff] }
 0x4a6   :  { %v9147_v20 = vpop.f32.mrf.mxu1 }
 0x4a7   :  { %v4531_v55 = vpop.f32.mrf.mxu0  ;;  %9080 = vmatmul.mubr.msk.bf16.gmra.mxu0 %vm410_vm4, %v15169_v27 }
 0x4a8   :  { %v5181_v8 = vpop.f32.mrf.mxu1  ;;  %v4852_v42 = vadd.f32 %v4531_v55, %v15170_v57  ;;  %9083 = vmatprep.mubr.msk.bf16.mxu0 %vm9764_vm1, %v14854_v10  ;;  %v15172_v57 = vld [vmem:[#allocation112_spill] sm:$0xff] }
 0x4a9   :  { %v13209_v45 = vadd.f32 %v5181_v8, %v4851_v58  ;;  %v8985_v25 = vpop.f32.mrf.mxu0  ;;  %v4988_v58 = vrot.slane %v14986_v37, 1 }
 0x4aa   :  { %v9148_v34 = vpop.f32.mrf.mxu1 }
 0x4ab   :  { %v4534_v9 = vpop.f32.mrf.mxu0 }
 0x4ac   :  { %v5186_v1 = vpop.f32.mrf.mxu1  ;;  %9246 = vmatmul.mubr.msk.bf16.gmra.mxu1 %vm410_vm4, %v4987_v49  ;;  %v4853_v48 = vadd.f32 %v4534_v9, %v15171_v22  ;;  %v4989_v49 = vsel %vm4934_vm7, %v4986_v50, %v4988_v58 }
 0x4ad   :  { %v13216_v20 = vadd.f32 %v5186_v1, %v4852_v42  ;;  %9249 = vmatprep.mubr.msk.bf16.mxu1 %vm9764_vm1, %v14854_v10  ;;  %v8986_v55 = vpop.f32.mrf.mxu0 }
 0x4ae   :  { %v9151_v38 = vpop.f32.mrf.mxu1 }
 0x4af   :  { %v4539_v27 = vpop.f32.mrf.mxu0  ;;  %9084 = vmatmul.mubr.msk.bf16.gmra.mxu0 %vm410_vm4, %v12486_v41  ;;  %v4990_v41 = vrot.slane %v14991_v61, 1 }
 0x4b0   :  { %v5189_v8 = vpop.f32.mrf.mxu1  ;;  %v4854_v25 = vadd.f32 %v4539_v27, %v15172_v57  ;;  %9087 = vmatprep.mubr.msk.bf16.mxu0 %vm9764_vm1, %v14854_v10 }
 0x4b1   :  { %v13224_v34 = vadd.f32 %v5189_v8, %v4853_v48  ;;  %v8989_v42 = vpop.f32.mrf.mxu0  ;;  %v15175_v8 = vld [vmem:[#allocation113_spill] sm:$0xff] }
 0x4b2   :  { %v9152_v9 = vpop.f32.mrf.mxu1  ;;  %v15176_v42 = vld [vmem:[#allocation34_spill] sm:$0xff] }
 0x4b3   :  { %15173 = vst [vmem:[#allocation35_spill] sm:$0xff] %v13224_v34  ;;  %v4542_v1 = vpop.f32.mrf.mxu0 }
 0x4b4   :  { %v5194_v22 = vpop.f32.mrf.mxu1  ;;  %9250 = vmatmul.mubr.msk.bf16.gmra.mxu1 %vm410_vm4, %v4989_v49  ;;  %v4855_v55 = vadd.f32 %v4542_v1, %v12489_v31  ;;  %v4991_v31 = vsel %vm4934_vm7, %v4988_v58, %v4990_v41 }
 0x4b5   :  { %v13231_v38 = vadd.f32 %v5194_v22, %v4854_v25  ;;  %9253 = vmatprep.mubr.msk.bf16.mxu1 %vm9764_vm1, %v14854_v10  ;;  %v8990_v48 = vpop.f32.mrf.mxu0 }
 0x4b6   :  { %v9155_v50 = vpop.f32.mrf.mxu1  ;;  %v15177_v48 = vld [vmem:[#allocation36_spill] sm:$0xff] }
 0x4b7   :  { %15174 = vst [vmem:[#allocation102_spill] sm:$0xff] %v13231_v38  ;;  %v4547_v27 = vpop.f32.mrf.mxu0  ;;  %9088 = vmatmul.mubr.msk.bf16.gmra.mxu0 %vm410_vm4, %v15175_v8 }
 0x4b8   :  { %v5197_v57 = vpop.f32.mrf.mxu1  ;;  %v4856_v9 = vadd.f32 %v4547_v27, %v15176_v42  ;;  %9091 = vmatprep.mubr.msk.bf16.mxu0 %vm9764_vm1, %v14854_v10  ;;  %v15178_v42 = vld [vmem:[#allocation114_spill] sm:$0xff] }
 0x4b9   :  { %v13239_v34 = vadd.f32 %v5197_v57, %v4855_v55  ;;  %v8993_v25 = vpop.f32.mrf.mxu0  ;;  %v4992_v55 = vrot.slane %v14993_v15, 1 }
 0x4ba   :  { %v9156_v49 = vpop.f32.mrf.mxu1 }
 0x4bb   :  { %v4550_v1 = vpop.f32.mrf.mxu0 }
 0x4bc   :  { %v5202_v22 = vpop.f32.mrf.mxu1  ;;  %9254 = vmatmul.mubr.msk.bf16.gmra.mxu1 %vm410_vm4, %v4991_v31  ;;  %v4857_v50 = vadd.f32 %v4550_v1, %v15177_v48  ;;  %v4993_v31 = vsel %vm4934_vm7, %v4990_v41, %v4992_v55 }
 0x4bd   :  { %v13246_v38 = vadd.f32 %v5202_v22, %v4856_v9  ;;  %9257 = vmatprep.mubr.msk.bf16.mxu1 %vm9764_vm1, %v14854_v10  ;;  %v8994_v27 = vpop.f32.mrf.mxu0 }
 0x4be   :  { %v9159_v58 = vpop.f32.mrf.mxu1 }
 0x4bf   :  { %v4555_v8 = vpop.f32.mrf.mxu0  ;;  %9092 = vmatmul.mubr.msk.bf16.gmra.mxu0 %vm410_vm4, %v12532_v35  ;;  %v4994_v35 = vrot.slane %v14998_v7, 1 }
 0x4c0   :  { %v5205_v57 = vpop.f32.mrf.mxu1  ;;  %v4858_v25 = vadd.f32 %v4555_v8, %v15178_v42  ;;  %9095 = vmatprep.mubr.msk.bf16.mxu0 %vm9764_vm1, %v14854_v10 }
 0x4c1   :  { %v13254_v49 = vadd.f32 %v5205_v57, %v4857_v50  ;;  %v8997_v9 = vpop.f32.mrf.mxu0  ;;  %v15181_v57 = vld [vmem:[#allocation115_spill] sm:$0xff] }
 0x4c2   :  { %v9160_v1 = vpop.f32.mrf.mxu1  ;;  %v15182_v9 = vld [vmem:[#allocation37_spill] sm:$0xff] }
 0x4c3   :  { %15179 = vst [vmem:[#allocation87_spill] sm:$0xff] %v13254_v49  ;;  %v4558_v22 = vpop.f32.mrf.mxu0 }
 0x4c4   :  { %v5210_v48 = vpop.f32.mrf.mxu1  ;;  %9258 = vmatmul.mubr.msk.bf16.gmra.mxu1 %vm410_vm4, %v4993_v31  ;;  %v4859_v27 = vadd.f32 %v4558_v22, %v12535_v51  ;;  %v4995_v51 = vsel %vm4934_vm7, %v4992_v55, %v4994_v35 }
 0x4c5   :  { %v13261_v58 = vadd.f32 %v5210_v48, %v4858_v25  ;;  %9261 = vmatprep.mubr.msk.bf16.mxu1 %vm9764_vm1, %v14854_v10  ;;  %v8998_v50 = vpop.f32.mrf.mxu0 }
 0x4c6   :  { %v9163_v41 = vpop.f32.mrf.mxu1  ;;  %v15183_v50 = vld [vmem:[#allocation40_spill] sm:$0xff] }
 0x4c7   :  { %15180 = vst [vmem:[#allocation38_spill] sm:$0xff] %v13261_v58  ;;  %v4563_v8 = vpop.f32.mrf.mxu0  ;;  %9096 = vmatmul.mubr.msk.bf16.gmra.mxu0 %vm410_vm4, %v15181_v57 }
 0x4c8   :  { %v5213_v42 = vpop.f32.mrf.mxu1  ;;  %v4860_v1 = vadd.f32 %v4563_v8, %v15182_v9  ;;  %9099 = vmatprep.mubr.msk.bf16.mxu0 %vm9764_vm1, %v14854_v10  ;;  %v15184_v9 = vld [vmem:[#allocation116_spill] sm:$0xff] }
 0x4c9   :  { %v13269_v49 = vadd.f32 %v5213_v42, %v4859_v27  ;;  %v9001_v25 = vpop.f32.mrf.mxu0  ;;  %v4996_v27 = vrot.slane %v15000_v33, 1 }
 0x4ca   :  { %v9164_v31 = vpop.f32.mrf.mxu1 }
 0x4cb   :  { %v4566_v22 = vpop.f32.mrf.mxu0 }
 0x4cc   :  { %v5218_v48 = vpop.f32.mrf.mxu1  ;;  %9262 = vmatmul.mubr.msk.bf16.gmra.mxu1 %vm410_vm4, %v4995_v51  ;;  %v4861_v41 = vadd.f32 %v4566_v22, %v15183_v50  ;;  %v4997_v51 = vsel %vm4934_vm7, %v4994_v35, %v4996_v27 }
 0x4cd   :  { %v13276_v58 = vadd.f32 %v5218_v48, %v4860_v1  ;;  %9265 = vmatprep.mubr.msk.bf16.mxu1 %vm9764_vm1, %v14854_v10  ;;  %v9002_v8 = vpop.f32.mrf.mxu0 }
 0x4ce   :  { %v9167_v55 = vpop.f32.mrf.mxu1 }
 0x4cf   :  { %v4571_v57 = vpop.f32.mrf.mxu0  ;;  %9100 = vmatmul.mubr.msk.bf16.gmra.mxu0 %vm410_vm4, %v12578_v17  ;;  %v4998_v17 = vrot.slane %v15005_v26, 1 }
 0x4d0   :  { %v5221_v42 = vpop.f32.mrf.mxu1  ;;  %v4862_v25 = vadd.f32 %v4571_v57, %v15184_v9  ;;  %9103 = vmatprep.mubr.msk.bf16.mxu0 %vm9764_vm1, %v14854_v10 }
 0x4d1   :  { %v13284_v31 = vadd.f32 %v5221_v42, %v4861_v41  ;;  %v9005_v1 = vpop.f32.mrf.mxu0  ;;  %v15187_v42 = vld [vmem:[#allocation117_spill] sm:$0xff] }
 0x4d2   :  { %v9168_v22 = vpop.f32.mrf.mxu1  ;;  %v15188_v1 = vld [vmem:[#allocation41_spill] sm:$0xff] }
 0x4d3   :  { %15185 = vst [vmem:[#allocation103_spill] sm:$0xff] %v13284_v31  ;;  %v4574_v48 = vpop.f32.mrf.mxu0 }
 0x4d4   :  { %v5226_v50 = vpop.f32.mrf.mxu1  ;;  %9266 = vmatmul.mubr.msk.bf16.gmra.mxu1 %vm410_vm4, %v4997_v51  ;;  %v4863_v8 = vadd.f32 %v4574_v48, %v12581_v14  ;;  %v4999_v14 = vsel %vm4934_vm7, %v4996_v27, %v4998_v17 }
 0x4d5   :  { %v13291_v55 = vadd.f32 %v5226_v50, %v4862_v25  ;;  %9269 = vmatprep.mubr.msk.bf16.mxu1 %vm9764_vm1, %v14854_v10  ;;  %v9006_v41 = vpop.f32.mrf.mxu0 }
 0x4d6   :  { %v9171_v35 = vpop.f32.mrf.mxu1  ;;  %v15190_v41 = vld [vmem:[#allocation44_spill] sm:$0xff] }
 0x4d7   :  { %15186 = vst [vmem:[#allocation88_spill] sm:$0xff] %v13291_v55  ;;  %v4579_v57 = vpop.f32.mrf.mxu0  ;;  %9104 = vmatmul.mubr.msk.bf16.gmra.mxu0 %vm410_vm4, %v15187_v42 }
 0x4d8   :  { %v5229_v9 = vpop.f32.mrf.mxu1  ;;  %v4864_v22 = vadd.f32 %v4579_v57, %v15188_v1  ;;  %9107 = vmatprep.mubr.msk.bf16.mxu0 %vm9764_vm1, %v14854_v10 }
 0x4d9   :  { %v13299_v31 = vadd.f32 %v5229_v9, %v4863_v8  ;;  %v9009_v25 = vpop.f32.mrf.mxu0  ;;  %v5000_v8 = vrot.slane %v15007_v60, 1  ;;  %v15192_v9 = vld [vmem:[#allocation119_spill] sm:$0xff] }
 0x4da   :  { %v9172_v51 = vpop.f32.mrf.mxu1  ;;  %v15193_v25 = vld [vmem:[#allocation118_spill] sm:$0xff] }
 0x4db   :  { %15189 = vst [vmem:[#allocation39_spill] sm:$0xff] %v13299_v31  ;;  %v4582_v48 = vpop.f32.mrf.mxu0 }
 0x4dc   :  { %v5234_v50 = vpop.f32.mrf.mxu1  ;;  %9270 = vmatmul.mubr.msk.bf16.gmra.mxu1 %vm410_vm4, %v4999_v14  ;;  %v4865_v35 = vadd.f32 %v4582_v48, %v15190_v41  ;;  %v5001_v14 = vsel %vm4934_vm7, %v4998_v17, %v5000_v8 }
 0x4dd   :  { %v13306_v55 = vadd.f32 %v5234_v50, %v4864_v22  ;;  %9273 = vmatprep.mubr.msk.bf16.mxu1 %vm9764_vm1, %v14854_v10  ;;  %v9010_v57 = vpop.f32.mrf.mxu0 }
 0x4de   :  { %v9175_v27 = vpop.f32.mrf.mxu1  ;;  %v15195_v57 = vld [vmem:[#allocation120_spill] sm:$0xff] }
 0x4df   :  { %15191 = vst [vmem:[#allocation104_spill] sm:$0xff] %v13306_v55  ;;  %v4587_v42 = vpop.f32.mrf.mxu0  ;;  %9108 = vmatmul.mubr.msk.bf16.gmra.mxu0 %vm410_vm4, %v15192_v9 }
 0x4e0   :  { %v5237_v1 = vpop.f32.mrf.mxu1  ;;  %v4866_v51 = vadd.f32 %v4587_v42, %v15193_v25  ;;  %9111 = vmatprep.mubr.msk.bf16.mxu0 %vm9764_vm1, %v14854_v10 }
 0x4e1   :  { %v13314_v31 = vadd.f32 %v5237_v1, %v4865_v35  ;;  %v9013_v22 = vpop.f32.mrf.mxu0  ;;  %v5002_v35 = vrot.slane %v15014_v30, 1  ;;  %v15197_v1 = vld [vmem:[#allocation54_spill] sm:$0xff] }
 0x4e2   :  { %v9176_v48 = vpop.f32.mrf.mxu1  ;;  %v15198_v22 = vld [vmem:[#allocation45_spill] sm:$0xff] }
 0x4e3   :  { %15194 = vst [vmem:[#allocation89_spill] sm:$0xff] %v13314_v31  ;;  %v4590_v50 = vpop.f32.mrf.mxu0 }
 0x4e4   :  { %v5242_v41 = vpop.f32.mrf.mxu1  ;;  %9274 = vmatmul.mubr.msk.bf16.gmra.mxu1 %vm410_vm4, %v5001_v14  ;;  %v4867_v27 = vadd.f32 %v4590_v50, %v15195_v57  ;;  %v5003_v14 = vsel %vm4934_vm7, %v5000_v8, %v5002_v35 }
 0x4e5   :  { %v13321_v55 = vadd.f32 %v5242_v41, %v4866_v51  ;;  %9277 = vmatprep.mubr.msk.bf16.mxu1 %vm9764_vm1, %v14854_v10  ;;  %v9014_v42 = vpop.f32.mrf.mxu0 }
 0x4e6   :  { %v9179_v17 = vpop.f32.mrf.mxu1  ;;  %v15200_v42 = vld [vmem:[#allocation48_spill] sm:$0xff] }
 0x4e7   :  { %15196 = vst [vmem:[#allocation42_spill] sm:$0xff] %v13321_v55  ;;  %v4595_v9 = vpop.f32.mrf.mxu0  ;;  %9112 = vmatmul.mubr.msk.bf16.gmra.mxu0 %vm410_vm4, %v15197_v1 }
 0x4e8   :  { %v5245_v25 = vpop.f32.mrf.mxu1  ;;  %v4868_v48 = vadd.f32 %v4595_v9, %v15198_v22  ;;  %9115 = vmatprep.mubr.msk.bf16.mxu0 %vm9764_vm1, %v14854_v10 }
 0x4e9   :  { %v13329_v31 = vadd.f32 %v5245_v25, %v4867_v27  ;;  %v9017_v51 = vpop.f32.mrf.mxu0  ;;  %v5004_v27 = vrot.slane %v15016_v54, 1  ;;  %v15202_v25 = vld [vmem:[#allocation121_spill] sm:$0xff] }
 0x4ea   :  { %v9180_v50 = vpop.f32.mrf.mxu1  ;;  %v15203_v51 = vld [vmem:[#allocation55_spill] sm:$0xff] }
 0x4eb   :  { %15199 = vst [vmem:[#allocation105_spill] sm:$0xff] %v13329_v31  ;;  %v4598_v41 = vpop.f32.mrf.mxu0 }
 0x4ec   :  { %v5250_v57 = vpop.f32.mrf.mxu1  ;;  %9278 = vmatmul.mubr.msk.bf16.gmra.mxu1 %vm410_vm4, %v5003_v14  ;;  %v4869_v17 = vadd.f32 %v4598_v41, %v15200_v42  ;;  %v5005_v14 = vsel %vm4934_vm7, %v5002_v35, %v5004_v27 }
 0x4ed   :  { %v13336_v55 = vadd.f32 %v5250_v57, %v4868_v48  ;;  %9281 = vmatprep.mubr.msk.bf16.mxu1 %vm9764_vm1, %v14854_v10  ;;  %v9018_v9 = vpop.f32.mrf.mxu0 }
 0x4ee   :  { %v9183_v8 = vpop.f32.mrf.mxu1  ;;  %v15205_v9 = vld [vmem:[#allocation122_spill] sm:$0xff] }
 0x4ef   :  { %15201 = vst [vmem:[#allocation90_spill] sm:$0xff] %v13336_v55  ;;  %v4603_v1 = vpop.f32.mrf.mxu0  ;;  %9116 = vmatmul.mubr.msk.bf16.gmra.mxu0 %vm410_vm4, %v15202_v25 }
 0x4f0   :  { %v5253_v22 = vpop.f32.mrf.mxu1  ;;  %v4870_v50 = vadd.f32 %v4603_v1, %v15203_v51  ;;  %9119 = vmatprep.mubr.msk.bf16.mxu0 %vm9764_vm1, %v14854_v10 }
 0x4f1   :  { %v13344_v31 = vadd.f32 %v5253_v22, %v4869_v17  ;;  %v9021_v48 = vpop.f32.mrf.mxu0  ;;  %v5006_v17 = vrot.slane %v15025_v0, 1  ;;  %v15207_v22 = vld [vmem:[#allocation56_spill] sm:$0xff] }
 0x4f2   :  { %v9184_v41 = vpop.f32.mrf.mxu1  ;;  %v15208_v48 = vld [vmem:[#allocation49_spill] sm:$0xff] }
 0x4f3   :  { %15204 = vst [vmem:[#allocation43_spill] sm:$0xff] %v13344_v31  ;;  %v4606_v57 = vpop.f32.mrf.mxu0 }
 0x4f4   :  { %v5258_v42 = vpop.f32.mrf.mxu1  ;;  %9282 = vmatmul.mubr.msk.bf16.gmra.mxu1 %vm410_vm4, %v5005_v14  ;;  %v4871_v8 = vadd.f32 %v4606_v57, %v15205_v9  ;;  %v5007_v14 = vsel %vm4934_vm7, %v5004_v27, %v5006_v17 }
 0x4f5   :  { %v13351_v55 = vadd.f32 %v5258_v42, %v4870_v50  ;;  %9285 = vmatprep.mubr.msk.bf16.mxu1 %vm9764_vm1, %v14854_v10  ;;  %v9022_v1 = vpop.f32.mrf.mxu0 }
 0x4f6   :  { %v9187_v35 = vpop.f32.mrf.mxu1  ;;  %v15209_v1 = vld [vmem:[#allocation52_spill] sm:$0xff] }
 0x4f7   :  { %15206 = vst [vmem:[#allocation26_spill] sm:$0xff] %v13351_v55  ;;  %v4611_v25 = vpop.f32.mrf.mxu0  ;;  %9120 = vmatmul.mubr.msk.bf16.gmra.mxu0 %vm410_vm4, %v15207_v22 }
 0x4f8   :  { %v5261_v51 = vpop.f32.mrf.mxu1  ;;  %v4872_v41 = vadd.f32 %v4611_v25, %v15208_v48  ;;  %9123 = vmatprep.mubr.msk.bf16.mxu0 %vm9764_vm1, %v14854_v10  ;;  %v15211_v48 = vld [vmem:[#allocation57_spill] sm:$0xff] }
 0x4f9   :  { %v13359_v31 = vadd.f32 %v5261_v51, %v4871_v8  ;;  %v9025_v50 = vpop.f32.mrf.mxu0  ;;  %v5008_v8 = vrot.slane %v15027_v4, 1 }
 0x4fa   :  { %v9188_v57 = vpop.f32.mrf.mxu1 }
 0x4fb   :  { %v4614_v42 = vpop.f32.mrf.mxu0 }
 0x4fc   :  { %v5266_v9 = vpop.f32.mrf.mxu1  ;;  %9286 = vmatmul.mubr.msk.bf16.gmra.mxu1 %vm410_vm4, %v5007_v14  ;;  %v4873_v35 = vadd.f32 %v4614_v42, %v15209_v1  ;;  %v5009_v14 = vsel %vm4934_vm7, %v5006_v17, %v5008_v8  ;;  %v5010_v17 = vrot.slane %v12714_v24, 1 }
 0x4fd   :  { %v13366_v55 = vadd.f32 %v5266_v9, %v4872_v41  ;;  %9289 = vmatprep.mubr.msk.bf16.mxu1 %vm9764_vm1, %v14854_v10  ;;  %v9026_v25 = vpop.f32.mrf.mxu0 }
 0x4fe   :  { %v9191_v27 = vpop.f32.mrf.mxu1  ;;  %v15213_v25 = vld [vmem:[#allocation124_spill] sm:$0xff] }
 0x4ff   :  { %15210 = vst [vmem:[#allocation106_spill] sm:$0xff] %v13366_v55  ;;  %v4619_v22 = vpop.f32.mrf.mxu0  ;;  %9124 = vmatmul.mubr.msk.bf16.gmra.mxu0 %vm410_vm4, %v12724_v62  ;;  %v113_v62 = vld [vmem:[%s14369_s0 + $0x15c] sm:$0xf] }
 0x500   :  { %v5269_v51 = vpop.f32.mrf.mxu1  ;;  %v4874_v50 = vadd.f32 %v4619_v22, %v15211_v48  ;;  %9127 = vmatprep.mubr.msk.bf16.mxu0 %vm9764_vm1, %v14854_v10  ;;  %v9737_v48 = vld [vmem:[%s14369_s0 + $0x158] sm:$0xf] }
 0x501   :  { %v13374_v57 = vadd.f32 %v5269_v51, %v4873_v35  ;;  %v9029_v41 = vpop.f32.mrf.mxu0 }
 0x502   :  { %v9192_v42 = vpop.f32.mrf.mxu1 }
 0x503   :  { %15212 = vst [vmem:[#allocation91_spill] sm:$0xff] %v13374_v57  ;;  %v4622_v9 = vpop.f32.mrf.mxu0  ;;  %v15215_v42 = vld [vmem:[#allocation126_spill] sm:$0xff] }
 0x504   :  { %v5274_v1 = vpop.f32.mrf.mxu1  ;;  %9290 = vmatmul.mubr.msk.bf16.gmra.mxu1 %vm410_vm4, %v5009_v14  ;;  %v4875_v27 = vadd.f32 %v4622_v9, %v15213_v25  ;;  %v13392_v14 = vcombine.low %v9737_v48, %v113_v62  ;;  %v15217_v48 = vld [vmem:[#allocation95_spill] sm:$0xff] }
 0x505   :  { %v13384_v22 = vadd.f32 %v5274_v1, %v4874_v50  ;;  %9293 = vmatprep.mubr.msk.bf16.mxu1 %vm9764_vm1, %v14854_v10  ;;  %v9030_v35 = vpop.f32.mrf.mxu0  ;;  %v15216_v50 = vld [vmem:[#allocation125_spill] sm:$0xff] }
 0x506   :  { %v9195_v51 = vpop.f32.mrf.mxu1  ;;  %v14627_v62 = vshll.u32 %v13392_v14, 16 }
 0x507   :  { %15214 = vst [vmem:[#allocation46_spill] sm:$0xff] %v13384_v22  ;;  %v4627_v41 = vpop.f32.mrf.mxu0  ;;  %9128 = vmatmul.mubr.msk.bf16.gmra.mxu0 %vm410_vm4, %v15215_v42  ;;  %v5011_v22 = vsel %vm4934_vm7, %v5008_v8, %v5010_v17  ;;  %v5012_v8 = vrot.slane %v15037_v39, 1 }
 0x508   :  { %v5277_v9 = vpop.f32.mrf.mxu1  ;;  %v4876_v1 = vadd.f32 %v4627_v41, %v15216_v50  ;;  %9131 = vmatprep.mubr.msk.bf16.mxu0 %vm9764_vm1, %v14854_v10 }
 0x509   :  { %v13397_v25 = vadd.f32 %v5277_v9, %v4875_v27  ;;  %v9033_v35 = vpop.f32.mrf.mxu0 }
 0x50a   :  { %v9196_v51 = vpop.f32.mrf.mxu1 }
 0x50b   :  { %v4630_v57 = vpop.f32.mrf.mxu0 }
 0x50c   :  { %v5282_v24 = vpop.f32.mrf.mxu1  ;;  %9294 = vmatmul.mubr.msk.bf16.gmra.mxu1 %vm410_vm4, %v5011_v22  ;;  %v4877_v42 = vadd.f32 %v4630_v57, %v15217_v48  ;;  %v4470_v22 = vrot.slane %v14627_v62, 1 }
 0x50d   :  { %v13405_v55 = vadd.f32 %v5282_v24, %v4876_v1  ;;  %9297 = vmatprep.mubr.msk.bf16.mxu1 %vm9764_vm1, %v14854_v10  ;;  %v9034_v27 = vpop.f32.mrf.mxu0  ;;  %v5013_v24 = vsel %vm4934_vm7, %v5010_v17, %v5012_v8  ;;  %v13423_v1 = vld [vmem:[%s14369_s0 + $0x160] ss:$0 sps:$4 sm:$0xff]  }
 0x50e   :  { %v9199_v41 = vpop.f32.mrf.mxu1 }
 0x50f   :  { %v4635_v9 = vpop.f32.mrf.mxu0  ;;  %9132 = vmatmul.mubr.msk.bf16.gmra.mxu0 %vm410_vm4, %v12773_v44 }
 0x510   :  { %v5285_v50 = vpop.f32.mrf.mxu1  ;;  %v4878_v35 = vadd.f32 %v4635_v9, %v12766_v53  ;;  %9135 = vmatprep.mubr.msk.bf16.mxu0 %vm9764_vm1, %v14854_v10  ;;  %v4471_v53 = vsel %vm3598_vm6, %v12790_v36, %v4470_v22  ;;  %v14629_v9 = vshrl.u32 %v13392_v14, 16 }
 0x511   :  { %v13415_v57 = vadd.f32 %v5285_v50, %v4877_v42  ;;  %v9037_v51 = vpop.f32.mrf.mxu0  ;;  %v5014_v42 = vrot.slane %v13392_v14, 1  ;;  %v14628_v50 = vshll.u32 %v13423_v1, 16 }
 0x512   :  { %v9200_v44 = vpop.f32.mrf.mxu1 }
 0x513   :  { %15218 = vst [vmem:[#allocation107_spill] sm:$0xff] %v13415_v57  ;;  %v4638_v48 = vpop.f32.mrf.mxu0  ;;  %v5015_v36 = vsel %vm4934_vm7, %v5012_v8, %v5014_v42  ;;  %v15220_v8 = vld [vmem:[#allocation127_spill] sm:$0xff] }
 0x514   :  { %v5290_v27 = vpop.f32.mrf.mxu1  ;;  %9298 = vmatmul.mubr.msk.bf16.gmra.mxu1 %vm410_vm4, %v5013_v24  ;;  %v4879_v17 = vadd.f32 %v4638_v48, %v12776_v19  ;;  %v4478_v48 = vrot.slane %v14628_v50, 1 }
 0x515   :  { %v13430_v41 = vadd.f32 %v5290_v27, %v4878_v35  ;;  %9301 = vmatprep.mubr.msk.bf16.mxu1 %vm9764_vm1, %v14854_v10  ;;  %v9038_v51 = vpop.f32.mrf.mxu0  ;;  %v4474_v35 = vor.u32 %v14629_v9, %v4470_v22  ;;  %v5016_v22 = vrot.slane %v13423_v1, 1 }
 0x516   :  { %v9203_v44 = vpop.f32.mrf.mxu1 }
 0x517   :  { %15219 = vst [vmem:[#allocation92_spill] sm:$0xff] %v13430_v41  ;;  %v4643_v62 = vpop.f32.mrf.mxu0  ;;  %9136 = vmatmul.mubr.msk.bf16.gmra.mxu0 %vm410_vm4, %v4471_v53 }
 0x518   :  { %v5293_v24 = vpop.f32.mrf.mxu1  ;;  %v4880_v57 = vadd.f32 %v4643_v62, %v12784_v28  ;;  %9139 = vmatprep.mubr.msk.bf16.mxu0 %vm9764_vm1, %v14854_v10  ;;  %v4479_v62 = vsel %vm3598_vm6, %v4474_v35, %v4478_v48 }
 0x519   :  { %v13439_v19 = vadd.f32 %v5293_v24, %v4879_v17  ;;  %v9041_v27 = vpop.f32.mrf.mxu0 }
 0x51a   :  { %v9204_v51 = vpop.f32.mrf.mxu1 }
 0x51b   :  { %v4646_v44 = vpop.f32.mrf.mxu0  ;;  %v15221_v51 = vld [vmem:[#allocation128_spill] sm:$0xff] }
 0x51c   :  { %v5298_v53 = vpop.f32.mrf.mxu1  ;;  %9302 = vmatmul.mubr.msk.bf16.gmra.mxu1 %vm410_vm4, %v5015_v36  ;;  %v4881_v41 = vadd.f32 %v4646_v44, %v15220_v8  ;;  %v15222_v8 = vshrl.u32 %v15044_v23, 16 }
 0x51d   :  { %v13449_v28 = vadd.f32 %v5298_v53, %v4880_v57  ;;  %9305 = vmatprep.mubr.msk.bf16.mxu1 %vm9764_vm1, %v14854_v10  ;;  %v9042_v17 = vpop.f32.mrf.mxu0  ;;  %v5017_v57 = vsel %vm4934_vm7, %v5014_v42, %v5016_v22 }
 0x51e   :  { %v9207_v24 = vpop.f32.mrf.mxu1  ;;  %v5597_v17 = vrot.slane %v15222_v8, 1 }
 0x51f   :  { %v4651_v50 = vpop.f32.mrf.mxu0  ;;  %9140 = vmatmul.mubr.msk.bf16.gmra.mxu0 %vm410_vm4, %v4479_v62  ;;  %v15223_v62 = vshll.u32 %v15044_v23, 16 }
 0x520   :  { %v5301_v27 = vpop.f32.mrf.mxu1  ;;  %v4882_v9 = vadd.f32 %v4651_v50, %v15221_v51  ;;  %9311 = vmatprep.mubr.msk.bf16.mxu0 %vm9764_vm1, %v14854_v10 }
 0x521   :  { %v13457_v36 = vadd.f32 %v5301_v27, %v4881_v41  ;;  %v9045_v35 = vpop.f32.mrf.mxu0  ;;  %v5598_v24 = vrot.slane %v15223_v62, 2  ;;  %v15227_v62 = vld [vmem:[#allocation5_spill] sm:$0xff] }
 0x522   :  { %v9208_v48 = vpop.f32.mrf.mxu1  ;;  %v15225_v35 = vld [vmem:[#allocation129_spill] sm:$0xff] }
 0x523   :  { %v4654_v44 = vpop.f32.mrf.mxu0 }
 0x524   :  { %v5306_v53 = vpop.f32.mrf.mxu1  ;;  %9306 = vmatmul.mubr.msk.bf16.gmra.mxu1 %vm410_vm4, %v5017_v57  ;;  %v4883_v41 = vadd.f32 %v4654_v44, %v12819_v40  ;;  %v5599_v57 = vor.u32 %v5598_v24, %v5597_v17  ;;  %v15229_v24 = vld [vmem:[#allocation9_spill] sm:$0xff] }
 0x525   :  { %v13468_v50 = vadd.f32 %v5306_v53, %v4882_v9  ;;  %9477 = vmatprep.mubr.msk.bf16.mxu1 %vm9764_vm1, %v14854_v10  ;;  %v9046_v42 = vpop.f32.mrf.mxu0 }
 0x526   :  { %v9211_v22 = vpop.f32.mrf.mxu1  ;;  %v5600_v42 = vsel %vm5589_vm8, %v13200_v59, %v5599_v57  ;;  %v15232_v59 = vld [vmem:[#allocation8_spill] sm:$0xff] }
 0x527   :  { %15224 = vst [vmem:[#allocation47_spill] sm:$0xff] %v13468_v50  ;;  %v4659_v27 = vpop.f32.mrf.mxu0  ;;  %9312 = vmatmul.mubr.msk.bf16.vlgmr.msra.gmra.mxu0 %vm410_vm4, %v13204_v63 }
 0x528   :  { %v5309_v51 = vpop.f32.mrf.mxu1  ;;  %v4884_v48 = vadd.f32 %v4659_v27, %v15225_v35  ;;  %9315 = vmatprep.mubr.msk.bf16.mxu0 %vm9764_vm1, %v14854_v10  ;;  %v15231_v27 = vshll.u32 %v15229_v24, 16 }
 0x529   :  { %v13475_v8 = vadd.f32 %v5309_v51, %v4883_v41  ;;  %v9049_v40 = vpop.f32.mrf.mxu0  ;;  %v15230_v41 = vshrl.u32 %v15229_v24, 16 }
 0x52a   :  { %v9212_v9 = vpop.f32.mrf.mxu1  ;;  %v5602_v51 = vrot.slane %v15231_v27, 2  ;;  %v15234_v27 = vshrl.u32 %v15053_v21, 16 }
 0x52b   :  { %15226 = vst [vmem:[#allocation28_spill] sm:$0xff] %v13475_v8  ;;  %v4662_v44 = vpop.f32.mrf.mxu0  ;;  %v5601_v22 = vrot.slane %v15230_v41, 1 }
 0x52c   :  { %v5314_v53 = vpop.f32.mrf.mxu1  ;;  %9478 = vmatmul.mubr.msk.bf16.vlgmr.msra.gmra.mxu1 %vm410_vm4, %v15227_v62  ;;  %v4885_v63 = vadd.f32 %v4662_v44, %v12835_v12 }
 0x52d   :  { %v13484_v17 = vadd.f32 %v5314_v53, %v4884_v48  ;;  %9481 = vmatprep.mubr.msk.bf16.mxu1 %vm9764_vm1, %v14854_v10  ;;  %v9050_v35 = vpop.f32.mrf.mxu0  ;;  %v5603_v48 = vor.u32 %v5602_v51, %v5601_v22 }
 0x52e   :  { %v9215_v40 = vpop.f32.mrf.mxu1  ;;  %v5605_v35 = vrot.slane %v15234_v27, 1  ;;  %v15237_v27 = vld [vmem:[#allocation58_spill] sm:$0xff] }
 0x52f   :  { %15228 = vst [vmem:[#allocation50_spill] sm:$0xff] %v13484_v17  ;;  %v4667_v9 = vpop.f32.mrf.mxu0  ;;  %9316 = vmatmul.mubr.msk.bf16.gmra.mxu0 %vm410_vm4, %v5600_v42  ;;  %v15235_v42 = vshll.u32 %v15053_v21, 16 }
 0x530   :  { %v5317_v62 = vpop.f32.mrf.mxu1  ;;  %v4886_v8 = vadd.f32 %v4667_v9, %v15232_v59  ;;  %9319 = vmatprep.mubr.msk.bf16.mxu0 %vm9764_vm1, %v14854_v10  ;;  %v15236_v9 = vld [vmem:[#allocation60_spill] sm:$0xff]  ;;  %v5604_v59 = vsel %vm5589_vm8, %v5599_v57, %v5603_v48 }
 0x531   :  { %v13494_v12 = vadd.f32 %v5317_v62, %v4885_v63  ;;  %v9053_v44 = vpop.f32.mrf.mxu0  ;;  %v5606_v40 = vrot.slane %v15235_v42, 2 }
 0x532   :  { %v9216_v53 = vpop.f32.mrf.mxu1 }
 0x533   :  { %15233 = vst [vmem:[#allocation93_spill] sm:$0xff] %v13494_v12  ;;  %v4670_v41 = vpop.f32.mrf.mxu0 }
 0x534   :  { %v5322_v17 = vpop.f32.mrf.mxu1  ;;  %9482 = vmatmul.mubr.msk.bf16.gmra.mxu1 %vm410_vm4, %v14845_v5  ;;  %v4887_v63 = vadd.f32 %v4670_v41, %v15236_v9  ;;  %v5607_v5 = vor.u32 %v5606_v40, %v5605_v35  ;;  %v15239_v35 = vld [vmem:[#allocation11_spill] sm:$0xff] }
 0x535   :  { %v13505_v62 = vadd.f32 %v5322_v17, %v4886_v8  ;;  %9485 = vmatprep.mubr.msk.bf16.mxu1 %vm9764_vm1, %v14854_v10  ;;  %v9054_v22 = vpop.f32.mrf.mxu0  ;;  %v15240_v40 = vshrl.u32 %v15239_v35, 16 }
 0x536   :  { %v9219_v51 = vpop.f32.mrf.mxu1  ;;  %v5608_v42 = vsel %vm5589_vm8, %v5603_v48, %v5607_v5  ;;  %v15241_v22 = vshll.u32 %v15239_v35, 16 }
 0x537   :  { %v4675_v44 = vpop.f32.mrf.mxu0  ;;  %9320 = vmatmul.mubr.msk.bf16.gmra.mxu0 %vm410_vm4, %v5604_v59 }
 0x538   :  { %v5325_v53 = vpop.f32.mrf.mxu1  ;;  %v4888_v12 = vadd.f32 %v4675_v44, %v15237_v27  ;;  %9323 = vmatprep.mubr.msk.bf16.mxu0 %vm9764_vm1, %v14854_v10  ;;  %v5610_v51 = vrot.slane %v15241_v22, 2  ;;  %v15244_v22 = vshrl.u32 %v15062_v11, 16 }
 0x539   :  { %v13512_v50 = vadd.f32 %v5325_v53, %v4887_v63  ;;  %v9057_v8 = vpop.f32.mrf.mxu0  ;;  %v5609_v63 = vrot.slane %v15240_v40, 1 }
 0x53a   :  { %v9220_v17 = vpop.f32.mrf.mxu1 }
 0x53b   :  { %v4678_v57 = vpop.f32.mrf.mxu0 }
 0x53c   :  { %v5330_v41 = vpop.f32.mrf.mxu1  ;;  %9486 = vmatmul.mubr.msk.bf16.gmra.mxu1 %vm410_vm4, %v14846_v16  ;;  %v4889_v9 = vadd.f32 %v4678_v57, %v12865_v32  ;;  %v15242_v16 = vld [vmem:[#allocation59_spill] sm:$0xff] }
 0x53d   :  { %v13520_v59 = vadd.f32 %v5330_v41, %v4888_v12  ;;  %9489 = vmatprep.mubr.msk.bf16.mxu1 %vm9764_vm1, %v14854_v10  ;;  %v9058_v44 = vpop.f32.mrf.mxu0  ;;  %v5611_v12 = vor.u32 %v5610_v51, %v5609_v63 }
 0x53e   :  { %v9223_v53 = vpop.f32.mrf.mxu1  ;;  %v5613_v44 = vrot.slane %v15244_v22, 1  ;;  %v15247_v22 = vld [vmem:[#allocation62_spill] sm:$0xff] }
 0x53f   :  { %15238 = vst [vmem:[#allocation29_spill] sm:$0xff] %v13520_v59  ;;  %v4683_v27 = vpop.f32.mrf.mxu0  ;;  %9324 = vmatmul.mubr.msk.bf16.gmra.mxu0 %vm410_vm4, %v5608_v42  ;;  %v15245_v42 = vshll.u32 %v15062_v11, 16 }
 0x540   :  { %v5333_v8 = vpop.f32.mrf.mxu1  ;;  %v4890_v48 = vadd.f32 %v4683_v27, %v15242_v16  ;;  %9327 = vmatprep.mubr.msk.bf16.mxu0 %vm9764_vm1, %v14854_v10  ;;  %v15246_v27 = vld [vmem:[#allocation61_spill] sm:$0xff]  ;;  %v5612_v16 = vsel %vm5589_vm8, %v5607_v5, %v5611_v12 }
 0x541   :  { %v13530_v32 = vadd.f32 %v5333_v8, %v4889_v9  ;;  %v9061_v17 = vpop.f32.mrf.mxu0  ;;  %v5614_v53 = vrot.slane %v15245_v42, 2 }
 0x542   :  { %v9224_v57 = vpop.f32.mrf.mxu1 }
 0x543   :  { %15243 = vst [vmem:[#allocation108_spill] sm:$0xff] %v13530_v32  ;;  %v4686_v41 = vpop.f32.mrf.mxu0 }
 0x544   :  { %v5338_v40 = vpop.f32.mrf.mxu1  ;;  %9490 = vmatmul.mubr.msk.bf16.gmra.mxu1 %vm410_vm4, %v15044_v23  ;;  %v4891_v9 = vadd.f32 %v4686_v41, %v15246_v27  ;;  %v5615_v23 = vor.u32 %v5614_v53, %v5613_v44  ;;  %v15249_v44 = vld [vmem:[#allocation13_spill] sm:$0xff] }
 0x545   :  { %v13541_v8 = vadd.f32 %v5338_v40, %v4890_v48  ;;  %9493 = vmatprep.mubr.msk.bf16.mxu1 %vm9764_vm1, %v14854_v10  ;;  %v9062_v63 = vpop.f32.mrf.mxu0  ;;  %v15250_v53 = vshrl.u32 %v15249_v44, 16 }
 0x546   :  { %v9227_v51 = vpop.f32.mrf.mxu1  ;;  %v5616_v42 = vsel %vm5589_vm8, %v5611_v12, %v5615_v23  ;;  %v15251_v63 = vshll.u32 %v15249_v44, 16 }
 0x547   :  { %v4691_v17 = vpop.f32.mrf.mxu0  ;;  %9328 = vmatmul.mubr.msk.bf16.gmra.mxu0 %vm410_vm4, %v5612_v16 }
 0x548   :  { %v5341_v57 = vpop.f32.mrf.mxu1  ;;  %v4892_v32 = vadd.f32 %v4691_v17, %v15247_v22  ;;  %9331 = vmatprep.mubr.msk.bf16.mxu0 %vm9764_vm1, %v14854_v10  ;;  %v5618_v51 = vrot.slane %v15251_v63, 2  ;;  %v15254_v63 = vshrl.u32 %v15071_v47, 16 }
 0x549   :  { %v13548_v59 = vadd.f32 %v5341_v57, %v4891_v9  ;;  %v9065_v48 = vpop.f32.mrf.mxu0  ;;  %v5617_v9 = vrot.slane %v15250_v53, 1 }
 0x54a   :  { %v9228_v41 = vpop.f32.mrf.mxu1 }
 0x54b   :  { %v4694_v5 = vpop.f32.mrf.mxu0 }
 0x54c   :  { %v5346_v40 = vpop.f32.mrf.mxu1  ;;  %9494 = vmatmul.mubr.msk.bf16.gmra.mxu1 %vm410_vm4, %v15229_v24  ;;  %v4893_v27 = vadd.f32 %v4694_v5, %v12895_v18  ;;  %v15252_v24 = vld [vmem:[#allocation10_spill] sm:$0xff] }
 0x54d   :  { %v13556_v16 = vadd.f32 %v5346_v40, %v4892_v32  ;;  %9497 = vmatprep.mubr.msk.bf16.mxu1 %vm9764_vm1, %v14854_v10  ;;  %v9066_v17 = vpop.f32.mrf.mxu0  ;;  %v5619_v32 = vor.u32 %v5618_v51, %v5617_v9 }
 0x54e   :  { %v9231_v57 = vpop.f32.mrf.mxu1  ;;  %v5621_v17 = vrot.slane %v15254_v63, 1  ;;  %v15257_v63 = vld [vmem:[#allocation63_spill] sm:$0xff] }
 0x54f   :  { %15248 = vst [vmem:[#allocation94_spill] sm:$0xff] %v13556_v16  ;;  %v4699_v22 = vpop.f32.mrf.mxu0  ;;  %9332 = vmatmul.mubr.msk.bf16.gmra.mxu0 %vm410_vm4, %v5616_v42  ;;  %v15255_v42 = vshll.u32 %v15071_v47, 16 }
 0x550   :  { %v5349_v48 = vpop.f32.mrf.mxu1  ;;  %v4894_v12 = vadd.f32 %v4699_v22, %v15252_v24  ;;  %9335 = vmatprep.mubr.msk.bf16.mxu0 %vm9764_vm1, %v14854_v10  ;;  %v15256_v22 = vld [vmem:[#allocation65_spill] sm:$0xff]  ;;  %v5620_v24 = vsel %vm5589_vm8, %v5615_v23, %v5619_v32 }
 0x551   :  { %v13566_v18 = vadd.f32 %v5349_v48, %v4893_v27  ;;  %v9069_v41 = vpop.f32.mrf.mxu0  ;;  %v5622_v57 = vrot.slane %v15255_v42, 2 }
 0x552   :  { %v9232_v5 = vpop.f32.mrf.mxu1 }
 0x553   :  { %15253 = vst [vmem:[#allocation109_spill] sm:$0xff] %v13566_v18  ;;  %v4702_v40 = vpop.f32.mrf.mxu0 }
 0x554   :  { %v5354_v53 = vpop.f32.mrf.mxu1  ;;  %9498 = vmatmul.mubr.msk.bf16.gmra.mxu1 %vm410_vm4, %v15053_v21  ;;  %v4895_v27 = vadd.f32 %v4702_v40, %v15256_v22  ;;  %v5623_v21 = vor.u32 %v5622_v57, %v5621_v17  ;;  %v15259_v17 = vld [vmem:[#allocation15_spill] sm:$0xff] }
 0x555   :  { %v13577_v48 = vadd.f32 %v5354_v53, %v4894_v12  ;;  %9501 = vmatprep.mubr.msk.bf16.mxu1 %vm9764_vm1, %v14854_v10  ;;  %v9070_v9 = vpop.f32.mrf.mxu0  ;;  %v15260_v57 = vshrl.u32 %v15259_v17, 16 }
 0x556   :  { %v9235_v51 = vpop.f32.mrf.mxu1  ;;  %v5624_v42 = vsel %vm5589_vm8, %v5619_v32, %v5623_v21  ;;  %v15261_v9 = vshll.u32 %v15259_v17, 16 }
 0x557   :  { %v4707_v41 = vpop.f32.mrf.mxu0  ;;  %9336 = vmatmul.mubr.msk.bf16.gmra.mxu0 %vm410_vm4, %v5620_v24 }
 0x558   :  { %v5357_v5 = vpop.f32.mrf.mxu1  ;;  %v4896_v18 = vadd.f32 %v4707_v41, %v15257_v63  ;;  %9339 = vmatprep.mubr.msk.bf16.mxu0 %vm9764_vm1, %v14854_v10  ;;  %v5626_v51 = vrot.slane %v15261_v9, 2  ;;  %v15264_v9 = vshrl.u32 %v15080_v2, 16 }
 0x559   :  { %v13584_v16 = vadd.f32 %v5357_v5, %v4895_v27  ;;  %v9073_v12 = vpop.f32.mrf.mxu0  ;;  %v5625_v27 = vrot.slane %v15260_v57, 1 }
 0x55a   :  { %v9236_v40 = vpop.f32.mrf.mxu1 }
 0x55b   :  { %v4710_v23 = vpop.f32.mrf.mxu0 }
 0x55c   :  { %v5362_v53 = vpop.f32.mrf.mxu1  ;;  %9502 = vmatmul.mubr.msk.bf16.gmra.mxu1 %vm410_vm4, %v15239_v35  ;;  %v4897_v22 = vadd.f32 %v4710_v23, %v12925_v52  ;;  %v15262_v35 = vld [vmem:[#allocation64_spill] sm:$0xff] }
 0x55d   :  { %v13592_v24 = vadd.f32 %v5362_v53, %v4896_v18  ;;  %9505 = vmatprep.mubr.msk.bf16.mxu1 %vm9764_vm1, %v14854_v10  ;;  %v9074_v41 = vpop.f32.mrf.mxu0  ;;  %v5627_v18 = vor.u32 %v5626_v51, %v5625_v27 }
 0x55e   :  { %v9239_v5 = vpop.f32.mrf.mxu1  ;;  %v5629_v41 = vrot.slane %v15264_v9, 1  ;;  %v15267_v9 = vld [vmem:[#allocation67_spill] sm:$0xff] }
 0x55f   :  { %15258 = vst [vmem:[#allocation53_spill] sm:$0xff] %v13592_v24  ;;  %v4715_v63 = vpop.f32.mrf.mxu0  ;;  %9340 = vmatmul.mubr.msk.bf16.gmra.mxu0 %vm410_vm4, %v5624_v42  ;;  %v15265_v42 = vshll.u32 %v15080_v2, 16 }
 0x560   :  { %v5365_v12 = vpop.f32.mrf.mxu1  ;;  %v4898_v32 = vadd.f32 %v4715_v63, %v15262_v35  ;;  %9343 = vmatprep.mubr.msk.bf16.mxu0 %vm9764_vm1, %v14854_v10  ;;  %v15266_v63 = vld [vmem:[#allocation66_spill] sm:$0xff]  ;;  %v5628_v35 = vsel %vm5589_vm8, %v5623_v21, %v5627_v18 }
 0x561   :  { %v13602_v52 = vadd.f32 %v5365_v12, %v4897_v22  ;;  %v9077_v40 = vpop.f32.mrf.mxu0  ;;  %v5630_v5 = vrot.slane %v15265_v42, 2 }
 0x562   :  { %v9240_v23 = vpop.f32.mrf.mxu1 }
 0x563   :  { %15263 = vst [vmem:[#allocation51_spill] sm:$0xff] %v13602_v52  ;;  %v4718_v53 = vpop.f32.mrf.mxu0 }
 0x564   :  { %v5370_v57 = vpop.f32.mrf.mxu1  ;;  %9506 = vmatmul.mubr.msk.bf16.gmra.mxu1 %vm410_vm4, %v15062_v11  ;;  %v4899_v22 = vadd.f32 %v4718_v53, %v15266_v63  ;;  %v5631_v11 = vor.u32 %v5630_v5, %v5629_v41  ;;  %v15270_v41 = vld [vmem:[#allocation17_spill] sm:$0xff] }
 0x565   :  { %v13613_v12 = vadd.f32 %v5370_v57, %v4898_v32  ;;  %9509 = vmatprep.mubr.msk.bf16.mxu1 %vm9764_vm1, %v14854_v10  ;;  %v9078_v27 = vpop.f32.mrf.mxu0  ;;  %v15271_v5 = vshrl.u32 %v15270_v41, 16 }
 0x566   :  { %v9243_v51 = vpop.f32.mrf.mxu1  ;;  %v5632_v42 = vsel %vm5589_vm8, %v5627_v18, %v5631_v11  ;;  %v15272_v27 = vshll.u32 %v15270_v41, 16 }
 0x567   :  { %v4723_v40 = vpop.f32.mrf.mxu0  ;;  %9344 = vmatmul.mubr.msk.bf16.gmra.mxu0 %vm410_vm4, %v5628_v35 }
 0x568   :  { %v5373_v23 = vpop.f32.mrf.mxu1  ;;  %v4900_v52 = vadd.f32 %v4723_v40, %v15267_v9  ;;  %9347 = vmatprep.mubr.msk.bf16.mxu0 %vm9764_vm1, %v14854_v10  ;;  %v5634_v51 = vrot.slane %v15272_v27, 2  ;;  %v15275_v27 = vld [vmem:[#allocation18_spill] sm:$0xff] }
 0x569   :  { %v13620_v24 = vadd.f32 %v5373_v23, %v4899_v22  ;;  %v9081_v32 = vpop.f32.mrf.mxu0  ;;  %v5633_v22 = vrot.slane %v15271_v5, 1 }
 0x56a   :  { %v9244_v53 = vpop.f32.mrf.mxu1 }
 0x56b   :  { %15268 = vst [vmem:[#allocation110_spill] sm:$0xff] %v13620_v24  ;;  %v4726_v21 = vpop.f32.mrf.mxu0 }
 0x56c   :  { %v5378_v57 = vpop.f32.mrf.mxu1  ;;  %9510 = vmatmul.mubr.msk.bf16.gmra.mxu1 %vm410_vm4, %v15249_v44  ;;  %v4901_v63 = vadd.f32 %v4726_v21, %v12955_v56  ;;  %v15273_v44 = vld [vmem:[#allocation12_spill] sm:$0xff] }
 0x56d   :  { %v13628_v35 = vadd.f32 %v5378_v57, %v4900_v52  ;;  %9513 = vmatprep.mubr.msk.bf16.mxu1 %vm9764_vm1, %v14854_v10  ;;  %v9082_v40 = vpop.f32.mrf.mxu0  ;;  %v5635_v52 = vor.u32 %v5634_v51, %v5633_v22 }
 0x56e   :  { %v9247_v23 = vpop.f32.mrf.mxu1  ;;  %v15276_v40 = vshrl.u32 %v15275_v27, 16 }
 0x56f   :  { %15269 = vst [vmem:[#allocation96_spill] sm:$0xff] %v13628_v35  ;;  %v4731_v9 = vpop.f32.mrf.mxu0  ;;  %9348 = vmatmul.mubr.msk.bf16.gmra.mxu0 %vm410_vm4, %v5632_v42  ;;  %v15277_v42 = vshll.u32 %v15275_v27, 16 }
 0x570   :  { %v5381_v32 = vpop.f32.mrf.mxu1  ;;  %v4902_v18 = vadd.f32 %v4731_v9, %v15273_v44  ;;  %9351 = vmatprep.mubr.msk.bf16.mxu0 %vm9764_vm1, %v14854_v10  ;;  %v5637_v23 = vrot.slane %v15276_v40, 1  ;;  %v15278_v9 = vld [vmem:[#allocation70_spill] sm:$0xff]  ;;  %v5636_v44 = vsel %vm5589_vm8, %v5631_v11, %v5635_v52  ;;  %v15280_v40 = vld [vmem:[#allocation68_spill] sm:$0xff] }
 0x571   :  { %v13638_v56 = vadd.f32 %v5381_v32, %v4901_v63  ;;  %v9085_v53 = vpop.f32.mrf.mxu0  ;;  %v5638_v35 = vrot.slane %v15277_v42, 2 }
 0x572   :  { %v9248_v21 = vpop.f32.mrf.mxu1 }
 0x573   :  { %15274 = vst [vmem:[#allocation111_spill] sm:$0xff] %v13638_v56  ;;  %v4734_v57 = vpop.f32.mrf.mxu0 }
 0x574   :  { %v5386_v5 = vpop.f32.mrf.mxu1  ;;  %9514 = vmatmul.mubr.msk.bf16.gmra.mxu1 %vm410_vm4, %v15071_v47  ;;  %v4903_v63 = vadd.f32 %v4734_v57, %v15278_v9  ;;  %v5639_v47 = vor.u32 %v5638_v35, %v5637_v23  ;;  %v15282_v9 = vld [vmem:[#allocation69_spill] sm:$0xff]  ;;  %v15284_v35 = vld [vmem:[#allocation19_spill] sm:$0xff] }
 0x575   :  { %v13649_v32 = vadd.f32 %v5386_v5, %v4902_v18  ;;  %9517 = vmatprep.mubr.msk.bf16.mxu1 %vm9764_vm1, %v14854_v10  ;;  %v9086_v22 = vpop.f32.mrf.mxu0  ;;  %v15285_v23 = vshrl.u32 %v15284_v35, 16 }
 0x576   :  { %v9251_v51 = vpop.f32.mrf.mxu1  ;;  %v5640_v42 = vsel %vm5589_vm8, %v5635_v52, %v5639_v47 }
 0x577   :  { %15279 = vst [vmem:[#allocation32_spill] sm:$0xff] %v13649_v32  ;;  %v4739_v53 = vpop.f32.mrf.mxu0  ;;  %9352 = vmatmul.mubr.msk.bf16.gmra.mxu0 %vm410_vm4, %v5636_v44  ;;  %v15286_v51 = vshll.u32 %v15284_v35, 16 }
 0x578   :  { %v5389_v21 = vpop.f32.mrf.mxu1  ;;  %v4904_v56 = vadd.f32 %v4739_v53, %v15280_v40  ;;  %9355 = vmatprep.mubr.msk.bf16.mxu0 %vm9764_vm1, %v14854_v10 }
 0x579   :  { %v13656_v24 = vadd.f32 %v5389_v21, %v4903_v63  ;;  %v9089_v18 = vpop.f32.mrf.mxu0  ;;  %v5641_v63 = vrot.slane %v15285_v23, 1  ;;  %v5642_v53 = vrot.slane %v15286_v51, 2  ;;  %v15289_v51 = vld [vmem:[#allocation20_spill] sm:$0xff] }
 0x57a   :  { %v9252_v57 = vpop.f32.mrf.mxu1 }
 0x57b   :  { %15281 = vst [vmem:[#allocation33_spill] sm:$0xff] %v13656_v24  ;;  %v4742_v11 = vpop.f32.mrf.mxu0 }
 0x57c   :  { %v5394_v5 = vpop.f32.mrf.mxu1  ;;  %9518 = vmatmul.mubr.msk.bf16.gmra.mxu1 %vm410_vm4, %v15259_v17  ;;  %v4905_v22 = vadd.f32 %v4742_v11, %v15282_v9  ;;  %v15287_v17 = vld [vmem:[#allocation6_spill] sm:$0xff] }
 0x57d   :  { %v13664_v44 = vadd.f32 %v5394_v5, %v4904_v56  ;;  %9521 = vmatprep.mubr.msk.bf16.mxu1 %vm9764_vm1, %v14854_v10  ;;  %v9090_v21 = vpop.f32.mrf.mxu0  ;;  %v5643_v56 = vor.u32 %v5642_v53, %v5641_v63 }
 0x57e   :  { %v9255_v40 = vpop.f32.mrf.mxu1  ;;  %v15290_v21 = vshrl.u32 %v15289_v51, 16 }
 0x57f   :  { %15283 = vst [vmem:[#allocation112_spill] sm:$0xff] %v13664_v44  ;;  %v4747_v18 = vpop.f32.mrf.mxu0  ;;  %9356 = vmatmul.mubr.msk.bf16.gmra.mxu0 %vm410_vm4, %v5640_v42  ;;  %v15291_v42 = vshll.u32 %v15289_v51, 16 }
 0x580   :  { %v5397_v57 = vpop.f32.mrf.mxu1  ;;  %v4906_v52 = vadd.f32 %v4747_v18, %v15287_v17  ;;  %9359 = vmatprep.mubr.msk.bf16.mxu0 %vm9764_vm1, %v14854_v10  ;;  %v5645_v40 = vrot.slane %v15290_v21, 1  ;;  %v15292_v18 = vld [vmem:[#allocation7_spill] sm:$0xff]  ;;  %v5644_v17 = vsel %vm5589_vm8, %v5639_v47, %v5643_v56  ;;  %v15294_v21 = vld [vmem:[#allocation14_spill] sm:$0xff] }
 0x581   :  { %v13674_v11 = vadd.f32 %v5397_v57, %v4905_v22  ;;  %v9093_v5 = vpop.f32.mrf.mxu0  ;;  %v5646_v24 = vrot.slane %v15291_v42, 2 }
 0x582   :  { %v9256_v9 = vpop.f32.mrf.mxu1 }
 0x583   :  { %15288 = vst [vmem:[#allocation113_spill] sm:$0xff] %v13674_v11  ;;  %v4750_v23 = vpop.f32.mrf.mxu0 }
 0x584   :  { %v5402_v44 = vpop.f32.mrf.mxu1  ;;  %9522 = vmatmul.mubr.msk.bf16.gmra.mxu1 %vm410_vm4, %v15080_v2  ;;  %v4907_v22 = vadd.f32 %v4750_v23, %v15292_v18  ;;  %v5647_v2 = vor.u32 %v5646_v24, %v5645_v40  ;;  %v15296_v18 = vld [vmem:[#allocation73_spill] sm:$0xff] }
 0x585   :  { %v13685_v57 = vadd.f32 %v5402_v44, %v4906_v52  ;;  %9525 = vmatprep.mubr.msk.bf16.mxu1 %vm9764_vm1, %v14854_v10  ;;  %v9094_v63 = vpop.f32.mrf.mxu0  ;;  %v15298_v24 = vld [vmem:[#allocation21_spill] sm:$0xff] }
 0x586   :  { %v9259_v53 = vpop.f32.mrf.mxu1  ;;  %v5648_v42 = vsel %vm5589_vm8, %v5643_v56, %v5647_v2  ;;  %v15299_v40 = vshrl.u32 %v15298_v24, 16 }
 0x587   :  { %15293 = vst [vmem:[#allocation34_spill] sm:$0xff] %v13685_v57  ;;  %v4755_v5 = vpop.f32.mrf.mxu0  ;;  %9360 = vmatmul.mubr.msk.bf16.gmra.mxu0 %vm410_vm4, %v5644_v17  ;;  %v15300_v53 = vshll.u32 %v15298_v24, 16 }
 0x588   :  { %v5405_v9 = vpop.f32.mrf.mxu1  ;;  %v4908_v11 = vadd.f32 %v4755_v5, %v15294_v21  ;;  %9363 = vmatprep.mubr.msk.bf16.mxu0 %vm9764_vm1, %v14854_v10 }
 0x589   :  { %v13692_v32 = vadd.f32 %v5405_v9, %v4907_v22  ;;  %v9097_v44 = vpop.f32.mrf.mxu0  ;;  %v5649_v22 = vrot.slane %v15299_v40, 1  ;;  %v5650_v5 = vrot.slane %v15300_v53, 2  ;;  %v15303_v53 = vld [vmem:[#allocation22_spill] sm:$0xff] }
 0x58a   :  { %v9260_v52 = vpop.f32.mrf.mxu1 }
 0x58b   :  { %15295 = vst [vmem:[#allocation36_spill] sm:$0xff] %v13692_v32  ;;  %v4758_v47 = vpop.f32.mrf.mxu0 }
 0x58c   :  { %v5410_v23 = vpop.f32.mrf.mxu1  ;;  %9526 = vmatmul.mubr.msk.bf16.gmra.mxu1 %vm410_vm4, %v15270_v41  ;;  %v4909_v63 = vadd.f32 %v4758_v47, %v15296_v18  ;;  %v15301_v41 = vld [vmem:[#allocation71_spill] sm:$0xff] }
 0x58d   :  { %v13700_v17 = vadd.f32 %v5410_v23, %v4908_v11  ;;  %9529 = vmatprep.mubr.msk.bf16.mxu1 %vm9764_vm1, %v14854_v10  ;;  %v9098_v9 = vpop.f32.mrf.mxu0  ;;  %v5651_v11 = vor.u32 %v5650_v5, %v5649_v22 }
 0x58e   :  { %v9263_v21 = vpop.f32.mrf.mxu1  ;;  %v15304_v9 = vshrl.u32 %v15303_v53, 16 }
 0x58f   :  { %15297 = vst [vmem:[#allocation114_spill] sm:$0xff] %v13700_v17  ;;  %v4763_v44 = vpop.f32.mrf.mxu0  ;;  %9364 = vmatmul.mubr.msk.bf16.gmra.mxu0 %vm410_vm4, %v5648_v42  ;;  %v15305_v42 = vshll.u32 %v15303_v53, 16 }
 0x590   :  { %v5413_v52 = vpop.f32.mrf.mxu1  ;;  %v4910_v56 = vadd.f32 %v4763_v44, %v15301_v41  ;;  %9367 = vmatprep.mubr.msk.bf16.mxu0 %vm9764_vm1, %v14854_v10  ;;  %v5653_v21 = vrot.slane %v15304_v9, 1  ;;  %v15306_v44 = vld [vmem:[#allocation72_spill] sm:$0xff]  ;;  %v5652_v41 = vsel %vm5589_vm8, %v5647_v2, %v5651_v11  ;;  %v15308_v9 = vld [vmem:[#allocation74_spill] sm:$0xff] }
 0x591   :  { %v13710_v47 = vadd.f32 %v5413_v52, %v4909_v63  ;;  %v9101_v23 = vpop.f32.mrf.mxu0  ;;  %v5654_v32 = vrot.slane %v15305_v42, 2 }
 0x592   :  { %v9264_v18 = vpop.f32.mrf.mxu1 }
 0x593   :  { %15302 = vst [vmem:[#allocation115_spill] sm:$0xff] %v13710_v47  ;;  %v4766_v40 = vpop.f32.mrf.mxu0 }
 0x594   :  { %v5418_v17 = vpop.f32.mrf.mxu1  ;;  %9530 = vmatmul.mubr.msk.bf16.gmra.mxu1 %vm410_vm4, %v15275_v27  ;;  %v4911_v63 = vadd.f32 %v4766_v40, %v15306_v44  ;;  %v5655_v27 = vor.u32 %v5654_v32, %v5653_v21  ;;  %v15310_v44 = vld [vmem:[#allocation75_spill] sm:$0xff] }
 0x595   :  { %v13721_v52 = vadd.f32 %v5418_v17, %v4910_v56  ;;  %9533 = vmatprep.mubr.msk.bf16.mxu1 %vm9764_vm1, %v14854_v10  ;;  %v9102_v22 = vpop.f32.mrf.mxu0  ;;  %v15312_v32 = vld [vmem:[#allocation23_spill] sm:$0xff] }
 0x596   :  { %v9267_v5 = vpop.f32.mrf.mxu1  ;;  %v5656_v42 = vsel %vm5589_vm8, %v5651_v11, %v5655_v27  ;;  %v15313_v21 = vshrl.u32 %v15312_v32, 16 }
 0x597   :  { %15307 = vst [vmem:[#allocation37_spill] sm:$0xff] %v13721_v52  ;;  %v4771_v23 = vpop.f32.mrf.mxu0  ;;  %9368 = vmatmul.mubr.msk.bf16.gmra.mxu0 %vm410_vm4, %v5652_v41  ;;  %v15314_v5 = vshll.u32 %v15312_v32, 16 }
 0x598   :  { %v5421_v18 = vpop.f32.mrf.mxu1  ;;  %v4912_v47 = vadd.f32 %v4771_v23, %v15308_v9  ;;  %9371 = vmatprep.mubr.msk.bf16.mxu0 %vm9764_vm1, %v14854_v10 }
 0x599   :  { %v13728_v57 = vadd.f32 %v5421_v18, %v4911_v63  ;;  %v9105_v17 = vpop.f32.mrf.mxu0  ;;  %v5657_v63 = vrot.slane %v15313_v21, 1  ;;  %v5658_v23 = vrot.slane %v15314_v5, 2  ;;  %v15317_v5 = vld [vmem:[#allocation24_spill] sm:$0xff] }
 0x59a   :  { %v9268_v56 = vpop.f32.mrf.mxu1 }
 0x59b   :  { %15309 = vst [vmem:[#allocation40_spill] sm:$0xff] %v13728_v57  ;;  %v4774_v2 = vpop.f32.mrf.mxu0 }
 0x59c   :  { %v5426_v40 = vpop.f32.mrf.mxu1  ;;  %9534 = vmatmul.mubr.msk.bf16.gmra.mxu1 %vm410_vm4, %v15284_v35  ;;  %v4913_v22 = vadd.f32 %v4774_v2, %v15310_v44  ;;  %v15315_v35 = vld [vmem:[#allocation16_spill] sm:$0xff] }
 0x59d   :  { %v13736_v41 = vadd.f32 %v5426_v40, %v4912_v47  ;;  %9537 = vmatprep.mubr.msk.bf16.mxu1 %vm9764_vm1, %v14854_v10  ;;  %v9106_v18 = vpop.f32.mrf.mxu0  ;;  %v5659_v47 = vor.u32 %v5658_v23, %v5657_v63 }
 0x59e   :  { %v9271_v9 = vpop.f32.mrf.mxu1  ;;  %v15318_v18 = vshrl.u32 %v15317_v5, 16 }
 0x59f   :  { %15311 = vst [vmem:[#allocation116_spill] sm:$0xff] %v13736_v41  ;;  %v4779_v17 = vpop.f32.mrf.mxu0  ;;  %9372 = vmatmul.mubr.msk.bf16.gmra.mxu0 %vm410_vm4, %v5656_v42  ;;  %v15319_v42 = vshll.u32 %v15317_v5, 16 }
 0x5a0   :  { %v5429_v56 = vpop.f32.mrf.mxu1  ;;  %v4914_v11 = vadd.f32 %v4779_v17, %v15315_v35  ;;  %9375 = vmatprep.mubr.msk.bf16.mxu0 %vm9764_vm1, %v14854_v10  ;;  %v5661_v9 = vrot.slane %v15318_v18, 1  ;;  %v15320_v17 = vld [vmem:[#allocation78_spill] sm:$0xff]  ;;  %v5660_v35 = vsel %vm5589_vm8, %v5655_v27, %v5659_v47  ;;  %v15321_v18 = vld [vmem:[#allocation76_spill] sm:$0xff] }
 0x5a1   :  { %v13746_v2 = vadd.f32 %v5429_v56, %v4913_v22  ;;  %v9109_v40 = vpop.f32.mrf.mxu0  ;;  %v5662_v57 = vrot.slane %v15319_v42, 2 }
 0x5a2   :  { %v9272_v44 = vpop.f32.mrf.mxu1 }
 0x5a3   :  { %15316 = vst [vmem:[#allocation117_spill] sm:$0xff] %v13746_v2  ;;  %v4782_v21 = vpop.f32.mrf.mxu0 }
 0x5a4   :  { %v5434_v41 = vpop.f32.mrf.mxu1  ;;  %9538 = vmatmul.mubr.msk.bf16.gmra.mxu1 %vm410_vm4, %v15289_v51  ;;  %v4915_v22 = vadd.f32 %v4782_v21, %v15320_v17  ;;  %v5663_v51 = vor.u32 %v5662_v57, %v5661_v9  ;;  %v15323_v17 = vld [vmem:[#allocation77_spill] sm:$0xff] }
 0x5a5   :  { %v13757_v56 = vadd.f32 %v5434_v41, %v4914_v11  ;;  %9541 = vmatprep.mubr.msk.bf16.mxu1 %vm9764_vm1, %v14854_v10  ;;  %v9110_v63 = vpop.f32.mrf.mxu0  ;;  %v15325_v57 = vld [vmem:[#allocation25_spill] sm:$0xff] }
 0x5a6   :  { %v9275_v23 = vpop.f32.mrf.mxu1  ;;  %v5664_v42 = vsel %vm5589_vm8, %v5659_v47, %v5663_v51  ;;  %v15326_v9 = vshrl.u32 %v15325_v57, 16 }
 0x5a7   :  { %v4787_v40 = vpop.f32.mrf.mxu0  ;;  %9376 = vmatmul.mubr.msk.bf16.gmra.mxu0 %vm410_vm4, %v5660_v35  ;;  %v15327_v23 = vshll.u32 %v15325_v57, 16 }
 0x5a8   :  { %v5437_v44 = vpop.f32.mrf.mxu1  ;;  %v4916_v2 = vadd.f32 %v4787_v40, %v15321_v18  ;;  %9379 = vmatprep.mubr.msk.bf16.mxu0 %vm9764_vm1, %v14854_v10 }
 0x5a9   :  { %v13764_v52 = vadd.f32 %v5437_v44, %v4915_v22  ;;  %v9113_v41 = vpop.f32.mrf.mxu0  ;;  %v5665_v22 = vrot.slane %v15326_v9, 1  ;;  %v5666_v40 = vrot.slane %v15327_v23, 2  ;;  %v15330_v23 = vshrl.u32 %v15137_v6, 16 }
 0x5aa   :  { %v9276_v11 = vpop.f32.mrf.mxu1 }
 0x5ab   :  { %15322 = vst [vmem:[#allocation41_spill] sm:$0xff] %v13764_v52  ;;  %v4790_v27 = vpop.f32.mrf.mxu0 }
 0x5ac   :  { %v5442_v21 = vpop.f32.mrf.mxu1  ;;  %9542 = vmatmul.mubr.msk.bf16.gmra.mxu1 %vm410_vm4, %v15298_v24  ;;  %v4917_v63 = vadd.f32 %v4790_v27, %v15323_v17  ;;  %v15328_v24 = vld [vmem:[#allocation79_spill] sm:$0xff] }
 0x5ad   :  { %v13772_v35 = vadd.f32 %v5442_v21, %v4916_v2  ;;  %9545 = vmatprep.mubr.msk.bf16.mxu1 %vm9764_vm1, %v14854_v10  ;;  %v9114_v44 = vpop.f32.mrf.mxu0  ;;  %v5667_v2 = vor.u32 %v5666_v40, %v5665_v22 }
 0x5ae   :  { %v9279_v18 = vpop.f32.mrf.mxu1  ;;  %v5669_v44 = vrot.slane %v15330_v23, 1  ;;  %v15333_v23 = vld [vmem:[#allocation97_spill] sm:$0xff] }
 0x5af   :  { %15324 = vst [vmem:[#allocation44_spill] sm:$0xff] %v13772_v35  ;;  %v4795_v41 = vpop.f32.mrf.mxu0  ;;  %9380 = vmatmul.mubr.msk.bf16.gmra.mxu0 %vm410_vm4, %v5664_v42  ;;  %v15331_v42 = vshll.u32 %v15137_v6, 16 }
 0x5b0   :  { %v5445_v11 = vpop.f32.mrf.mxu1  ;;  %v4918_v47 = vadd.f32 %v4795_v41, %v15328_v24  ;;  %9383 = vmatprep.mubr.msk.bf16.mxu0 %vm9764_vm1, %v14854_v10  ;;  %v15332_v41 = vld [vmem:[#allocation80_spill] sm:$0xff]  ;;  %v5668_v24 = vsel %vm5589_vm8, %v5663_v51, %v5667_v2 }
 0x5b1   :  { %v13782_v27 = vadd.f32 %v5445_v11, %v4917_v63  ;;  %v9117_v21 = vpop.f32.mrf.mxu0  ;;  %v5670_v18 = vrot.slane %v15331_v42, 2 }
 0x5b2   :  { %v9280_v17 = vpop.f32.mrf.mxu1 }
 0x5b3   :  { %15329 = vst [vmem:[#allocation119_spill] sm:$0xff] %v13782_v27  ;;  %v4798_v9 = vpop.f32.mrf.mxu0 }
 0x5b4   :  { %v5450_v35 = vpop.f32.mrf.mxu1  ;;  %9546 = vmatmul.mubr.msk.bf16.gmra.mxu1 %vm410_vm4, %v15303_v53  ;;  %v4919_v63 = vadd.f32 %v4798_v9, %v15332_v41  ;;  %v5671_v53 = vor.u32 %v5670_v18, %v5669_v44  ;;  %v15335_v41 = vld [vmem:[#allocation81_spill] sm:$0xff]  ;;  %v15337_v44 = vld [vmem:[#allocation27_spill] sm:$0xff] }
 0x5b5   :  { %v13793_v11 = vadd.f32 %v5450_v35, %v4918_v47  ;;  %9549 = vmatprep.mubr.msk.bf16.mxu1 %vm9764_vm1, %v14854_v10  ;;  %v9118_v22 = vpop.f32.mrf.mxu0  ;;  %v15338_v18 = vshrl.u32 %v15337_v44, 16 }
 0x5b6   :  { %v9283_v40 = vpop.f32.mrf.mxu1  ;;  %v5672_v42 = vsel %vm5589_vm8, %v5667_v2, %v5671_v53 }
 0x5b7   :  { %v4803_v21 = vpop.f32.mrf.mxu0  ;;  %9384 = vmatmul.mubr.msk.bf16.gmra.mxu0 %vm410_vm4, %v5668_v24  ;;  %v15339_v40 = vshll.u32 %v15337_v44, 16 }
 0x5b8   :  { %v5453_v17 = vpop.f32.mrf.mxu1  ;;  %v4920_v27 = vadd.f32 %v4803_v21, %v15333_v23  ;;  %9387 = vmatprep.mubr.msk.bf16.mxu0 %vm9764_vm1, %v14854_v10 }
 0x5b9   :  { %v13800_v52 = vadd.f32 %v5453_v17, %v4919_v63  ;;  %v9121_v35 = vpop.f32.mrf.mxu0  ;;  %v5673_v63 = vrot.slane %v15338_v18, 1  ;;  %v5674_v21 = vrot.slane %v15339_v40, 2  ;;  %v15342_v40 = vshrl.u32 %v15148_v3, 16 }
 0x5ba   :  { %v9284_v47 = vpop.f32.mrf.mxu1 }
 0x5bb   :  { %15334 = vst [vmem:[#allocation118_spill] sm:$0xff] %v13800_v52  ;;  %v4806_v51 = vpop.f32.mrf.mxu0 }
 0x5bc   :  { %v5458_v9 = vpop.f32.mrf.mxu1  ;;  %9550 = vmatmul.mubr.msk.bf16.gmra.mxu1 %vm410_vm4, %v15312_v32  ;;  %v4921_v22 = vadd.f32 %v4806_v51, %v15335_v41  ;;  %v15340_v32 = vld [vmem:[#allocation82_spill] sm:$0xff] }
 0x5bd   :  { %v13808_v24 = vadd.f32 %v5458_v9, %v4920_v27  ;;  %9553 = vmatprep.mubr.msk.bf16.mxu1 %vm9764_vm1, %v14854_v10  ;;  %v9122_v17 = vpop.f32.mrf.mxu0  ;;  %v5675_v27 = vor.u32 %v5674_v21, %v5673_v63 }
 0x5be   :  { %v9287_v23 = vpop.f32.mrf.mxu1  ;;  %v5677_v17 = vrot.slane %v15342_v40, 1  ;;  %v15345_v40 = vld [vmem:[#allocation83_spill] sm:$0xff] }
 0x5bf   :  { %15336 = vst [vmem:[#allocation120_spill] sm:$0xff] %v13808_v24  ;;  %v4811_v35 = vpop.f32.mrf.mxu0  ;;  %9388 = vmatmul.mubr.msk.bf16.gmra.mxu0 %vm410_vm4, %v5672_v42  ;;  %v15343_v42 = vshll.u32 %v15148_v3, 16 }
 0x5c0   :  { %v5461_v47 = vpop.f32.mrf.mxu1  ;;  %v4922_v2 = vadd.f32 %v4811_v35, %v15340_v32  ;;  %9391 = vmatprep.mubr.msk.bf16.mxu0 %vm9764_vm1, %v14854_v10  ;;  %v15344_v35 = vld [vmem:[#allocation98_spill] sm:$0xff]  ;;  %v5676_v32 = vsel %vm5589_vm8, %v5671_v53, %v5675_v27 }
 0x5c1   :  { %v13818_v51 = vadd.f32 %v5461_v47, %v4921_v22  ;;  %v9125_v9 = vpop.f32.mrf.mxu0  ;;  %v5678_v23 = vrot.slane %v15343_v42, 2 }
 0x5c2   :  { %v9288_v41 = vpop.f32.mrf.mxu1 }
 0x5c3   :  { %15341 = vst [vmem:[#allocation54_spill] sm:$0xff] %v13818_v51  ;;  %v4814_v18 = vpop.f32.mrf.mxu0 }
 0x5c4   :  { %v5466_v24 = vpop.f32.mrf.mxu1  ;;  %9554 = vmatmul.mubr.msk.bf16.gmra.mxu1 %vm410_vm4, %v15317_v5  ;;  %v4923_v22 = vadd.f32 %v4814_v18, %v15344_v35  ;;  %v5679_v5 = vor.u32 %v5678_v23, %v5677_v17  ;;  %v15347_v35 = vld [vmem:[#allocation99_spill] sm:$0xff]  ;;  %v15349_v17 = vshrl.u32 %v14965_v13, 16 }
 0x5c5   :  { %v13829_v47 = vadd.f32 %v5466_v24, %v4922_v2  ;;  %9557 = vmatprep.mubr.msk.bf16.mxu1 %vm9764_vm1, %v14854_v10  ;;  %v9126_v63 = vpop.f32.mrf.mxu0 }
 0x5c6   :  { %v9291_v21 = vpop.f32.mrf.mxu1  ;;  %v5680_v42 = vsel %vm5589_vm8, %v5675_v27, %v5679_v5  ;;  %v5681_v23 = vrot.slane %v15349_v17, 1 }
 0x5c7   :  { %v4819_v9 = vpop.f32.mrf.mxu0  ;;  %9392 = vmatmul.mubr.msk.bf16.gmra.mxu0 %vm410_vm4, %v5676_v32 }
 0x5c8   :  { %v5469_v41 = vpop.f32.mrf.mxu1  ;;  %v4924_v51 = vadd.f32 %v4819_v9, %v15345_v40  ;;  %9395 = vmatprep.mubr.msk.bf16.mxu0 %vm9764_vm1, %v14854_v10 }
 0x5c9   :  { %v13836_v52 = vadd.f32 %v5469_v41, %v4923_v22  ;;  %v9129_v24 = vpop.f32.mrf.mxu0  ;;  %v15350_v22 = vshll.u32 %v14965_v13, 16 }
 0x5ca   :  { %v9292_v2 = vpop.f32.mrf.mxu1 }
 0x5cb   :  { %15346 = vst [vmem:[#allocation45_spill] sm:$0xff] %v13836_v52  ;;  %v4822_v53 = vpop.f32.mrf.mxu0  ;;  %v5682_v21 = vrot.slane %v15350_v22, 2  ;;  %v15353_v22 = vld [vmem:[#allocation30_spill] sm:$0xff] }
 0x5cc   :  { %v5474_v18 = vpop.f32.mrf.mxu1  ;;  %9558 = vmatmul.mubr.msk.bf16.gmra.mxu1 %vm410_vm4, %v15325_v57  ;;  %v4925_v63 = vadd.f32 %v4822_v53, %v15347_v35  ;;  %v15351_v57 = vld [vmem:[#allocation100_spill] sm:$0xff] }
 0x5cd   :  { %v13844_v32 = vadd.f32 %v5474_v18, %v4924_v51  ;;  %9561 = vmatprep.mubr.msk.bf16.mxu1 %vm9764_vm1, %v14854_v10  ;;  %v9130_v9 = vpop.f32.mrf.mxu0  ;;  %v5683_v51 = vor.u32 %v5682_v21, %v5681_v23 }
 0x5ce   :  { %v9295_v41 = vpop.f32.mrf.mxu1  ;;  %v15354_v9 = vshrl.u32 %v15353_v22, 16 }
 0x5cf   :  { %15348 = vst [vmem:[#allocation48_spill] sm:$0xff] %v13844_v32  ;;  %v4827_v40 = vpop.f32.mrf.mxu0  ;;  %9396 = vmatmul.mubr.msk.bf16.gmra.mxu0 %vm410_vm4, %v5680_v42  ;;  %v15355_v42 = vshll.u32 %v15353_v22, 16 }
 0x5d0   :  { %v5477_v24 = vpop.f32.mrf.mxu1  ;;  %v4926_v27 = vadd.f32 %v4827_v40, %v15351_v57  ;;  %9399 = vmatprep.mubr.msk.bf16.mxu0 %vm9764_vm1, %v14854_v10  ;;  %v5685_v41 = vrot.slane %v15354_v9, 1  ;;  %v15356_v40 = vld [vmem:[#allocation84_spill] sm:$0xff]  ;;  %v5684_v57 = vsel %vm5589_vm8, %v5679_v5, %v5683_v51  ;;  %v15357_v9 = vld [vmem:[#allocation85_spill] sm:$0xff] }
 0x5d1   :  { %v13854_v2 = vadd.f32 %v5477_v24, %v4925_v63  ;;  %v9133_v53 = vpop.f32.mrf.mxu0  ;;  %v5686_v32 = vrot.slane %v15355_v42, 2 }
 0x5d2   :  { %v9296_v18 = vpop.f32.mrf.mxu1 }
 0x5d3   :  { %15352 = vst [vmem:[#allocation121_spill] sm:$0xff] %v13854_v2  ;;  %v4830_v35 = vpop.f32.mrf.mxu0 }
 0x5d4   :  { %v5482_v17 = vpop.f32.mrf.mxu1  ;;  %9562 = vmatmul.mubr.msk.bf16.gmra.mxu1 %vm410_vm4, %v15137_v6  ;;  %v4927_v63 = vadd.f32 %v4830_v35, %v15356_v40  ;;  %v5687_v6 = vor.u32 %v5686_v32, %v5685_v41  ;;  %v15358_v40 = vld [vmem:[#allocation101_spill] sm:$0xff]  ;;  %v15360_v32 = vld [vmem:[#allocation31_spill] sm:$0xff] }
 0x5d5   :  { %v13865_v24 = vadd.f32 %v5482_v17, %v4926_v27  ;;  %9565 = vmatprep.mubr.msk.bf16.mxu1 %vm9764_vm1, %v14854_v10  ;;  %v9134_v23 = vpop.f32.mrf.mxu0  ;;  %v15361_v41 = vshrl.u32 %v15360_v32, 16 }
 0x5d6   :  { %v9299_v21 = vpop.f32.mrf.mxu1  ;;  %v5688_v42 = vsel %vm5589_vm8, %v5683_v51, %v5687_v6 }
 0x5d7   :  { %v4835_v53 = vpop.f32.mrf.mxu0  ;;  %9400 = vmatmul.mubr.msk.bf16.gmra.mxu0 %vm410_vm4, %v5684_v57  ;;  %v15362_v21 = vshll.u32 %v15360_v32, 16 }
 0x5d8   :  { %v5485_v18 = vpop.f32.mrf.mxu1  ;;  %v4928_v2 = vadd.f32 %v4835_v53, %v15357_v9  ;;  %9403 = vmatprep.mubr.msk.bf16.mxu0 %vm9764_vm1, %v14854_v10 }
 0x5d9   :  { %v13872_v52 = vadd.f32 %v5485_v18, %v4927_v63  ;;  %v9137_v27 = vpop.f32.mrf.mxu0  ;;  %v5689_v63 = vrot.slane %v15361_v41, 1  ;;  %v5690_v53 = vrot.slane %v15362_v21, 2  ;;  %v15364_v21 = vshrl.u32 %v14984_v29, 16 }
 0x5da   :  { %v9300_v35 = vpop.f32.mrf.mxu1 }
 0x5db   :  { %v4838_v5 = vpop.f32.mrf.mxu0 }
 0x5dc   :  { %v5490_v17 = vpop.f32.mrf.mxu1  ;;  %9566 = vmatmul.mubr.msk.bf16.gmra.mxu1 %vm410_vm4, %v15337_v44  ;;  %v4929_v23 = vadd.f32 %v4838_v5, %v15358_v40  ;;  %v15363_v44 = vld [vmem:[#allocation86_spill] sm:$0xff] }
 0x5dd   :  { %v13880_v57 = vadd.f32 %v5490_v17, %v4928_v2  ;;  %9569 = vmatprep.mubr.msk.bf16.mxu1 %vm9764_vm1, %v14854_v10  ;;  %v9138_v18 = vpop.f32.mrf.mxu0  ;;  %v5691_v2 = vor.u32 %v5690_v53, %v5689_v63 }
 0x5de   :  { %v9303_v9 = vpop.f32.mrf.mxu1  ;;  %v5693_v18 = vrot.slane %v15364_v21, 1 }
 0x5df   :  { %15359 = vst [vmem:[#allocation55_spill] sm:$0xff] %v13880_v57  ;;  %v4843_v27 = vpop.f32.mrf.mxu0  ;;  %9404 = vmatmul.mubr.msk.bf16.gmra.mxu0 %vm410_vm4, %v5688_v42  ;;  %v15365_v42 = vshll.u32 %v14984_v29, 16 }
 0x5e0   :  { %v5493_v35 = vpop.f32.mrf.mxu1  ;;  %v4930_v51 = vadd.f32 %v4843_v27, %v15363_v44  ;;  %9407 = vmatprep.mubr.msk.bf16.mxu0 %vm9764_vm1, %v14854_v10 }
 0x5e1   :  { %v13890_v5 = vadd.f32 %v5493_v35, %v4929_v23  ;;  %v9141_v17 = vpop.f32.mrf.mxu0  ;;  %v5694_v9 = vrot.slane %v15365_v42, 2  ;;  %v5692_v35 = vsel %vm5589_vm8, %v5687_v6, %v5691_v2 }
 0x5e2   :  { %v9304_v40 = vpop.f32.mrf.mxu1 }
 0x5e3   :  { %v4846_v41 = vpop.f32.mrf.mxu0  ;;  %v5695_v40 = vor.u32 %v5694_v9, %v5693_v18 }
 0x5e4   :  { %v5498_v57 = vpop.f32.mrf.mxu1  ;;  %9570 = vmatmul.mubr.msk.bf16.gmra.mxu1 %vm410_vm4, %v15148_v3  ;;  %v4931_v23 = vadd.f32 %v4846_v41, %v13185_v46  ;;  %v13909_v3 = vld [vmem:[%s14371_s2] ss:$0 sm:$0xff] }
 0x5e5   :  { %v13901_v27 = vadd.f32 %v5498_v57, %v4930_v51  ;;  %9573 = vmatprep.mubr.msk.bf16.mxu1 %vm9764_vm1, %v14854_v10  ;;  %v9142_v63 = vpop.f32.mrf.mxu0  ;;  %v13920_v41 = vld [vmem:[%s14373_s4] ss:$0 sm:$0xff]  ;;  %v5696_v18 = vsel %vm5589_vm8, %v5691_v2, %v5695_v40 }
 0x5e6   :  { %v9307_v53 = vpop.f32.mrf.mxu1 }
 0x5e7   :  { %v5919_v17 = vpop.f32.mrf.mxu0  ;;  %9408 = vmatmul.mubr.msk.bf16.gmra.mxu0 %vm410_vm4, %v5692_v35 }
 0x5e8   :  { %v5501_v44 = vpop.f32.mrf.mxu1  ;;  %v6246_v57 = vadd.f32 %v5919_v17, %v13196_v43  ;;  %9411 = vmatprep.mubr.msk.bf16.mxu0 %vm9764_vm1, %v14854_v10  ;;  %v15366_v43 = vshrl.u32 %v14986_v37, 16 }
 0x5e9   :  { %v13912_v46 = vadd.f32 %v5501_v44, %v4931_v23  ;;  %v9313_v51 = vpop.f32.mrf.mxu0  ;;  %v15367_v44 = vshll.u32 %v14986_v37, 16 }
 0x5ea   :  { %v9308_v6 = vpop.f32.mrf.mxu1  ;;  %v6335_v21 = vadd.f32 %v13909_v3, %v6246_v57  ;;  %v5697_v9 = vrot.slane %v15366_v43, 1 }
 0x5eb   :  { %v5922_v42 = vpop.f32.mrf.mxu0  ;;  %v5698_v17 = vrot.slane %v15367_v44, 2 }
 0x5ec   :  { %v6544_v63 = vpop.f32.mrf.mxu1  ;;  %9574 = vmatmul.mubr.msk.bf16.gmra.mxu1 %vm410_vm4, %v14965_v13  ;;  %v6417_v23 = vmax.f32 %v6335_v21, 0.0  ;;  %v6247_v35 = vadd.f32 %v5922_v42, %v13209_v45 }
 0x5ed   :  { %v6545_v53 = vadd.f32 %v13920_v41, %v6544_v63  ;;  %9577 = vmatprep.mubr.msk.bf16.mxu1 %vm9764_vm1, %v14854_v10  ;;  %v9314_v57 = vpop.f32.mrf.mxu0  ;;  %v5699_v63 = vor.u32 %v5698_v17, %v5697_v9 }
 0x5ee   :  { %v9479_v6 = vpop.f32.mrf.mxu1  ;;  %v6336_v13 = vadd.f32 %v13909_v3, %v6247_v35 }
 0x5ef   :  { %v6871_v51 = vadd.f32 %v6545_v53, %v6417_v23  ;;  %v5927_v2 = vpop.f32.mrf.mxu0  ;;  %9412 = vmatmul.mubr.msk.bf16.gmra.mxu0 %vm410_vm4, %v5696_v18  ;;  %v15368_v18 = vshrl.u32 %v14991_v61, 16 }
 0x5f0   :  { %v6547_v43 = vpop.f32.mrf.mxu1  ;;  %v6418_v21 = vmax.f32 %v6336_v13, 0.0  ;;  %v6248_v45 = vadd.f32 %v5927_v2, %v13216_v20  ;;  %9415 = vmatprep.mubr.msk.bf16.mxu0 %vm9764_vm1, %v14854_v10  ;;  %v15369_v20 = vshll.u32 %v14991_v61, 16 }
 0x5f1   :  { %6953 = vst [vmem:[#allocation2] sm:$0xff] %v6871_v51  ;;  %v6548_v42 = vadd.f32 %v13920_v41, %v6547_v43  ;;  %v9317_v44 = vpop.f32.mrf.mxu0  ;;  %v5701_v13 = vrot.slane %v15368_v18, 1  ;;  %v15370_v43 = vld [vmem:[#allocation35_spill] sm:$0xff] }
 0x5f2   :  { %v9480_v57 = vpop.f32.mrf.mxu1  ;;  %v6337_v6 = vadd.f32 %v13909_v3, %v6248_v45  ;;  %v5702_v51 = vrot.slane %v15369_v20, 2  ;;  %v5700_v45 = vsel %vm5589_vm8, %v5695_v40, %v5699_v63 }
 0x5f3   :  { %v6872_v35 = vadd.f32 %v6548_v42, %v6418_v21  ;;  %v5930_v23 = vpop.f32.mrf.mxu0 }
 0x5f4   :  { %v6552_v53 = vpop.f32.mrf.mxu1  ;;  %9578 = vmatmul.mubr.msk.bf16.gmra.mxu1 %vm410_vm4, %v15353_v22  ;;  %v6419_v2 = vmax.f32 %v6337_v6, 0.0  ;;  %v6249_v9 = vadd.f32 %v5930_v23, %v15370_v43  ;;  %v5703_v6 = vor.u32 %v5702_v51, %v5701_v13  ;;  %v15371_v23 = vld [vmem:[#allocation102_spill] sm:$0xff]  ;;  %v15372_v51 = vshrl.u32 %v14993_v15, 16 }
 0x5f5   :  { %6954 = vst [vmem:[#allocation2 + $0x8] sm:$0xff] %v6872_v35  ;;  %v6553_v17 = vadd.f32 %v13920_v41, %v6552_v53  ;;  %9581 = vmatprep.mubr.msk.bf16.mxu1 %vm9764_vm1, %v14854_v10  ;;  %v9318_v21 = vpop.f32.mrf.mxu0 }
 0x5f6   :  { %v9483_v42 = vpop.f32.mrf.mxu1  ;;  %v6338_v22 = vadd.f32 %v13909_v3, %v6249_v9  ;;  %v5704_v13 = vsel %vm5589_vm8, %v5699_v63, %v5703_v6 }
 0x5f7   :  { %v6873_v44 = vadd.f32 %v6553_v17, %v6419_v2  ;;  %v5935_v57 = vpop.f32.mrf.mxu0  ;;  %9416 = vmatmul.mubr.msk.bf16.gmra.mxu0 %vm410_vm4, %v5700_v45  ;;  %v5705_v45 = vrot.slane %v15372_v51, 1 }
 0x5f8   :  { %v6555_v18 = vpop.f32.mrf.mxu1  ;;  %v6420_v35 = vmax.f32 %v6338_v22, 0.0  ;;  %v6250_v20 = vadd.f32 %v5935_v57, %v15371_v23  ;;  %9419 = vmatprep.mubr.msk.bf16.mxu0 %vm9764_vm1, %v14854_v10  ;;  %v15373_v57 = vshll.u32 %v14993_v15, 16 }
 0x5f9   :  { %6955 = vst [vmem:[#allocation2 + $0x10] sm:$0xff] %v6873_v44  ;;  %v6556_v53 = vadd.f32 %v13920_v41, %v6555_v18  ;;  %v9321_v40 = vpop.f32.mrf.mxu0 }
 0x5fa   :  { %v9484_v43 = vpop.f32.mrf.mxu1  ;;  %v6339_v21 = vadd.f32 %v13909_v3, %v6250_v20  ;;  %v5706_v18 = vrot.slane %v15373_v57, 2 }
 0x5fb   :  { %v6874_v9 = vadd.f32 %v6556_v53, %v6420_v35  ;;  %v5938_v2 = vpop.f32.mrf.mxu0 }
 0x5fc   :  { %v6560_v17 = vpop.f32.mrf.mxu1  ;;  %9582 = vmatmul.mubr.msk.bf16.gmra.mxu1 %vm410_vm4, %v15360_v32  ;;  %v6421_v42 = vmax.f32 %v6339_v21, 0.0  ;;  %v6251_v22 = vadd.f32 %v5938_v2, %v13239_v34  ;;  %v5707_v21 = vor.u32 %v5706_v18, %v5705_v45 }
 0x5fd   :  { %6956 = vst [vmem:[#allocation2 + $0x18] sm:$0xff] %v6874_v9  ;;  %v6561_v44 = vadd.f32 %v13920_v41, %v6560_v17  ;;  %9585 = vmatprep.mubr.msk.bf16.mxu1 %vm9764_vm1, %v14854_v10  ;;  %v9322_v35 = vpop.f32.mrf.mxu0 }
 0x5fe   :  { %v9487_v23 = vpop.f32.mrf.mxu1  ;;  %v6340_v32 = vadd.f32 %v13909_v3, %v6251_v22 }
 0x5ff   :  { %v6875_v63 = vadd.f32 %v6561_v44, %v6421_v42  ;;  %v5943_v20 = vpop.f32.mrf.mxu0  ;;  %9420 = vmatmul.mubr.msk.bf16.gmra.mxu0 %vm410_vm4, %v5704_v13  ;;  %v15374_v13 = vshrl.u32 %v14998_v7, 16  ;;  %v15376_v23 = vld [vmem:[#allocation87_spill] sm:$0xff] }
 0x600   :  { %v6563_v53 = vpop.f32.mrf.mxu1  ;;  %v6422_v40 = vmax.f32 %v6340_v32, 0.0  ;;  %v6252_v34 = vadd.f32 %v5943_v20, %v13246_v38  ;;  %9423 = vmatprep.mubr.msk.bf16.mxu0 %vm9764_vm1, %v14854_v10  ;;  %v15375_v38 = vshll.u32 %v14998_v7, 16  ;;  %v5708_v32 = vsel %vm5589_vm8, %v5703_v6, %v5707_v21 }
 0x601   :  { %6957 = vst [vmem:[#allocation2 + $0x20] sm:$0xff] %v6875_v63  ;;  %v6564_v43 = vadd.f32 %v13920_v41, %v6563_v53  ;;  %v9325_v9 = vpop.f32.mrf.mxu0  ;;  %v5709_v44 = vrot.slane %v15374_v13, 1 }
 0x602   :  { %v9488_v2 = vpop.f32.mrf.mxu1  ;;  %v6341_v17 = vadd.f32 %v13909_v3, %v6252_v34  ;;  %v5710_v57 = vrot.slane %v15375_v38, 2 }
 0x603   :  { %v6876_v51 = vadd.f32 %v6564_v43, %v6422_v40  ;;  %v5946_v42 = vpop.f32.mrf.mxu0  ;;  %v15377_v2 = vld [vmem:[#allocation38_spill] sm:$0xff] }
 0x604   :  { %v6568_v22 = vpop.f32.mrf.mxu1  ;;  %9586 = vmatmul.mubr.msk.bf16.gmra.mxu1 %vm410_vm4, %v14984_v29  ;;  %v6423_v35 = vmax.f32 %v6341_v17, 0.0  ;;  %v6253_v45 = vadd.f32 %v5946_v42, %v15376_v23  ;;  %v5711_v43 = vor.u32 %v5710_v57, %v5709_v44  ;;  %v15378_v57 = vshrl.u32 %v15000_v33, 16 }
 0x605   :  { %6958 = vst [vmem:[#allocation2 + $0x28] sm:$0xff] %v6876_v51  ;;  %v6569_v18 = vadd.f32 %v13920_v41, %v6568_v22  ;;  %9589 = vmatprep.mubr.msk.bf16.mxu1 %vm9764_vm1, %v14854_v10  ;;  %v9326_v63 = vpop.f32.mrf.mxu0 }
 0x606   :  { %v9491_v20 = vpop.f32.mrf.mxu1  ;;  %v6342_v29 = vadd.f32 %v13909_v3, %v6253_v45  ;;  %v5712_v44 = vsel %vm5589_vm8, %v5707_v21, %v5711_v43  ;;  %v5713_v23 = vrot.slane %v15378_v57, 1  ;;  %v15379_v63 = vshll.u32 %v15000_v33, 16 }
 0x607   :  { %v6877_v53 = vadd.f32 %v6569_v18, %v6423_v35  ;;  %v5951_v40 = vpop.f32.mrf.mxu0  ;;  %9424 = vmatmul.mubr.msk.bf16.gmra.mxu0 %vm410_vm4, %v5708_v32 }
 0x608   :  { %v6571_v34 = vpop.f32.mrf.mxu1  ;;  %v6424_v9 = vmax.f32 %v6342_v29, 0.0  ;;  %v6254_v17 = vadd.f32 %v5951_v40, %v15377_v2  ;;  %9427 = vmatprep.mubr.msk.bf16.mxu0 %vm9764_vm1, %v14854_v10  ;;  %v5714_v20 = vrot.slane %v15379_v63, 2 }
 0x609   :  { %6959 = vst [vmem:[#allocation2 + $0x30] sm:$0xff] %v6877_v53  ;;  %v6572_v51 = vadd.f32 %v13920_v41, %v6571_v34  ;;  %v9329_v6 = vpop.f32.mrf.mxu0 }
 0x60a   :  { %v9492_v42 = vpop.f32.mrf.mxu1  ;;  %v6343_v22 = vadd.f32 %v13909_v3, %v6254_v17  ;;  %v5715_v17 = vor.u32 %v5714_v20, %v5713_v23 }
 0x60b   :  { %v6878_v13 = vadd.f32 %v6572_v51, %v6424_v9  ;;  %v5954_v38 = vpop.f32.mrf.mxu0 }
 0x60c   :  { %v6576_v35 = vpop.f32.mrf.mxu1  ;;  %9590 = vmatmul.mubr.msk.bf16.gmra.mxu1 %vm410_vm4, %v14986_v37  ;;  %v6425_v45 = vmax.f32 %v6343_v22, 0.0  ;;  %v6255_v18 = vadd.f32 %v5954_v38, %v13269_v49  ;;  %v5716_v63 = vsel %vm5589_vm8, %v5711_v43, %v5715_v17 }
 0x60d   :  { %6960 = vst [vmem:[#allocation2 + $0x38] sm:$0xff] %v6878_v13  ;;  %v6577_v32 = vadd.f32 %v13920_v41, %v6576_v35  ;;  %9593 = vmatprep.mubr.msk.bf16.mxu1 %vm9764_vm1, %v14854_v10  ;;  %v9330_v29 = vpop.f32.mrf.mxu0  ;;  %v15380_v35 = vshrl.u32 %v15005_v26, 16 }
 0x60e   :  { %v9495_v53 = vpop.f32.mrf.mxu1  ;;  %v6344_v37 = vadd.f32 %v13909_v3, %v6255_v18  ;;  %v15382_v18 = vld [vmem:[#allocation103_spill] sm:$0xff] }
 0x60f   :  { %v6879_v21 = vadd.f32 %v6577_v32, %v6425_v45  ;;  %v5959_v40 = vpop.f32.mrf.mxu0  ;;  %9428 = vmatmul.mubr.msk.bf16.gmra.mxu0 %vm410_vm4, %v5712_v44  ;;  %v5717_v44 = vrot.slane %v15380_v35, 1  ;;  %v15384_v35 = vshrl.u32 %v15007_v60, 16 }
 0x610   :  { %v6579_v34 = vpop.f32.mrf.mxu1  ;;  %v6426_v9 = vmax.f32 %v6344_v37, 0.0  ;;  %v6256_v49 = vadd.f32 %v5959_v40, %v13276_v58  ;;  %9431 = vmatprep.mubr.msk.bf16.mxu0 %vm9764_vm1, %v14854_v10  ;;  %v15381_v58 = vshll.u32 %v15005_v26, 16 }
 0x611   :  { %6961 = vst [vmem:[#allocation2 + $0x40] sm:$0xff] %v6879_v21  ;;  %v6580_v2 = vadd.f32 %v13920_v41, %v6579_v34  ;;  %v9333_v51 = vpop.f32.mrf.mxu0 }
 0x612   :  { %v9496_v6 = vpop.f32.mrf.mxu1  ;;  %v6345_v42 = vadd.f32 %v13909_v3, %v6256_v49  ;;  %v5718_v57 = vrot.slane %v15381_v58, 2 }
 0x613   :  { %v6880_v22 = vadd.f32 %v6580_v2, %v6426_v9  ;;  %v5962_v13 = vpop.f32.mrf.mxu0  ;;  %v15383_v9 = vld [vmem:[#allocation88_spill] sm:$0xff] }
 0x614   :  { %v6584_v38 = vpop.f32.mrf.mxu1  ;;  %9594 = vmatmul.mubr.msk.bf16.gmra.mxu1 %vm410_vm4, %v14991_v61  ;;  %v6427_v45 = vmax.f32 %v6345_v42, 0.0  ;;  %v6257_v23 = vadd.f32 %v5962_v13, %v15382_v18  ;;  %v5719_v40 = vor.u32 %v5718_v57, %v5717_v44  ;;  %v5721_v44 = vrot.slane %v15384_v35, 1  ;;  %v15385_v57 = vld [vmem:[#allocation39_spill] sm:$0xff] }
 0x615   :  { %6962 = vst [vmem:[#allocation2 + $0x48] sm:$0xff] %v6880_v22  ;;  %v6585_v32 = vadd.f32 %v13920_v41, %v6584_v38  ;;  %9597 = vmatprep.mubr.msk.bf16.mxu1 %vm9764_vm1, %v14854_v10  ;;  %v9334_v20 = vpop.f32.mrf.mxu0 }
 0x616   :  { %v9499_v29 = vpop.f32.mrf.mxu1  ;;  %v6346_v61 = vadd.f32 %v13909_v3, %v6257_v23  ;;  %v5720_v38 = vsel %vm5589_vm8, %v5715_v17, %v5719_v40  ;;  %v15386_v23 = vshll.u32 %v15007_v60, 16 }
 0x617   :  { %v6881_v53 = vadd.f32 %v6585_v32, %v6427_v45  ;;  %v5967_v37 = vpop.f32.mrf.mxu0  ;;  %9432 = vmatmul.mubr.msk.bf16.gmra.mxu0 %vm410_vm4, %v5716_v63 }
 0x618   :  { %v6587_v21 = vpop.f32.mrf.mxu1  ;;  %v6428_v34 = vmax.f32 %v6346_v61, 0.0  ;;  %v6258_v49 = vadd.f32 %v5967_v37, %v15383_v9  ;;  %9435 = vmatprep.mubr.msk.bf16.mxu0 %vm9764_vm1, %v14854_v10  ;;  %v5722_v32 = vrot.slane %v15386_v23, 2  ;;  %v15387_v37 = vld [vmem:[#allocation104_spill] sm:$0xff] }
 0x619   :  { %6963 = vst [vmem:[#allocation2 + $0x50] sm:$0xff] %v6881_v53  ;;  %v6588_v2 = vadd.f32 %v13920_v41, %v6587_v21  ;;  %v9337_v43 = vpop.f32.mrf.mxu0 }
 0x61a   :  { %v9500_v51 = vpop.f32.mrf.mxu1  ;;  %v6347_v6 = vadd.f32 %v13909_v3, %v6258_v49  ;;  %v5723_v9 = vor.u32 %v5722_v32, %v5721_v44 }
 0x61b   :  { %v6882_v42 = vadd.f32 %v6588_v2, %v6428_v34  ;;  %v5970_v22 = vpop.f32.mrf.mxu0 }
 0x61c   :  { %v6592_v13 = vpop.f32.mrf.mxu1  ;;  %9598 = vmatmul.mubr.msk.bf16.gmra.mxu1 %vm410_vm4, %v14993_v15  ;;  %v6429_v58 = vmax.f32 %v6347_v6, 0.0  ;;  %v6259_v45 = vadd.f32 %v5970_v22, %v15385_v57  ;;  %v15388_v22 = vshrl.u32 %v15014_v30, 16  ;;  %v15390_v57 = vld [vmem:[#allocation89_spill] sm:$0xff] }
 0x61d   :  { %6964 = vst [vmem:[#allocation2 + $0x58] sm:$0xff] %v6882_v42  ;;  %v6593_v18 = vadd.f32 %v13920_v41, %v6592_v13  ;;  %9601 = vmatprep.mubr.msk.bf16.mxu1 %vm9764_vm1, %v14854_v10  ;;  %v9338_v63 = vpop.f32.mrf.mxu0 }
 0x61e   :  { %v9503_v20 = vpop.f32.mrf.mxu1  ;;  %v6348_v15 = vadd.f32 %v13909_v3, %v6259_v45  ;;  %v5725_v13 = vrot.slane %v15388_v22, 1 }
 0x61f   :  { %v6883_v17 = vadd.f32 %v6593_v18, %v6429_v58  ;;  %v5975_v29 = vpop.f32.mrf.mxu0  ;;  %9436 = vmatmul.mubr.msk.bf16.gmra.mxu0 %vm410_vm4, %v5720_v38  ;;  %v15389_v38 = vshll.u32 %v15014_v30, 16  ;;  %v5724_v18 = vsel %vm5589_vm8, %v5719_v40, %v5723_v9 }
 0x620   :  { %v6595_v61 = vpop.f32.mrf.mxu1  ;;  %v6430_v53 = vmax.f32 %v6348_v15, 0.0  ;;  %v6260_v21 = vadd.f32 %v5975_v29, %v15387_v37  ;;  %9439 = vmatprep.mubr.msk.bf16.mxu0 %vm9764_vm1, %v14854_v10 }
 0x621   :  { %6965 = vst [vmem:[#allocation2 + $0x60] sm:$0xff] %v6883_v17  ;;  %v6596_v34 = vadd.f32 %v13920_v41, %v6595_v61  ;;  %v9341_v49 = vpop.f32.mrf.mxu0  ;;  %v5726_v35 = vrot.slane %v15389_v38, 2  ;;  %v15391_v61 = vld [vmem:[#allocation42_spill] sm:$0xff] }
 0x622   :  { %v9504_v2 = vpop.f32.mrf.mxu1  ;;  %v6349_v43 = vadd.f32 %v13909_v3, %v6260_v21 }
 0x623   :  { %v6884_v51 = vadd.f32 %v6596_v34, %v6430_v53  ;;  %v5978_v6 = vpop.f32.mrf.mxu0  ;;  %v5727_v17 = vor.u32 %v5726_v35, %v5725_v13  ;;  %v15393_v13 = vld [vmem:[#allocation105_spill] sm:$0xff] }
 0x624   :  { %v6600_v42 = vpop.f32.mrf.mxu1  ;;  %9602 = vmatmul.mubr.msk.bf16.gmra.mxu1 %vm410_vm4, %v14998_v7  ;;  %v6431_v58 = vmax.f32 %v6349_v43, 0.0  ;;  %v6261_v44 = vadd.f32 %v5978_v6, %v15390_v57  ;;  %v15392_v6 = vshrl.u32 %v15016_v54, 16 }
 0x625   :  { %6966 = vst [vmem:[#allocation2 + $0x68] sm:$0xff] %v6884_v51  ;;  %v6601_v45 = vadd.f32 %v13920_v41, %v6600_v42  ;;  %9605 = vmatprep.mubr.msk.bf16.mxu1 %vm9764_vm1, %v14854_v10  ;;  %v9342_v23 = vpop.f32.mrf.mxu0  ;;  %v5728_v51 = vsel %vm5589_vm8, %v5723_v9, %v5727_v17 }
 0x626   :  { %v9507_v32 = vpop.f32.mrf.mxu1  ;;  %v6350_v7 = vadd.f32 %v13909_v3, %v6261_v44  ;;  %v5729_v42 = vrot.slane %v15392_v6, 1  ;;  %v15398_v6 = vld [vmem:[#allocation43_spill] sm:$0xff] }
 0x627   :  { %v6885_v63 = vadd.f32 %v6601_v45, %v6431_v58  ;;  %v5983_v20 = vpop.f32.mrf.mxu0  ;;  %9440 = vmatmul.mubr.msk.bf16.gmra.mxu0 %vm410_vm4, %v5724_v18  ;;  %v15394_v58 = vshll.u32 %v15016_v54, 16 }
 0x628   :  { %v6603_v15 = vpop.f32.mrf.mxu1  ;;  %v6432_v29 = vmax.f32 %v6350_v7, 0.0  ;;  %v6262_v53 = vadd.f32 %v5983_v20, %v15391_v61  ;;  %9443 = vmatprep.mubr.msk.bf16.mxu0 %vm9764_vm1, %v14854_v10  ;;  %v15395_v7 = vld [vmem:[#allocation90_spill] sm:$0xff] }
 0x629   :  { %6967 = vst [vmem:[#allocation2 + $0x70] sm:$0xff] %v6885_v63  ;;  %v6604_v37 = vadd.f32 %v13920_v41, %v6603_v15  ;;  %v9345_v40 = vpop.f32.mrf.mxu0  ;;  %v5730_v57 = vrot.slane %v15394_v58, 2 }
 0x62a   :  { %v9508_v21 = vpop.f32.mrf.mxu1  ;;  %v6351_v34 = vadd.f32 %v13909_v3, %v6262_v53 }
 0x62b   :  { %v6886_v49 = vadd.f32 %v6604_v37, %v6432_v29  ;;  %v5986_v2 = vpop.f32.mrf.mxu0  ;;  %v5731_v15 = vor.u32 %v5730_v57, %v5729_v42 }
 0x62c   :  { %v6608_v43 = vpop.f32.mrf.mxu1  ;;  %9606 = vmatmul.mubr.msk.bf16.gmra.mxu1 %vm410_vm4, %v15000_v33  ;;  %v6433_v22 = vmax.f32 %v6351_v34, 0.0  ;;  %v6263_v38 = vadd.f32 %v5986_v2, %v15393_v13  ;;  %v15396_v34 = vshrl.u32 %v15025_v0, 16  ;;  %v15397_v2 = vshll.u32 %v15025_v0, 16 }
 0x62d   :  { %6968 = vst [vmem:[#allocation2 + $0x78] sm:$0xff] %v6886_v49  ;;  %v6609_v35 = vadd.f32 %v13920_v41, %v6608_v43  ;;  %9609 = vmatprep.mubr.msk.bf16.mxu1 %vm9764_vm1, %v14854_v10  ;;  %v9346_v44 = vpop.f32.mrf.mxu0  ;;  %v5732_v13 = vsel %vm5589_vm8, %v5727_v17, %v5731_v15 }
 0x62e   :  { %v9511_v45 = vpop.f32.mrf.mxu1  ;;  %v6352_v33 = vadd.f32 %v13909_v3, %v6263_v38  ;;  %v5733_v49 = vrot.slane %v15396_v34, 1  ;;  %v5734_v43 = vrot.slane %v15397_v2, 2 }
 0x62f   :  { %v6887_v9 = vadd.f32 %v6609_v35, %v6433_v22  ;;  %v5991_v18 = vpop.f32.mrf.mxu0  ;;  %9444 = vmatmul.mubr.msk.bf16.gmra.mxu0 %vm410_vm4, %v5728_v51 }
 0x630   :  { %v6611_v23 = vpop.f32.mrf.mxu1  ;;  %v6434_v32 = vmax.f32 %v6352_v33, 0.0  ;;  %v6264_v63 = vadd.f32 %v5991_v18, %v15395_v7  ;;  %9447 = vmatprep.mubr.msk.bf16.mxu0 %vm9764_vm1, %v14854_v10  ;;  %v5735_v45 = vor.u32 %v5734_v43, %v5733_v49  ;;  %v15401_v49 = vshll.u32 %v15027_v4, 16 }
 0x631   :  { %6969 = vst [vmem:[#allocation2 + $0x80] sm:$0xff] %v6887_v9  ;;  %v6612_v20 = vadd.f32 %v13920_v41, %v6611_v23  ;;  %v9349_v29 = vpop.f32.mrf.mxu0  ;;  %v15399_v9 = vld [vmem:[#allocation26_spill] sm:$0xff] }
 0x632   :  { %v9512_v61 = vpop.f32.mrf.mxu1  ;;  %v6353_v53 = vadd.f32 %v13909_v3, %v6264_v63  ;;  %v5738_v2 = vrot.slane %v15401_v49, 2 }
 0x633   :  { %v6888_v37 = vadd.f32 %v6612_v20, %v6434_v32  ;;  %v5994_v40 = vpop.f32.mrf.mxu0  ;;  %v5736_v61 = vsel %vm5589_vm8, %v5731_v15, %v5735_v45 }
 0x634   :  { %v6616_v21 = vpop.f32.mrf.mxu1  ;;  %9610 = vmatmul.mubr.msk.bf16.gmra.mxu1 %vm410_vm4, %v15005_v26  ;;  %v6435_v51 = vmax.f32 %v6353_v53, 0.0  ;;  %v6265_v42 = vadd.f32 %v5994_v40, %v15398_v6  ;;  %v15400_v53 = vshrl.u32 %v15027_v4, 16 }
 0x635   :  { %6970 = vst [vmem:[#allocation2 + $0x88] sm:$0xff] %v6888_v37  ;;  %v6617_v22 = vadd.f32 %v13920_v41, %v6616_v21  ;;  %9613 = vmatprep.mubr.msk.bf16.mxu1 %vm9764_vm1, %v14854_v10  ;;  %v9350_v38 = vpop.f32.mrf.mxu0 }
 0x636   :  { %v9515_v35 = vpop.f32.mrf.mxu1  ;;  %v6354_v26 = vadd.f32 %v13909_v3, %v6265_v42  ;;  %v5737_v37 = vrot.slane %v15400_v53, 1 }
 0x637   :  { %v6889_v58 = vadd.f32 %v6617_v22, %v6435_v51  ;;  %v5999_v57 = vpop.f32.mrf.mxu0  ;;  %9448 = vmatmul.mubr.msk.bf16.gmra.mxu0 %vm410_vm4, %v5732_v13 }
 0x638   :  { %v6619_v44 = vpop.f32.mrf.mxu1  ;;  %v6436_v33 = vmax.f32 %v6354_v26, 0.0  ;;  %v6266_v18 = vadd.f32 %v5999_v57, %v15399_v9  ;;  %9451 = vmatprep.mubr.msk.bf16.mxu0 %vm9764_vm1, %v14854_v10  ;;  %v5739_v35 = vor.u32 %v5738_v2, %v5737_v37 }
 0x639   :  { %6971 = vst [vmem:[#allocation2 + $0x90] sm:$0xff] %v6889_v58  ;;  %v6620_v23 = vadd.f32 %v13920_v41, %v6619_v44  ;;  %v9353_v17 = vpop.f32.mrf.mxu0 }
 0x63a   :  { %v9516_v32 = vpop.f32.mrf.mxu1  ;;  %v6355_v7 = vadd.f32 %v13909_v3, %v6266_v18  ;;  %v15403_v18 = vld [vmem:[#allocation123_spill] sm:$0xff]  ;;  %v5740_v53 = vsel %vm5589_vm8, %v5735_v45, %v5739_v35 }
 0x63b   :  { %v6890_v63 = vadd.f32 %v6620_v23, %v6436_v33  ;;  %v6002_v20 = vpop.f32.mrf.mxu0  ;;  %v15404_v23 = vshrl.u32 %v15403_v18, 16  ;;  %v15405_v32 = vshll.u32 %v15403_v18, 16 }
 0x63c   :  { %v6624_v29 = vpop.f32.mrf.mxu1  ;;  %9614 = vmatmul.mubr.msk.bf16.gmra.mxu1 %vm410_vm4, %v15007_v60  ;;  %v6437_v40 = vmax.f32 %v6355_v7, 0.0  ;;  %v6267_v21 = vadd.f32 %v6002_v20, %v13359_v31  ;;  %v15402_v31 = vld [vmem:[#allocation106_spill] sm:$0xff]  ;;  %v15406_v20 = vld [vmem:[#allocation91_spill] sm:$0xff] }
 0x63d   :  { %6972 = vst [vmem:[#allocation2 + $0x98] sm:$0xff] %v6890_v63  ;;  %v6625_v34 = vadd.f32 %v13920_v41, %v6624_v29  ;;  %9617 = vmatprep.mubr.msk.bf16.mxu1 %vm9764_vm1, %v14854_v10  ;;  %v9354_v43 = vpop.f32.mrf.mxu0  ;;  %v5741_v17 = vrot.slane %v15404_v23, 1  ;;  %v5742_v7 = vrot.slane %v15405_v32, 2 }
 0x63e   :  { %v9519_v51 = vpop.f32.mrf.mxu1  ;;  %v6356_v60 = vadd.f32 %v13909_v3, %v6267_v21 }
 0x63f   :  { %v6891_v15 = vadd.f32 %v6625_v34, %v6437_v40  ;;  %v6007_v6 = vpop.f32.mrf.mxu0  ;;  %9452 = vmatmul.mubr.msk.bf16.gmra.mxu0 %vm410_vm4, %v5736_v61  ;;  %v5743_v2 = vor.u32 %v5742_v7, %v5741_v17  ;;  %v15407_v51 = vld [vmem:[#allocation46_spill] sm:$0xff] }
 0x640   :  { %v6627_v42 = vpop.f32.mrf.mxu1  ;;  %v6438_v22 = vmax.f32 %v6356_v60, 0.0  ;;  %v6268_v13 = vadd.f32 %v6007_v6, %v15402_v31  ;;  %9455 = vmatprep.mubr.msk.bf16.mxu0 %vm9764_vm1, %v14854_v10 }
 0x641   :  { %6973 = vst [vmem:[#allocation2 + $0xa0] sm:$0xff] %v6891_v15  ;;  %v6628_v38 = vadd.f32 %v13920_v41, %v6627_v42  ;;  %v9357_v26 = vpop.f32.mrf.mxu0 }
 0x642   :  { %v9520_v58 = vpop.f32.mrf.mxu1  ;;  %v6357_v57 = vadd.f32 %v13909_v3, %v6268_v13  ;;  %v15408_v26 = vshrl.u32 %v15037_v39, 16 }
 0x643   :  { %v6892_v44 = vadd.f32 %v6628_v38, %v6438_v22  ;;  %v6010_v33 = vpop.f32.mrf.mxu0  ;;  %v5744_v38 = vsel %vm5589_vm8, %v5739_v35, %v5743_v2 }
 0x644   :  { %v6632_v9 = vpop.f32.mrf.mxu1  ;;  %9618 = vmatmul.mubr.msk.bf16.gmra.mxu1 %vm410_vm4, %v15014_v30  ;;  %v6439_v63 = vmax.f32 %v6357_v57, 0.0  ;;  %v6269_v29 = vadd.f32 %v6010_v33, %v15406_v20  ;;  %v5745_v58 = vrot.slane %v15408_v26, 1 }
 0x645   :  { %6974 = vst [vmem:[#allocation2 + $0xa8] sm:$0xff] %v6892_v44  ;;  %v6633_v61 = vadd.f32 %v13920_v41, %v6632_v9  ;;  %9621 = vmatprep.mubr.msk.bf16.mxu1 %vm9764_vm1, %v14854_v10  ;;  %v9358_v37 = vpop.f32.mrf.mxu0  ;;  %v15409_v9 = vshll.u32 %v15037_v39, 16 }
 0x646   :  { %v9523_v40 = vpop.f32.mrf.mxu1  ;;  %v6358_v30 = vadd.f32 %v13909_v3, %v6269_v29 }
 0x647   :  { %v6893_v21 = vadd.f32 %v6633_v61, %v6439_v63  ;;  %v6015_v34 = vpop.f32.mrf.mxu0  ;;  %9456 = vmatmul.mubr.msk.bf16.gmra.mxu0 %vm410_vm4, %v5740_v53  ;;  %v5746_v23 = vrot.slane %v15409_v9, 2 }
 0x648   :  { %v6635_v49 = vpop.f32.mrf.mxu1  ;;  %v6440_v43 = vmax.f32 %v6358_v30, 0.0  ;;  %v6270_v60 = vadd.f32 %v6015_v34, %v15407_v51  ;;  %9459 = vmatprep.mubr.msk.bf16.mxu0 %vm9764_vm1, %v14854_v10 }
 0x649   :  { %6975 = vst [vmem:[#allocation2 + $0xb0] sm:$0xff] %v6893_v21  ;;  %v6636_v15 = vadd.f32 %v13920_v41, %v6635_v49  ;;  %v9361_v45 = vpop.f32.mrf.mxu0  ;;  %v5747_v61 = vor.u32 %v5746_v23, %v5745_v58  ;;  %v15410_v49 = vshrl.u32 %v13392_v14, 16  ;;  %v9738_v58 = vld [vmem:[%s14369_s0 + $0x160] ss:$0 sps:$4 sm:$0xff]  }
 0x64a   :  { %v9524_v6 = vpop.f32.mrf.mxu1  ;;  %v6359_v42 = vadd.f32 %v13909_v3, %v6270_v60 }
 0x64b   :  { %v6894_v22 = vadd.f32 %v6636_v15, %v6440_v43  ;;  %v6018_v31 = vpop.f32.mrf.mxu0  ;;  %v5749_v43 = vrot.slane %v15410_v49, 1  ;;  %v15412_v15 = vld [vmem:[#allocation107_spill] sm:$0xff] }
 0x64c   :  { %v6640_v13 = vpop.f32.mrf.mxu1  ;;  %9622 = vmatmul.mubr.msk.bf16.gmra.mxu1 %vm410_vm4, %v15016_v54  ;;  %v6441_v57 = vmax.f32 %v6359_v42, 0.0  ;;  %v6271_v44 = vadd.f32 %v6018_v31, %v13397_v25  ;;  %v5748_v42 = vsel %vm5589_vm8, %v5743_v2, %v5747_v61  ;;  %v15413_v2 = vld [vmem:[#allocation92_spill] sm:$0xff] }
 0x64d   :  { %6976 = vst [vmem:[#allocation2 + $0xb8] sm:$0xff] %v6894_v22  ;;  %v6641_v33 = vadd.f32 %v13920_v41, %v6640_v13  ;;  %9625 = vmatprep.mubr.msk.bf16.mxu1 %vm9764_vm1, %v14854_v10  ;;  %v9362_v17 = vpop.f32.mrf.mxu0 }
 0x64e   :  { %v9527_v32 = vpop.f32.mrf.mxu1  ;;  %v6360_v54 = vadd.f32 %v13909_v3, %v6271_v44 }
 0x64f   :  { %v6895_v35 = vadd.f32 %v6641_v33, %v6441_v57  ;;  %v6023_v7 = vpop.f32.mrf.mxu0  ;;  %9460 = vmatmul.mubr.msk.bf16.gmra.mxu0 %vm410_vm4, %v5744_v38  ;;  %v5753_v57 = vshrl.u32 %v9738_v58, 16 }
 0x650   :  { %v6643_v63 = vpop.f32.mrf.mxu1  ;;  %v6442_v20 = vmax.f32 %v6360_v54, 0.0  ;;  %v6272_v25 = vadd.f32 %v6023_v7, %v13405_v55  ;;  %9463 = vmatprep.mubr.msk.bf16.mxu0 %vm9764_vm1, %v14854_v10  ;;  %v15411_v55 = vshll.u32 %v13392_v14, 16 }
 0x651   :  { %6977 = vst [vmem:[#allocation2 + $0xc0] sm:$0xff] %v6895_v35  ;;  %v6644_v29 = vadd.f32 %v13920_v41, %v6643_v63  ;;  %v9365_v53 = vpop.f32.mrf.mxu0 }
 0x652   :  { %v9528_v37 = vpop.f32.mrf.mxu1  ;;  %v6361_v40 = vadd.f32 %v13909_v3, %v6272_v25  ;;  %v5750_v51 = vrot.slane %v15411_v55, 2 }
 0x653   :  { %v6896_v30 = vadd.f32 %v6644_v29, %v6442_v20  ;;  %v6026_v21 = vpop.f32.mrf.mxu0  ;;  %v5755_v20 = vrot.slane %v5753_v57, 1  ;;  %v15414_v37 = vshll.u32 %v13423_v1, 16 }
 0x654   :  { %v6648_v34 = vpop.f32.mrf.mxu1  ;;  %9626 = vmatmul.mubr.msk.bf16.gmra.mxu1 %vm410_vm4, %v15025_v0  ;;  %v6443_v60 = vmax.f32 %v6361_v40, 0.0  ;;  %v6273_v45 = vadd.f32 %v6026_v21, %v15412_v15  ;;  %v5751_v26 = vor.u32 %v5750_v51, %v5749_v43 }
 0x655   :  { %6978 = vst [vmem:[#allocation2 + $0xc8] sm:$0xff] %v6896_v30  ;;  %v6649_v6 = vadd.f32 %v13920_v41, %v6648_v34  ;;  %9629 = vmatprep.mubr.msk.bf16.mxu1 %vm9764_vm1, %v14854_v10  ;;  %v9366_v22 = vpop.f32.mrf.mxu0  ;;  %v5756_v40 = vrot.slane %v15414_v37, 2 }
 0x656   :  { %v9531_v31 = vpop.f32.mrf.mxu1  ;;  %v6362_v0 = vadd.f32 %v13909_v3, %v6273_v45  ;;  %v5752_v63 = vsel %vm5589_vm8, %v5747_v61, %v5751_v26 }
 0x657   :  { %v6897_v13 = vadd.f32 %v6649_v6, %v6443_v60  ;;  %v6031_v38 = vpop.f32.mrf.mxu0  ;;  %9464 = vmatmul.mubr.msk.bf16.gmra.mxu0 %vm410_vm4, %v5748_v42  ;;  %v5757_v1 = vor.u32 %v5756_v40, %v5755_v20 }
 0x658   :  { %v6651_v14 = vpop.f32.mrf.mxu1  ;;  %v6444_v44 = vmax.f32 %v6362_v0, 0.0  ;;  %v6274_v33 = vadd.f32 %v6031_v38, %v15413_v2  ;;  %9467 = vmatprep.mubr.msk.bf16.mxu0 %vm9764_vm1, %v14854_v10  ;;  %v15415_v2 = vld [vmem:[#allocation47_spill] sm:$0xff] }
 0x659   :  { %6979 = vst [vmem:[#allocation2 + $0xd0] sm:$0xff] %v6897_v13  ;;  %v6652_v9 = vadd.f32 %v13920_v41, %v6651_v14  ;;  %v9369_v23 = vpop.f32.mrf.mxu0  ;;  %v5758_v0 = vsel %vm5589_vm8, %v5751_v26, %v5757_v1 }
 0x65a   :  { %v9532_v17 = vpop.f32.mrf.mxu1  ;;  %v6363_v32 = vadd.f32 %v13909_v3, %v6274_v33 }
 0x65b   :  { %v6898_v54 = vadd.f32 %v6652_v9, %v6444_v44  ;;  %v6034_v35 = vpop.f32.mrf.mxu0 }
 0x65c   :  { %v6656_v7 = vpop.f32.mrf.mxu1  ;;  %9630 = vmatmul.mubr.msk.bf16.gmra.mxu1 %vm410_vm4, %v15027_v4  ;;  %v6445_v25 = vmax.f32 %v6363_v32, 0.0  ;;  %v6275_v29 = vadd.f32 %v6034_v35, %v13439_v19  ;;  %v15416_v35 = vld [vmem:[#allocation28_spill] sm:$0xff] }
 0x65d   :  { %6980 = vst [vmem:[#allocation2 + $0xd8] sm:$0xff] %v6898_v54  ;;  %v6657_v53 = vadd.f32 %v13920_v41, %v6656_v7  ;;  %9633 = vmatprep.mubr.msk.bf16.mxu1 %vm9764_vm1, %v14854_v10  ;;  %v9370_v30 = vpop.f32.mrf.mxu0 }
 0x65e   :  { %v9535_v21 = vpop.f32.mrf.mxu1  ;;  %v6364_v34 = vadd.f32 %v13909_v3, %v6275_v29 }
 0x65f   :  { %v6899_v4 = vadd.f32 %v6657_v53, %v6445_v25  ;;  %v6039_v49 = vpop.f32.mrf.mxu0  ;;  %9468 = vmatmul.mubr.msk.bf16.gmra.mxu0 %vm410_vm4, %v5752_v63  ;;  %v15417_v21 = vld [vmem:[#allocation50_spill] sm:$0xff] }
 0x660   :  { %v6659_v61 = vpop.f32.mrf.mxu1  ;;  %v6446_v43 = vmax.f32 %v6364_v34, 0.0  ;;  %v6276_v19 = vadd.f32 %v6039_v49, %v13449_v28  ;;  %9471 = vmatprep.mubr.msk.bf16.mxu0 %vm9764_vm1, %v14854_v10 }
 0x661   :  { %6981 = vst [vmem:[#allocation2 + $0xe0] sm:$0xff] %v6899_v4  ;;  %v6660_v55 = vadd.f32 %v13920_v41, %v6659_v61  ;;  %v9373_v51 = vpop.f32.mrf.mxu0 }
 0x662   :  { %v9536_v60 = vpop.f32.mrf.mxu1  ;;  %v6365_v15 = vadd.f32 %v13909_v3, %v6276_v19  ;;  %v15418_v51 = vld [vmem:[#allocation93_spill] sm:$0xff] }
 0x663   :  { %v6900_v45 = vadd.f32 %v6660_v55, %v6446_v43  ;;  %v6042_v6 = vpop.f32.mrf.mxu0 }
 0x664   :  { %v6664_v42 = vpop.f32.mrf.mxu1  ;;  %9634 = vmatmul.mubr.msk.bf16.gmra.mxu1 %vm410_vm4, %v15403_v18  ;;  %v6447_v22 = vmax.f32 %v6365_v15, 0.0  ;;  %v6277_v28 = vadd.f32 %v6042_v6, %v13457_v36 }
 0x665   :  { %6982 = vst [vmem:[#allocation2 + $0xe8] sm:$0xff] %v6900_v45  ;;  %v6665_v31 = vadd.f32 %v13920_v41, %v6664_v42  ;;  %9637 = vmatprep.mubr.msk.bf16.mxu1 %vm9764_vm1, %v14854_v10  ;;  %v9374_v13 = vpop.f32.mrf.mxu0 }
 0x666   :  { %v9539_v38 = vpop.f32.mrf.mxu1  ;;  %v6366_v14 = vadd.f32 %v13909_v3, %v6277_v28 }
 0x667   :  { %v6901_v58 = vadd.f32 %v6665_v31, %v6447_v22  ;;  %v6047_v57 = vpop.f32.mrf.mxu0  ;;  %9472 = vmatmul.mubr.msk.bf16.gmra.mxu0 %vm410_vm4, %v5758_v0 }
 0x668   :  { %v6667_v18 = vpop.f32.mrf.mxu1  ;;  %v6448_v44 = vmax.f32 %v6366_v14, 0.0  ;;  %v6278_v36 = vadd.f32 %v6047_v57, %v15415_v2 }
 0x669   :  { %6983 = vst [vmem:[#allocation2 + $0xf0] sm:$0xff] %v6901_v58  ;;  %v6668_v33 = vadd.f32 %v13920_v41, %v6667_v18  ;;  %v9377_v9 = vpop.f32.mrf.mxu0 }
 0x66a   :  { %v9540_v26 = vpop.f32.mrf.mxu1  ;;  %v6367_v23 = vadd.f32 %v13909_v3, %v6278_v36 }
 0x66b   :  { %v6902_v10 = vadd.f32 %v6668_v33, %v6448_v44  ;;  %v6050_v17 = vpop.f32.mrf.mxu0 }
 0x66c   :  { %v6672_v32 = vpop.f32.mrf.mxu1  ;;  %9638 = vmatmul.mubr.msk.bf16.gmra.mxu1 %vm410_vm4, %v15037_v39  ;;  %v6449_v54 = vmax.f32 %v6367_v23, 0.0  ;;  %v6279_v7 = vadd.f32 %v6050_v17, %v15416_v35  ;;  %v15419_v35 = vld [vmem:[#allocation29_spill] sm:$0xff] }
 0x66d   :  { %6984 = vst [vmem:[#allocation2 + $0xf8] sm:$0xff] %v6902_v10  ;;  %v6673_v63 = vadd.f32 %v13920_v41, %v6672_v32  ;;  %v9378_v20 = vpop.f32.mrf.mxu0 }
 0x66e   :  { %v9543_v25 = vpop.f32.mrf.mxu1  ;;  %v6368_v29 = vadd.f32 %v13909_v3, %v6279_v7 }
 0x66f   :  { %v6903_v53 = vadd.f32 %v6673_v63, %v6449_v54  ;;  %v6055_v37 = vpop.f32.mrf.mxu0 }
 0x670   :  { %v6675_v40 = vpop.f32.mrf.mxu1  ;;  %v6450_v30 = vmax.f32 %v6368_v29, 0.0  ;;  %v6280_v34 = vadd.f32 %v6055_v37, %v15417_v21 }
 0x671   :  { %6985 = vst [vmem:[#allocation2 + $0x100] sm:$0xff] %v6903_v53  ;;  %v6676_v4 = vadd.f32 %v13920_v41, %v6675_v40  ;;  %v9381_v39 = vpop.f32.mrf.mxu0 }
 0x672   :  { %v9544_v49 = vpop.f32.mrf.mxu1  ;;  %v6369_v61 = vadd.f32 %v13909_v3, %v6280_v34 }
 0x673   :  { %v6904_v43 = vadd.f32 %v6676_v4, %v6450_v30  ;;  %v6058_v19 = vpop.f32.mrf.mxu0  ;;  %v15420_v30 = vld [vmem:[#allocation108_spill] sm:$0xff] }
 0x674   :  { %v6680_v55 = vpop.f32.mrf.mxu1  ;;  %v6451_v1 = vmax.f32 %v6369_v61, 0.0  ;;  %v6281_v60 = vadd.f32 %v6058_v19, %v15418_v51 }
 0x675   :  { %6986 = vst [vmem:[#allocation2 + $0x108] sm:$0xff] %v6904_v43  ;;  %v6681_v15 = vadd.f32 %v13920_v41, %v6680_v55  ;;  %v9382_v45 = vpop.f32.mrf.mxu0 }
 0x676   :  { %v9547_v6 = vpop.f32.mrf.mxu1  ;;  %v6370_v42 = vadd.f32 %v13909_v3, %v6281_v60 }
 0x677   :  { %v6905_v22 = vadd.f32 %v6681_v15, %v6451_v1  ;;  %v6063_v28 = vpop.f32.mrf.mxu0 }
 0x678   :  { %v6683_v31 = vpop.f32.mrf.mxu1  ;;  %v6452_v0 = vmax.f32 %v6370_v42, 0.0  ;;  %v6282_v13 = vadd.f32 %v6063_v28, %v13505_v62 }
 0x679   :  { %6987 = vst [vmem:[#allocation2 + $0x110] sm:$0xff] %v6905_v22  ;;  %v6684_v38 = vadd.f32 %v13920_v41, %v6683_v31  ;;  %v9385_v14 = vpop.f32.mrf.mxu0 }
 0x67a   :  { %v9548_v58 = vpop.f32.mrf.mxu1  ;;  %v6371_v57 = vadd.f32 %v13909_v3, %v6282_v13 }
 0x67b   :  { %v6906_v18 = vadd.f32 %v6684_v38, %v6452_v0  ;;  %v6066_v44 = vpop.f32.mrf.mxu0 }
 0x67c   :  { %v6688_v2 = vpop.f32.mrf.mxu1  ;;  %v6453_v36 = vmax.f32 %v6371_v57, 0.0  ;;  %v6283_v33 = vadd.f32 %v6066_v44, %v13512_v50  ;;  %v14228_v50 = vld [vmem:[%s14371_s2] ss:$0 sm:$0xff]  ;;  %v15421_v44 = vld [vmem:[#allocation94_spill] sm:$0xff]  ;;  %s9765_s2 = smov [#allocation2]  }
 0x67d   :  { %6988 = vst [vmem:[#allocation2 + $0x118] sm:$0xff] %v6906_v18  ;;  %v6689_v9 = vadd.f32 %v13920_v41, %v6688_v2  ;;  %v9386_v26 = vpop.f32.mrf.mxu0 }
 0x67e   :  { %v9551_v23 = vpop.f32.mrf.mxu1  ;;  %v6372_v10 = vadd.f32 %v13909_v3, %v6283_v33 }
 0x67f   :  { %v6907_v62 = vadd.f32 %v6689_v9, %v6453_v36  ;;  %v6071_v17 = vpop.f32.mrf.mxu0 }
 0x680   :  { %v6691_v32 = vpop.f32.mrf.mxu1  ;;  %v6454_v54 = vmax.f32 %v6372_v10, 0.0  ;;  %v6284_v7 = vadd.f32 %v6071_v17, %v15419_v35  ;;  %v15422_v17 = vld [vmem:[#allocation109_spill] sm:$0xff] }
 0x681   :  { %6989 = vst [vmem:[#allocation2 + $0x120] sm:$0xff] %v6907_v62  ;;  %v6692_v63 = vadd.f32 %v13920_v41, %v6691_v32  ;;  %v9389_v20 = vpop.f32.mrf.mxu0  ;;  %v14235_v41 = vld [vmem:[%s14373_s4] ss:$0 sm:$0xff]  ;;  %s7040_s4 = sshll.u32 %s9765_s2, 4  ;;  %s7041_s4 = int_to_ptr.vmem [resolvable:$true] %s7040_s4 }
 0x682   :  { %v9552_v25 = vpop.f32.mrf.mxu1  ;;  %v6373_v29 = vadd.f32 %v14228_v50, %v6284_v7  ;;  %s9741_s27 = scalar_lea.vmem %s7041_s4, 10496  ;;  %p9746_p1 = scmp.lt.s32.totalorder %s7041_s4, %s7041_s4 }
 0x683   :  { %v6908_v53 = vadd.f32 %v6692_v63, %v6454_v54  ;;  %v6074_v3 = vpop.f32.mrf.mxu0  ;;  %p9742_p0 = scmp.ne.s32.totalorder %s7041_s4, %s9741_s27  ;;  %p9747_p2 = scmp.lt.s32.totalorder %s9741_s27, %s9741_s27 }
 0x684   :  { %v6696_v37 = vpop.f32.mrf.mxu1  ;;  %v6455_v40 = vmax.f32 %v6373_v29, 0.0  ;;  %v6285_v21 = vadd.f32 %v6074_v3, %v15420_v30 }
 0x685   :  { %6990 = vst [vmem:[#allocation2 + $0x128] sm:$0xff] %v6908_v53  ;;  %v6697_v34 = vadd.f32 %v14235_v41, %v6696_v37  ;;  %v9390_v4 = vpop.f32.mrf.mxu0  ;;  %p9748_p3 = por %p9747_p2, %p9746_p1 }
 0x686   :  { %v9555_v39 = vpop.f32.mrf.mxu1  ;;  %v6374_v49 = vadd.f32 %v14228_v50, %v6285_v21 }
 0x687   :  { %v6909_v61 = vadd.f32 %v6697_v34, %v6455_v40  ;;  %v6079_v43 = vpop.f32.mrf.mxu0  ;;  %p9749_p4 = pnand %p9748_p3, %p9742_p0 }
 0x688   :  { %v6699_v19 = vpop.f32.mrf.mxu1  ;;  %v6456_v55 = vmax.f32 %v6374_v49, 0.0  ;;  %v6286_v1 = vadd.f32 %v6079_v43, %v13541_v8 }
 0x689   :  { %6991 = vst [vmem:[#allocation2 + $0x130] sm:$0xff] %v6909_v61  ;;  %v6700_v51 = vadd.f32 %v14235_v41, %v6699_v19  ;;  %v9393_v60 = vpop.f32.mrf.mxu0 }
 0x68a   :  { %v9556_v15 = vpop.f32.mrf.mxu1  ;;  %v6375_v45 = vadd.f32 %v14228_v50, %v6286_v1 }
 0x68b   :  { %v6910_v6 = vadd.f32 %v6700_v51, %v6456_v55  ;;  %v6082_v42 = vpop.f32.mrf.mxu0 }
 0x68c   :  { %v6704_v22 = vpop.f32.mrf.mxu1  ;;  %v6457_v28 = vmax.f32 %v6375_v45, 0.0  ;;  %v6287_v31 = vadd.f32 %v6082_v42, %v13548_v59  ;;  %v15423_v45 = vld [vmem:[#allocation53_spill] sm:$0xff] }
 0x68d   :  { %6992 = vst [vmem:[#allocation2 + $0x138] sm:$0xff] %v6910_v6  ;;  %v6705_v0 = vadd.f32 %v14235_v41, %v6704_v22  ;;  %v9394_v13 = vpop.f32.mrf.mxu0 }
 0x68e   :  { %v9559_v38 = vpop.f32.mrf.mxu1  ;;  %v6376_v14 = vadd.f32 %v14228_v50, %v6287_v31 }
 0x68f   :  { %v6911_v8 = vadd.f32 %v6705_v0, %v6457_v28  ;;  %v6087_v58 = vpop.f32.mrf.mxu0 }
 0x690   :  { %v6707_v57 = vpop.f32.mrf.mxu1  ;;  %v6458_v18 = vmax.f32 %v6376_v14, 0.0  ;;  %v6288_v2 = vadd.f32 %v6087_v58, %v15421_v44  ;;  %v15424_v14 = vld [vmem:[#allocation51_spill] sm:$0xff] }
 0x691   :  { %6993 = vst [vmem:[#allocation2 + $0x140] sm:$0xff] %v6911_v8  ;;  %v6708_v36 = vadd.f32 %v14235_v41, %v6707_v57  ;;  %v9397_v33 = vpop.f32.mrf.mxu0 }
 0x692   :  { %v9560_v9 = vpop.f32.mrf.mxu1  ;;  %v6377_v26 = vadd.f32 %v14228_v50, %v6288_v2 }
 0x693   :  { %v6912_v59 = vadd.f32 %v6708_v36, %v6458_v18  ;;  %v6090_v23 = vpop.f32.mrf.mxu0 }
 0x694   :  { %v6712_v10 = vpop.f32.mrf.mxu1  ;;  %v6459_v62 = vmax.f32 %v6377_v26, 0.0  ;;  %v6289_v32 = vadd.f32 %v6090_v23, %v15422_v17 }
 0x695   :  { %6994 = vst [vmem:[#allocation2 + $0x148] sm:$0xff] %v6912_v59  ;;  %v6713_v54 = vadd.f32 %v14235_v41, %v6712_v10  ;;  %v9398_v35 = vpop.f32.mrf.mxu0 }
 0x696   :  { %v9563_v7 = vpop.f32.mrf.mxu1  ;;  %v6378_v63 = vadd.f32 %v14228_v50, %v6289_v32 }
 0x697   :  { %v6913_v20 = vadd.f32 %v6713_v54, %v6459_v62  ;;  %v6095_v25 = vpop.f32.mrf.mxu0  ;;  %v15425_v7 = vld [vmem:[#allocation110_spill] sm:$0xff] }
 0x698   :  { %v6715_v29 = vpop.f32.mrf.mxu1  ;;  %v6460_v53 = vmax.f32 %v6378_v63, 0.0  ;;  %v6290_v3 = vadd.f32 %v6095_v25, %v13577_v48 }
 0x699   :  { %6995 = vst [vmem:[#allocation2 + $0x150] sm:$0xff] %v6913_v20  ;;  %v6716_v37 = vadd.f32 %v14235_v41, %v6715_v29  ;;  %v9401_v40 = vpop.f32.mrf.mxu0 }
 0x69a   :  { %v9564_v30 = vpop.f32.mrf.mxu1  ;;  %v6379_v21 = vadd.f32 %v14228_v50, %v6290_v3 }
 0x69b   :  { %v6914_v34 = vadd.f32 %v6716_v37, %v6460_v53  ;;  %v6098_v4 = vpop.f32.mrf.mxu0  ;;  %v15426_v30 = vld [vmem:[#allocation96_spill] sm:$0xff] }
 0x69c   :  { %v6720_v39 = vpop.f32.mrf.mxu1  ;;  %v6461_v49 = vmax.f32 %v6379_v21, 0.0  ;;  %v6291_v61 = vadd.f32 %v6098_v4, %v13584_v16 }
 0x69d   :  { %6996 = vst [vmem:[#allocation2 + $0x158] sm:$0xff] %v6914_v34  ;;  %v6721_v43 = vadd.f32 %v14235_v41, %v6720_v39  ;;  %v9402_v19 = vpop.f32.mrf.mxu0 }
 0x69e   :  { %v9567_v55 = vpop.f32.mrf.mxu1  ;;  %v6380_v1 = vadd.f32 %v14228_v50, %v6291_v61 }
 0x69f   :  { %v6915_v48 = vadd.f32 %v6721_v43, %v6461_v49  ;;  %v6103_v51 = vpop.f32.mrf.mxu0 }
 0x6a0   :  { %v6723_v60 = vpop.f32.mrf.mxu1  ;;  %v6462_v15 = vmax.f32 %v6380_v1, 0.0  ;;  %v6292_v6 = vadd.f32 %v6103_v51, %v15423_v45  ;;  %v15427_v1 = vld [vmem:[#allocation111_spill] sm:$0xff] }
 0x6a1   :  { %6997 = vst [vmem:[#allocation2 + $0x160] sm:$0xff] %v6915_v48  ;;  %v6724_v42 = vadd.f32 %v14235_v41, %v6723_v60  ;;  %v9405_v22 = vpop.f32.mrf.mxu0 }
 0x6a2   :  { %v9568_v28 = vpop.f32.mrf.mxu1  ;;  %v6381_v31 = vadd.f32 %v14228_v50, %v6292_v6 }
 0x6a3   :  { %v6916_v16 = vadd.f32 %v6724_v42, %v6462_v15  ;;  %v6106_v0 = vpop.f32.mrf.mxu0 }
 0x6a4   :  { %v6728_v13 = vpop.f32.mrf.mxu1  ;;  %v6463_v38 = vmax.f32 %v6381_v31, 0.0  ;;  %v6293_v8 = vadd.f32 %v6106_v0, %v15424_v14  ;;  %v15428_v31 = vld [vmem:[#allocation32_spill] sm:$0xff] }
 0x6a5   :  { %6998 = vst [vmem:[#allocation2 + $0x168] sm:$0xff] %v6916_v16  ;;  %v6729_v58 = vadd.f32 %v14235_v41, %v6728_v13  ;;  %v9406_v57 = vpop.f32.mrf.mxu0 }
 0x6a6   :  { %v9571_v18 = vpop.f32.mrf.mxu1  ;;  %v6382_v44 = vadd.f32 %v14228_v50, %v6293_v8 }
 0x6a7   :  { %v6917_v2 = vadd.f32 %v6729_v58, %v6463_v38  ;;  %v6111_v36 = vpop.f32.mrf.mxu0 }
 0x6a8   :  { %v6731_v33 = vpop.f32.mrf.mxu1  ;;  %v6464_v9 = vmax.f32 %v6382_v44, 0.0  ;;  %v6294_v26 = vadd.f32 %v6111_v36, %v13613_v12  ;;  %v15429_v44 = vld [vmem:[#allocation33_spill] sm:$0xff] }
 0x6a9   :  { %6999 = vst [vmem:[#allocation2 + $0x170] sm:$0xff] %v6917_v2  ;;  %v6732_v59 = vadd.f32 %v14235_v41, %v6731_v33  ;;  %v9409_v23 = vpop.f32.mrf.mxu0 }
 0x6aa   :  { %v9572_v10 = vpop.f32.mrf.mxu1  ;;  %v6383_v62 = vadd.f32 %v14228_v50, %v6294_v26 }
 0x6ab   :  { %v6918_v17 = vadd.f32 %v6732_v59, %v6464_v9  ;;  %v6114_v32 = vpop.f32.mrf.mxu0 }
 0x6ac   :  { %v6736_v54 = vpop.f32.mrf.mxu1  ;;  %v6465_v35 = vmax.f32 %v6383_v62, 0.0  ;;  %v6295_v63 = vadd.f32 %v6114_v32, %v15425_v7 }
 0x6ad   :  { %7000 = vst [vmem:[#allocation2 + $0x178] sm:$0xff] %v6918_v17  ;;  %v6737_v20 = vadd.f32 %v14235_v41, %v6736_v54  ;;  %v9410_v25 = vpop.f32.mrf.mxu0  ;;  %v15430_v17 = vld [vmem:[#allocation112_spill] sm:$0xff] }
 0x6ae   :  { %v9575_v29 = vpop.f32.mrf.mxu1  ;;  %v6384_v53 = vadd.f32 %v14228_v50, %v6295_v63 }
 0x6af   :  { %v6919_v12 = vadd.f32 %v6737_v20, %v6465_v35  ;;  %v6119_v3 = vpop.f32.mrf.mxu0 }
 0x6b0   :  { %v6739_v37 = vpop.f32.mrf.mxu1  ;;  %v6466_v40 = vmax.f32 %v6384_v53, 0.0  ;;  %v6296_v21 = vadd.f32 %v6119_v3, %v15426_v30 }
 0x6b1   :  { %7001 = vst [vmem:[#allocation2 + $0x180] sm:$0xff] %v6919_v12  ;;  %v6740_v34 = vadd.f32 %v14235_v41, %v6739_v37  ;;  %v9413_v4 = vpop.f32.mrf.mxu0  ;;  %v15431_v12 = vld [vmem:[#allocation113_spill] sm:$0xff] }
 0x6b2   :  { %v9576_v39 = vpop.f32.mrf.mxu1  ;;  %v6385_v49 = vadd.f32 %v14228_v50, %v6296_v21 }
 0x6b3   :  { %v6920_v61 = vadd.f32 %v6740_v34, %v6466_v40  ;;  %v6122_v43 = vpop.f32.mrf.mxu0 }
 0x6b4   :  { %v6744_v19 = vpop.f32.mrf.mxu1  ;;  %v6467_v55 = vmax.f32 %v6385_v49, 0.0  ;;  %v6297_v48 = vadd.f32 %v6122_v43, %v15427_v1 }
 0x6b5   :  { %7002 = vst [vmem:[#allocation2 + $0x188] sm:$0xff] %v6920_v61  ;;  %v6745_v51 = vadd.f32 %v14235_v41, %v6744_v19  ;;  %v9414_v60 = vpop.f32.mrf.mxu0  ;;  %v15432_v61 = vld [vmem:[#allocation34_spill] sm:$0xff] }
 0x6b6   :  { %v9579_v15 = vpop.f32.mrf.mxu1  ;;  %v6386_v45 = vadd.f32 %v14228_v50, %v6297_v48 }
 0x6b7   :  { %v6921_v6 = vadd.f32 %v6745_v51, %v6467_v55  ;;  %v6127_v42 = vpop.f32.mrf.mxu0 }
 0x6b8   :  { %v6747_v22 = vpop.f32.mrf.mxu1  ;;  %v6468_v28 = vmax.f32 %v6386_v45, 0.0  ;;  %v6298_v16 = vadd.f32 %v6127_v42, %v15428_v31 }
 0x6b9   :  { %7003 = vst [vmem:[#allocation2 + $0x190] sm:$0xff] %v6921_v6  ;;  %v6748_v0 = vadd.f32 %v14235_v41, %v6747_v22  ;;  %v9417_v13 = vpop.f32.mrf.mxu0  ;;  %v15433_v6 = vld [vmem:[#allocation36_spill] sm:$0xff] }
 0x6ba   :  { %v9580_v38 = vpop.f32.mrf.mxu1  ;;  %v6387_v14 = vadd.f32 %v14228_v50, %v6298_v16 }
 0x6bb   :  { %v6922_v8 = vadd.f32 %v6748_v0, %v6468_v28  ;;  %v6130_v58 = vpop.f32.mrf.mxu0 }
 0x6bc   :  { %v6752_v57 = vpop.f32.mrf.mxu1  ;;  %v6469_v18 = vmax.f32 %v6387_v14, 0.0  ;;  %v6299_v2 = vadd.f32 %v6130_v58, %v15429_v44 }
 0x6bd   :  { %7004 = vst [vmem:[#allocation2 + $0x198] sm:$0xff] %v6922_v8  ;;  %v6753_v36 = vadd.f32 %v14235_v41, %v6752_v57  ;;  %v9418_v33 = vpop.f32.mrf.mxu0  ;;  %v15434_v8 = vld [vmem:[#allocation114_spill] sm:$0xff] }
 0x6be   :  { %v9583_v9 = vpop.f32.mrf.mxu1  ;;  %v6388_v26 = vadd.f32 %v14228_v50, %v6299_v2 }
 0x6bf   :  { %v6923_v59 = vadd.f32 %v6753_v36, %v6469_v18  ;;  %v6135_v23 = vpop.f32.mrf.mxu0 }
 0x6c0   :  { %v6755_v10 = vpop.f32.mrf.mxu1  ;;  %v6470_v62 = vmax.f32 %v6388_v26, 0.0  ;;  %v6300_v32 = vadd.f32 %v6135_v23, %v15430_v17 }
 0x6c1   :  { %7005 = vst [vmem:[#allocation2 + $0x1a0] sm:$0xff] %v6923_v59  ;;  %v6756_v54 = vadd.f32 %v14235_v41, %v6755_v10  ;;  %v9421_v35 = vpop.f32.mrf.mxu0  ;;  %v15435_v59 = vld [vmem:[#allocation115_spill] sm:$0xff] }
 0x6c2   :  { %v9584_v7 = vpop.f32.mrf.mxu1  ;;  %v6389_v63 = vadd.f32 %v14228_v50, %v6300_v32 }
 0x6c3   :  { %v6924_v20 = vadd.f32 %v6756_v54, %v6470_v62  ;;  %v6138_v25 = vpop.f32.mrf.mxu0 }
 0x6c4   :  { %v6760_v29 = vpop.f32.mrf.mxu1  ;;  %v6471_v53 = vmax.f32 %v6389_v63, 0.0  ;;  %v6301_v3 = vadd.f32 %v6138_v25, %v15431_v12 }
 0x6c5   :  { %7006 = vst [vmem:[#allocation2 + $0x1a8] sm:$0xff] %v6924_v20  ;;  %v6761_v37 = vadd.f32 %v14235_v41, %v6760_v29  ;;  %v9422_v40 = vpop.f32.mrf.mxu0  ;;  %v15436_v20 = vld [vmem:[#allocation37_spill] sm:$0xff] }
 0x6c6   :  { %v9587_v30 = vpop.f32.mrf.mxu1  ;;  %v6390_v21 = vadd.f32 %v14228_v50, %v6301_v3 }
 0x6c7   :  { %v6925_v34 = vadd.f32 %v6761_v37, %v6471_v53  ;;  %v6143_v4 = vpop.f32.mrf.mxu0 }
 0x6c8   :  { %v6763_v39 = vpop.f32.mrf.mxu1  ;;  %v6472_v49 = vmax.f32 %v6390_v21, 0.0  ;;  %v6302_v43 = vadd.f32 %v6143_v4, %v15432_v61 }
 0x6c9   :  { %7007 = vst [vmem:[#allocation2 + $0x1b0] sm:$0xff] %v6925_v34  ;;  %v6764_v19 = vadd.f32 %v14235_v41, %v6763_v39  ;;  %v9425_v55 = vpop.f32.mrf.mxu0  ;;  %v15437_v34 = vld [vmem:[#allocation40_spill] sm:$0xff] }
 0x6ca   :  { %v9588_v1 = vpop.f32.mrf.mxu1  ;;  %v6391_v48 = vadd.f32 %v14228_v50, %v6302_v43 }
 0x6cb   :  { %v6926_v51 = vadd.f32 %v6764_v19, %v6472_v49  ;;  %v6146_v60 = vpop.f32.mrf.mxu0 }
 0x6cc   :  { %v6768_v15 = vpop.f32.mrf.mxu1  ;;  %v6473_v45 = vmax.f32 %v6391_v48, 0.0  ;;  %v6303_v42 = vadd.f32 %v6146_v60, %v15433_v6 }
 0x6cd   :  { %7008 = vst [vmem:[#allocation2 + $0x1b8] sm:$0xff] %v6926_v51  ;;  %v6769_v22 = vadd.f32 %v14235_v41, %v6768_v15  ;;  %v9426_v28 = vpop.f32.mrf.mxu0  ;;  %v15438_v51 = vld [vmem:[#allocation116_spill] sm:$0xff] }
 0x6ce   :  { %v9591_v31 = vpop.f32.mrf.mxu1  ;;  %v6392_v16 = vadd.f32 %v14228_v50, %v6303_v42 }
 0x6cf   :  { %v6927_v0 = vadd.f32 %v6769_v22, %v6473_v45  ;;  %v6151_v13 = vpop.f32.mrf.mxu0 }
 0x6d0   :  { %v6771_v38 = vpop.f32.mrf.mxu1  ;;  %v6474_v14 = vmax.f32 %v6392_v16, 0.0  ;;  %v6304_v58 = vadd.f32 %v6151_v13, %v15434_v8 }
 0x6d1   :  { %7009 = vst [vmem:[#allocation2 + $0x1c0] sm:$0xff] %v6927_v0  ;;  %v6772_v57 = vadd.f32 %v14235_v41, %v6771_v38  ;;  %v9429_v18 = vpop.f32.mrf.mxu0  ;;  %v15439_v0 = vld [vmem:[#allocation117_spill] sm:$0xff] }
 0x6d2   :  { %v9592_v44 = vpop.f32.mrf.mxu1  ;;  %v6393_v2 = vadd.f32 %v14228_v50, %v6304_v58 }
 0x6d3   :  { %v6928_v36 = vadd.f32 %v6772_v57, %v6474_v14  ;;  %v6154_v33 = vpop.f32.mrf.mxu0 }
 0x6d4   :  { %v6776_v9 = vpop.f32.mrf.mxu1  ;;  %v6475_v26 = vmax.f32 %v6393_v2, 0.0  ;;  %v6305_v23 = vadd.f32 %v6154_v33, %v15435_v59 }
 0x6d5   :  { %7010 = vst [vmem:[#allocation2 + $0x1c8] sm:$0xff] %v6928_v36  ;;  %v6777_v10 = vadd.f32 %v14235_v41, %v6776_v9  ;;  %v9430_v62 = vpop.f32.mrf.mxu0 }
 0x6d6   :  { %v9595_v17 = vpop.f32.mrf.mxu1  ;;  %v6394_v32 = vadd.f32 %v14228_v50, %v6305_v23 }
 0x6d7   :  { %v6929_v54 = vadd.f32 %v6777_v10, %v6475_v26  ;;  %v6159_v35 = vpop.f32.mrf.mxu0 }
 0x6d8   :  { %v6779_v7 = vpop.f32.mrf.mxu1  ;;  %v6476_v63 = vmax.f32 %v6394_v32, 0.0  ;;  %v6306_v25 = vadd.f32 %v6159_v35, %v15436_v20  ;;  %v15440_v32 = vld [vmem:[#allocation41_spill] sm:$0xff] }
 0x6d9   :  { %7011 = vst [vmem:[#allocation2 + $0x1d0] sm:$0xff] %v6929_v54  ;;  %v6780_v29 = vadd.f32 %v14235_v41, %v6779_v7  ;;  %v9433_v53 = vpop.f32.mrf.mxu0 }
 0x6da   :  { %v9596_v12 = vpop.f32.mrf.mxu1  ;;  %v6395_v3 = vadd.f32 %v14228_v50, %v6306_v25 }
 0x6db   :  { %v6930_v37 = vadd.f32 %v6780_v29, %v6476_v63  ;;  %v6162_v40 = vpop.f32.mrf.mxu0  ;;  %v15441_v12 = vld [vmem:[#allocation44_spill] sm:$0xff] }
 0x6dc   :  { %v6784_v30 = vpop.f32.mrf.mxu1  ;;  %v6477_v21 = vmax.f32 %v6395_v3, 0.0  ;;  %v6307_v4 = vadd.f32 %v6162_v40, %v15437_v34 }
 0x6dd   :  { %7012 = vst [vmem:[#allocation2 + $0x1d8] sm:$0xff] %v6930_v37  ;;  %v6785_v39 = vadd.f32 %v14235_v41, %v6784_v30  ;;  %v9434_v49 = vpop.f32.mrf.mxu0 }
 0x6de   :  { %v9599_v61 = vpop.f32.mrf.mxu1  ;;  %v6396_v43 = vadd.f32 %v14228_v50, %v6307_v4 }
 0x6df   :  { %v6931_v19 = vadd.f32 %v6785_v39, %v6477_v21  ;;  %v6167_v55 = vpop.f32.mrf.mxu0  ;;  %v15442_v61 = vld [vmem:[#allocation119_spill] sm:$0xff] }
 0x6e0   :  { %v6787_v1 = vpop.f32.mrf.mxu1  ;;  %v6478_v48 = vmax.f32 %v6396_v43, 0.0  ;;  %v6308_v60 = vadd.f32 %v6167_v55, %v15438_v51 }
 0x6e1   :  { %7013 = vst [vmem:[#allocation2 + $0x1e0] sm:$0xff] %v6931_v19  ;;  %v6788_v15 = vadd.f32 %v14235_v41, %v6787_v1  ;;  %v9437_v45 = vpop.f32.mrf.mxu0 }
 0x6e2   :  { %v9600_v6 = vpop.f32.mrf.mxu1  ;;  %v6397_v42 = vadd.f32 %v14228_v50, %v6308_v60 }
 0x6e3   :  { %v6932_v22 = vadd.f32 %v6788_v15, %v6478_v48  ;;  %v6170_v28 = vpop.f32.mrf.mxu0 }
 0x6e4   :  { %v6792_v31 = vpop.f32.mrf.mxu1  ;;  %v6479_v16 = vmax.f32 %v6397_v42, 0.0  ;;  %v6309_v13 = vadd.f32 %v6170_v28, %v15439_v0 }
 0x6e5   :  { %7014 = vst [vmem:[#allocation2 + $0x1e8] sm:$0xff] %v6932_v22  ;;  %v6793_v38 = vadd.f32 %v14235_v41, %v6792_v31  ;;  %v9438_v14 = vpop.f32.mrf.mxu0 }
 0x6e6   :  { %v9603_v8 = vpop.f32.mrf.mxu1  ;;  %v6398_v58 = vadd.f32 %v14228_v50, %v6309_v13  ;;  %v15443_v14 = vld [vmem:[#allocation118_spill] sm:$0xff] }
 0x6e7   :  { %v6933_v57 = vadd.f32 %v6793_v38, %v6479_v16  ;;  %v6175_v18 = vpop.f32.mrf.mxu0 }
 0x6e8   :  { %v6795_v44 = vpop.f32.mrf.mxu1  ;;  %v6480_v2 = vmax.f32 %v6398_v58, 0.0  ;;  %v6310_v36 = vadd.f32 %v6175_v18, %v13757_v56 }
 0x6e9   :  { %7015 = vst [vmem:[#allocation2 + $0x1f0] sm:$0xff] %v6933_v57  ;;  %v6796_v33 = vadd.f32 %v14235_v41, %v6795_v44  ;;  %v9441_v9 = vpop.f32.mrf.mxu0 }
 0x6ea   :  { %v9604_v26 = vpop.f32.mrf.mxu1  ;;  %v6399_v59 = vadd.f32 %v14228_v50, %v6310_v36  ;;  %v15444_v9 = vld [vmem:[#allocation120_spill] sm:$0xff] }
 0x6eb   :  { %v6934_v23 = vadd.f32 %v6796_v33, %v6480_v2  ;;  %v6178_v10 = vpop.f32.mrf.mxu0 }
 0x6ec   :  { %v6800_v62 = vpop.f32.mrf.mxu1  ;;  %v6481_v17 = vmax.f32 %v6399_v59, 0.0  ;;  %v6311_v54 = vadd.f32 %v6178_v10, %v15440_v32 }
 0x6ed   :  { %7016 = vst [vmem:[#allocation2 + $0x1f8] sm:$0xff] %v6934_v23  ;;  %v6801_v35 = vadd.f32 %v14235_v41, %v6800_v62  ;;  %v9442_v7 = vpop.f32.mrf.mxu0 }
 0x6ee   :  { %v9607_v63 = vpop.f32.mrf.mxu1  ;;  %v6400_v20 = vadd.f32 %v14228_v50, %v6311_v54  ;;  %v15445_v7 = vld [vmem:[#allocation54_spill] sm:$0xff] }
 0x6ef   :  { %v6935_v56 = vadd.f32 %v6801_v35, %v6481_v17  ;;  %v6183_v25 = vpop.f32.mrf.mxu0 }
 0x6f0   :  { %v6803_v29 = vpop.f32.mrf.mxu1  ;;  %v6482_v53 = vmax.f32 %v6400_v20, 0.0  ;;  %v6312_v3 = vadd.f32 %v6183_v25, %v15441_v12 }
 0x6f1   :  { %7017 = vst [vmem:[#allocation2 + $0x200] sm:$0xff] %v6935_v56  ;;  %v6804_v37 = vadd.f32 %v14235_v41, %v6803_v29  ;;  %v9445_v40 = vpop.f32.mrf.mxu0 }
 0x6f2   :  { %v9608_v30 = vpop.f32.mrf.mxu1  ;;  %v6401_v21 = vadd.f32 %v14228_v50, %v6312_v3 }
 0x6f3   :  { %v6936_v34 = vadd.f32 %v6804_v37, %v6482_v53  ;;  %v6186_v4 = vpop.f32.mrf.mxu0 }
 0x6f4   :  { %v6808_v39 = vpop.f32.mrf.mxu1  ;;  %v6483_v49 = vmax.f32 %v6401_v21, 0.0  ;;  %v6313_v43 = vadd.f32 %v6186_v4, %v15442_v61 }
 0x6f5   :  { %7018 = vst [vmem:[#allocation2 + $0x208] sm:$0xff] %v6936_v34  ;;  %v6809_v19 = vadd.f32 %v14235_v41, %v6808_v39  ;;  %v9446_v55 = vpop.f32.mrf.mxu0 }
 0x6f6   :  { %v9611_v1 = vpop.f32.mrf.mxu1  ;;  %v6402_v48 = vadd.f32 %v14228_v50, %v6313_v43 }
 0x6f7   :  { %v6937_v51 = vadd.f32 %v6809_v19, %v6483_v49  ;;  %v6191_v60 = vpop.f32.mrf.mxu0  ;;  %v15446_v19 = vld [vmem:[#allocation45_spill] sm:$0xff] }
 0x6f8   :  { %v6811_v15 = vpop.f32.mrf.mxu1  ;;  %v6484_v45 = vmax.f32 %v6402_v48, 0.0  ;;  %v6314_v6 = vadd.f32 %v6191_v60, %v13793_v11 }
 0x6f9   :  { %7019 = vst [vmem:[#allocation2 + $0x210] sm:$0xff] %v6937_v51  ;;  %v6812_v42 = vadd.f32 %v14235_v41, %v6811_v15  ;;  %v9449_v22 = vpop.f32.mrf.mxu0 }
 0x6fa   :  { %v9612_v28 = vpop.f32.mrf.mxu1  ;;  %v6403_v31 = vadd.f32 %v14228_v50, %v6314_v6 }
 0x6fb   :  { %v6938_v16 = vadd.f32 %v6812_v42, %v6484_v45  ;;  %v6194_v0 = vpop.f32.mrf.mxu0  ;;  %v15447_v42 = vld [vmem:[#allocation48_spill] sm:$0xff] }
 0x6fc   :  { %v6816_v13 = vpop.f32.mrf.mxu1  ;;  %v6485_v38 = vmax.f32 %v6403_v31, 0.0  ;;  %v6315_v8 = vadd.f32 %v6194_v0, %v15443_v14 }
 0x6fd   :  { %7020 = vst [vmem:[#allocation2 + $0x218] sm:$0xff] %v6938_v16  ;;  %v6817_v58 = vadd.f32 %v14235_v41, %v6816_v13  ;;  %v9450_v57 = vpop.f32.mrf.mxu0 }
 0x6fe   :  { %v9615_v18 = vpop.f32.mrf.mxu1  ;;  %v6404_v44 = vadd.f32 %v14228_v50, %v6315_v8 }
 0x6ff   :  { %v6939_v11 = vadd.f32 %v6817_v58, %v6485_v38  ;;  %v6199_v2 = vpop.f32.mrf.mxu0  ;;  %v15448_v58 = vld [vmem:[#allocation121_spill] sm:$0xff] }
 0x700   :  { %v6819_v36 = vpop.f32.mrf.mxu1  ;;  %v6486_v33 = vmax.f32 %v6404_v44, 0.0  ;;  %v6316_v26 = vadd.f32 %v6199_v2, %v15444_v9 }
 0x701   :  { %7021 = vst [vmem:[#allocation2 + $0x220] sm:$0xff] %v6939_v11  ;;  %v6820_v59 = vadd.f32 %v14235_v41, %v6819_v36  ;;  %v9453_v23 = vpop.f32.mrf.mxu0 }
 0x702   :  { %v9616_v10 = vpop.f32.mrf.mxu1  ;;  %v6405_v62 = vadd.f32 %v14228_v50, %v6316_v26 }
 0x703   :  { %v6940_v17 = vadd.f32 %v6820_v59, %v6486_v33  ;;  %v6202_v32 = vpop.f32.mrf.mxu0 }
 0x704   :  { %v6824_v54 = vpop.f32.mrf.mxu1  ;;  %v6487_v35 = vmax.f32 %v6405_v62, 0.0  ;;  %v6317_v63 = vadd.f32 %v6202_v32, %v15445_v7 }
 0x705   :  { %7022 = vst [vmem:[#allocation2 + $0x228] sm:$0xff] %v6940_v17  ;;  %v6825_v20 = vadd.f32 %v14235_v41, %v6824_v54  ;;  %v9454_v56 = vpop.f32.mrf.mxu0 }
 0x706   :  { %v9619_v25 = vpop.f32.mrf.mxu1  ;;  %v6406_v29 = vadd.f32 %v14228_v50, %v6317_v63 }
 0x707   :  { %v6941_v53 = vadd.f32 %v6825_v20, %v6487_v35  ;;  %v6207_v12 = vpop.f32.mrf.mxu0 }
 0x708   :  { %v6827_v3 = vpop.f32.mrf.mxu1  ;;  %v6488_v37 = vmax.f32 %v6406_v29, 0.0  ;;  %v6318_v40 = vadd.f32 %v6207_v12, %v13829_v47 }
 0x709   :  { %7023 = vst [vmem:[#allocation2 + $0x230] sm:$0xff] %v6941_v53  ;;  %v6828_v30 = vadd.f32 %v14235_v41, %v6827_v3  ;;  %v9457_v21 = vpop.f32.mrf.mxu0 }
 0x70a   :  { %v9620_v34 = vpop.f32.mrf.mxu1  ;;  %v6407_v4 = vadd.f32 %v14228_v50, %v6318_v40 }
 0x70b   :  { %v6942_v39 = vadd.f32 %v6828_v30, %v6488_v37  ;;  %v6210_v49 = vpop.f32.mrf.mxu0  ;;  %v15449_v37 = vld [vmem:[#allocation55_spill] sm:$0xff] }
 0x70c   :  { %v6832_v61 = vpop.f32.mrf.mxu1  ;;  %v6489_v43 = vmax.f32 %v6407_v4, 0.0  ;;  %v6319_v55 = vadd.f32 %v6210_v49, %v15446_v19 }
 0x70d   :  { %7024 = vst [vmem:[#allocation2 + $0x238] sm:$0xff] %v6942_v39  ;;  %v6833_v1 = vadd.f32 %v14235_v41, %v6832_v61  ;;  %v9458_v48 = vpop.f32.mrf.mxu0 }
 0x70e   :  { %v9623_v51 = vpop.f32.mrf.mxu1  ;;  %v6408_v60 = vadd.f32 %v14228_v50, %v6319_v55 }
 0x70f   :  { %v6943_v47 = vadd.f32 %v6833_v1, %v6489_v43  ;;  %v6215_v15 = vpop.f32.mrf.mxu0 }
 0x710   :  { %v6835_v45 = vpop.f32.mrf.mxu1  ;;  %v6490_v6 = vmax.f32 %v6408_v60, 0.0  ;;  %v6320_v22 = vadd.f32 %v6215_v15, %v15447_v42 }
 0x711   :  { %7025 = vst [vmem:[#allocation2 + $0x240] sm:$0xff] %v6943_v47  ;;  %v6836_v28 = vadd.f32 %v14235_v41, %v6835_v45  ;;  %v9461_v31 = vpop.f32.mrf.mxu0 }
 0x712   :  { %v9624_v16 = vpop.f32.mrf.mxu1  ;;  %v6409_v0 = vadd.f32 %v14228_v50, %v6320_v22 }
 0x713   :  { %v6944_v13 = vadd.f32 %v6836_v28, %v6490_v6  ;;  %v6218_v38 = vpop.f32.mrf.mxu0 }
 0x714   :  { %v6840_v14 = vpop.f32.mrf.mxu1  ;;  %v6491_v8 = vmax.f32 %v6409_v0, 0.0  ;;  %v6321_v57 = vadd.f32 %v6218_v38, %v15448_v58 }
 0x715   :  { %7026 = vst [vmem:[#allocation2 + $0x248] sm:$0xff] %v6944_v13  ;;  %v6841_v18 = vadd.f32 %v14235_v41, %v6840_v14  ;;  %v9462_v44 = vpop.f32.mrf.mxu0 }
 0x716   :  { %v9627_v11 = vpop.f32.mrf.mxu1  ;;  %v6410_v2 = vadd.f32 %v14228_v50, %v6321_v57 }
 0x717   :  { %v6945_v36 = vadd.f32 %v6841_v18, %v6491_v8  ;;  %v6223_v33 = vpop.f32.mrf.mxu0 }
 0x718   :  { %v6843_v9 = vpop.f32.mrf.mxu1  ;;  %v6492_v26 = vmax.f32 %v6410_v2, 0.0  ;;  %v6322_v59 = vadd.f32 %v6223_v33, %v13865_v24 }
 0x719   :  { %7027 = vst [vmem:[#allocation2 + $0x250] sm:$0xff] %v6945_v36  ;;  %v6844_v23 = vadd.f32 %v14235_v41, %v6843_v9  ;;  %v9465_v10 = vpop.f32.mrf.mxu0 }
 0x71a   :  { %v9628_v62 = vpop.f32.mrf.mxu1  ;;  %v6411_v17 = vadd.f32 %v14228_v50, %v6322_v59 }
 0x71b   :  { %v6946_v32 = vadd.f32 %v6844_v23, %v6492_v26  ;;  %v6226_v54 = vpop.f32.mrf.mxu0 }
 0x71c   :  { %v6848_v35 = vpop.f32.mrf.mxu1  ;;  %v6493_v7 = vmax.f32 %v6411_v17, 0.0  ;;  %v6323_v63 = vadd.f32 %v6226_v54, %v13872_v52 }
 0x71d   :  { %7028 = vst [vmem:[#allocation2 + $0x258] sm:$0xff] %v6946_v32  ;;  %v6849_v20 = vadd.f32 %v14235_v41, %v6848_v35  ;;  %v9466_v56 = vpop.f32.mrf.mxu0 }
 0x71e   :  { %v9631_v25 = vpop.f32.mrf.mxu1  ;;  %v6412_v29 = vadd.f32 %v14228_v50, %v6323_v63 }
 0x71f   :  { %v6947_v24 = vadd.f32 %v6849_v20, %v6493_v7  ;;  %v6231_v53 = vpop.f32.mrf.mxu0 }
 0x720   :  { %v6851_v12 = vpop.f32.mrf.mxu1  ;;  %v6494_v3 = vmax.f32 %v6412_v29, 0.0  ;;  %v6324_v40 = vadd.f32 %v6231_v53, %v15449_v37 }
 0x721   :  { %7029 = vst [vmem:[#allocation2 + $0x260] sm:$0xff] %v6947_v24  ;;  %v6852_v30 = vadd.f32 %v14235_v41, %v6851_v12  ;;  %v9469_v21 = vpop.f32.mrf.mxu0 }
 0x722   :  { %v9632_v34 = vpop.f32.mrf.mxu1  ;;  %v6413_v4 = vadd.f32 %v14228_v50, %v6324_v40 }
 0x723   :  { %v6948_v52 = vadd.f32 %v6852_v30, %v6494_v3  ;;  %v6234_v39 = vpop.f32.mrf.mxu0 }
 0x724   :  { %v6856_v49 = vpop.f32.mrf.mxu1  ;;  %v6495_v61 = vmax.f32 %v6413_v4, 0.0  ;;  %v6325_v43 = vadd.f32 %v6234_v39, %v13890_v5 }
 0x725   :  { %7030 = vst [vmem:[#allocation2 + $0x268] sm:$0xff] %v6948_v52  ;;  %v6857_v19 = vadd.f32 %v14235_v41, %v6856_v49  ;;  %v9470_v55 = vpop.f32.mrf.mxu0 }
 0x726   :  { %v9635_v1 = vpop.f32.mrf.mxu1  ;;  %v6414_v48 = vadd.f32 %v14228_v50, %v6325_v43 }
 0x727   :  { %v6949_v51 = vadd.f32 %v6857_v19, %v6495_v61  ;;  %v6239_v60 = vpop.f32.mrf.mxu0 }
 0x728   :  { %v6859_v47 = vpop.f32.mrf.mxu1  ;;  %v6496_v15 = vmax.f32 %v6414_v48, 0.0  ;;  %v6326_v45 = vadd.f32 %v6239_v60, %v13901_v27 }
 0x729   :  { %7031 = vst [vmem:[#allocation2 + $0x270] sm:$0xff] %v6949_v51  ;;  %v6860_v6 = vadd.f32 %v14235_v41, %v6859_v47  ;;  %v9473_v42 = vpop.f32.mrf.mxu0 }
 0x72a   :  { %v9636_v22 = vpop.f32.mrf.mxu1  ;;  %v6415_v28 = vadd.f32 %v14228_v50, %v6326_v45 }
 0x72b   :  { %v6950_v5 = vadd.f32 %v6860_v6, %v6496_v15  ;;  %v6242_v31 = vpop.f32.mrf.mxu0 }
 0x72c   :  { %v6864_v16 = vpop.f32.mrf.mxu1  ;;  %v6497_v0 = vmax.f32 %v6415_v28, 0.0  ;;  %v6327_v13 = vadd.f32 %v6242_v31, %v13912_v46 }
 0x72d   :  { %7032 = vst [vmem:[#allocation2 + $0x278] sm:$0xff] %v6950_v5  ;;  %v6865_v38 = vadd.f32 %v14235_v41, %v6864_v16  ;;  %v9474_v14 = vpop.f32.mrf.mxu0 }
 0x72e   :  { %v9639_v8 = vpop.f32.mrf.mxu1  ;;  %v6416_v58 = vadd.f32 %v14228_v50, %v6327_v13 }
 0x72f   :  { %v6951_v27 = vadd.f32 %v6865_v38, %v6497_v0 }
 0x730   :  { %v6867_v57 = vpop.f32.mrf.mxu1  ;;  %v6498_v18 = vmax.f32 %v6416_v58, 0.0 }
 0x731   :  { %7033 = vst [vmem:[#allocation2 + $0x280] sm:$0xff] %v6951_v27  ;;  %v6868_v44 = vadd.f32 %v14235_v41, %v6867_v57 }
 0x732   :  { %v9640_v11 = vpop.f32.mrf.mxu1 }
 0x733   :  { %v6952_v2 = vadd.f32 %v6868_v44, %v6498_v18 }
 0x735   :  { %7034 = vst [vmem:[#allocation2 + $0x288] sm:$0xff] %v6952_v2 }
 0x736   :  { %9752 = shalt.err (!%p9749_p4)
}
 0x737   :  { %s9766_s28 = smov 128   ;;  %s9767_s29 = smov 8  }
 0x738   :  { %7046 = dma.vmem_to_hbm [thread:$0]  %s7041_s4, 10496, %s14374_s5, [#allocation3], %s9766_s28, %s9766_s28, %s9767_s29  }
 0x739   :  { %9761 = dma.done.wait [#allocation3], 10496  }
 0x73a   :  { %9762 = vsyncadd [#allocation3], 4294956800 }
 0x73b   :  { %7050 = vsyncpa [#allocation3], 1 }

</bundles_post_ra>
